<compile_context>
chip_gen: v7x
topology: tpu7x:2x2x1
jax: 0.10.0
libtpu: 0.0.40
codegen_flags: <defaults>
</compile_context>

<pallas_src>
import math
import functools

import jax
import jax.numpy as jnp
from jax.experimental import pallas as pl
from jax.experimental.pallas import tpu as pltpu

BN_EPS = 1e-5
ACT_DTYPE = jnp.bfloat16          # inter-layer activation dtype (halves HBM traffic)
VMEM_LIMIT = 32 * 1024 * 1024     # safe on v5e/v6e (128 MiB) and v7x (64 MiB)


def _const_spec(arr):
    """Full-array block with a constant index map (weights/bias resident)."""
    nd = arr.ndim
    return pl.BlockSpec(arr.shape, lambda *args, _nd=nd: (0,) * _nd)


# ----------------------------------------------------------------------------
# Pallas kernel: 1-D conv (stride 1, arbitrary dilation) with fused
# BN-folded bias + activation.  Time on lanes; K taps = K accumulated matmuls.
# ----------------------------------------------------------------------------
def _conv_act_kernel(K, dilation, act, x_ref, *refs):
    o_ref = refs[-1]
    T = o_ref.shape[-1]

    def tap_matmul(w_ref, b_ref):
        acc = b_ref[...].astype(jnp.float32)          # (Cout, 1) -> broadcasts over T
        for k in range(K):                            # static unroll over taps
            xs = x_ref[:, k * dilation: k * dilation + T]
            acc = acc + jnp.dot(w_ref[k], xs, preferred_element_type=jnp.float32)
        return acc                                    # (Cout, T) f32

    if act in ("linear", "prelu"):
        w_ref, b_ref = refs[0], refs[1]
        z = tap_matmul(w_ref, b_ref)
        if act == "prelu":
            alpha = refs[2][...].astype(jnp.float32)  # (Cout, 1)
            z = jnp.where(z >= 0.0, z, alpha * z)
        o_ref[...] = z.astype(o_ref.dtype)
    else:  # "glu": v * sigmoid(g)   |   "gated": tanh(v) * sigmoid(g)
        wv_ref, bv_ref, wg_ref, bg_ref = refs[0], refs[1], refs[2], refs[3]
        zv = tap_matmul(wv_ref, bv_ref)
        zg = tap_matmul(wg_ref, bg_ref)
        val = jnp.tanh(zv) if act == "gated" else zv
        o_ref[...] = (val * jax.nn.sigmoid(zg)).astype(o_ref.dtype)


def _fold_bn(weight, bias, bn):
    """Fold eval-mode BatchNorm1d (running_mean=0, running_var=1) into W, b."""
    if bn is None:
        return weight, bias
    scale = bn["gamma"] / jnp.sqrt(1.0 + BN_EPS)
    return weight * scale[:, None, None], bias * scale + bn["beta"]


def _wstack(w):
    """(Cout, Cin, K) -> (K, Cout, Cin) bf16 MXU-lhs tap stack."""
    return jnp.transpose(w, (2, 0, 1)).astype(jnp.bfloat16)


def conv1d_lanes(x_bct, weight, bias, *, dilation=1, bn=None, act="linear",
                 alpha=None, out_dtype=ACT_DTYPE):
    """'same'-padded stride-1 conv.  x_bct: (B, Cin, T) -> (B, Cout_eff, T)."""
    B, Cin, T = x_bct.shape
    Cout, Cin_w, K = weight.shape
    assert Cin_w == Cin, (Cin_w, Cin)

    weight, bias = _fold_bn(weight, bias, bn)

    pad_total = (K - 1) * dilation
    pad_l = pad_total // 2
    pad_r = pad_total - pad_l
    x_pad = jnp.pad(x_bct, ((0, 0), (0, 0), (pad_l, pad_r))).astype(jnp.bfloat16)
    T_pad = T + pad_total

    if act in ("linear", "prelu"):
        n_out = Cout
        ops = [_wstack(weight), bias.reshape(Cout, 1).astype(jnp.float32)]
        if act == "prelu":
            ops.append(alpha.reshape(Cout, 1).astype(jnp.float32))
        n_mm = 1
    else:  # glu / gated: split value / gate halves -> two aligned matmul stacks
        n_out = Cout // 2
        wv, wg = weight[:n_out], weight[n_out:]
        bv, bg = bias[:n_out], bias[n_out:]
        ops = [_wstack(wv), bv.reshape(n_out, 1).astype(jnp.float32),
               _wstack(wg), bg.reshape(n_out, 1).astype(jnp.float32)]
        n_mm = 2

    cost = pl.CostEstimate(
        flops=2 * B * K * n_out * Cin * T * n_mm,
        transcendentals=0 if n_mm == 1 else B * n_out * T * 2,
        bytes_accessed=int(x_pad.size * 2 + B * n_out * T * 2
                           + sum(o.size * o.dtype.itemsize for o in ops)),
    )

    out = pl.pallas_call(
        functools.partial(_conv_act_kernel, K, dilation, act),
        out_shape=jax.ShapeDtypeStruct((B, n_out, T), out_dtype),
        grid=(B,),
        in_specs=[pl.BlockSpec((None, Cin, T_pad), lambda b: (b, 0, 0))]
                 + [_const_spec(o) for o in ops],
        out_specs=pl.BlockSpec((None, n_out, T), lambda b: (b, 0, 0)),
        compiler_params=pltpu.CompilerParams(
            dimension_semantics=("parallel",),
            vmem_limit_bytes=VMEM_LIMIT),
        cost_estimate=cost,
    )(x_pad, *ops)
    return out


def conv1d_strided(x_bct, weight, bias, *, stride, bn=None, act="prelu",
                   alpha=None, out_dtype=ACT_DTYPE):
    """'same'-padded strided conv (down-sampler).  The stride-phase gather is
    done once in XLA (K folded onto the contraction axis), then a single
    lane-dense Pallas matmul handles W @ patches."""
    B, Cin, T = x_bct.shape
    Cout, _, K = weight.shape
    T_out = -(-T // stride)
    span = (T_out - 1) * stride + K
    pad_total = max(span - T, 0)
    pad_l = pad_total // 2
    pad_r = pad_total - pad_l
    x_pad = jnp.pad(x_bct, ((0, 0), (0, 0), (pad_l, pad_r)))
    taps = [x_pad[:, :, k: k + (T_out - 1) * stride + 1: stride] for k in range(K)]
    patches = jnp.concatenate(taps, axis=1)                       # (B, K*Cin, T_out)
    w_flat = jnp.transpose(weight, (0, 2, 1)).reshape(Cout, K * Cin, 1)
    return conv1d_lanes(patches, w_flat, bias, dilation=1, bn=bn, act=act,
                        alpha=alpha, out_dtype=out_dtype)


def conv_transpose1d(x_bct, weight_t, bias, *, stride, bn=None, act="glu",
                     out_dtype=ACT_DTYPE):
    """ConvTranspose1d with 'same'-style output length T*stride: zero-stuff then
    stride-1 conv with the flipped kernel (taps realised in-kernel).
    weight_t: (Cin, Cout, K) as in torch.nn.ConvTranspose1d."""
    # TODO(synk): polyphase decomposition would avoid the (stride-1)/stride
    #             wasted MXU work from zero-stuffed columns.
    B, Cin, T = x_bct.shape
    z = jnp.zeros((B, Cin, T * stride), x_bct.dtype)
    z = z.at[:, :, ::stride].set(x_bct)
    w_conv = jnp.flip(weight_t, axis=-1).transpose(1, 0, 2)       # (Cout, Cin, K)
    return conv1d_lanes(z, w_conv, bias, dilation=1, bn=bn, act=act,
                        out_dtype=out_dtype)


# ----------------------------------------------------------------------------
# Fused WaveNet residual block (single pallas_call per block)
# ----------------------------------------------------------------------------
def _wavenet_block_kernel(K, dilation, pad_l,
                          x_ref, skip_ref,
                          wv_ref, bv_ref, wg_ref, bg_ref,
                          wr_ref, br_ref, ws_ref, bs_ref,
                          h_out_ref, skip_out_ref):
    T = h_out_ref.shape[-1]
    zv = bv_ref[...].astype(jnp.float32)
    zg = bg_ref[...].astype(jnp.float32)
    for k in range(K):                                           # dilated conv taps
        xs = x_ref[:, k * dilation: k * dilation + T]
        zv = zv + jnp.dot(wv_ref[k], xs, preferred_element_type=jnp.float32)
        zg = zg + jnp.dot(wg_ref[k], xs, preferred_element_type=jnp.float32)
    a = (jnp.tanh(zv) * jax.nn.sigmoid(zg)).astype(jnp.bfloat16)  # (gd, T)
    res = jnp.dot(wr_ref[...], a, preferred_element_type=jnp.float32) + br_ref[...]
    skp = jnp.dot(ws_ref[...], a, preferred_element_type=jnp.float32) + bs_ref[...]
    h_in = x_ref[:, pad_l: pad_l + T].astype(jnp.float32)         # un-padded residual input
    h_out_ref[...] = (h_in + res).astype(h_out_ref.dtype)
    skip_out_ref[...] = (skip_ref[...].astype(jnp.float32) + skp).astype(skip_out_ref.dtype)


def wavenet_block(h_bct, skip_bct, blk, dilation):
    B, rd, T = h_bct.shape
    gd = blk["res"]["w"].shape[1]
    sd = blk["skip"]["w"].shape[0]
    K = blk["dil"]["w"].shape[-1]

    w_dil, b_dil = _fold_bn(blk["dil"]["w"], blk["dil"]["b"], blk["bn"])
    wv, wg = w_dil[:gd], w_dil[gd:]          # value / gate halves of the 2*gd conv
    bv, bg = b_dil[:gd], b_dil[gd:]

    pad_total = (K - 1) * dilation
    pad_l = pad_total // 2
    pad_r = pad_total - pad_l
    x_pad = jnp.pad(h_bct, ((0, 0), (0, 0), (pad_l, pad_r))).astype(jnp.bfloat16)
    T_pad = T + pad_total

    ops = [
        _wstack(wv), bv.reshape(gd, 1).astype(jnp.float32),
        _wstack(wg), bg.reshape(gd, 1).astype(jnp.float32),
        blk["res"]["w"][:, :, 0].astype(jnp.bfloat16),
        blk["res"]["b"].reshape(rd, 1).astype(jnp.float32),
        blk["skip"]["w"][:, :, 0].astype(jnp.bfloat16),
        blk["skip"]["b"].reshape(sd, 1).astype(jnp.float32),
    ]

    h_out, skip_out = pl.pallas_call(
        functools.partial(_wavenet_block_kernel, K, dilation, pad_l),
        out_shape=(jax.ShapeDtypeStruct((B, rd, T), ACT_DTYPE),
                   jax.ShapeDtypeStruct((B, sd, T), jnp.float32)),
        grid=(B,),
        in_specs=[pl.BlockSpec((None, rd, T_pad), lambda b: (b, 0, 0)),
                  pl.BlockSpec((None, sd, T), lambda b: (b, 0, 0))]
                 + [_const_spec(o) for o in ops],
        out_specs=(pl.BlockSpec((None, rd, T), lambda b: (b, 0, 0)),
                   pl.BlockSpec((None, sd, T), lambda b: (b, 0, 0))),
        compiler_params=pltpu.CompilerParams(
            dimension_semantics=("parallel",),
            vmem_limit_bytes=VMEM_LIMIT),
    )(x_pad, skip_bct, *ops)
    return h_out, skip_out


def wavenet_forward(p, dilations, h_bct):
    """dilations: static Python ints (from the config, NOT from params)."""
    B, rd, T = h_bct.shape
    sd = p["blocks"][0]["skip"]["w"].shape[0]
    skip = jnp.zeros((B, sd, T), jnp.float32)
    for blk, d in zip(p["blocks"], dilations):
        h_bct, skip = wavenet_block(h_bct, skip, blk, d)
    return skip


# ----------------------------------------------------------------------------
# Deterministic parameter construction (params contain ONLY arrays; all
# structural ints — dilation, stride, kernel sizes — stay static in the cfgs).
# ----------------------------------------------------------------------------
class KeyGen:
    def __init__(self, key):
        self.key = key

    def __call__(self):
        self.key, sub = jax.random.split(self.key)
        return sub


def init_conv(kg, cin, cout, k):
    w = jax.random.normal(kg(), (cout, cin, k), jnp.float32) / math.sqrt(cin * k)
    b = jnp.zeros((cout,), jnp.float32)
    return {"w": w, "b": b}


def init_bn(c):
    return {"gamma": jnp.ones((c,), jnp.float32), "beta": jnp.zeros((c,), jnp.float32)}


def init_wavenet(kg, residual_dim, gate_dim, skip_dim, kernel_size, dilation_list, n_stages):
    blocks = []
    for _ in range(n_stages):
        for _d in dilation_list:
            blocks.append({
                "dil": init_conv(kg, residual_dim, 2 * gate_dim, kernel_size),
                "bn": init_bn(2 * gate_dim),
                "res": init_conv(kg, gate_dim, residual_dim, 1),
                "skip": init_conv(kg, gate_dim, skip_dim, 1),
            })
    return {"blocks": blocks}


def init_encoder(kg, cfg):
    rd, gd, sd, ks = cfg["residual_dim"], cfg["gate_dim"], cfg["skip_dim"], cfg["kernel_size"]
    od, dsf = cfg["output_dim"], cfg["down_sample_factor"]
    p = {
        "in_conv": init_conv(kg, cfg["input_dim"], rd, 5),
        "in_bn": init_bn(rd),
        "in_alpha": jnp.full((rd,), 0.25, jnp.float32),
        "wn": init_wavenet(kg, rd, gd, sd, ks, cfg["dilation_list"], cfg["n_stages"]),
        "out1_conv": init_conv(kg, sd, od, ks),
        "out1_bn": init_bn(od),
        "out1_alpha": jnp.full((od,), 0.25, jnp.float32),
        "out2_conv": init_conv(kg, od, od, 1),
    }
    if dsf > 1:
        rw = (4 + dsf % 2) * dsf
        p["ds_conv"] = init_conv(kg, rd, rd, rw)
        p["ds_bn"] = init_bn(rd)
        p["ds_alpha"] = jnp.full((rd,), 0.25, jnp.float32)
    return p


def encoder_forward(p, cfg, x_bct):
    h = conv1d_lanes(x_bct, p["in_conv"]["w"], p["in_conv"]["b"], bn=p["in_bn"],
                     act="prelu", alpha=p["in_alpha"])
    if cfg["down_sample_factor"] > 1:
        h = conv1d_strided(h, p["ds_conv"]["w"], p["ds_conv"]["b"],
                           stride=cfg["down_sample_factor"], bn=p["ds_bn"],
                           act="prelu", alpha=p["ds_alpha"])
    h = wavenet_forward(p["wn"], cfg["dilation_list"] * cfg["n_stages"], h)
    h = conv1d_lanes(h, p["out1_conv"]["w"], p["out1_conv"]["b"], bn=p["out1_bn"],
                     act="prelu", alpha=p["out1_alpha"])
    h = conv1d_lanes(h, p["out2_conv"]["w"], p["out2_conv"]["b"], act="linear")
    return h


def init_decoder(kg, cfg):
    rd, gd, sd, ks = cfg["residual_dim"], cfg["gate_dim"], cfg["skip_dim"], cfg["kernel_size"]
    usf = cfg["up_sample_factor"]
    p = {
        "in_conv": init_conv(kg, cfg["input_dim"], 2 * rd, ks),
        "in_bn": init_bn(2 * rd),
        "wn": init_wavenet(kg, rd, gd, sd, ks, cfg["dilation_list"], cfg["n_stages"]),
        "out1_conv": init_conv(kg, sd, 2 * sd, ks),
        "out1_bn": init_bn(2 * sd),
        "out2_conv": init_conv(kg, sd, cfg["output_dim"], 15),
    }
    if usf > 1:
        rw = (4 + usf % 2) * usf
        p["up_w"] = jax.random.normal(kg(), (rd, 2 * rd, rw), jnp.float32) / math.sqrt(rd * rw)
        p["up_b"] = jnp.zeros((2 * rd,), jnp.float32)
        p["up_bn"] = init_bn(2 * rd)
    return p


def decoder_forward(p, cfg, x_bct):
    h = conv1d_lanes(x_bct, p["in_conv"]["w"], p["in_conv"]["b"], bn=p["in_bn"], act="glu")
    if cfg["up_sample_factor"] > 1:
        h = conv_transpose1d(h, p["up_w"], p["up_b"], stride=cfg["up_sample_factor"],
                             bn=p["up_bn"], act="glu")
    h = wavenet_forward(p["wn"], cfg["dilation_list"] * cfg["n_stages"], h)
    h = conv1d_lanes(h, p["out1_conv"]["w"], p["out1_conv"]["b"], bn=p["out1_bn"], act="glu")
    h = conv1d_lanes(h, p["out2_conv"]["w"], p["out2_conv"]["b"], act="linear")
    return h


# ----------------------------------------------------------------------------
# UNetEncoder / UNetDecoder / AEUNet
# ----------------------------------------------------------------------------
def unet_encoder_forward(params, cfgs, embedding_dims, x_bct):
    list_z = []
    h = x_bct
    for p, cfg, dim in zip(params, cfgs, embedding_dims):
        h = encoder_forward(p, cfg, h)
        e, h = h[:, :dim, :], h[:, dim:, :]
        list_z.append(e)                       # use_batchnorm=False -> nn.Identity
    return list_z


def unet_decoder_forward(params, cfgs, list_h):
    pair = []
    for p, cfg, hi in zip(params, cfgs, list_h):
        pair = pair + [hi]
        h = decoder_forward(p, cfg, jnp.concatenate(pair, axis=1))
        pair = [h]
    return pair[0]


def aeunet_forward(params, enc_cfgs, embedding_dims, dec_cfgs, x_bct):
    list_zx = unet_encoder_forward(params["encoders"], enc_cfgs, embedding_dims, x_bct)
    xhat_bct = unet_decoder_forward(params["decoders"], dec_cfgs, list_zx[::-1])
    return xhat_bct.astype(jnp.float32)


# ----------------------------------------------------------------------------
# Main
# ----------------------------------------------------------------------------
if __name__ == "__main__":
    B, C_IN, T = 2, 4, 16

    enc_cfgs = [
        dict(input_dim=4, output_dim=8, residual_dim=8, gate_dim=8, skip_dim=8,
             kernel_size=3, dilation_list=[1, 2], n_stages=1, down_sample_factor=2),
        dict(input_dim=4, output_dim=8, residual_dim=8, gate_dim=8, skip_dim=8,
             kernel_size=3, dilation_list=[1, 2], n_stages=1, down_sample_factor=2),
    ]
    embedding_dims = [4, 8]
    dec_cfgs = [
        dict(input_dim=8, output_dim=4, residual_dim=8, gate_dim=8, skip_dim=8,
             kernel_size=3, dilation_list=[1, 2], n_stages=1, up_sample_factor=2),
        dict(input_dim=8, output_dim=4, residual_dim=8, gate_dim=8, skip_dim=8,
             kernel_size=3, dilation_list=[1, 2], n_stages=1, up_sample_factor=2),
    ]

    root = jax.random.PRNGKey(0)
    x_key, param_key = jax.random.split(root)
    kg = KeyGen(param_key)
    params = {
        "encoders": [init_encoder(kg, c) for c in enc_cfgs],
        "decoders": [init_decoder(kg, c) for c in dec_cfgs],
    }

    x_bct = jax.random.normal(x_key, (B, C_IN, T), jnp.float32)

    fwd = jax.jit(lambda p, x: aeunet_forward(p, enc_cfgs, embedding_dims, dec_cfgs, x))
    y_bct = fwd(params, x_bct)
    y_bct = jax.block_until_ready(y_bct)

    assert y_bct.shape == (B, C_IN, T), y_bct.shape
    assert bool(jnp.all(jnp.isfinite(y_bct)))
    print("KERNEL_OK")
</pallas_src>

<mosaic_0001>
module attributes {stable_mosaic.version = 11 : i64} {
  func.func @_conv_act_kernel(%arg0: i32, %arg1: memref<1x4x20xbf16, #tpu.memory_space<vmem>>, %arg2: memref<5x8x4xbf16, #tpu.memory_space<vmem>>, %arg3: memref<8x1xf32, #tpu.memory_space<vmem>>, %arg4: memref<8x1xf32, #tpu.memory_space<vmem>>, %arg5: memref<1x8x16xbf16, #tpu.memory_space<vmem>>) attributes {dimension_semantics = [#tpu.dimension_semantics<parallel>], iteration_bounds = array<i64: 2>, scalar_prefetch = 0 : i64, scratch_operands = 0 : i64, tpu.core_type = #tpu.core_type<tc>, window_params = [{transform_indices = @transform_0, window_bounds = array<i64: 1, 4, 20>}, {pipeline_mode = #tpu.pipeline_mode<synchronous>, transform_indices = @transform_1, window_bounds = array<i64: 5, 8, 4>}, {pipeline_mode = #tpu.pipeline_mode<synchronous>, transform_indices = @transform_2, window_bounds = array<i64: 8, 1>}, {pipeline_mode = #tpu.pipeline_mode<synchronous>, transform_indices = @transform_3, window_bounds = array<i64: 8, 1>}, {transform_indices = @transform_4, window_bounds = array<i64: 1, 8, 16>}]} {
    %c0 = arith.constant 0 : index
    %c0_0 = arith.constant 0 : index
    %0 = vector.load %arg3[%c0, %c0_0] : memref<8x1xf32, #tpu.memory_space<vmem>>, vector<8x1xf32>
    %c0_1 = arith.constant 0 : index
    %c0_2 = arith.constant 0 : index
    %c0_3 = arith.constant 0 : index
    %1 = vector.load %arg1[%c0_1, %c0_2, %c0_3] : memref<1x4x20xbf16, #tpu.memory_space<vmem>>, vector<1x4x16xbf16>
    %2 = vector.shape_cast %1 : vector<1x4x16xbf16> to vector<4x16xbf16>
    %c0_4 = arith.constant 0 : index
    %c0_5 = arith.constant 0 : index
    %c0_6 = arith.constant 0 : index
    %3 = vector.load %arg2[%c0_4, %c0_5, %c0_6] : memref<5x8x4xbf16, #tpu.memory_space<vmem>>, vector<1x8x4xbf16>
    %4 = vector.shape_cast %3 : vector<1x8x4xbf16> to vector<8x4xbf16>
    %cst = arith.constant dense<0.000000e+00> : vector<8x16xf32>
    %5 = tpu.matmul %4, %2, %cst {dimension_numbers = #tpu.dot_dimension_numbers<[1], [0], [0], [1], [0, 0, 1, 1], [], []>} : vector<8x4xbf16>, vector<4x16xbf16>, vector<8x16xf32> -> vector<8x16xf32>
    %6 = vector.broadcast %0 : vector<8x1xf32> to vector<8x16xf32>
    %7 = arith.addf %6, %5 : vector<8x16xf32>
    %c0_7 = arith.constant 0 : index
    %c0_8 = arith.constant 0 : index
    %c1 = arith.constant 1 : index
    %8 = vector.load %arg1[%c0_7, %c0_8, %c1] : memref<1x4x20xbf16, #tpu.memory_space<vmem>>, vector<1x4x16xbf16>
    %9 = vector.shape_cast %8 : vector<1x4x16xbf16> to vector<4x16xbf16>
    %c1_9 = arith.constant 1 : index
    %c0_10 = arith.constant 0 : index
    %c0_11 = arith.constant 0 : index
    %10 = vector.load %arg2[%c1_9, %c0_10, %c0_11] : memref<5x8x4xbf16, #tpu.memory_space<vmem>>, vector<1x8x4xbf16>
    %11 = vector.shape_cast %10 : vector<1x8x4xbf16> to vector<8x4xbf16>
    %cst_12 = arith.constant dense<0.000000e+00> : vector<8x16xf32>
    %12 = tpu.matmul %11, %9, %cst_12 {dimension_numbers = #tpu.dot_dimension_numbers<[1], [0], [0], [1], [0, 0, 1, 1], [], []>} : vector<8x4xbf16>, vector<4x16xbf16>, vector<8x16xf32> -> vector<8x16xf32>
    %13 = arith.addf %7, %12 : vector<8x16xf32>
    %c0_13 = arith.constant 0 : index
    %c0_14 = arith.constant 0 : index
    %c2 = arith.constant 2 : index
    %14 = vector.load %arg1[%c0_13, %c0_14, %c2] : memref<1x4x20xbf16, #tpu.memory_space<vmem>>, vector<1x4x16xbf16>
    %15 = vector.shape_cast %14 : vector<1x4x16xbf16> to vector<4x16xbf16>
    %c2_15 = arith.constant 2 : index
    %c0_16 = arith.constant 0 : index
    %c0_17 = arith.constant 0 : index
    %16 = vector.load %arg2[%c2_15, %c0_16, %c0_17] : memref<5x8x4xbf16, #tpu.memory_space<vmem>>, vector<1x8x4xbf16>
    %17 = vector.shape_cast %16 : vector<1x8x4xbf16> to vector<8x4xbf16>
    %cst_18 = arith.constant dense<0.000000e+00> : vector<8x16xf32>
    %18 = tpu.matmul %17, %15, %cst_18 {dimension_numbers = #tpu.dot_dimension_numbers<[1], [0], [0], [1], [0, 0, 1, 1], [], []>} : vector<8x4xbf16>, vector<4x16xbf16>, vector<8x16xf32> -> vector<8x16xf32>
    %19 = arith.addf %13, %18 : vector<8x16xf32>
    %c0_19 = arith.constant 0 : index
    %c0_20 = arith.constant 0 : index
    %c3 = arith.constant 3 : index
    %20 = vector.load %arg1[%c0_19, %c0_20, %c3] : memref<1x4x20xbf16, #tpu.memory_space<vmem>>, vector<1x4x16xbf16>
    %21 = vector.shape_cast %20 : vector<1x4x16xbf16> to vector<4x16xbf16>
    %c3_21 = arith.constant 3 : index
    %c0_22 = arith.constant 0 : index
    %c0_23 = arith.constant 0 : index
    %22 = vector.load %arg2[%c3_21, %c0_22, %c0_23] : memref<5x8x4xbf16, #tpu.memory_space<vmem>>, vector<1x8x4xbf16>
    %23 = vector.shape_cast %22 : vector<1x8x4xbf16> to vector<8x4xbf16>
    %cst_24 = arith.constant dense<0.000000e+00> : vector<8x16xf32>
    %24 = tpu.matmul %23, %21, %cst_24 {dimension_numbers = #tpu.dot_dimension_numbers<[1], [0], [0], [1], [0, 0, 1, 1], [], []>} : vector<8x4xbf16>, vector<4x16xbf16>, vector<8x16xf32> -> vector<8x16xf32>
    %25 = arith.addf %19, %24 : vector<8x16xf32>
    %c0_25 = arith.constant 0 : index
    %c0_26 = arith.constant 0 : index
    %c4 = arith.constant 4 : index
    %26 = vector.load %arg1[%c0_25, %c0_26, %c4] : memref<1x4x20xbf16, #tpu.memory_space<vmem>>, vector<1x4x16xbf16>
    %27 = vector.shape_cast %26 : vector<1x4x16xbf16> to vector<4x16xbf16>
    %c4_27 = arith.constant 4 : index
    %c0_28 = arith.constant 0 : index
    %c0_29 = arith.constant 0 : index
    %28 = vector.load %arg2[%c4_27, %c0_28, %c0_29] : memref<5x8x4xbf16, #tpu.memory_space<vmem>>, vector<1x8x4xbf16>
    %29 = vector.shape_cast %28 : vector<1x8x4xbf16> to vector<8x4xbf16>
    %cst_30 = arith.constant dense<0.000000e+00> : vector<8x16xf32>
    %30 = tpu.matmul %29, %27, %cst_30 {dimension_numbers = #tpu.dot_dimension_numbers<[1], [0], [0], [1], [0, 0, 1, 1], [], []>} : vector<8x4xbf16>, vector<4x16xbf16>, vector<8x16xf32> -> vector<8x16xf32>
    %31 = arith.addf %25, %30 : vector<8x16xf32>
    %c0_31 = arith.constant 0 : index
    %c0_32 = arith.constant 0 : index
    %32 = vector.load %arg4[%c0_31, %c0_32] : memref<8x1xf32, #tpu.memory_space<vmem>>, vector<8x1xf32>
    %cst_33 = arith.constant 0.000000e+00 : f32
    %33 = vector.broadcast %cst_33 : f32 to vector<8x16xf32>
    %34 = arith.cmpf oge, %31, %33 : vector<8x16xf32>
    %35 = vector.broadcast %32 : vector<8x1xf32> to vector<8x16xf32>
    %36 = arith.mulf %35, %31 : vector<8x16xf32>
    %37 = arith.select %34, %31, %36 : vector<8x16xi1>, vector<8x16xf32>
    %38 = arith.truncf %37 : vector<8x16xf32> to vector<8x16xbf16>
    %c0_34 = arith.constant 0 : index
    %c0_35 = arith.constant 0 : index
    %c0_36 = arith.constant 0 : index
    %39 = vector.load %arg5[%c0_34, %c0_35, %c0_36] : memref<1x8x16xbf16, #tpu.memory_space<vmem>>, vector<1x8x16xbf16>
    %40 = vector.shape_cast %39 : vector<1x8x16xbf16> to vector<8x16xbf16>
    %41 = vector.shape_cast %38 : vector<8x16xbf16> to vector<1x8x16xbf16>
    tpu.vector_store %arg5[%c0_34, %c0_35, %c0_36], %41 {strides = array<i32>} : memref<1x8x16xbf16, #tpu.memory_space<vmem>>, vector<1x8x16xbf16>,
    return
  }
  func.func @transform_0(%arg0: i32) -> (i32, i32, i32) {
    %c0_i32 = arith.constant 0 : i32
    %c0_i32_0 = arith.constant 0 : i32
    %c0_i32_1 = arith.constant 0 : i32
    return %arg0, %c0_i32, %c0_i32_0 : i32, i32, i32
  }
  func.func @transform_1(%arg0: i32) -> (i32, i32, i32) {
    %c0_i32 = arith.constant 0 : i32
    %c0_i32_0 = arith.constant 0 : i32
    %c0_i32_1 = arith.constant 0 : i32
    %c0_i32_2 = arith.constant 0 : i32
    return %c0_i32, %c0_i32_0, %c0_i32_1 : i32, i32, i32
  }
  func.func @transform_2(%arg0: i32) -> (i32, i32) {
    %c0_i32 = arith.constant 0 : i32
    %c0_i32_0 = arith.constant 0 : i32
    %c0_i32_1 = arith.constant 0 : i32
    return %c0_i32, %c0_i32_0 : i32, i32
  }
  func.func @transform_3(%arg0: i32) -> (i32, i32) {
    %c0_i32 = arith.constant 0 : i32
    %c0_i32_0 = arith.constant 0 : i32
    %c0_i32_1 = arith.constant 0 : i32
    return %c0_i32, %c0_i32_0 : i32, i32
  }
  func.func @transform_4(%arg0: i32) -> (i32, i32, i32) {
    %c0_i32 = arith.constant 0 : i32
    %c0_i32_0 = arith.constant 0 : i32
    %c0_i32_1 = arith.constant 0 : i32
    return %arg0, %c0_i32, %c0_i32_0 : i32, i32, i32
  }
}

module attributes {stable_mosaic.version = 11 : i64} {
  func.func @_conv_act_kernel(%arg0: i32, %arg1: memref<1x64x8xbf16, #tpu.memory_space<vmem>>, %arg2: memref<1x8x64xbf16, #tpu.memory_space<vmem>>, %arg3: memref<8x1xf32, #tpu.memory_space<vmem>>, %arg4: memref<8x1xf32, #tpu.memory_space<vmem>>, %arg5: memref<1x8x8xbf16, #tpu.memory_space<vmem>>) attributes {dimension_semantics = [#tpu.dimension_semantics<parallel>], iteration_bounds = array<i64: 2>, scalar_prefetch = 0 : i64, scratch_operands = 0 : i64, tpu.core_type = #tpu.core_type<tc>, window_params = [{transform_indices = @transform_0, window_bounds = array<i64: 1, 64, 8>}, {pipeline_mode = #tpu.pipeline_mode<synchronous>, transform_indices = @transform_1, window_bounds = array<i64: 1, 8, 64>}, {pipeline_mode = #tpu.pipeline_mode<synchronous>, transform_indices = @transform_2, window_bounds = array<i64: 8, 1>}, {pipeline_mode = #tpu.pipeline_mode<synchronous>, transform_indices = @transform_3, window_bounds = array<i64: 8, 1>}, {transform_indices = @transform_4, window_bounds = array<i64: 1, 8, 8>}]} {
    %c0 = arith.constant 0 : index
    %c0_0 = arith.constant 0 : index
    %0 = vector.load %arg3[%c0, %c0_0] : memref<8x1xf32, #tpu.memory_space<vmem>>, vector<8x1xf32>
    %c0_1 = arith.constant 0 : index
    %c0_2 = arith.constant 0 : index
    %c0_3 = arith.constant 0 : index
    %1 = vector.load %arg1[%c0_1, %c0_2, %c0_3] : memref<1x64x8xbf16, #tpu.memory_space<vmem>>, vector<1x64x8xbf16>
    %2 = vector.shape_cast %1 : vector<1x64x8xbf16> to vector<64x8xbf16>
    %c0_4 = arith.constant 0 : index
    %c0_5 = arith.constant 0 : index
    %c0_6 = arith.constant 0 : index
    %3 = vector.load %arg2[%c0_4, %c0_5, %c0_6] : memref<1x8x64xbf16, #tpu.memory_space<vmem>>, vector<1x8x64xbf16>
    %4 = vector.shape_cast %3 : vector<1x8x64xbf16> to vector<8x64xbf16>
    %cst = arith.constant dense<0.000000e+00> : vector<8x8xf32>
    %5 = tpu.matmul %4, %2, %cst {dimension_numbers = #tpu.dot_dimension_numbers<[1], [0], [0], [1], [0, 0, 1, 1], [], []>} : vector<8x64xbf16>, vector<64x8xbf16>, vector<8x8xf32> -> vector<8x8xf32>
    %6 = vector.broadcast %0 : vector<8x1xf32> to vector<8x8xf32>
    %7 = arith.addf %6, %5 : vector<8x8xf32>
    %c0_7 = arith.constant 0 : index
    %c0_8 = arith.constant 0 : index
    %8 = vector.load %arg4[%c0_7, %c0_8] : memref<8x1xf32, #tpu.memory_space<vmem>>, vector<8x1xf32>
    %cst_9 = arith.constant 0.000000e+00 : f32
    %9 = vector.broadcast %cst_9 : f32 to vector<8x8xf32>
    %10 = arith.cmpf oge, %7, %9 : vector<8x8xf32>
    %11 = vector.broadcast %8 : vector<8x1xf32> to vector<8x8xf32>
    %12 = arith.mulf %11, %7 : vector<8x8xf32>
    %13 = arith.select %10, %7, %12 : vector<8x8xi1>, vector<8x8xf32>
    %14 = arith.truncf %13 : vector<8x8xf32> to vector<8x8xbf16>
    %c0_10 = arith.constant 0 : index
    %c0_11 = arith.constant 0 : index
    %c0_12 = arith.constant 0 : index
    %15 = vector.load %arg5[%c0_10, %c0_11, %c0_12] : memref<1x8x8xbf16, #tpu.memory_space<vmem>>, vector<1x8x8xbf16>
    %16 = vector.shape_cast %15 : vector<1x8x8xbf16> to vector<8x8xbf16>
    %17 = vector.shape_cast %14 : vector<8x8xbf16> to vector<1x8x8xbf16>
    tpu.vector_store %arg5[%c0_10, %c0_11, %c0_12], %17 {strides = array<i32>} : memref<1x8x8xbf16, #tpu.memory_space<vmem>>, vector<1x8x8xbf16>,
    return
  }
  func.func @transform_0(%arg0: i32) -> (i32, i32, i32) {
    %c0_i32 = arith.constant 0 : i32
    %c0_i32_0 = arith.constant 0 : i32
    %c0_i32_1 = arith.constant 0 : i32
    return %arg0, %c0_i32, %c0_i32_0 : i32, i32, i32
  }
  func.func @transform_1(%arg0: i32) -> (i32, i32, i32) {
    %c0_i32 = arith.constant 0 : i32
    %c0_i32_0 = arith.constant 0 : i32
    %c0_i32_1 = arith.constant 0 : i32
    %c0_i32_2 = arith.constant 0 : i32
    return %c0_i32, %c0_i32_0, %c0_i32_1 : i32, i32, i32
  }
  func.func @transform_2(%arg0: i32) -> (i32, i32) {
    %c0_i32 = arith.constant 0 : i32
    %c0_i32_0 = arith.constant 0 : i32
    %c0_i32_1 = arith.constant 0 : i32
    return %c0_i32, %c0_i32_0 : i32, i32
  }
  func.func @transform_3(%arg0: i32) -> (i32, i32) {
    %c0_i32 = arith.constant 0 : i32
    %c0_i32_0 = arith.constant 0 : i32
    %c0_i32_1 = arith.constant 0 : i32
    return %c0_i32, %c0_i32_0 : i32, i32
  }
  func.func @transform_4(%arg0: i32) -> (i32, i32, i32) {
    %c0_i32 = arith.constant 0 : i32
    %c0_i32_0 = arith.constant 0 : i32
    %c0_i32_1 = arith.constant 0 : i32
    return %arg0, %c0_i32, %c0_i32_0 : i32, i32, i32
  }
}

module attributes {stable_mosaic.version = 11 : i64} {
  func.func @_wavenet_block_kernel(%arg0: i32, %arg1: memref<1x8x10xbf16, #tpu.memory_space<vmem>>, %arg2: memref<1x8x8xf32, #tpu.memory_space<vmem>>, %arg3: memref<3x8x8xbf16, #tpu.memory_space<vmem>>, %arg4: memref<8x1xf32, #tpu.memory_space<vmem>>, %arg5: memref<3x8x8xbf16, #tpu.memory_space<vmem>>, %arg6: memref<8x1xf32, #tpu.memory_space<vmem>>, %arg7: memref<8x8xbf16, #tpu.memory_space<vmem>>, %arg8: memref<8x1xf32, #tpu.memory_space<vmem>>, %arg9: memref<8x8xbf16, #tpu.memory_space<vmem>>, %arg10: memref<8x1xf32, #tpu.memory_space<vmem>>, %arg11: memref<1x8x8xbf16, #tpu.memory_space<vmem>>, %arg12: memref<1x8x8xf32, #tpu.memory_space<vmem>>) attributes {dimension_semantics = [#tpu.dimension_semantics<parallel>], iteration_bounds = array<i64: 2>, scalar_prefetch = 0 : i64, scratch_operands = 0 : i64, tpu.core_type = #tpu.core_type<tc>, window_params = [{transform_indices = @transform_0, window_bounds = array<i64: 1, 8, 10>}, {transform_indices = @transform_1, window_bounds = array<i64: 1, 8, 8>}, {pipeline_mode = #tpu.pipeline_mode<synchronous>, transform_indices = @transform_2, window_bounds = array<i64: 3, 8, 8>}, {pipeline_mode = #tpu.pipeline_mode<synchronous>, transform_indices = @transform_3, window_bounds = array<i64: 8, 1>}, {pipeline_mode = #tpu.pipeline_mode<synchronous>, transform_indices = @transform_4, window_bounds = array<i64: 3, 8, 8>}, {pipeline_mode = #tpu.pipeline_mode<synchronous>, transform_indices = @transform_5, window_bounds = array<i64: 8, 1>}, {pipeline_mode = #tpu.pipeline_mode<synchronous>, transform_indices = @transform_6, window_bounds = array<i64: 8, 8>}, {pipeline_mode = #tpu.pipeline_mode<synchronous>, transform_indices = @transform_7, window_bounds = array<i64: 8, 1>}, {pipeline_mode = #tpu.pipeline_mode<synchronous>, transform_indices = @transform_8, window_bounds = array<i64: 8, 8>}, {pipeline_mode = #tpu.pipeline_mode<synchronous>, transform_indices = @transform_9, window_bounds = array<i64: 8, 1>}, {transform_indices = @transform_10, window_bounds = array<i64: 1, 8, 8>}, {transform_indices = @transform_11, window_bounds = array<i64: 1, 8, 8>}]} {
    %c0 = arith.constant 0 : index
    %c0_0 = arith.constant 0 : index
    %0 = vector.load %arg4[%c0, %c0_0] : memref<8x1xf32, #tpu.memory_space<vmem>>, vector<8x1xf32>
    %c0_1 = arith.constant 0 : index
    %c0_2 = arith.constant 0 : index
    %1 = vector.load %arg6[%c0_1, %c0_2] : memref<8x1xf32, #tpu.memory_space<vmem>>, vector<8x1xf32>
    %c0_3 = arith.constant 0 : index
    %c0_4 = arith.constant 0 : index
    %c0_5 = arith.constant 0 : index
    %2 = vector.load %arg1[%c0_3, %c0_4, %c0_5] : memref<1x8x10xbf16, #tpu.memory_space<vmem>>, vector<1x8x8xbf16>
    %3 = vector.shape_cast %2 : vector<1x8x8xbf16> to vector<8x8xbf16>
    %c0_6 = arith.constant 0 : index
    %c0_7 = arith.constant 0 : index
    %c0_8 = arith.constant 0 : index
    %4 = vector.load %arg3[%c0_6, %c0_7, %c0_8] : memref<3x8x8xbf16, #tpu.memory_space<vmem>>, vector<1x8x8xbf16>
    %5 = vector.shape_cast %4 : vector<1x8x8xbf16> to vector<8x8xbf16>
    %cst = arith.constant dense<0.000000e+00> : vector<8x8xf32>
    %6 = tpu.matmul %5, %3, %cst {dimension_numbers = #tpu.dot_dimension_numbers<[1], [0], [0], [1], [0, 0, 1, 1], [], []>} : vector<8x8xbf16>, vector<8x8xbf16>, vector<8x8xf32> -> vector<8x8xf32>
    %7 = vector.broadcast %0 : vector<8x1xf32> to vector<8x8xf32>
    %8 = arith.addf %7, %6 : vector<8x8xf32>
    %c0_9 = arith.constant 0 : index
    %c0_10 = arith.constant 0 : index
    %c0_11 = arith.constant 0 : index
    %9 = vector.load %arg5[%c0_9, %c0_10, %c0_11] : memref<3x8x8xbf16, #tpu.memory_space<vmem>>, vector<1x8x8xbf16>
    %10 = vector.shape_cast %9 : vector<1x8x8xbf16> to vector<8x8xbf16>
    %cst_12 = arith.constant dense<0.000000e+00> : vector<8x8xf32>
    %11 = tpu.matmul %10, %3, %cst_12 {dimension_numbers = #tpu.dot_dimension_numbers<[1], [0], [0], [1], [0, 0, 1, 1], [], []>} : vector<8x8xbf16>, vector<8x8xbf16>, vector<8x8xf32> -> vector<8x8xf32>
    %12 = vector.broadcast %1 : vector<8x1xf32> to vector<8x8xf32>
    %13 = arith.addf %12, %11 : vector<8x8xf32>
    %c0_13 = arith.constant 0 : index
    %c0_14 = arith.constant 0 : index
    %c1 = arith.constant 1 : index
    %14 = vector.load %arg1[%c0_13, %c0_14, %c1] : memref<1x8x10xbf16, #tpu.memory_space<vmem>>, vector<1x8x8xbf16>
    %15 = vector.shape_cast %14 : vector<1x8x8xbf16> to vector<8x8xbf16>
    %c1_15 = arith.constant 1 : index
    %c0_16 = arith.constant 0 : index
    %c0_17 = arith.constant 0 : index
    %16 = vector.load %arg3[%c1_15, %c0_16, %c0_17] : memref<3x8x8xbf16, #tpu.memory_space<vmem>>, vector<1x8x8xbf16>
    %17 = vector.shape_cast %16 : vector<1x8x8xbf16> to vector<8x8xbf16>
    %cst_18 = arith.constant dense<0.000000e+00> : vector<8x8xf32>
    %18 = tpu.matmul %17, %15, %cst_18 {dimension_numbers = #tpu.dot_dimension_numbers<[1], [0], [0], [1], [0, 0, 1, 1], [], []>} : vector<8x8xbf16>, vector<8x8xbf16>, vector<8x8xf32> -> vector<8x8xf32>
    %19 = arith.addf %8, %18 : vector<8x8xf32>
    %c1_19 = arith.constant 1 : index
    %c0_20 = arith.constant 0 : index
    %c0_21 = arith.constant 0 : index
    %20 = vector.load %arg5[%c1_19, %c0_20, %c0_21] : memref<3x8x8xbf16, #tpu.memory_space<vmem>>, vector<1x8x8xbf16>
    %21 = vector.shape_cast %20 : vector<1x8x8xbf16> to vector<8x8xbf16>
    %cst_22 = arith.constant dense<0.000000e+00> : vector<8x8xf32>
    %22 = tpu.matmul %21, %15, %cst_22 {dimension_numbers = #tpu.dot_dimension_numbers<[1], [0], [0], [1], [0, 0, 1, 1], [], []>} : vector<8x8xbf16>, vector<8x8xbf16>, vector<8x8xf32> -> vector<8x8xf32>
    %23 = arith.addf %13, %22 : vector<8x8xf32>
    %c0_23 = arith.constant 0 : index
    %c0_24 = arith.constant 0 : index
    %c2 = arith.constant 2 : index
    %24 = vector.load %arg1[%c0_23, %c0_24, %c2] : memref<1x8x10xbf16, #tpu.memory_space<vmem>>, vector<1x8x8xbf16>
    %25 = vector.shape_cast %24 : vector<1x8x8xbf16> to vector<8x8xbf16>
    %c2_25 = arith.constant 2 : index
    %c0_26 = arith.constant 0 : index
    %c0_27 = arith.constant 0 : index
    %26 = vector.load %arg3[%c2_25, %c0_26, %c0_27] : memref<3x8x8xbf16, #tpu.memory_space<vmem>>, vector<1x8x8xbf16>
    %27 = vector.shape_cast %26 : vector<1x8x8xbf16> to vector<8x8xbf16>
    %cst_28 = arith.constant dense<0.000000e+00> : vector<8x8xf32>
    %28 = tpu.matmul %27, %25, %cst_28 {dimension_numbers = #tpu.dot_dimension_numbers<[1], [0], [0], [1], [0, 0, 1, 1], [], []>} : vector<8x8xbf16>, vector<8x8xbf16>, vector<8x8xf32> -> vector<8x8xf32>
    %29 = arith.addf %19, %28 : vector<8x8xf32>
    %c2_29 = arith.constant 2 : index
    %c0_30 = arith.constant 0 : index
    %c0_31 = arith.constant 0 : index
    %30 = vector.load %arg5[%c2_29, %c0_30, %c0_31] : memref<3x8x8xbf16, #tpu.memory_space<vmem>>, vector<1x8x8xbf16>
    %31 = vector.shape_cast %30 : vector<1x8x8xbf16> to vector<8x8xbf16>
    %cst_32 = arith.constant dense<0.000000e+00> : vector<8x8xf32>
    %32 = tpu.matmul %31, %25, %cst_32 {dimension_numbers = #tpu.dot_dimension_numbers<[1], [0], [0], [1], [0, 0, 1, 1], [], []>} : vector<8x8xbf16>, vector<8x8xbf16>, vector<8x8xf32> -> vector<8x8xf32>
    %33 = arith.addf %23, %32 : vector<8x8xf32>
    %34 = math.tanh %29 : vector<8x8xf32>
    %35 = arith.negf %33 : vector<8x8xf32>
    %36 = math.exp %35 : vector<8x8xf32>
    %cst_33 = arith.constant 1.000000e+00 : f32
    %37 = vector.broadcast %cst_33 : f32 to vector<8x8xf32>
    %38 = arith.addf %37, %36 : vector<8x8xf32>
    %39 = arith.divf %37, %38 : vector<8x8xf32>
    %40 = arith.mulf %34, %39 : vector<8x8xf32>
    %41 = arith.truncf %40 : vector<8x8xf32> to vector<8x8xbf16>
    %c0_34 = arith.constant 0 : index
    %c0_35 = arith.constant 0 : index
    %42 = vector.load %arg7[%c0_34, %c0_35] : memref<8x8xbf16, #tpu.memory_space<vmem>>, vector<8x8xbf16>
    %cst_36 = arith.constant dense<0.000000e+00> : vector<8x8xf32>
    %43 = tpu.matmul %42, %41, %cst_36 {dimension_numbers = #tpu.dot_dimension_numbers<[1], [0], [0], [1], [0, 0, 1, 1], [], []>} : vector<8x8xbf16>, vector<8x8xbf16>, vector<8x8xf32> -> vector<8x8xf32>
    %c0_37 = arith.constant 0 : index
    %c0_38 = arith.constant 0 : index
    %44 = vector.load %arg8[%c0_37, %c0_38] : memref<8x1xf32, #tpu.memory_space<vmem>>, vector<8x1xf32>
    %45 = vector.broadcast %44 : vector<8x1xf32> to vector<8x8xf32>
    %46 = arith.addf %43, %45 : vector<8x8xf32>
    %c0_39 = arith.constant 0 : index
    %c0_40 = arith.constant 0 : index
    %47 = vector.load %arg9[%c0_39, %c0_40] : memref<8x8xbf16, #tpu.memory_space<vmem>>, vector<8x8xbf16>
    %cst_41 = arith.constant dense<0.000000e+00> : vector<8x8xf32>
    %48 = tpu.matmul %47, %41, %cst_41 {dimension_numbers = #tpu.dot_dimension_numbers<[1], [0], [0], [1], [0, 0, 1, 1], [], []>} : vector<8x8xbf16>, vector<8x8xbf16>, vector<8x8xf32> -> vector<8x8xf32>
    %c0_42 = arith.constant 0 : index
    %c0_43 = arith.constant 0 : index
    %49 = vector.load %arg10[%c0_42, %c0_43] : memref<8x1xf32, #tpu.memory_space<vmem>>, vector<8x1xf32>
    %50 = vector.broadcast %49 : vector<8x1xf32> to vector<8x8xf32>
    %51 = arith.addf %48, %50 : vector<8x8xf32>
    %c0_44 = arith.constant 0 : index
    %c0_45 = arith.constant 0 : index
    %c1_46 = arith.constant 1 : index
    %52 = vector.load %arg1[%c0_44, %c0_45, %c1_46] : memref<1x8x10xbf16, #tpu.memory_space<vmem>>, vector<1x8x8xbf16>
    %53 = vector.shape_cast %52 : vector<1x8x8xbf16> to vector<8x8xbf16>
    %54 = arith.extf %53 : vector<8x8xbf16> to vector<8x8xf32>
    %55 = arith.addf %54, %46 : vector<8x8xf32>
    %56 = arith.truncf %55 : vector<8x8xf32> to vector<8x8xbf16>
    %c0_47 = arith.constant 0 : index
    %c0_48 = arith.constant 0 : index
    %c0_49 = arith.constant 0 : index
    %57 = vector.load %arg11[%c0_47, %c0_48, %c0_49] : memref<1x8x8xbf16, #tpu.memory_space<vmem>>, vector<1x8x8xbf16>
    %58 = vector.shape_cast %57 : vector<1x8x8xbf16> to vector<8x8xbf16>
    %59 = vector.shape_cast %56 : vector<8x8xbf16> to vector<1x8x8xbf16>
    tpu.vector_store %arg11[%c0_47, %c0_48, %c0_49], %59 {strides = array<i32>} : memref<1x8x8xbf16, #tpu.memory_space<vmem>>, vector<1x8x8xbf16>,
    %c0_50 = arith.constant 0 : index
    %c0_51 = arith.constant 0 : index
    %c0_52 = arith.constant 0 : index
    %60 = vector.load %arg2[%c0_50, %c0_51, %c0_52] : memref<1x8x8xf32, #tpu.memory_space<vmem>>, vector<1x8x8xf32>
    %61 = vector.shape_cast %60 : vector<1x8x8xf32> to vector<8x8xf32>
    %62 = arith.addf %61, %51 : vector<8x8xf32>
    %c0_53 = arith.constant 0 : index
    %c0_54 = arith.constant 0 : index
    %c0_55 = arith.constant 0 : index
    %63 = vector.load %arg12[%c0_53, %c0_54, %c0_55] : memref<1x8x8xf32, #tpu.memory_space<vmem>>, vector<1x8x8xf32>
    %64 = vector.shape_cast %63 : vector<1x8x8xf32> to vector<8x8xf32>
    %65 = vector.shape_cast %62 : vector<8x8xf32> to vector<1x8x8xf32>
    tpu.vector_store %arg12[%c0_53, %c0_54, %c0_55], %65 {strides = array<i32>} : memref<1x8x8xf32, #tpu.memory_space<vmem>>, vector<1x8x8xf32>,
    return
  }
  func.func @transform_0(%arg0: i32) -> (i32, i32, i32) {
    %c0_i32 = arith.constant 0 : i32
    %c0_i32_0 = arith.constant 0 : i32
    %c0_i32_1 = arith.constant 0 : i32
    return %arg0, %c0_i32, %c0_i32_0 : i32, i32, i32
  }
  func.func @transform_1(%arg0: i32) -> (i32, i32, i32) {
    %c0_i32 = arith.constant 0 : i32
    %c0_i32_0 = arith.constant 0 : i32
    %c0_i32_1 = arith.constant 0 : i32
    return %arg0, %c0_i32, %c0_i32_0 : i32, i32, i32
  }
  func.func @transform_2(%arg0: i32) -> (i32, i32, i32) {
    %c0_i32 = arith.constant 0 : i32
    %c0_i32_0 = arith.constant 0 : i32
    %c0_i32_1 = arith.constant 0 : i32
    %c0_i32_2 = arith.constant 0 : i32
    return %c0_i32, %c0_i32_0, %c0_i32_1 : i32, i32, i32
  }
  func.func @transform_3(%arg0: i32) -> (i32, i32) {
    %c0_i32 = arith.constant 0 : i32
    %c0_i32_0 = arith.constant 0 : i32
    %c0_i32_1 = arith.constant 0 : i32
    return %c0_i32, %c0_i32_0 : i32, i32
  }
  func.func @transform_4(%arg0: i32) -> (i32, i32, i32) {
    %c0_i32 = arith.constant 0 : i32
    %c0_i32_0 = arith.constant 0 : i32
    %c0_i32_1 = arith.constant 0 : i32
    %c0_i32_2 = arith.constant 0 : i32
    return %c0_i32, %c0_i32_0, %c0_i32_1 : i32, i32, i32
  }
  func.func @transform_5(%arg0: i32) -> (i32, i32) {
    %c0_i32 = arith.constant 0 : i32
    %c0_i32_0 = arith.constant 0 : i32
    %c0_i32_1 = arith.constant 0 : i32
    return %c0_i32, %c0_i32_0 : i32, i32
  }
  func.func @transform_6(%arg0: i32) -> (i32, i32) {
    %c0_i32 = arith.constant 0 : i32
    %c0_i32_0 = arith.constant 0 : i32
    %c0_i32_1 = arith.constant 0 : i32
    return %c0_i32, %c0_i32_0 : i32, i32
  }
  func.func @transform_7(%arg0: i32) -> (i32, i32) {
    %c0_i32 = arith.constant 0 : i32
    %c0_i32_0 = arith.constant 0 : i32
    %c0_i32_1 = arith.constant 0 : i32
    return %c0_i32, %c0_i32_0 : i32, i32
  }
  func.func @transform_8(%arg0: i32) -> (i32, i32) {
    %c0_i32 = arith.constant 0 : i32
    %c0_i32_0 = arith.constant 0 : i32
    %c0_i32_1 = arith.constant 0 : i32
    return %c0_i32, %c0_i32_0 : i32, i32
  }
  func.func @transform_9(%arg0: i32) -> (i32, i32) {
    %c0_i32 = arith.constant 0 : i32
    %c0_i32_0 = arith.constant 0 : i32
    %c0_i32_1 = arith.constant 0 : i32
    return %c0_i32, %c0_i32_0 : i32, i32
  }
  func.func @transform_10(%arg0: i32) -> (i32, i32, i32) {
    %c0_i32 = arith.constant 0 : i32
    %c0_i32_0 = arith.constant 0 : i32
    %c0_i32_1 = arith.constant 0 : i32
    return %arg0, %c0_i32, %c0_i32_0 : i32, i32, i32
  }
  func.func @transform_11(%arg0: i32) -> (i32, i32, i32) {
    %c0_i32 = arith.constant 0 : i32
    %c0_i32_0 = arith.constant 0 : i32
    %c0_i32_1 = arith.constant 0 : i32
    return %arg0, %c0_i32, %c0_i32_0 : i32, i32, i32
  }
}

module attributes {stable_mosaic.version = 11 : i64} {
  func.func @_wavenet_block_kernel(%arg0: i32, %arg1: memref<1x8x12xbf16, #tpu.memory_space<vmem>>, %arg2: memref<1x8x8xf32, #tpu.memory_space<vmem>>, %arg3: memref<3x8x8xbf16, #tpu.memory_space<vmem>>, %arg4: memref<8x1xf32, #tpu.memory_space<vmem>>, %arg5: memref<3x8x8xbf16, #tpu.memory_space<vmem>>, %arg6: memref<8x1xf32, #tpu.memory_space<vmem>>, %arg7: memref<8x8xbf16, #tpu.memory_space<vmem>>, %arg8: memref<8x1xf32, #tpu.memory_space<vmem>>, %arg9: memref<8x8xbf16, #tpu.memory_space<vmem>>, %arg10: memref<8x1xf32, #tpu.memory_space<vmem>>, %arg11: memref<1x8x8xbf16, #tpu.memory_space<vmem>>, %arg12: memref<1x8x8xf32, #tpu.memory_space<vmem>>) attributes {dimension_semantics = [#tpu.dimension_semantics<parallel>], iteration_bounds = array<i64: 2>, scalar_prefetch = 0 : i64, scratch_operands = 0 : i64, tpu.core_type = #tpu.core_type<tc>, window_params = [{transform_indices = @transform_0, window_bounds = array<i64: 1, 8, 12>}, {transform_indices = @transform_1, window_bounds = array<i64: 1, 8, 8>}, {pipeline_mode = #tpu.pipeline_mode<synchronous>, transform_indices = @transform_2, window_bounds = array<i64: 3, 8, 8>}, {pipeline_mode = #tpu.pipeline_mode<synchronous>, transform_indices = @transform_3, window_bounds = array<i64: 8, 1>}, {pipeline_mode = #tpu.pipeline_mode<synchronous>, transform_indices = @transform_4, window_bounds = array<i64: 3, 8, 8>}, {pipeline_mode = #tpu.pipeline_mode<synchronous>, transform_indices = @transform_5, window_bounds = array<i64: 8, 1>}, {pipeline_mode = #tpu.pipeline_mode<synchronous>, transform_indices = @transform_6, window_bounds = array<i64: 8, 8>}, {pipeline_mode = #tpu.pipeline_mode<synchronous>, transform_indices = @transform_7, window_bounds = array<i64: 8, 1>}, {pipeline_mode = #tpu.pipeline_mode<synchronous>, transform_indices = @transform_8, window_bounds = array<i64: 8, 8>}, {pipeline_mode = #tpu.pipeline_mode<synchronous>, transform_indices = @transform_9, window_bounds = array<i64: 8, 1>}, {transform_indices = @transform_10, window_bounds = array<i64: 1, 8, 8>}, {transform_indices = @transform_11, window_bounds = array<i64: 1, 8, 8>}]} {
    %c0 = arith.constant 0 : index
    %c0_0 = arith.constant 0 : index
    %0 = vector.load %arg4[%c0, %c0_0] : memref<8x1xf32, #tpu.memory_space<vmem>>, vector<8x1xf32>
    %c0_1 = arith.constant 0 : index
    %c0_2 = arith.constant 0 : index
    %1 = vector.load %arg6[%c0_1, %c0_2] : memref<8x1xf32, #tpu.memory_space<vmem>>, vector<8x1xf32>
    %c0_3 = arith.constant 0 : index
    %c0_4 = arith.constant 0 : index
    %c0_5 = arith.constant 0 : index
    %2 = vector.load %arg1[%c0_3, %c0_4, %c0_5] : memref<1x8x12xbf16, #tpu.memory_space<vmem>>, vector<1x8x8xbf16>
    %3 = vector.shape_cast %2 : vector<1x8x8xbf16> to vector<8x8xbf16>
    %c0_6 = arith.constant 0 : index
    %c0_7 = arith.constant 0 : index
    %c0_8 = arith.constant 0 : index
    %4 = vector.load %arg3[%c0_6, %c0_7, %c0_8] : memref<3x8x8xbf16, #tpu.memory_space<vmem>>, vector<1x8x8xbf16>
    %5 = vector.shape_cast %4 : vector<1x8x8xbf16> to vector<8x8xbf16>
    %cst = arith.constant dense<0.000000e+00> : vector<8x8xf32>
    %6 = tpu.matmul %5, %3, %cst {dimension_numbers = #tpu.dot_dimension_numbers<[1], [0], [0], [1], [0, 0, 1, 1], [], []>} : vector<8x8xbf16>, vector<8x8xbf16>, vector<8x8xf32> -> vector<8x8xf32>
    %7 = vector.broadcast %0 : vector<8x1xf32> to vector<8x8xf32>
    %8 = arith.addf %7, %6 : vector<8x8xf32>
    %c0_9 = arith.constant 0 : index
    %c0_10 = arith.constant 0 : index
    %c0_11 = arith.constant 0 : index
    %9 = vector.load %arg5[%c0_9, %c0_10, %c0_11] : memref<3x8x8xbf16, #tpu.memory_space<vmem>>, vector<1x8x8xbf16>
    %10 = vector.shape_cast %9 : vector<1x8x8xbf16> to vector<8x8xbf16>
    %cst_12 = arith.constant dense<0.000000e+00> : vector<8x8xf32>
    %11 = tpu.matmul %10, %3, %cst_12 {dimension_numbers = #tpu.dot_dimension_numbers<[1], [0], [0], [1], [0, 0, 1, 1], [], []>} : vector<8x8xbf16>, vector<8x8xbf16>, vector<8x8xf32> -> vector<8x8xf32>
    %12 = vector.broadcast %1 : vector<8x1xf32> to vector<8x8xf32>
    %13 = arith.addf %12, %11 : vector<8x8xf32>
    %c0_13 = arith.constant 0 : index
    %c0_14 = arith.constant 0 : index
    %c2 = arith.constant 2 : index
    %14 = vector.load %arg1[%c0_13, %c0_14, %c2] : memref<1x8x12xbf16, #tpu.memory_space<vmem>>, vector<1x8x8xbf16>
    %15 = vector.shape_cast %14 : vector<1x8x8xbf16> to vector<8x8xbf16>
    %c1 = arith.constant 1 : index
    %c0_15 = arith.constant 0 : index
    %c0_16 = arith.constant 0 : index
    %16 = vector.load %arg3[%c1, %c0_15, %c0_16] : memref<3x8x8xbf16, #tpu.memory_space<vmem>>, vector<1x8x8xbf16>
    %17 = vector.shape_cast %16 : vector<1x8x8xbf16> to vector<8x8xbf16>
    %cst_17 = arith.constant dense<0.000000e+00> : vector<8x8xf32>
    %18 = tpu.matmul %17, %15, %cst_17 {dimension_numbers = #tpu.dot_dimension_numbers<[1], [0], [0], [1], [0, 0, 1, 1], [], []>} : vector<8x8xbf16>, vector<8x8xbf16>, vector<8x8xf32> -> vector<8x8xf32>
    %19 = arith.addf %8, %18 : vector<8x8xf32>
    %c1_18 = arith.constant 1 : index
    %c0_19 = arith.constant 0 : index
    %c0_20 = arith.constant 0 : index
    %20 = vector.load %arg5[%c1_18, %c0_19, %c0_20] : memref<3x8x8xbf16, #tpu.memory_space<vmem>>, vector<1x8x8xbf16>
    %21 = vector.shape_cast %20 : vector<1x8x8xbf16> to vector<8x8xbf16>
    %cst_21 = arith.constant dense<0.000000e+00> : vector<8x8xf32>
    %22 = tpu.matmul %21, %15, %cst_21 {dimension_numbers = #tpu.dot_dimension_numbers<[1], [0], [0], [1], [0, 0, 1, 1], [], []>} : vector<8x8xbf16>, vector<8x8xbf16>, vector<8x8xf32> -> vector<8x8xf32>
    %23 = arith.addf %13, %22 : vector<8x8xf32>
    %c0_22 = arith.constant 0 : index
    %c0_23 = arith.constant 0 : index
    %c4 = arith.constant 4 : index
    %24 = vector.load %arg1[%c0_22, %c0_23, %c4] : memref<1x8x12xbf16, #tpu.memory_space<vmem>>, vector<1x8x8xbf16>
    %25 = vector.shape_cast %24 : vector<1x8x8xbf16> to vector<8x8xbf16>
    %c2_24 = arith.constant 2 : index
    %c0_25 = arith.constant 0 : index
    %c0_26 = arith.constant 0 : index
    %26 = vector.load %arg3[%c2_24, %c0_25, %c0_26] : memref<3x8x8xbf16, #tpu.memory_space<vmem>>, vector<1x8x8xbf16>
    %27 = vector.shape_cast %26 : vector<1x8x8xbf16> to vector<8x8xbf16>
    %cst_27 = arith.constant dense<0.000000e+00> : vector<8x8xf32>
    %28 = tpu.matmul %27, %25, %cst_27 {dimension_numbers = #tpu.dot_dimension_numbers<[1], [0], [0], [1], [0, 0, 1, 1], [], []>} : vector<8x8xbf16>, vector<8x8xbf16>, vector<8x8xf32> -> vector<8x8xf32>
    %29 = arith.addf %19, %28 : vector<8x8xf32>
    %c2_28 = arith.constant 2 : index
    %c0_29 = arith.constant 0 : index
    %c0_30 = arith.constant 0 : index
    %30 = vector.load %arg5[%c2_28, %c0_29, %c0_30] : memref<3x8x8xbf16, #tpu.memory_space<vmem>>, vector<1x8x8xbf16>
    %31 = vector.shape_cast %30 : vector<1x8x8xbf16> to vector<8x8xbf16>
    %cst_31 = arith.constant dense<0.000000e+00> : vector<8x8xf32>
    %32 = tpu.matmul %31, %25, %cst_31 {dimension_numbers = #tpu.dot_dimension_numbers<[1], [0], [0], [1], [0, 0, 1, 1], [], []>} : vector<8x8xbf16>, vector<8x8xbf16>, vector<8x8xf32> -> vector<8x8xf32>
    %33 = arith.addf %23, %32 : vector<8x8xf32>
    %34 = math.tanh %29 : vector<8x8xf32>
    %35 = arith.negf %33 : vector<8x8xf32>
    %36 = math.exp %35 : vector<8x8xf32>
    %cst_32 = arith.constant 1.000000e+00 : f32
    %37 = vector.broadcast %cst_32 : f32 to vector<8x8xf32>
    %38 = arith.addf %37, %36 : vector<8x8xf32>
    %39 = arith.divf %37, %38 : vector<8x8xf32>
    %40 = arith.mulf %34, %39 : vector<8x8xf32>
    %41 = arith.truncf %40 : vector<8x8xf32> to vector<8x8xbf16>
    %c0_33 = arith.constant 0 : index
    %c0_34 = arith.constant 0 : index
    %42 = vector.load %arg7[%c0_33, %c0_34] : memref<8x8xbf16, #tpu.memory_space<vmem>>, vector<8x8xbf16>
    %cst_35 = arith.constant dense<0.000000e+00> : vector<8x8xf32>
    %43 = tpu.matmul %42, %41, %cst_35 {dimension_numbers = #tpu.dot_dimension_numbers<[1], [0], [0], [1], [0, 0, 1, 1], [], []>} : vector<8x8xbf16>, vector<8x8xbf16>, vector<8x8xf32> -> vector<8x8xf32>
    %c0_36 = arith.constant 0 : index
    %c0_37 = arith.constant 0 : index
    %44 = vector.load %arg8[%c0_36, %c0_37] : memref<8x1xf32, #tpu.memory_space<vmem>>, vector<8x1xf32>
    %45 = vector.broadcast %44 : vector<8x1xf32> to vector<8x8xf32>
    %46 = arith.addf %43, %45 : vector<8x8xf32>
    %c0_38 = arith.constant 0 : index
    %c0_39 = arith.constant 0 : index
    %47 = vector.load %arg9[%c0_38, %c0_39] : memref<8x8xbf16, #tpu.memory_space<vmem>>, vector<8x8xbf16>
    %cst_40 = arith.constant dense<0.000000e+00> : vector<8x8xf32>
    %48 = tpu.matmul %47, %41, %cst_40 {dimension_numbers = #tpu.dot_dimension_numbers<[1], [0], [0], [1], [0, 0, 1, 1], [], []>} : vector<8x8xbf16>, vector<8x8xbf16>, vector<8x8xf32> -> vector<8x8xf32>
    %c0_41 = arith.constant 0 : index
    %c0_42 = arith.constant 0 : index
    %49 = vector.load %arg10[%c0_41, %c0_42] : memref<8x1xf32, #tpu.memory_space<vmem>>, vector<8x1xf32>
    %50 = vector.broadcast %49 : vector<8x1xf32> to vector<8x8xf32>
    %51 = arith.addf %48, %50 : vector<8x8xf32>
    %c0_43 = arith.constant 0 : index
    %c0_44 = arith.constant 0 : index
    %c2_45 = arith.constant 2 : index
    %52 = vector.load %arg1[%c0_43, %c0_44, %c2_45] : memref<1x8x12xbf16, #tpu.memory_space<vmem>>, vector<1x8x8xbf16>
    %53 = vector.shape_cast %52 : vector<1x8x8xbf16> to vector<8x8xbf16>
    %54 = arith.extf %53 : vector<8x8xbf16> to vector<8x8xf32>
    %55 = arith.addf %54, %46 : vector<8x8xf32>
    %56 = arith.truncf %55 : vector<8x8xf32> to vector<8x8xbf16>
    %c0_46 = arith.constant 0 : index
    %c0_47 = arith.constant 0 : index
    %c0_48 = arith.constant 0 : index
    %57 = vector.load %arg11[%c0_46, %c0_47, %c0_48] : memref<1x8x8xbf16, #tpu.memory_space<vmem>>, vector<1x8x8xbf16>
    %58 = vector.shape_cast %57 : vector<1x8x8xbf16> to vector<8x8xbf16>
    %59 = vector.shape_cast %56 : vector<8x8xbf16> to vector<1x8x8xbf16>
    tpu.vector_store %arg11[%c0_46, %c0_47, %c0_48], %59 {strides = array<i32>} : memref<1x8x8xbf16, #tpu.memory_space<vmem>>, vector<1x8x8xbf16>,
    %c0_49 = arith.constant 0 : index
    %c0_50 = arith.constant 0 : index
    %c0_51 = arith.constant 0 : index
    %60 = vector.load %arg2[%c0_49, %c0_50, %c0_51] : memref<1x8x8xf32, #tpu.memory_space<vmem>>, vector<1x8x8xf32>
    %61 = vector.shape_cast %60 : vector<1x8x8xf32> to vector<8x8xf32>
    %62 = arith.addf %61, %51 : vector<8x8xf32>
    %c0_52 = arith.constant 0 : index
    %c0_53 = arith.constant 0 : index
    %c0_54 = arith.constant 0 : index
    %63 = vector.load %arg12[%c0_52, %c0_53, %c0_54] : memref<1x8x8xf32, #tpu.memory_space<vmem>>, vector<1x8x8xf32>
    %64 = vector.shape_cast %63 : vector<1x8x8xf32> to vector<8x8xf32>
    %65 = vector.shape_cast %62 : vector<8x8xf32> to vector<1x8x8xf32>
    tpu.vector_store %arg12[%c0_52, %c0_53, %c0_54], %65 {strides = array<i32>} : memref<1x8x8xf32, #tpu.memory_space<vmem>>, vector<1x8x8xf32>,
    return
  }
  func.func @transform_0(%arg0: i32) -> (i32, i32, i32) {
    %c0_i32 = arith.constant 0 : i32
    %c0_i32_0 = arith.constant 0 : i32
    %c0_i32_1 = arith.constant 0 : i32
    return %arg0, %c0_i32, %c0_i32_0 : i32, i32, i32
  }
  func.func @transform_1(%arg0: i32) -> (i32, i32, i32) {
    %c0_i32 = arith.constant 0 : i32
    %c0_i32_0 = arith.constant 0 : i32
    %c0_i32_1 = arith.constant 0 : i32
    return %arg0, %c0_i32, %c0_i32_0 : i32, i32, i32
  }
  func.func @transform_2(%arg0: i32) -> (i32, i32, i32) {
    %c0_i32 = arith.constant 0 : i32
    %c0_i32_0 = arith.constant 0 : i32
    %c0_i32_1 = arith.constant 0 : i32
    %c0_i32_2 = arith.constant 0 : i32
    return %c0_i32, %c0_i32_0, %c0_i32_1 : i32, i32, i32
  }
  func.func @transform_3(%arg0: i32) -> (i32, i32) {
    %c0_i32 = arith.constant 0 : i32
    %c0_i32_0 = arith.constant 0 : i32
    %c0_i32_1 = arith.constant 0 : i32
    return %c0_i32, %c0_i32_0 : i32, i32
  }
  func.func @transform_4(%arg0: i32) -> (i32, i32, i32) {
    %c0_i32 = arith.constant 0 : i32
    %c0_i32_0 = arith.constant 0 : i32
    %c0_i32_1 = arith.constant 0 : i32
    %c0_i32_2 = arith.constant 0 : i32
    return %c0_i32, %c0_i32_0, %c0_i32_1 : i32, i32, i32
  }
  func.func @transform_5(%arg0: i32) -> (i32, i32) {
    %c0_i32 = arith.constant 0 : i32
    %c0_i32_0 = arith.constant 0 : i32
    %c0_i32_1 = arith.constant 0 : i32
    return %c0_i32, %c0_i32_0 : i32, i32
  }
  func.func @transform_6(%arg0: i32) -> (i32, i32) {
    %c0_i32 = arith.constant 0 : i32
    %c0_i32_0 = arith.constant 0 : i32
    %c0_i32_1 = arith.constant 0 : i32
    return %c0_i32, %c0_i32_0 : i32, i32
  }
  func.func @transform_7(%arg0: i32) -> (i32, i32) {
    %c0_i32 = arith.constant 0 : i32
    %c0_i32_0 = arith.constant 0 : i32
    %c0_i32_1 = arith.constant 0 : i32
    return %c0_i32, %c0_i32_0 : i32, i32
  }
  func.func @transform_8(%arg0: i32) -> (i32, i32) {
    %c0_i32 = arith.constant 0 : i32
    %c0_i32_0 = arith.constant 0 : i32
    %c0_i32_1 = arith.constant 0 : i32
    return %c0_i32, %c0_i32_0 : i32, i32
  }
  func.func @transform_9(%arg0: i32) -> (i32, i32) {
    %c0_i32 = arith.constant 0 : i32
    %c0_i32_0 = arith.constant 0 : i32
    %c0_i32_1 = arith.constant 0 : i32
    return %c0_i32, %c0_i32_0 : i32, i32
  }
  func.func @transform_10(%arg0: i32) -> (i32, i32, i32) {
    %c0_i32 = arith.constant 0 : i32
    %c0_i32_0 = arith.constant 0 : i32
    %c0_i32_1 = arith.constant 0 : i32
    return %arg0, %c0_i32, %c0_i32_0 : i32, i32, i32
  }
  func.func @transform_11(%arg0: i32) -> (i32, i32, i32) {
    %c0_i32 = arith.constant 0 : i32
    %c0_i32_0 = arith.constant 0 : i32
    %c0_i32_1 = arith.constant 0 : i32
    return %arg0, %c0_i32, %c0_i32_0 : i32, i32, i32
  }
}

module attributes {stable_mosaic.version = 11 : i64} {
  func.func @_conv_act_kernel(%arg0: i32, %arg1: memref<1x8x10xbf16, #tpu.memory_space<vmem>>, %arg2: memref<3x8x8xbf16, #tpu.memory_space<vmem>>, %arg3: memref<8x1xf32, #tpu.memory_space<vmem>>, %arg4: memref<8x1xf32, #tpu.memory_space<vmem>>, %arg5: memref<1x8x8xbf16, #tpu.memory_space<vmem>>) attributes {dimension_semantics = [#tpu.dimension_semantics<parallel>], iteration_bounds = array<i64: 2>, scalar_prefetch = 0 : i64, scratch_operands = 0 : i64, tpu.core_type = #tpu.core_type<tc>, window_params = [{transform_indices = @transform_0, window_bounds = array<i64: 1, 8, 10>}, {pipeline_mode = #tpu.pipeline_mode<synchronous>, transform_indices = @transform_1, window_bounds = array<i64: 3, 8, 8>}, {pipeline_mode = #tpu.pipeline_mode<synchronous>, transform_indices = @transform_2, window_bounds = array<i64: 8, 1>}, {pipeline_mode = #tpu.pipeline_mode<synchronous>, transform_indices = @transform_3, window_bounds = array<i64: 8, 1>}, {transform_indices = @transform_4, window_bounds = array<i64: 1, 8, 8>}]} {
    %c0 = arith.constant 0 : index
    %c0_0 = arith.constant 0 : index
    %0 = vector.load %arg3[%c0, %c0_0] : memref<8x1xf32, #tpu.memory_space<vmem>>, vector<8x1xf32>
    %c0_1 = arith.constant 0 : index
    %c0_2 = arith.constant 0 : index
    %c0_3 = arith.constant 0 : index
    %1 = vector.load %arg1[%c0_1, %c0_2, %c0_3] : memref<1x8x10xbf16, #tpu.memory_space<vmem>>, vector<1x8x8xbf16>
    %2 = vector.shape_cast %1 : vector<1x8x8xbf16> to vector<8x8xbf16>
    %c0_4 = arith.constant 0 : index
    %c0_5 = arith.constant 0 : index
    %c0_6 = arith.constant 0 : index
    %3 = vector.load %arg2[%c0_4, %c0_5, %c0_6] : memref<3x8x8xbf16, #tpu.memory_space<vmem>>, vector<1x8x8xbf16>
    %4 = vector.shape_cast %3 : vector<1x8x8xbf16> to vector<8x8xbf16>
    %cst = arith.constant dense<0.000000e+00> : vector<8x8xf32>
    %5 = tpu.matmul %4, %2, %cst {dimension_numbers = #tpu.dot_dimension_numbers<[1], [0], [0], [1], [0, 0, 1, 1], [], []>} : vector<8x8xbf16>, vector<8x8xbf16>, vector<8x8xf32> -> vector<8x8xf32>
    %6 = vector.broadcast %0 : vector<8x1xf32> to vector<8x8xf32>
    %7 = arith.addf %6, %5 : vector<8x8xf32>
    %c0_7 = arith.constant 0 : index
    %c0_8 = arith.constant 0 : index
    %c1 = arith.constant 1 : index
    %8 = vector.load %arg1[%c0_7, %c0_8, %c1] : memref<1x8x10xbf16, #tpu.memory_space<vmem>>, vector<1x8x8xbf16>
    %9 = vector.shape_cast %8 : vector<1x8x8xbf16> to vector<8x8xbf16>
    %c1_9 = arith.constant 1 : index
    %c0_10 = arith.constant 0 : index
    %c0_11 = arith.constant 0 : index
    %10 = vector.load %arg2[%c1_9, %c0_10, %c0_11] : memref<3x8x8xbf16, #tpu.memory_space<vmem>>, vector<1x8x8xbf16>
    %11 = vector.shape_cast %10 : vector<1x8x8xbf16> to vector<8x8xbf16>
    %cst_12 = arith.constant dense<0.000000e+00> : vector<8x8xf32>
    %12 = tpu.matmul %11, %9, %cst_12 {dimension_numbers = #tpu.dot_dimension_numbers<[1], [0], [0], [1], [0, 0, 1, 1], [], []>} : vector<8x8xbf16>, vector<8x8xbf16>, vector<8x8xf32> -> vector<8x8xf32>
    %13 = arith.addf %7, %12 : vector<8x8xf32>
    %c0_13 = arith.constant 0 : index
    %c0_14 = arith.constant 0 : index
    %c2 = arith.constant 2 : index
    %14 = vector.load %arg1[%c0_13, %c0_14, %c2] : memref<1x8x10xbf16, #tpu.memory_space<vmem>>, vector<1x8x8xbf16>
    %15 = vector.shape_cast %14 : vector<1x8x8xbf16> to vector<8x8xbf16>
    %c2_15 = arith.constant 2 : index
    %c0_16 = arith.constant 0 : index
    %c0_17 = arith.constant 0 : index
    %16 = vector.load %arg2[%c2_15, %c0_16, %c0_17] : memref<3x8x8xbf16, #tpu.memory_space<vmem>>, vector<1x8x8xbf16>
    %17 = vector.shape_cast %16 : vector<1x8x8xbf16> to vector<8x8xbf16>
    %cst_18 = arith.constant dense<0.000000e+00> : vector<8x8xf32>
    %18 = tpu.matmul %17, %15, %cst_18 {dimension_numbers = #tpu.dot_dimension_numbers<[1], [0], [0], [1], [0, 0, 1, 1], [], []>} : vector<8x8xbf16>, vector<8x8xbf16>, vector<8x8xf32> -> vector<8x8xf32>
    %19 = arith.addf %13, %18 : vector<8x8xf32>
    %c0_19 = arith.constant 0 : index
    %c0_20 = arith.constant 0 : index
    %20 = vector.load %arg4[%c0_19, %c0_20] : memref<8x1xf32, #tpu.memory_space<vmem>>, vector<8x1xf32>
    %cst_21 = arith.constant 0.000000e+00 : f32
    %21 = vector.broadcast %cst_21 : f32 to vector<8x8xf32>
    %22 = arith.cmpf oge, %19, %21 : vector<8x8xf32>
    %23 = vector.broadcast %20 : vector<8x1xf32> to vector<8x8xf32>
    %24 = arith.mulf %23, %19 : vector<8x8xf32>
    %25 = arith.select %22, %19, %24 : vector<8x8xi1>, vector<8x8xf32>
    %26 = arith.truncf %25 : vector<8x8xf32> to vector<8x8xbf16>
    %c0_22 = arith.constant 0 : index
    %c0_23 = arith.constant 0 : index
    %c0_24 = arith.constant 0 : index
    %27 = vector.load %arg5[%c0_22, %c0_23, %c0_24] : memref<1x8x8xbf16, #tpu.memory_space<vmem>>, vector<1x8x8xbf16>
    %28 = vector.shape_cast %27 : vector<1x8x8xbf16> to vector<8x8xbf16>
    %29 = vector.shape_cast %26 : vector<8x8xbf16> to vector<1x8x8xbf16>
    tpu.vector_store %arg5[%c0_22, %c0_23, %c0_24], %29 {strides = array<i32>} : memref<1x8x8xbf16, #tpu.memory_space<vmem>>, vector<1x8x8xbf16>,
    return
  }
  func.func @transform_0(%arg0: i32) -> (i32, i32, i32) {
    %c0_i32 = arith.constant 0 : i32
    %c0_i32_0 = arith.constant 0 : i32
    %c0_i32_1 = arith.constant 0 : i32
    return %arg0, %c0_i32, %c0_i32_0 : i32, i32, i32
  }
  func.func @transform_1(%arg0: i32) -> (i32, i32, i32) {
    %c0_i32 = arith.constant 0 : i32
    %c0_i32_0 = arith.constant 0 : i32
    %c0_i32_1 = arith.constant 0 : i32
    %c0_i32_2 = arith.constant 0 : i32
    return %c0_i32, %c0_i32_0, %c0_i32_1 : i32, i32, i32
  }
  func.func @transform_2(%arg0: i32) -> (i32, i32) {
    %c0_i32 = arith.constant 0 : i32
    %c0_i32_0 = arith.constant 0 : i32
    %c0_i32_1 = arith.constant 0 : i32
    return %c0_i32, %c0_i32_0 : i32, i32
  }
  func.func @transform_3(%arg0: i32) -> (i32, i32) {
    %c0_i32 = arith.constant 0 : i32
    %c0_i32_0 = arith.constant 0 : i32
    %c0_i32_1 = arith.constant 0 : i32
    return %c0_i32, %c0_i32_0 : i32, i32
  }
  func.func @transform_4(%arg0: i32) -> (i32, i32, i32) {
    %c0_i32 = arith.constant 0 : i32
    %c0_i32_0 = arith.constant 0 : i32
    %c0_i32_1 = arith.constant 0 : i32
    return %arg0, %c0_i32, %c0_i32_0 : i32, i32, i32
  }
}

module attributes {stable_mosaic.version = 11 : i64} {
  func.func @_conv_act_kernel(%arg0: i32, %arg1: memref<1x8x8xbf16, #tpu.memory_space<vmem>>, %arg2: memref<1x8x8xbf16, #tpu.memory_space<vmem>>, %arg3: memref<8x1xf32, #tpu.memory_space<vmem>>, %arg4: memref<1x8x8xbf16, #tpu.memory_space<vmem>>) attributes {dimension_semantics = [#tpu.dimension_semantics<parallel>], iteration_bounds = array<i64: 2>, scalar_prefetch = 0 : i64, scratch_operands = 0 : i64, tpu.core_type = #tpu.core_type<tc>, window_params = [{transform_indices = @transform_0, window_bounds = array<i64: 1, 8, 8>}, {pipeline_mode = #tpu.pipeline_mode<synchronous>, transform_indices = @transform_1, window_bounds = array<i64: 1, 8, 8>}, {pipeline_mode = #tpu.pipeline_mode<synchronous>, transform_indices = @transform_2, window_bounds = array<i64: 8, 1>}, {transform_indices = @transform_3, window_bounds = array<i64: 1, 8, 8>}]} {
    %c0 = arith.constant 0 : index
    %c0_0 = arith.constant 0 : index
    %0 = vector.load %arg3[%c0, %c0_0] : memref<8x1xf32, #tpu.memory_space<vmem>>, vector<8x1xf32>
    %c0_1 = arith.constant 0 : index
    %c0_2 = arith.constant 0 : index
    %c0_3 = arith.constant 0 : index
    %1 = vector.load %arg1[%c0_1, %c0_2, %c0_3] : memref<1x8x8xbf16, #tpu.memory_space<vmem>>, vector<1x8x8xbf16>
    %2 = vector.shape_cast %1 : vector<1x8x8xbf16> to vector<8x8xbf16>
    %c0_4 = arith.constant 0 : index
    %c0_5 = arith.constant 0 : index
    %c0_6 = arith.constant 0 : index
    %3 = vector.load %arg2[%c0_4, %c0_5, %c0_6] : memref<1x8x8xbf16, #tpu.memory_space<vmem>>, vector<1x8x8xbf16>
    %4 = vector.shape_cast %3 : vector<1x8x8xbf16> to vector<8x8xbf16>
    %cst = arith.constant dense<0.000000e+00> : vector<8x8xf32>
    %5 = tpu.matmul %4, %2, %cst {dimension_numbers = #tpu.dot_dimension_numbers<[1], [0], [0], [1], [0, 0, 1, 1], [], []>} : vector<8x8xbf16>, vector<8x8xbf16>, vector<8x8xf32> -> vector<8x8xf32>
    %6 = vector.broadcast %0 : vector<8x1xf32> to vector<8x8xf32>
    %7 = arith.addf %6, %5 : vector<8x8xf32>
    %8 = arith.truncf %7 : vector<8x8xf32> to vector<8x8xbf16>
    %c0_7 = arith.constant 0 : index
    %c0_8 = arith.constant 0 : index
    %c0_9 = arith.constant 0 : index
    %9 = vector.load %arg4[%c0_7, %c0_8, %c0_9] : memref<1x8x8xbf16, #tpu.memory_space<vmem>>, vector<1x8x8xbf16>
    %10 = vector.shape_cast %9 : vector<1x8x8xbf16> to vector<8x8xbf16>
    %11 = vector.shape_cast %8 : vector<8x8xbf16> to vector<1x8x8xbf16>
    tpu.vector_store %arg4[%c0_7, %c0_8, %c0_9], %11 {strides = array<i32>} : memref<1x8x8xbf16, #tpu.memory_space<vmem>>, vector<1x8x8xbf16>,
    return
  }
  func.func @transform_0(%arg0: i32) -> (i32, i32, i32) {
    %c0_i32 = arith.constant 0 : i32
    %c0_i32_0 = arith.constant 0 : i32
    %c0_i32_1 = arith.constant 0 : i32
    return %arg0, %c0_i32, %c0_i32_0 : i32, i32, i32
  }
  func.func @transform_1(%arg0: i32) -> (i32, i32, i32) {
    %c0_i32 = arith.constant 0 : i32
    %c0_i32_0 = arith.constant 0 : i32
    %c0_i32_1 = arith.constant 0 : i32
    %c0_i32_2 = arith.constant 0 : i32
    return %c0_i32, %c0_i32_0, %c0_i32_1 : i32, i32, i32
  }
  func.func @transform_2(%arg0: i32) -> (i32, i32) {
    %c0_i32 = arith.constant 0 : i32
    %c0_i32_0 = arith.constant 0 : i32
    %c0_i32_1 = arith.constant 0 : i32
    return %c0_i32, %c0_i32_0 : i32, i32
  }
  func.func @transform_3(%arg0: i32) -> (i32, i32, i32) {
    %c0_i32 = arith.constant 0 : i32
    %c0_i32_0 = arith.constant 0 : i32
    %c0_i32_1 = arith.constant 0 : i32
    return %arg0, %c0_i32, %c0_i32_0 : i32, i32, i32
  }
}

module attributes {stable_mosaic.version = 11 : i64} {
  func.func @_conv_act_kernel(%arg0: i32, %arg1: memref<1x4x12xbf16, #tpu.memory_space<vmem>>, %arg2: memref<5x8x4xbf16, #tpu.memory_space<vmem>>, %arg3: memref<8x1xf32, #tpu.memory_space<vmem>>, %arg4: memref<8x1xf32, #tpu.memory_space<vmem>>, %arg5: memref<1x8x8xbf16, #tpu.memory_space<vmem>>) attributes {dimension_semantics = [#tpu.dimension_semantics<parallel>], iteration_bounds = array<i64: 2>, scalar_prefetch = 0 : i64, scratch_operands = 0 : i64, tpu.core_type = #tpu.core_type<tc>, window_params = [{transform_indices = @transform_0, window_bounds = array<i64: 1, 4, 12>}, {pipeline_mode = #tpu.pipeline_mode<synchronous>, transform_indices = @transform_1, window_bounds = array<i64: 5, 8, 4>}, {pipeline_mode = #tpu.pipeline_mode<synchronous>, transform_indices = @transform_2, window_bounds = array<i64: 8, 1>}, {pipeline_mode = #tpu.pipeline_mode<synchronous>, transform_indices = @transform_3, window_bounds = array<i64: 8, 1>}, {transform_indices = @transform_4, window_bounds = array<i64: 1, 8, 8>}]} {
    %c0 = arith.constant 0 : index
    %c0_0 = arith.constant 0 : index
    %0 = vector.load %arg3[%c0, %c0_0] : memref<8x1xf32, #tpu.memory_space<vmem>>, vector<8x1xf32>
    %c0_1 = arith.constant 0 : index
    %c0_2 = arith.constant 0 : index
    %c0_3 = arith.constant 0 : index
    %1 = vector.load %arg1[%c0_1, %c0_2, %c0_3] : memref<1x4x12xbf16, #tpu.memory_space<vmem>>, vector<1x4x8xbf16>
    %2 = vector.shape_cast %1 : vector<1x4x8xbf16> to vector<4x8xbf16>
    %c0_4 = arith.constant 0 : index
    %c0_5 = arith.constant 0 : index
    %c0_6 = arith.constant 0 : index
    %3 = vector.load %arg2[%c0_4, %c0_5, %c0_6] : memref<5x8x4xbf16, #tpu.memory_space<vmem>>, vector<1x8x4xbf16>
    %4 = vector.shape_cast %3 : vector<1x8x4xbf16> to vector<8x4xbf16>
    %cst = arith.constant dense<0.000000e+00> : vector<8x8xf32>
    %5 = tpu.matmul %4, %2, %cst {dimension_numbers = #tpu.dot_dimension_numbers<[1], [0], [0], [1], [0, 0, 1, 1], [], []>} : vector<8x4xbf16>, vector<4x8xbf16>, vector<8x8xf32> -> vector<8x8xf32>
    %6 = vector.broadcast %0 : vector<8x1xf32> to vector<8x8xf32>
    %7 = arith.addf %6, %5 : vector<8x8xf32>
    %c0_7 = arith.constant 0 : index
    %c0_8 = arith.constant 0 : index
    %c1 = arith.constant 1 : index
    %8 = vector.load %arg1[%c0_7, %c0_8, %c1] : memref<1x4x12xbf16, #tpu.memory_space<vmem>>, vector<1x4x8xbf16>
    %9 = vector.shape_cast %8 : vector<1x4x8xbf16> to vector<4x8xbf16>
    %c1_9 = arith.constant 1 : index
    %c0_10 = arith.constant 0 : index
    %c0_11 = arith.constant 0 : index
    %10 = vector.load %arg2[%c1_9, %c0_10, %c0_11] : memref<5x8x4xbf16, #tpu.memory_space<vmem>>, vector<1x8x4xbf16>
    %11 = vector.shape_cast %10 : vector<1x8x4xbf16> to vector<8x4xbf16>
    %cst_12 = arith.constant dense<0.000000e+00> : vector<8x8xf32>
    %12 = tpu.matmul %11, %9, %cst_12 {dimension_numbers = #tpu.dot_dimension_numbers<[1], [0], [0], [1], [0, 0, 1, 1], [], []>} : vector<8x4xbf16>, vector<4x8xbf16>, vector<8x8xf32> -> vector<8x8xf32>
    %13 = arith.addf %7, %12 : vector<8x8xf32>
    %c0_13 = arith.constant 0 : index
    %c0_14 = arith.constant 0 : index
    %c2 = arith.constant 2 : index
    %14 = vector.load %arg1[%c0_13, %c0_14, %c2] : memref<1x4x12xbf16, #tpu.memory_space<vmem>>, vector<1x4x8xbf16>
    %15 = vector.shape_cast %14 : vector<1x4x8xbf16> to vector<4x8xbf16>
    %c2_15 = arith.constant 2 : index
    %c0_16 = arith.constant 0 : index
    %c0_17 = arith.constant 0 : index
    %16 = vector.load %arg2[%c2_15, %c0_16, %c0_17] : memref<5x8x4xbf16, #tpu.memory_space<vmem>>, vector<1x8x4xbf16>
    %17 = vector.shape_cast %16 : vector<1x8x4xbf16> to vector<8x4xbf16>
    %cst_18 = arith.constant dense<0.000000e+00> : vector<8x8xf32>
    %18 = tpu.matmul %17, %15, %cst_18 {dimension_numbers = #tpu.dot_dimension_numbers<[1], [0], [0], [1], [0, 0, 1, 1], [], []>} : vector<8x4xbf16>, vector<4x8xbf16>, vector<8x8xf32> -> vector<8x8xf32>
    %19 = arith.addf %13, %18 : vector<8x8xf32>
    %c0_19 = arith.constant 0 : index
    %c0_20 = arith.constant 0 : index
    %c3 = arith.constant 3 : index
    %20 = vector.load %arg1[%c0_19, %c0_20, %c3] : memref<1x4x12xbf16, #tpu.memory_space<vmem>>, vector<1x4x8xbf16>
    %21 = vector.shape_cast %20 : vector<1x4x8xbf16> to vector<4x8xbf16>
    %c3_21 = arith.constant 3 : index
    %c0_22 = arith.constant 0 : index
    %c0_23 = arith.constant 0 : index
    %22 = vector.load %arg2[%c3_21, %c0_22, %c0_23] : memref<5x8x4xbf16, #tpu.memory_space<vmem>>, vector<1x8x4xbf16>
    %23 = vector.shape_cast %22 : vector<1x8x4xbf16> to vector<8x4xbf16>
    %cst_24 = arith.constant dense<0.000000e+00> : vector<8x8xf32>
    %24 = tpu.matmul %23, %21, %cst_24 {dimension_numbers = #tpu.dot_dimension_numbers<[1], [0], [0], [1], [0, 0, 1, 1], [], []>} : vector<8x4xbf16>, vector<4x8xbf16>, vector<8x8xf32> -> vector<8x8xf32>
    %25 = arith.addf %19, %24 : vector<8x8xf32>
    %c0_25 = arith.constant 0 : index
    %c0_26 = arith.constant 0 : index
    %c4 = arith.constant 4 : index
    %26 = vector.load %arg1[%c0_25, %c0_26, %c4] : memref<1x4x12xbf16, #tpu.memory_space<vmem>>, vector<1x4x8xbf16>
    %27 = vector.shape_cast %26 : vector<1x4x8xbf16> to vector<4x8xbf16>
    %c4_27 = arith.constant 4 : index
    %c0_28 = arith.constant 0 : index
    %c0_29 = arith.constant 0 : index
    %28 = vector.load %arg2[%c4_27, %c0_28, %c0_29] : memref<5x8x4xbf16, #tpu.memory_space<vmem>>, vector<1x8x4xbf16>
    %29 = vector.shape_cast %28 : vector<1x8x4xbf16> to vector<8x4xbf16>
    %cst_30 = arith.constant dense<0.000000e+00> : vector<8x8xf32>
    %30 = tpu.matmul %29, %27, %cst_30 {dimension_numbers = #tpu.dot_dimension_numbers<[1], [0], [0], [1], [0, 0, 1, 1], [], []>} : vector<8x4xbf16>, vector<4x8xbf16>, vector<8x8xf32> -> vector<8x8xf32>
    %31 = arith.addf %25, %30 : vector<8x8xf32>
    %c0_31 = arith.constant 0 : index
    %c0_32 = arith.constant 0 : index
    %32 = vector.load %arg4[%c0_31, %c0_32] : memref<8x1xf32, #tpu.memory_space<vmem>>, vector<8x1xf32>
    %cst_33 = arith.constant 0.000000e+00 : f32
    %33 = vector.broadcast %cst_33 : f32 to vector<8x8xf32>
    %34 = arith.cmpf oge, %31, %33 : vector<8x8xf32>
    %35 = vector.broadcast %32 : vector<8x1xf32> to vector<8x8xf32>
    %36 = arith.mulf %35, %31 : vector<8x8xf32>
    %37 = arith.select %34, %31, %36 : vector<8x8xi1>, vector<8x8xf32>
    %38 = arith.truncf %37 : vector<8x8xf32> to vector<8x8xbf16>
    %c0_34 = arith.constant 0 : index
    %c0_35 = arith.constant 0 : index
    %c0_36 = arith.constant 0 : index
    %39 = vector.load %arg5[%c0_34, %c0_35, %c0_36] : memref<1x8x8xbf16, #tpu.memory_space<vmem>>, vector<1x8x8xbf16>
    %40 = vector.shape_cast %39 : vector<1x8x8xbf16> to vector<8x8xbf16>
    %41 = vector.shape_cast %38 : vector<8x8xbf16> to vector<1x8x8xbf16>
    tpu.vector_store %arg5[%c0_34, %c0_35, %c0_36], %41 {strides = array<i32>} : memref<1x8x8xbf16, #tpu.memory_space<vmem>>, vector<1x8x8xbf16>,
    return
  }
  func.func @transform_0(%arg0: i32) -> (i32, i32, i32) {
    %c0_i32 = arith.constant 0 : i32
    %c0_i32_0 = arith.constant 0 : i32
    %c0_i32_1 = arith.constant 0 : i32
    return %arg0, %c0_i32, %c0_i32_0 : i32, i32, i32
  }
  func.func @transform_1(%arg0: i32) -> (i32, i32, i32) {
    %c0_i32 = arith.constant 0 : i32
    %c0_i32_0 = arith.constant 0 : i32
    %c0_i32_1 = arith.constant 0 : i32
    %c0_i32_2 = arith.constant 0 : i32
    return %c0_i32, %c0_i32_0, %c0_i32_1 : i32, i32, i32
  }
  func.func @transform_2(%arg0: i32) -> (i32, i32) {
    %c0_i32 = arith.constant 0 : i32
    %c0_i32_0 = arith.constant 0 : i32
    %c0_i32_1 = arith.constant 0 : i32
    return %c0_i32, %c0_i32_0 : i32, i32
  }
  func.func @transform_3(%arg0: i32) -> (i32, i32) {
    %c0_i32 = arith.constant 0 : i32
    %c0_i32_0 = arith.constant 0 : i32
    %c0_i32_1 = arith.constant 0 : i32
    return %c0_i32, %c0_i32_0 : i32, i32
  }
  func.func @transform_4(%arg0: i32) -> (i32, i32, i32) {
    %c0_i32 = arith.constant 0 : i32
    %c0_i32_0 = arith.constant 0 : i32
    %c0_i32_1 = arith.constant 0 : i32
    return %arg0, %c0_i32, %c0_i32_0 : i32, i32, i32
  }
}

module attributes {stable_mosaic.version = 11 : i64} {
  func.func @_conv_act_kernel(%arg0: i32, %arg1: memref<1x64x4xbf16, #tpu.memory_space<vmem>>, %arg2: memref<1x8x64xbf16, #tpu.memory_space<vmem>>, %arg3: memref<8x1xf32, #tpu.memory_space<vmem>>, %arg4: memref<8x1xf32, #tpu.memory_space<vmem>>, %arg5: memref<1x8x4xbf16, #tpu.memory_space<vmem>>) attributes {dimension_semantics = [#tpu.dimension_semantics<parallel>], iteration_bounds = array<i64: 2>, scalar_prefetch = 0 : i64, scratch_operands = 0 : i64, tpu.core_type = #tpu.core_type<tc>, window_params = [{transform_indices = @transform_0, window_bounds = array<i64: 1, 64, 4>}, {pipeline_mode = #tpu.pipeline_mode<synchronous>, transform_indices = @transform_1, window_bounds = array<i64: 1, 8, 64>}, {pipeline_mode = #tpu.pipeline_mode<synchronous>, transform_indices = @transform_2, window_bounds = array<i64: 8, 1>}, {pipeline_mode = #tpu.pipeline_mode<synchronous>, transform_indices = @transform_3, window_bounds = array<i64: 8, 1>}, {transform_indices = @transform_4, window_bounds = array<i64: 1, 8, 4>}]} {
    %c0 = arith.constant 0 : index
    %c0_0 = arith.constant 0 : index
    %0 = vector.load %arg3[%c0, %c0_0] : memref<8x1xf32, #tpu.memory_space<vmem>>, vector<8x1xf32>
    %c0_1 = arith.constant 0 : index
    %c0_2 = arith.constant 0 : index
    %c0_3 = arith.constant 0 : index
    %1 = vector.load %arg1[%c0_1, %c0_2, %c0_3] : memref<1x64x4xbf16, #tpu.memory_space<vmem>>, vector<1x64x4xbf16>
    %2 = vector.shape_cast %1 : vector<1x64x4xbf16> to vector<64x4xbf16>
    %c0_4 = arith.constant 0 : index
    %c0_5 = arith.constant 0 : index
    %c0_6 = arith.constant 0 : index
    %3 = vector.load %arg2[%c0_4, %c0_5, %c0_6] : memref<1x8x64xbf16, #tpu.memory_space<vmem>>, vector<1x8x64xbf16>
    %4 = vector.shape_cast %3 : vector<1x8x64xbf16> to vector<8x64xbf16>
    %cst = arith.constant dense<0.000000e+00> : vector<8x4xf32>
    %5 = tpu.matmul %4, %2, %cst {dimension_numbers = #tpu.dot_dimension_numbers<[1], [0], [0], [1], [0, 0, 1, 1], [], []>} : vector<8x64xbf16>, vector<64x4xbf16>, vector<8x4xf32> -> vector<8x4xf32>
    %6 = vector.broadcast %0 : vector<8x1xf32> to vector<8x4xf32>
    %7 = arith.addf %6, %5 : vector<8x4xf32>
    %c0_7 = arith.constant 0 : index
    %c0_8 = arith.constant 0 : index
    %8 = vector.load %arg4[%c0_7, %c0_8] : memref<8x1xf32, #tpu.memory_space<vmem>>, vector<8x1xf32>
    %cst_9 = arith.constant 0.000000e+00 : f32
    %9 = vector.broadcast %cst_9 : f32 to vector<8x4xf32>
    %10 = arith.cmpf oge, %7, %9 : vector<8x4xf32>
    %11 = vector.broadcast %8 : vector<8x1xf32> to vector<8x4xf32>
    %12 = arith.mulf %11, %7 : vector<8x4xf32>
    %13 = arith.select %10, %7, %12 : vector<8x4xi1>, vector<8x4xf32>
    %14 = arith.truncf %13 : vector<8x4xf32> to vector<8x4xbf16>
    %c0_10 = arith.constant 0 : index
    %c0_11 = arith.constant 0 : index
    %c0_12 = arith.constant 0 : index
    %15 = vector.load %arg5[%c0_10, %c0_11, %c0_12] : memref<1x8x4xbf16, #tpu.memory_space<vmem>>, vector<1x8x4xbf16>
    %16 = vector.shape_cast %15 : vector<1x8x4xbf16> to vector<8x4xbf16>
    %17 = vector.shape_cast %14 : vector<8x4xbf16> to vector<1x8x4xbf16>
    tpu.vector_store %arg5[%c0_10, %c0_11, %c0_12], %17 {strides = array<i32>} : memref<1x8x4xbf16, #tpu.memory_space<vmem>>, vector<1x8x4xbf16>,
    return
  }
  func.func @transform_0(%arg0: i32) -> (i32, i32, i32) {
    %c0_i32 = arith.constant 0 : i32
    %c0_i32_0 = arith.constant 0 : i32
    %c0_i32_1 = arith.constant 0 : i32
    return %arg0, %c0_i32, %c0_i32_0 : i32, i32, i32
  }
  func.func @transform_1(%arg0: i32) -> (i32, i32, i32) {
    %c0_i32 = arith.constant 0 : i32
    %c0_i32_0 = arith.constant 0 : i32
    %c0_i32_1 = arith.constant 0 : i32
    %c0_i32_2 = arith.constant 0 : i32
    return %c0_i32, %c0_i32_0, %c0_i32_1 : i32, i32, i32
  }
  func.func @transform_2(%arg0: i32) -> (i32, i32) {
    %c0_i32 = arith.constant 0 : i32
    %c0_i32_0 = arith.constant 0 : i32
    %c0_i32_1 = arith.constant 0 : i32
    return %c0_i32, %c0_i32_0 : i32, i32
  }
  func.func @transform_3(%arg0: i32) -> (i32, i32) {
    %c0_i32 = arith.constant 0 : i32
    %c0_i32_0 = arith.constant 0 : i32
    %c0_i32_1 = arith.constant 0 : i32
    return %c0_i32, %c0_i32_0 : i32, i32
  }
  func.func @transform_4(%arg0: i32) -> (i32, i32, i32) {
    %c0_i32 = arith.constant 0 : i32
    %c0_i32_0 = arith.constant 0 : i32
    %c0_i32_1 = arith.constant 0 : i32
    return %arg0, %c0_i32, %c0_i32_0 : i32, i32, i32
  }
}

module attributes {stable_mosaic.version = 11 : i64} {
  func.func @_wavenet_block_kernel(%arg0: i32, %arg1: memref<1x8x6xbf16, #tpu.memory_space<vmem>>, %arg2: memref<1x8x4xf32, #tpu.memory_space<vmem>>, %arg3: memref<3x8x8xbf16, #tpu.memory_space<vmem>>, %arg4: memref<8x1xf32, #tpu.memory_space<vmem>>, %arg5: memref<3x8x8xbf16, #tpu.memory_space<vmem>>, %arg6: memref<8x1xf32, #tpu.memory_space<vmem>>, %arg7: memref<8x8xbf16, #tpu.memory_space<vmem>>, %arg8: memref<8x1xf32, #tpu.memory_space<vmem>>, %arg9: memref<8x8xbf16, #tpu.memory_space<vmem>>, %arg10: memref<8x1xf32, #tpu.memory_space<vmem>>, %arg11: memref<1x8x4xbf16, #tpu.memory_space<vmem>>, %arg12: memref<1x8x4xf32, #tpu.memory_space<vmem>>) attributes {dimension_semantics = [#tpu.dimension_semantics<parallel>], iteration_bounds = array<i64: 2>, scalar_prefetch = 0 : i64, scratch_operands = 0 : i64, tpu.core_type = #tpu.core_type<tc>, window_params = [{transform_indices = @transform_0, window_bounds = array<i64: 1, 8, 6>}, {transform_indices = @transform_1, window_bounds = array<i64: 1, 8, 4>}, {pipeline_mode = #tpu.pipeline_mode<synchronous>, transform_indices = @transform_2, window_bounds = array<i64: 3, 8, 8>}, {pipeline_mode = #tpu.pipeline_mode<synchronous>, transform_indices = @transform_3, window_bounds = array<i64: 8, 1>}, {pipeline_mode = #tpu.pipeline_mode<synchronous>, transform_indices = @transform_4, window_bounds = array<i64: 3, 8, 8>}, {pipeline_mode = #tpu.pipeline_mode<synchronous>, transform_indices = @transform_5, window_bounds = array<i64: 8, 1>}, {pipeline_mode = #tpu.pipeline_mode<synchronous>, transform_indices = @transform_6, window_bounds = array<i64: 8, 8>}, {pipeline_mode = #tpu.pipeline_mode<synchronous>, transform_indices = @transform_7, window_bounds = array<i64: 8, 1>}, {pipeline_mode = #tpu.pipeline_mode<synchronous>, transform_indices = @transform_8, window_bounds = array<i64: 8, 8>}, {pipeline_mode = #tpu.pipeline_mode<synchronous>, transform_indices = @transform_9, window_bounds = array<i64: 8, 1>}, {transform_indices = @transform_10, window_bounds = array<i64: 1, 8, 4>}, {transform_indices = @transform_11, window_bounds = array<i64: 1, 8, 4>}]} {
    %c0 = arith.constant 0 : index
    %c0_0 = arith.constant 0 : index
    %0 = vector.load %arg4[%c0, %c0_0] : memref<8x1xf32, #tpu.memory_space<vmem>>, vector<8x1xf32>
    %c0_1 = arith.constant 0 : index
    %c0_2 = arith.constant 0 : index
    %1 = vector.load %arg6[%c0_1, %c0_2] : memref<8x1xf32, #tpu.memory_space<vmem>>, vector<8x1xf32>
    %c0_3 = arith.constant 0 : index
    %c0_4 = arith.constant 0 : index
    %c0_5 = arith.constant 0 : index
    %2 = vector.load %arg1[%c0_3, %c0_4, %c0_5] : memref<1x8x6xbf16, #tpu.memory_space<vmem>>, vector<1x8x4xbf16>
    %3 = vector.shape_cast %2 : vector<1x8x4xbf16> to vector<8x4xbf16>
    %c0_6 = arith.constant 0 : index
    %c0_7 = arith.constant 0 : index
    %c0_8 = arith.constant 0 : index
    %4 = vector.load %arg3[%c0_6, %c0_7, %c0_8] : memref<3x8x8xbf16, #tpu.memory_space<vmem>>, vector<1x8x8xbf16>
    %5 = vector.shape_cast %4 : vector<1x8x8xbf16> to vector<8x8xbf16>
    %cst = arith.constant dense<0.000000e+00> : vector<8x4xf32>
    %6 = tpu.matmul %5, %3, %cst {dimension_numbers = #tpu.dot_dimension_numbers<[1], [0], [0], [1], [0, 0, 1, 1], [], []>} : vector<8x8xbf16>, vector<8x4xbf16>, vector<8x4xf32> -> vector<8x4xf32>
    %7 = vector.broadcast %0 : vector<8x1xf32> to vector<8x4xf32>
    %8 = arith.addf %7, %6 : vector<8x4xf32>
    %c0_9 = arith.constant 0 : index
    %c0_10 = arith.constant 0 : index
    %c0_11 = arith.constant 0 : index
    %9 = vector.load %arg5[%c0_9, %c0_10, %c0_11] : memref<3x8x8xbf16, #tpu.memory_space<vmem>>, vector<1x8x8xbf16>
    %10 = vector.shape_cast %9 : vector<1x8x8xbf16> to vector<8x8xbf16>
    %cst_12 = arith.constant dense<0.000000e+00> : vector<8x4xf32>
    %11 = tpu.matmul %10, %3, %cst_12 {dimension_numbers = #tpu.dot_dimension_numbers<[1], [0], [0], [1], [0, 0, 1, 1], [], []>} : vector<8x8xbf16>, vector<8x4xbf16>, vector<8x4xf32> -> vector<8x4xf32>
    %12 = vector.broadcast %1 : vector<8x1xf32> to vector<8x4xf32>
    %13 = arith.addf %12, %11 : vector<8x4xf32>
    %c0_13 = arith.constant 0 : index
    %c0_14 = arith.constant 0 : index
    %c1 = arith.constant 1 : index
    %14 = vector.load %arg1[%c0_13, %c0_14, %c1] : memref<1x8x6xbf16, #tpu.memory_space<vmem>>, vector<1x8x4xbf16>
    %15 = vector.shape_cast %14 : vector<1x8x4xbf16> to vector<8x4xbf16>
    %c1_15 = arith.constant 1 : index
    %c0_16 = arith.constant 0 : index
    %c0_17 = arith.constant 0 : index
    %16 = vector.load %arg3[%c1_15, %c0_16, %c0_17] : memref<3x8x8xbf16, #tpu.memory_space<vmem>>, vector<1x8x8xbf16>
    %17 = vector.shape_cast %16 : vector<1x8x8xbf16> to vector<8x8xbf16>
    %cst_18 = arith.constant dense<0.000000e+00> : vector<8x4xf32>
    %18 = tpu.matmul %17, %15, %cst_18 {dimension_numbers = #tpu.dot_dimension_numbers<[1], [0], [0], [1], [0, 0, 1, 1], [], []>} : vector<8x8xbf16>, vector<8x4xbf16>, vector<8x4xf32> -> vector<8x4xf32>
    %19 = arith.addf %8, %18 : vector<8x4xf32>
    %c1_19 = arith.constant 1 : index
    %c0_20 = arith.constant 0 : index
    %c0_21 = arith.constant 0 : index
    %20 = vector.load %arg5[%c1_19, %c0_20, %c0_21] : memref<3x8x8xbf16, #tpu.memory_space<vmem>>, vector<1x8x8xbf16>
    %21 = vector.shape_cast %20 : vector<1x8x8xbf16> to vector<8x8xbf16>
    %cst_22 = arith.constant dense<0.000000e+00> : vector<8x4xf32>
    %22 = tpu.matmul %21, %15, %cst_22 {dimension_numbers = #tpu.dot_dimension_numbers<[1], [0], [0], [1], [0, 0, 1, 1], [], []>} : vector<8x8xbf16>, vector<8x4xbf16>, vector<8x4xf32> -> vector<8x4xf32>
    %23 = arith.addf %13, %22 : vector<8x4xf32>
    %c0_23 = arith.constant 0 : index
    %c0_24 = arith.constant 0 : index
    %c2 = arith.constant 2 : index
    %24 = vector.load %arg1[%c0_23, %c0_24, %c2] : memref<1x8x6xbf16, #tpu.memory_space<vmem>>, vector<1x8x4xbf16>
    %25 = vector.shape_cast %24 : vector<1x8x4xbf16> to vector<8x4xbf16>
    %c2_25 = arith.constant 2 : index
    %c0_26 = arith.constant 0 : index
    %c0_27 = arith.constant 0 : index
    %26 = vector.load %arg3[%c2_25, %c0_26, %c0_27] : memref<3x8x8xbf16, #tpu.memory_space<vmem>>, vector<1x8x8xbf16>
    %27 = vector.shape_cast %26 : vector<1x8x8xbf16> to vector<8x8xbf16>
    %cst_28 = arith.constant dense<0.000000e+00> : vector<8x4xf32>
    %28 = tpu.matmul %27, %25, %cst_28 {dimension_numbers = #tpu.dot_dimension_numbers<[1], [0], [0], [1], [0, 0, 1, 1], [], []>} : vector<8x8xbf16>, vector<8x4xbf16>, vector<8x4xf32> -> vector<8x4xf32>
    %29 = arith.addf %19, %28 : vector<8x4xf32>
    %c2_29 = arith.constant 2 : index
    %c0_30 = arith.constant 0 : index
    %c0_31 = arith.constant 0 : index
    %30 = vector.load %arg5[%c2_29, %c0_30, %c0_31] : memref<3x8x8xbf16, #tpu.memory_space<vmem>>, vector<1x8x8xbf16>
    %31 = vector.shape_cast %30 : vector<1x8x8xbf16> to vector<8x8xbf16>
    %cst_32 = arith.constant dense<0.000000e+00> : vector<8x4xf32>
    %32 = tpu.matmul %31, %25, %cst_32 {dimension_numbers = #tpu.dot_dimension_numbers<[1], [0], [0], [1], [0, 0, 1, 1], [], []>} : vector<8x8xbf16>, vector<8x4xbf16>, vector<8x4xf32> -> vector<8x4xf32>
    %33 = arith.addf %23, %32 : vector<8x4xf32>
    %34 = math.tanh %29 : vector<8x4xf32>
    %35 = arith.negf %33 : vector<8x4xf32>
    %36 = math.exp %35 : vector<8x4xf32>
    %cst_33 = arith.constant 1.000000e+00 : f32
    %37 = vector.broadcast %cst_33 : f32 to vector<8x4xf32>
    %38 = arith.addf %37, %36 : vector<8x4xf32>
    %39 = arith.divf %37, %38 : vector<8x4xf32>
    %40 = arith.mulf %34, %39 : vector<8x4xf32>
    %41 = arith.truncf %40 : vector<8x4xf32> to vector<8x4xbf16>
    %c0_34 = arith.constant 0 : index
    %c0_35 = arith.constant 0 : index
    %42 = vector.load %arg7[%c0_34, %c0_35] : memref<8x8xbf16, #tpu.memory_space<vmem>>, vector<8x8xbf16>
    %cst_36 = arith.constant dense<0.000000e+00> : vector<8x4xf32>
    %43 = tpu.matmul %42, %41, %cst_36 {dimension_numbers = #tpu.dot_dimension_numbers<[1], [0], [0], [1], [0, 0, 1, 1], [], []>} : vector<8x8xbf16>, vector<8x4xbf16>, vector<8x4xf32> -> vector<8x4xf32>
    %c0_37 = arith.constant 0 : index
    %c0_38 = arith.constant 0 : index
    %44 = vector.load %arg8[%c0_37, %c0_38] : memref<8x1xf32, #tpu.memory_space<vmem>>, vector<8x1xf32>
    %45 = vector.broadcast %44 : vector<8x1xf32> to vector<8x4xf32>
    %46 = arith.addf %43, %45 : vector<8x4xf32>
    %c0_39 = arith.constant 0 : index
    %c0_40 = arith.constant 0 : index
    %47 = vector.load %arg9[%c0_39, %c0_40] : memref<8x8xbf16, #tpu.memory_space<vmem>>, vector<8x8xbf16>
    %cst_41 = arith.constant dense<0.000000e+00> : vector<8x4xf32>
    %48 = tpu.matmul %47, %41, %cst_41 {dimension_numbers = #tpu.dot_dimension_numbers<[1], [0], [0], [1], [0, 0, 1, 1], [], []>} : vector<8x8xbf16>, vector<8x4xbf16>, vector<8x4xf32> -> vector<8x4xf32>
    %c0_42 = arith.constant 0 : index
    %c0_43 = arith.constant 0 : index
    %49 = vector.load %arg10[%c0_42, %c0_43] : memref<8x1xf32, #tpu.memory_space<vmem>>, vector<8x1xf32>
    %50 = vector.broadcast %49 : vector<8x1xf32> to vector<8x4xf32>
    %51 = arith.addf %48, %50 : vector<8x4xf32>
    %c0_44 = arith.constant 0 : index
    %c0_45 = arith.constant 0 : index
    %c1_46 = arith.constant 1 : index
    %52 = vector.load %arg1[%c0_44, %c0_45, %c1_46] : memref<1x8x6xbf16, #tpu.memory_space<vmem>>, vector<1x8x4xbf16>
    %53 = vector.shape_cast %52 : vector<1x8x4xbf16> to vector<8x4xbf16>
    %54 = arith.extf %53 : vector<8x4xbf16> to vector<8x4xf32>
    %55 = arith.addf %54, %46 : vector<8x4xf32>
    %56 = arith.truncf %55 : vector<8x4xf32> to vector<8x4xbf16>
    %c0_47 = arith.constant 0 : index
    %c0_48 = arith.constant 0 : index
    %c0_49 = arith.constant 0 : index
    %57 = vector.load %arg11[%c0_47, %c0_48, %c0_49] : memref<1x8x4xbf16, #tpu.memory_space<vmem>>, vector<1x8x4xbf16>
    %58 = vector.shape_cast %57 : vector<1x8x4xbf16> to vector<8x4xbf16>
    %59 = vector.shape_cast %56 : vector<8x4xbf16> to vector<1x8x4xbf16>
    tpu.vector_store %arg11[%c0_47, %c0_48, %c0_49], %59 {strides = array<i32>} : memref<1x8x4xbf16, #tpu.memory_space<vmem>>, vector<1x8x4xbf16>,
    %c0_50 = arith.constant 0 : index
    %c0_51 = arith.constant 0 : index
    %c0_52 = arith.constant 0 : index
    %60 = vector.load %arg2[%c0_50, %c0_51, %c0_52] : memref<1x8x4xf32, #tpu.memory_space<vmem>>, vector<1x8x4xf32>
    %61 = vector.shape_cast %60 : vector<1x8x4xf32> to vector<8x4xf32>
    %62 = arith.addf %61, %51 : vector<8x4xf32>
    %c0_53 = arith.constant 0 : index
    %c0_54 = arith.constant 0 : index
    %c0_55 = arith.constant 0 : index
    %63 = vector.load %arg12[%c0_53, %c0_54, %c0_55] : memref<1x8x4xf32, #tpu.memory_space<vmem>>, vector<1x8x4xf32>
    %64 = vector.shape_cast %63 : vector<1x8x4xf32> to vector<8x4xf32>
    %65 = vector.shape_cast %62 : vector<8x4xf32> to vector<1x8x4xf32>
    tpu.vector_store %arg12[%c0_53, %c0_54, %c0_55], %65 {strides = array<i32>} : memref<1x8x4xf32, #tpu.memory_space<vmem>>, vector<1x8x4xf32>,
    return
  }
  func.func @transform_0(%arg0: i32) -> (i32, i32, i32) {
    %c0_i32 = arith.constant 0 : i32
    %c0_i32_0 = arith.constant 0 : i32
    %c0_i32_1 = arith.constant 0 : i32
    return %arg0, %c0_i32, %c0_i32_0 : i32, i32, i32
  }
  func.func @transform_1(%arg0: i32) -> (i32, i32, i32) {
    %c0_i32 = arith.constant 0 : i32
    %c0_i32_0 = arith.constant 0 : i32
    %c0_i32_1 = arith.constant 0 : i32
    return %arg0, %c0_i32, %c0_i32_0 : i32, i32, i32
  }
  func.func @transform_2(%arg0: i32) -> (i32, i32, i32) {
    %c0_i32 = arith.constant 0 : i32
    %c0_i32_0 = arith.constant 0 : i32
    %c0_i32_1 = arith.constant 0 : i32
    %c0_i32_2 = arith.constant 0 : i32
    return %c0_i32, %c0_i32_0, %c0_i32_1 : i32, i32, i32
  }
  func.func @transform_3(%arg0: i32) -> (i32, i32) {
    %c0_i32 = arith.constant 0 : i32
    %c0_i32_0 = arith.constant 0 : i32
    %c0_i32_1 = arith.constant 0 : i32
    return %c0_i32, %c0_i32_0 : i32, i32
  }
  func.func @transform_4(%arg0: i32) -> (i32, i32, i32) {
    %c0_i32 = arith.constant 0 : i32
    %c0_i32_0 = arith.constant 0 : i32
    %c0_i32_1 = arith.constant 0 : i32
    %c0_i32_2 = arith.constant 0 : i32
    return %c0_i32, %c0_i32_0, %c0_i32_1 : i32, i32, i32
  }
  func.func @transform_5(%arg0: i32) -> (i32, i32) {
    %c0_i32 = arith.constant 0 : i32
    %c0_i32_0 = arith.constant 0 : i32
    %c0_i32_1 = arith.constant 0 : i32
    return %c0_i32, %c0_i32_0 : i32, i32
  }
  func.func @transform_6(%arg0: i32) -> (i32, i32) {
    %c0_i32 = arith.constant 0 : i32
    %c0_i32_0 = arith.constant 0 : i32
    %c0_i32_1 = arith.constant 0 : i32
    return %c0_i32, %c0_i32_0 : i32, i32
  }
  func.func @transform_7(%arg0: i32) -> (i32, i32) {
    %c0_i32 = arith.constant 0 : i32
    %c0_i32_0 = arith.constant 0 : i32
    %c0_i32_1 = arith.constant 0 : i32
    return %c0_i32, %c0_i32_0 : i32, i32
  }
  func.func @transform_8(%arg0: i32) -> (i32, i32) {
    %c0_i32 = arith.constant 0 : i32
    %c0_i32_0 = arith.constant 0 : i32
    %c0_i32_1 = arith.constant 0 : i32
    return %c0_i32, %c0_i32_0 : i32, i32
  }
  func.func @transform_9(%arg0: i32) -> (i32, i32) {
    %c0_i32 = arith.constant 0 : i32
    %c0_i32_0 = arith.constant 0 : i32
    %c0_i32_1 = arith.constant 0 : i32
    return %c0_i32, %c0_i32_0 : i32, i32
  }
  func.func @transform_10(%arg0: i32) -> (i32, i32, i32) {
    %c0_i32 = arith.constant 0 : i32
    %c0_i32_0 = arith.constant 0 : i32
    %c0_i32_1 = arith.constant 0 : i32
    return %arg0, %c0_i32, %c0_i32_0 : i32, i32, i32
  }
  func.func @transform_11(%arg0: i32) -> (i32, i32, i32) {
    %c0_i32 = arith.constant 0 : i32
    %c0_i32_0 = arith.constant 0 : i32
    %c0_i32_1 = arith.constant 0 : i32
    return %arg0, %c0_i32, %c0_i32_0 : i32, i32, i32
  }
}

module attributes {stable_mosaic.version = 11 : i64} {
  func.func @_wavenet_block_kernel(%arg0: i32, %arg1: memref<1x8x8xbf16, #tpu.memory_space<vmem>>, %arg2: memref<1x8x4xf32, #tpu.memory_space<vmem>>, %arg3: memref<3x8x8xbf16, #tpu.memory_space<vmem>>, %arg4: memref<8x1xf32, #tpu.memory_space<vmem>>, %arg5: memref<3x8x8xbf16, #tpu.memory_space<vmem>>, %arg6: memref<8x1xf32, #tpu.memory_space<vmem>>, %arg7: memref<8x8xbf16, #tpu.memory_space<vmem>>, %arg8: memref<8x1xf32, #tpu.memory_space<vmem>>, %arg9: memref<8x8xbf16, #tpu.memory_space<vmem>>, %arg10: memref<8x1xf32, #tpu.memory_space<vmem>>, %arg11: memref<1x8x4xbf16, #tpu.memory_space<vmem>>, %arg12: memref<1x8x4xf32, #tpu.memory_space<vmem>>) attributes {dimension_semantics = [#tpu.dimension_semantics<parallel>], iteration_bounds = array<i64: 2>, scalar_prefetch = 0 : i64, scratch_operands = 0 : i64, tpu.core_type = #tpu.core_type<tc>, window_params = [{transform_indices = @transform_0, window_bounds = array<i64: 1, 8, 8>}, {transform_indices = @transform_1, window_bounds = array<i64: 1, 8, 4>}, {pipeline_mode = #tpu.pipeline_mode<synchronous>, transform_indices = @transform_2, window_bounds = array<i64: 3, 8, 8>}, {pipeline_mode = #tpu.pipeline_mode<synchronous>, transform_indices = @transform_3, window_bounds = array<i64: 8, 1>}, {pipeline_mode = #tpu.pipeline_mode<synchronous>, transform_indices = @transform_4, window_bounds = array<i64: 3, 8, 8>}, {pipeline_mode = #tpu.pipeline_mode<synchronous>, transform_indices = @transform_5, window_bounds = array<i64: 8, 1>}, {pipeline_mode = #tpu.pipeline_mode<synchronous>, transform_indices = @transform_6, window_bounds = array<i64: 8, 8>}, {pipeline_mode = #tpu.pipeline_mode<synchronous>, transform_indices = @transform_7, window_bounds = array<i64: 8, 1>}, {pipeline_mode = #tpu.pipeline_mode<synchronous>, transform_indices = @transform_8, window_bounds = array<i64: 8, 8>}, {pipeline_mode = #tpu.pipeline_mode<synchronous>, transform_indices = @transform_9, window_bounds = array<i64: 8, 1>}, {transform_indices = @transform_10, window_bounds = array<i64: 1, 8, 4>}, {transform_indices = @transform_11, window_bounds = array<i64: 1, 8, 4>}]} {
    %c0 = arith.constant 0 : index
    %c0_0 = arith.constant 0 : index
    %0 = vector.load %arg4[%c0, %c0_0] : memref<8x1xf32, #tpu.memory_space<vmem>>, vector<8x1xf32>
    %c0_1 = arith.constant 0 : index
    %c0_2 = arith.constant 0 : index
    %1 = vector.load %arg6[%c0_1, %c0_2] : memref<8x1xf32, #tpu.memory_space<vmem>>, vector<8x1xf32>
    %c0_3 = arith.constant 0 : index
    %c0_4 = arith.constant 0 : index
    %c0_5 = arith.constant 0 : index
    %2 = vector.load %arg1[%c0_3, %c0_4, %c0_5] : memref<1x8x8xbf16, #tpu.memory_space<vmem>>, vector<1x8x4xbf16>
    %3 = vector.shape_cast %2 : vector<1x8x4xbf16> to vector<8x4xbf16>
    %c0_6 = arith.constant 0 : index
    %c0_7 = arith.constant 0 : index
    %c0_8 = arith.constant 0 : index
    %4 = vector.load %arg3[%c0_6, %c0_7, %c0_8] : memref<3x8x8xbf16, #tpu.memory_space<vmem>>, vector<1x8x8xbf16>
    %5 = vector.shape_cast %4 : vector<1x8x8xbf16> to vector<8x8xbf16>
    %cst = arith.constant dense<0.000000e+00> : vector<8x4xf32>
    %6 = tpu.matmul %5, %3, %cst {dimension_numbers = #tpu.dot_dimension_numbers<[1], [0], [0], [1], [0, 0, 1, 1], [], []>} : vector<8x8xbf16>, vector<8x4xbf16>, vector<8x4xf32> -> vector<8x4xf32>
    %7 = vector.broadcast %0 : vector<8x1xf32> to vector<8x4xf32>
    %8 = arith.addf %7, %6 : vector<8x4xf32>
    %c0_9 = arith.constant 0 : index
    %c0_10 = arith.constant 0 : index
    %c0_11 = arith.constant 0 : index
    %9 = vector.load %arg5[%c0_9, %c0_10, %c0_11] : memref<3x8x8xbf16, #tpu.memory_space<vmem>>, vector<1x8x8xbf16>
    %10 = vector.shape_cast %9 : vector<1x8x8xbf16> to vector<8x8xbf16>
    %cst_12 = arith.constant dense<0.000000e+00> : vector<8x4xf32>
    %11 = tpu.matmul %10, %3, %cst_12 {dimension_numbers = #tpu.dot_dimension_numbers<[1], [0], [0], [1], [0, 0, 1, 1], [], []>} : vector<8x8xbf16>, vector<8x4xbf16>, vector<8x4xf32> -> vector<8x4xf32>
    %12 = vector.broadcast %1 : vector<8x1xf32> to vector<8x4xf32>
    %13 = arith.addf %12, %11 : vector<8x4xf32>
    %c0_13 = arith.constant 0 : index
    %c0_14 = arith.constant 0 : index
    %c2 = arith.constant 2 : index
    %14 = vector.load %arg1[%c0_13, %c0_14, %c2] : memref<1x8x8xbf16, #tpu.memory_space<vmem>>, vector<1x8x4xbf16>
    %15 = vector.shape_cast %14 : vector<1x8x4xbf16> to vector<8x4xbf16>
    %c1 = arith.constant 1 : index
    %c0_15 = arith.constant 0 : index
    %c0_16 = arith.constant 0 : index
    %16 = vector.load %arg3[%c1, %c0_15, %c0_16] : memref<3x8x8xbf16, #tpu.memory_space<vmem>>, vector<1x8x8xbf16>
    %17 = vector.shape_cast %16 : vector<1x8x8xbf16> to vector<8x8xbf16>
    %cst_17 = arith.constant dense<0.000000e+00> : vector<8x4xf32>
    %18 = tpu.matmul %17, %15, %cst_17 {dimension_numbers = #tpu.dot_dimension_numbers<[1], [0], [0], [1], [0, 0, 1, 1], [], []>} : vector<8x8xbf16>, vector<8x4xbf16>, vector<8x4xf32> -> vector<8x4xf32>
    %19 = arith.addf %8, %18 : vector<8x4xf32>
    %c1_18 = arith.constant 1 : index
    %c0_19 = arith.constant 0 : index
    %c0_20 = arith.constant 0 : index
    %20 = vector.load %arg5[%c1_18, %c0_19, %c0_20] : memref<3x8x8xbf16, #tpu.memory_space<vmem>>, vector<1x8x8xbf16>
    %21 = vector.shape_cast %20 : vector<1x8x8xbf16> to vector<8x8xbf16>
    %cst_21 = arith.constant dense<0.000000e+00> : vector<8x4xf32>
    %22 = tpu.matmul %21, %15, %cst_21 {dimension_numbers = #tpu.dot_dimension_numbers<[1], [0], [0], [1], [0, 0, 1, 1], [], []>} : vector<8x8xbf16>, vector<8x4xbf16>, vector<8x4xf32> -> vector<8x4xf32>
    %23 = arith.addf %13, %22 : vector<8x4xf32>
    %c0_22 = arith.constant 0 : index
    %c0_23 = arith.constant 0 : index
    %c4 = arith.constant 4 : index
    %24 = vector.load %arg1[%c0_22, %c0_23, %c4] : memref<1x8x8xbf16, #tpu.memory_space<vmem>>, vector<1x8x4xbf16>
    %25 = vector.shape_cast %24 : vector<1x8x4xbf16> to vector<8x4xbf16>
    %c2_24 = arith.constant 2 : index
    %c0_25 = arith.constant 0 : index
    %c0_26 = arith.constant 0 : index
    %26 = vector.load %arg3[%c2_24, %c0_25, %c0_26] : memref<3x8x8xbf16, #tpu.memory_space<vmem>>, vector<1x8x8xbf16>
    %27 = vector.shape_cast %26 : vector<1x8x8xbf16> to vector<8x8xbf16>
    %cst_27 = arith.constant dense<0.000000e+00> : vector<8x4xf32>
    %28 = tpu.matmul %27, %25, %cst_27 {dimension_numbers = #tpu.dot_dimension_numbers<[1], [0], [0], [1], [0, 0, 1, 1], [], []>} : vector<8x8xbf16>, vector<8x4xbf16>, vector<8x4xf32> -> vector<8x4xf32>
    %29 = arith.addf %19, %28 : vector<8x4xf32>
    %c2_28 = arith.constant 2 : index
    %c0_29 = arith.constant 0 : index
    %c0_30 = arith.constant 0 : index
    %30 = vector.load %arg5[%c2_28, %c0_29, %c0_30] : memref<3x8x8xbf16, #tpu.memory_space<vmem>>, vector<1x8x8xbf16>
    %31 = vector.shape_cast %30 : vector<1x8x8xbf16> to vector<8x8xbf16>
    %cst_31 = arith.constant dense<0.000000e+00> : vector<8x4xf32>
    %32 = tpu.matmul %31, %25, %cst_31 {dimension_numbers = #tpu.dot_dimension_numbers<[1], [0], [0], [1], [0, 0, 1, 1], [], []>} : vector<8x8xbf16>, vector<8x4xbf16>, vector<8x4xf32> -> vector<8x4xf32>
    %33 = arith.addf %23, %32 : vector<8x4xf32>
    %34 = math.tanh %29 : vector<8x4xf32>
    %35 = arith.negf %33 : vector<8x4xf32>
    %36 = math.exp %35 : vector<8x4xf32>
    %cst_32 = arith.constant 1.000000e+00 : f32
    %37 = vector.broadcast %cst_32 : f32 to vector<8x4xf32>
    %38 = arith.addf %37, %36 : vector<8x4xf32>
    %39 = arith.divf %37, %38 : vector<8x4xf32>
    %40 = arith.mulf %34, %39 : vector<8x4xf32>
    %41 = arith.truncf %40 : vector<8x4xf32> to vector<8x4xbf16>
    %c0_33 = arith.constant 0 : index
    %c0_34 = arith.constant 0 : index
    %42 = vector.load %arg7[%c0_33, %c0_34] : memref<8x8xbf16, #tpu.memory_space<vmem>>, vector<8x8xbf16>
    %cst_35 = arith.constant dense<0.000000e+00> : vector<8x4xf32>
    %43 = tpu.matmul %42, %41, %cst_35 {dimension_numbers = #tpu.dot_dimension_numbers<[1], [0], [0], [1], [0, 0, 1, 1], [], []>} : vector<8x8xbf16>, vector<8x4xbf16>, vector<8x4xf32> -> vector<8x4xf32>
    %c0_36 = arith.constant 0 : index
    %c0_37 = arith.constant 0 : index
    %44 = vector.load %arg8[%c0_36, %c0_37] : memref<8x1xf32, #tpu.memory_space<vmem>>, vector<8x1xf32>
    %45 = vector.broadcast %44 : vector<8x1xf32> to vector<8x4xf32>
    %46 = arith.addf %43, %45 : vector<8x4xf32>
    %c0_38 = arith.constant 0 : index
    %c0_39 = arith.constant 0 : index
    %47 = vector.load %arg9[%c0_38, %c0_39] : memref<8x8xbf16, #tpu.memory_space<vmem>>, vector<8x8xbf16>
    %cst_40 = arith.constant dense<0.000000e+00> : vector<8x4xf32>
    %48 = tpu.matmul %47, %41, %cst_40 {dimension_numbers = #tpu.dot_dimension_numbers<[1], [0], [0], [1], [0, 0, 1, 1], [], []>} : vector<8x8xbf16>, vector<8x4xbf16>, vector<8x4xf32> -> vector<8x4xf32>
    %c0_41 = arith.constant 0 : index
    %c0_42 = arith.constant 0 : index
    %49 = vector.load %arg10[%c0_41, %c0_42] : memref<8x1xf32, #tpu.memory_space<vmem>>, vector<8x1xf32>
    %50 = vector.broadcast %49 : vector<8x1xf32> to vector<8x4xf32>
    %51 = arith.addf %48, %50 : vector<8x4xf32>
    %c0_43 = arith.constant 0 : index
    %c0_44 = arith.constant 0 : index
    %c2_45 = arith.constant 2 : index
    %52 = vector.load %arg1[%c0_43, %c0_44, %c2_45] : memref<1x8x8xbf16, #tpu.memory_space<vmem>>, vector<1x8x4xbf16>
    %53 = vector.shape_cast %52 : vector<1x8x4xbf16> to vector<8x4xbf16>
    %54 = arith.extf %53 : vector<8x4xbf16> to vector<8x4xf32>
    %55 = arith.addf %54, %46 : vector<8x4xf32>
    %56 = arith.truncf %55 : vector<8x4xf32> to vector<8x4xbf16>
    %c0_46 = arith.constant 0 : index
    %c0_47 = arith.constant 0 : index
    %c0_48 = arith.constant 0 : index
    %57 = vector.load %arg11[%c0_46, %c0_47, %c0_48] : memref<1x8x4xbf16, #tpu.memory_space<vmem>>, vector<1x8x4xbf16>
    %58 = vector.shape_cast %57 : vector<1x8x4xbf16> to vector<8x4xbf16>
    %59 = vector.shape_cast %56 : vector<8x4xbf16> to vector<1x8x4xbf16>
    tpu.vector_store %arg11[%c0_46, %c0_47, %c0_48], %59 {strides = array<i32>} : memref<1x8x4xbf16, #tpu.memory_space<vmem>>, vector<1x8x4xbf16>,
    %c0_49 = arith.constant 0 : index
    %c0_50 = arith.constant 0 : index
    %c0_51 = arith.constant 0 : index
    %60 = vector.load %arg2[%c0_49, %c0_50, %c0_51] : memref<1x8x4xf32, #tpu.memory_space<vmem>>, vector<1x8x4xf32>
    %61 = vector.shape_cast %60 : vector<1x8x4xf32> to vector<8x4xf32>
    %62 = arith.addf %61, %51 : vector<8x4xf32>
    %c0_52 = arith.constant 0 : index
    %c0_53 = arith.constant 0 : index
    %c0_54 = arith.constant 0 : index
    %63 = vector.load %arg12[%c0_52, %c0_53, %c0_54] : memref<1x8x4xf32, #tpu.memory_space<vmem>>, vector<1x8x4xf32>
    %64 = vector.shape_cast %63 : vector<1x8x4xf32> to vector<8x4xf32>
    %65 = vector.shape_cast %62 : vector<8x4xf32> to vector<1x8x4xf32>
    tpu.vector_store %arg12[%c0_52, %c0_53, %c0_54], %65 {strides = array<i32>} : memref<1x8x4xf32, #tpu.memory_space<vmem>>, vector<1x8x4xf32>,
    return
  }
  func.func @transform_0(%arg0: i32) -> (i32, i32, i32) {
    %c0_i32 = arith.constant 0 : i32
    %c0_i32_0 = arith.constant 0 : i32
    %c0_i32_1 = arith.constant 0 : i32
    return %arg0, %c0_i32, %c0_i32_0 : i32, i32, i32
  }
  func.func @transform_1(%arg0: i32) -> (i32, i32, i32) {
    %c0_i32 = arith.constant 0 : i32
    %c0_i32_0 = arith.constant 0 : i32
    %c0_i32_1 = arith.constant 0 : i32
    return %arg0, %c0_i32, %c0_i32_0 : i32, i32, i32
  }
  func.func @transform_2(%arg0: i32) -> (i32, i32, i32) {
    %c0_i32 = arith.constant 0 : i32
    %c0_i32_0 = arith.constant 0 : i32
    %c0_i32_1 = arith.constant 0 : i32
    %c0_i32_2 = arith.constant 0 : i32
    return %c0_i32, %c0_i32_0, %c0_i32_1 : i32, i32, i32
  }
  func.func @transform_3(%arg0: i32) -> (i32, i32) {
    %c0_i32 = arith.constant 0 : i32
    %c0_i32_0 = arith.constant 0 : i32
    %c0_i32_1 = arith.constant 0 : i32
    return %c0_i32, %c0_i32_0 : i32, i32
  }
  func.func @transform_4(%arg0: i32) -> (i32, i32, i32) {
    %c0_i32 = arith.constant 0 : i32
    %c0_i32_0 = arith.constant 0 : i32
    %c0_i32_1 = arith.constant 0 : i32
    %c0_i32_2 = arith.constant 0 : i32
    return %c0_i32, %c0_i32_0, %c0_i32_1 : i32, i32, i32
  }
  func.func @transform_5(%arg0: i32) -> (i32, i32) {
    %c0_i32 = arith.constant 0 : i32
    %c0_i32_0 = arith.constant 0 : i32
    %c0_i32_1 = arith.constant 0 : i32
    return %c0_i32, %c0_i32_0 : i32, i32
  }
  func.func @transform_6(%arg0: i32) -> (i32, i32) {
    %c0_i32 = arith.constant 0 : i32
    %c0_i32_0 = arith.constant 0 : i32
    %c0_i32_1 = arith.constant 0 : i32
    return %c0_i32, %c0_i32_0 : i32, i32
  }
  func.func @transform_7(%arg0: i32) -> (i32, i32) {
    %c0_i32 = arith.constant 0 : i32
    %c0_i32_0 = arith.constant 0 : i32
    %c0_i32_1 = arith.constant 0 : i32
    return %c0_i32, %c0_i32_0 : i32, i32
  }
  func.func @transform_8(%arg0: i32) -> (i32, i32) {
    %c0_i32 = arith.constant 0 : i32
    %c0_i32_0 = arith.constant 0 : i32
    %c0_i32_1 = arith.constant 0 : i32
    return %c0_i32, %c0_i32_0 : i32, i32
  }
  func.func @transform_9(%arg0: i32) -> (i32, i32) {
    %c0_i32 = arith.constant 0 : i32
    %c0_i32_0 = arith.constant 0 : i32
    %c0_i32_1 = arith.constant 0 : i32
    return %c0_i32, %c0_i32_0 : i32, i32
  }
  func.func @transform_10(%arg0: i32) -> (i32, i32, i32) {
    %c0_i32 = arith.constant 0 : i32
    %c0_i32_0 = arith.constant 0 : i32
    %c0_i32_1 = arith.constant 0 : i32
    return %arg0, %c0_i32, %c0_i32_0 : i32, i32, i32
  }
  func.func @transform_11(%arg0: i32) -> (i32, i32, i32) {
    %c0_i32 = arith.constant 0 : i32
    %c0_i32_0 = arith.constant 0 : i32
    %c0_i32_1 = arith.constant 0 : i32
    return %arg0, %c0_i32, %c0_i32_0 : i32, i32, i32
  }
}

module attributes {stable_mosaic.version = 11 : i64} {
  func.func @_conv_act_kernel(%arg0: i32, %arg1: memref<1x8x6xbf16, #tpu.memory_space<vmem>>, %arg2: memref<3x8x8xbf16, #tpu.memory_space<vmem>>, %arg3: memref<8x1xf32, #tpu.memory_space<vmem>>, %arg4: memref<8x1xf32, #tpu.memory_space<vmem>>, %arg5: memref<1x8x4xbf16, #tpu.memory_space<vmem>>) attributes {dimension_semantics = [#tpu.dimension_semantics<parallel>], iteration_bounds = array<i64: 2>, scalar_prefetch = 0 : i64, scratch_operands = 0 : i64, tpu.core_type = #tpu.core_type<tc>, window_params = [{transform_indices = @transform_0, window_bounds = array<i64: 1, 8, 6>}, {pipeline_mode = #tpu.pipeline_mode<synchronous>, transform_indices = @transform_1, window_bounds = array<i64: 3, 8, 8>}, {pipeline_mode = #tpu.pipeline_mode<synchronous>, transform_indices = @transform_2, window_bounds = array<i64: 8, 1>}, {pipeline_mode = #tpu.pipeline_mode<synchronous>, transform_indices = @transform_3, window_bounds = array<i64: 8, 1>}, {transform_indices = @transform_4, window_bounds = array<i64: 1, 8, 4>}]} {
    %c0 = arith.constant 0 : index
    %c0_0 = arith.constant 0 : index
    %0 = vector.load %arg3[%c0, %c0_0] : memref<8x1xf32, #tpu.memory_space<vmem>>, vector<8x1xf32>
    %c0_1 = arith.constant 0 : index
    %c0_2 = arith.constant 0 : index
    %c0_3 = arith.constant 0 : index
    %1 = vector.load %arg1[%c0_1, %c0_2, %c0_3] : memref<1x8x6xbf16, #tpu.memory_space<vmem>>, vector<1x8x4xbf16>
    %2 = vector.shape_cast %1 : vector<1x8x4xbf16> to vector<8x4xbf16>
    %c0_4 = arith.constant 0 : index
    %c0_5 = arith.constant 0 : index
    %c0_6 = arith.constant 0 : index
    %3 = vector.load %arg2[%c0_4, %c0_5, %c0_6] : memref<3x8x8xbf16, #tpu.memory_space<vmem>>, vector<1x8x8xbf16>
    %4 = vector.shape_cast %3 : vector<1x8x8xbf16> to vector<8x8xbf16>
    %cst = arith.constant dense<0.000000e+00> : vector<8x4xf32>
    %5 = tpu.matmul %4, %2, %cst {dimension_numbers = #tpu.dot_dimension_numbers<[1], [0], [0], [1], [0, 0, 1, 1], [], []>} : vector<8x8xbf16>, vector<8x4xbf16>, vector<8x4xf32> -> vector<8x4xf32>
    %6 = vector.broadcast %0 : vector<8x1xf32> to vector<8x4xf32>
    %7 = arith.addf %6, %5 : vector<8x4xf32>
    %c0_7 = arith.constant 0 : index
    %c0_8 = arith.constant 0 : index
    %c1 = arith.constant 1 : index
    %8 = vector.load %arg1[%c0_7, %c0_8, %c1] : memref<1x8x6xbf16, #tpu.memory_space<vmem>>, vector<1x8x4xbf16>
    %9 = vector.shape_cast %8 : vector<1x8x4xbf16> to vector<8x4xbf16>
    %c1_9 = arith.constant 1 : index
    %c0_10 = arith.constant 0 : index
    %c0_11 = arith.constant 0 : index
    %10 = vector.load %arg2[%c1_9, %c0_10, %c0_11] : memref<3x8x8xbf16, #tpu.memory_space<vmem>>, vector<1x8x8xbf16>
    %11 = vector.shape_cast %10 : vector<1x8x8xbf16> to vector<8x8xbf16>
    %cst_12 = arith.constant dense<0.000000e+00> : vector<8x4xf32>
    %12 = tpu.matmul %11, %9, %cst_12 {dimension_numbers = #tpu.dot_dimension_numbers<[1], [0], [0], [1], [0, 0, 1, 1], [], []>} : vector<8x8xbf16>, vector<8x4xbf16>, vector<8x4xf32> -> vector<8x4xf32>
    %13 = arith.addf %7, %12 : vector<8x4xf32>
    %c0_13 = arith.constant 0 : index
    %c0_14 = arith.constant 0 : index
    %c2 = arith.constant 2 : index
    %14 = vector.load %arg1[%c0_13, %c0_14, %c2] : memref<1x8x6xbf16, #tpu.memory_space<vmem>>, vector<1x8x4xbf16>
    %15 = vector.shape_cast %14 : vector<1x8x4xbf16> to vector<8x4xbf16>
    %c2_15 = arith.constant 2 : index
    %c0_16 = arith.constant 0 : index
    %c0_17 = arith.constant 0 : index
    %16 = vector.load %arg2[%c2_15, %c0_16, %c0_17] : memref<3x8x8xbf16, #tpu.memory_space<vmem>>, vector<1x8x8xbf16>
    %17 = vector.shape_cast %16 : vector<1x8x8xbf16> to vector<8x8xbf16>
    %cst_18 = arith.constant dense<0.000000e+00> : vector<8x4xf32>
    %18 = tpu.matmul %17, %15, %cst_18 {dimension_numbers = #tpu.dot_dimension_numbers<[1], [0], [0], [1], [0, 0, 1, 1], [], []>} : vector<8x8xbf16>, vector<8x4xbf16>, vector<8x4xf32> -> vector<8x4xf32>
    %19 = arith.addf %13, %18 : vector<8x4xf32>
    %c0_19 = arith.constant 0 : index
    %c0_20 = arith.constant 0 : index
    %20 = vector.load %arg4[%c0_19, %c0_20] : memref<8x1xf32, #tpu.memory_space<vmem>>, vector<8x1xf32>
    %cst_21 = arith.constant 0.000000e+00 : f32
    %21 = vector.broadcast %cst_21 : f32 to vector<8x4xf32>
    %22 = arith.cmpf oge, %19, %21 : vector<8x4xf32>
    %23 = vector.broadcast %20 : vector<8x1xf32> to vector<8x4xf32>
    %24 = arith.mulf %23, %19 : vector<8x4xf32>
    %25 = arith.select %22, %19, %24 : vector<8x4xi1>, vector<8x4xf32>
    %26 = arith.truncf %25 : vector<8x4xf32> to vector<8x4xbf16>
    %c0_22 = arith.constant 0 : index
    %c0_23 = arith.constant 0 : index
    %c0_24 = arith.constant 0 : index
    %27 = vector.load %arg5[%c0_22, %c0_23, %c0_24] : memref<1x8x4xbf16, #tpu.memory_space<vmem>>, vector<1x8x4xbf16>
    %28 = vector.shape_cast %27 : vector<1x8x4xbf16> to vector<8x4xbf16>
    %29 = vector.shape_cast %26 : vector<8x4xbf16> to vector<1x8x4xbf16>
    tpu.vector_store %arg5[%c0_22, %c0_23, %c0_24], %29 {strides = array<i32>} : memref<1x8x4xbf16, #tpu.memory_space<vmem>>, vector<1x8x4xbf16>,
    return
  }
  func.func @transform_0(%arg0: i32) -> (i32, i32, i32) {
    %c0_i32 = arith.constant 0 : i32
    %c0_i32_0 = arith.constant 0 : i32
    %c0_i32_1 = arith.constant 0 : i32
    return %arg0, %c0_i32, %c0_i32_0 : i32, i32, i32
  }
  func.func @transform_1(%arg0: i32) -> (i32, i32, i32) {
    %c0_i32 = arith.constant 0 : i32
    %c0_i32_0 = arith.constant 0 : i32
    %c0_i32_1 = arith.constant 0 : i32
    %c0_i32_2 = arith.constant 0 : i32
    return %c0_i32, %c0_i32_0, %c0_i32_1 : i32, i32, i32
  }
  func.func @transform_2(%arg0: i32) -> (i32, i32) {
    %c0_i32 = arith.constant 0 : i32
    %c0_i32_0 = arith.constant 0 : i32
    %c0_i32_1 = arith.constant 0 : i32
    return %c0_i32, %c0_i32_0 : i32, i32
  }
  func.func @transform_3(%arg0: i32) -> (i32, i32) {
    %c0_i32 = arith.constant 0 : i32
    %c0_i32_0 = arith.constant 0 : i32
    %c0_i32_1 = arith.constant 0 : i32
    return %c0_i32, %c0_i32_0 : i32, i32
  }
  func.func @transform_4(%arg0: i32) -> (i32, i32, i32) {
    %c0_i32 = arith.constant 0 : i32
    %c0_i32_0 = arith.constant 0 : i32
    %c0_i32_1 = arith.constant 0 : i32
    return %arg0, %c0_i32, %c0_i32_0 : i32, i32, i32
  }
}

module attributes {stable_mosaic.version = 11 : i64} {
  func.func @_conv_act_kernel(%arg0: i32, %arg1: memref<1x8x4xbf16, #tpu.memory_space<vmem>>, %arg2: memref<1x8x8xbf16, #tpu.memory_space<vmem>>, %arg3: memref<8x1xf32, #tpu.memory_space<vmem>>, %arg4: memref<1x8x4xbf16, #tpu.memory_space<vmem>>) attributes {dimension_semantics = [#tpu.dimension_semantics<parallel>], iteration_bounds = array<i64: 2>, scalar_prefetch = 0 : i64, scratch_operands = 0 : i64, tpu.core_type = #tpu.core_type<tc>, window_params = [{transform_indices = @transform_0, window_bounds = array<i64: 1, 8, 4>}, {pipeline_mode = #tpu.pipeline_mode<synchronous>, transform_indices = @transform_1, window_bounds = array<i64: 1, 8, 8>}, {pipeline_mode = #tpu.pipeline_mode<synchronous>, transform_indices = @transform_2, window_bounds = array<i64: 8, 1>}, {transform_indices = @transform_3, window_bounds = array<i64: 1, 8, 4>}]} {
    %c0 = arith.constant 0 : index
    %c0_0 = arith.constant 0 : index
    %0 = vector.load %arg3[%c0, %c0_0] : memref<8x1xf32, #tpu.memory_space<vmem>>, vector<8x1xf32>
    %c0_1 = arith.constant 0 : index
    %c0_2 = arith.constant 0 : index
    %c0_3 = arith.constant 0 : index
    %1 = vector.load %arg1[%c0_1, %c0_2, %c0_3] : memref<1x8x4xbf16, #tpu.memory_space<vmem>>, vector<1x8x4xbf16>
    %2 = vector.shape_cast %1 : vector<1x8x4xbf16> to vector<8x4xbf16>
    %c0_4 = arith.constant 0 : index
    %c0_5 = arith.constant 0 : index
    %c0_6 = arith.constant 0 : index
    %3 = vector.load %arg2[%c0_4, %c0_5, %c0_6] : memref<1x8x8xbf16, #tpu.memory_space<vmem>>, vector<1x8x8xbf16>
    %4 = vector.shape_cast %3 : vector<1x8x8xbf16> to vector<8x8xbf16>
    %cst = arith.constant dense<0.000000e+00> : vector<8x4xf32>
    %5 = tpu.matmul %4, %2, %cst {dimension_numbers = #tpu.dot_dimension_numbers<[1], [0], [0], [1], [0, 0, 1, 1], [], []>} : vector<8x8xbf16>, vector<8x4xbf16>, vector<8x4xf32> -> vector<8x4xf32>
    %6 = vector.broadcast %0 : vector<8x1xf32> to vector<8x4xf32>
    %7 = arith.addf %6, %5 : vector<8x4xf32>
    %8 = arith.truncf %7 : vector<8x4xf32> to vector<8x4xbf16>
    %c0_7 = arith.constant 0 : index
    %c0_8 = arith.constant 0 : index
    %c0_9 = arith.constant 0 : index
    %9 = vector.load %arg4[%c0_7, %c0_8, %c0_9] : memref<1x8x4xbf16, #tpu.memory_space<vmem>>, vector<1x8x4xbf16>
    %10 = vector.shape_cast %9 : vector<1x8x4xbf16> to vector<8x4xbf16>
    %11 = vector.shape_cast %8 : vector<8x4xbf16> to vector<1x8x4xbf16>
    tpu.vector_store %arg4[%c0_7, %c0_8, %c0_9], %11 {strides = array<i32>} : memref<1x8x4xbf16, #tpu.memory_space<vmem>>, vector<1x8x4xbf16>,
    return
  }
  func.func @transform_0(%arg0: i32) -> (i32, i32, i32) {
    %c0_i32 = arith.constant 0 : i32
    %c0_i32_0 = arith.constant 0 : i32
    %c0_i32_1 = arith.constant 0 : i32
    return %arg0, %c0_i32, %c0_i32_0 : i32, i32, i32
  }
  func.func @transform_1(%arg0: i32) -> (i32, i32, i32) {
    %c0_i32 = arith.constant 0 : i32
    %c0_i32_0 = arith.constant 0 : i32
    %c0_i32_1 = arith.constant 0 : i32
    %c0_i32_2 = arith.constant 0 : i32
    return %c0_i32, %c0_i32_0, %c0_i32_1 : i32, i32, i32
  }
  func.func @transform_2(%arg0: i32) -> (i32, i32) {
    %c0_i32 = arith.constant 0 : i32
    %c0_i32_0 = arith.constant 0 : i32
    %c0_i32_1 = arith.constant 0 : i32
    return %c0_i32, %c0_i32_0 : i32, i32
  }
  func.func @transform_3(%arg0: i32) -> (i32, i32, i32) {
    %c0_i32 = arith.constant 0 : i32
    %c0_i32_0 = arith.constant 0 : i32
    %c0_i32_1 = arith.constant 0 : i32
    return %arg0, %c0_i32, %c0_i32_0 : i32, i32, i32
  }
}

module attributes {stable_mosaic.version = 11 : i64} {
  func.func @_conv_act_kernel(%arg0: i32, %arg1: memref<1x8x6xbf16, #tpu.memory_space<vmem>>, %arg2: memref<3x8x8xbf16, #tpu.memory_space<vmem>>, %arg3: memref<8x1xf32, #tpu.memory_space<vmem>>, %arg4: memref<3x8x8xbf16, #tpu.memory_space<vmem>>, %arg5: memref<8x1xf32, #tpu.memory_space<vmem>>, %arg6: memref<1x8x4xbf16, #tpu.memory_space<vmem>>) attributes {dimension_semantics = [#tpu.dimension_semantics<parallel>], iteration_bounds = array<i64: 2>, scalar_prefetch = 0 : i64, scratch_operands = 0 : i64, tpu.core_type = #tpu.core_type<tc>, window_params = [{transform_indices = @transform_0, window_bounds = array<i64: 1, 8, 6>}, {pipeline_mode = #tpu.pipeline_mode<synchronous>, transform_indices = @transform_1, window_bounds = array<i64: 3, 8, 8>}, {pipeline_mode = #tpu.pipeline_mode<synchronous>, transform_indices = @transform_2, window_bounds = array<i64: 8, 1>}, {pipeline_mode = #tpu.pipeline_mode<synchronous>, transform_indices = @transform_3, window_bounds = array<i64: 3, 8, 8>}, {pipeline_mode = #tpu.pipeline_mode<synchronous>, transform_indices = @transform_4, window_bounds = array<i64: 8, 1>}, {transform_indices = @transform_5, window_bounds = array<i64: 1, 8, 4>}]} {
    %c0 = arith.constant 0 : index
    %c0_0 = arith.constant 0 : index
    %0 = vector.load %arg3[%c0, %c0_0] : memref<8x1xf32, #tpu.memory_space<vmem>>, vector<8x1xf32>
    %c0_1 = arith.constant 0 : index
    %c0_2 = arith.constant 0 : index
    %c0_3 = arith.constant 0 : index
    %1 = vector.load %arg1[%c0_1, %c0_2, %c0_3] : memref<1x8x6xbf16, #tpu.memory_space<vmem>>, vector<1x8x4xbf16>
    %2 = vector.shape_cast %1 : vector<1x8x4xbf16> to vector<8x4xbf16>
    %c0_4 = arith.constant 0 : index
    %c0_5 = arith.constant 0 : index
    %c0_6 = arith.constant 0 : index
    %3 = vector.load %arg2[%c0_4, %c0_5, %c0_6] : memref<3x8x8xbf16, #tpu.memory_space<vmem>>, vector<1x8x8xbf16>
    %4 = vector.shape_cast %3 : vector<1x8x8xbf16> to vector<8x8xbf16>
    %cst = arith.constant dense<0.000000e+00> : vector<8x4xf32>
    %5 = tpu.matmul %4, %2, %cst {dimension_numbers = #tpu.dot_dimension_numbers<[1], [0], [0], [1], [0, 0, 1, 1], [], []>} : vector<8x8xbf16>, vector<8x4xbf16>, vector<8x4xf32> -> vector<8x4xf32>
    %6 = vector.broadcast %0 : vector<8x1xf32> to vector<8x4xf32>
    %7 = arith.addf %6, %5 : vector<8x4xf32>
    %c0_7 = arith.constant 0 : index
    %c0_8 = arith.constant 0 : index
    %c1 = arith.constant 1 : index
    %8 = vector.load %arg1[%c0_7, %c0_8, %c1] : memref<1x8x6xbf16, #tpu.memory_space<vmem>>, vector<1x8x4xbf16>
    %9 = vector.shape_cast %8 : vector<1x8x4xbf16> to vector<8x4xbf16>
    %c1_9 = arith.constant 1 : index
    %c0_10 = arith.constant 0 : index
    %c0_11 = arith.constant 0 : index
    %10 = vector.load %arg2[%c1_9, %c0_10, %c0_11] : memref<3x8x8xbf16, #tpu.memory_space<vmem>>, vector<1x8x8xbf16>
    %11 = vector.shape_cast %10 : vector<1x8x8xbf16> to vector<8x8xbf16>
    %cst_12 = arith.constant dense<0.000000e+00> : vector<8x4xf32>
    %12 = tpu.matmul %11, %9, %cst_12 {dimension_numbers = #tpu.dot_dimension_numbers<[1], [0], [0], [1], [0, 0, 1, 1], [], []>} : vector<8x8xbf16>, vector<8x4xbf16>, vector<8x4xf32> -> vector<8x4xf32>
    %13 = arith.addf %7, %12 : vector<8x4xf32>
    %c0_13 = arith.constant 0 : index
    %c0_14 = arith.constant 0 : index
    %c2 = arith.constant 2 : index
    %14 = vector.load %arg1[%c0_13, %c0_14, %c2] : memref<1x8x6xbf16, #tpu.memory_space<vmem>>, vector<1x8x4xbf16>
    %15 = vector.shape_cast %14 : vector<1x8x4xbf16> to vector<8x4xbf16>
    %c2_15 = arith.constant 2 : index
    %c0_16 = arith.constant 0 : index
    %c0_17 = arith.constant 0 : index
    %16 = vector.load %arg2[%c2_15, %c0_16, %c0_17] : memref<3x8x8xbf16, #tpu.memory_space<vmem>>, vector<1x8x8xbf16>
    %17 = vector.shape_cast %16 : vector<1x8x8xbf16> to vector<8x8xbf16>
    %cst_18 = arith.constant dense<0.000000e+00> : vector<8x4xf32>
    %18 = tpu.matmul %17, %15, %cst_18 {dimension_numbers = #tpu.dot_dimension_numbers<[1], [0], [0], [1], [0, 0, 1, 1], [], []>} : vector<8x8xbf16>, vector<8x4xbf16>, vector<8x4xf32> -> vector<8x4xf32>
    %19 = arith.addf %13, %18 : vector<8x4xf32>
    %c0_19 = arith.constant 0 : index
    %c0_20 = arith.constant 0 : index
    %20 = vector.load %arg5[%c0_19, %c0_20] : memref<8x1xf32, #tpu.memory_space<vmem>>, vector<8x1xf32>
    %c0_21 = arith.constant 0 : index
    %c0_22 = arith.constant 0 : index
    %c0_23 = arith.constant 0 : index
    %21 = vector.load %arg1[%c0_21, %c0_22, %c0_23] : memref<1x8x6xbf16, #tpu.memory_space<vmem>>, vector<1x8x4xbf16>
    %22 = vector.shape_cast %21 : vector<1x8x4xbf16> to vector<8x4xbf16>
    %c0_24 = arith.constant 0 : index
    %c0_25 = arith.constant 0 : index
    %c0_26 = arith.constant 0 : index
    %23 = vector.load %arg4[%c0_24, %c0_25, %c0_26] : memref<3x8x8xbf16, #tpu.memory_space<vmem>>, vector<1x8x8xbf16>
    %24 = vector.shape_cast %23 : vector<1x8x8xbf16> to vector<8x8xbf16>
    %cst_27 = arith.constant dense<0.000000e+00> : vector<8x4xf32>
    %25 = tpu.matmul %24, %22, %cst_27 {dimension_numbers = #tpu.dot_dimension_numbers<[1], [0], [0], [1], [0, 0, 1, 1], [], []>} : vector<8x8xbf16>, vector<8x4xbf16>, vector<8x4xf32> -> vector<8x4xf32>
    %26 = vector.broadcast %20 : vector<8x1xf32> to vector<8x4xf32>
    %27 = arith.addf %26, %25 : vector<8x4xf32>
    %c0_28 = arith.constant 0 : index
    %c0_29 = arith.constant 0 : index
    %c1_30 = arith.constant 1 : index
    %28 = vector.load %arg1[%c0_28, %c0_29, %c1_30] : memref<1x8x6xbf16, #tpu.memory_space<vmem>>, vector<1x8x4xbf16>
    %29 = vector.shape_cast %28 : vector<1x8x4xbf16> to vector<8x4xbf16>
    %c1_31 = arith.constant 1 : index
    %c0_32 = arith.constant 0 : index
    %c0_33 = arith.constant 0 : index
    %30 = vector.load %arg4[%c1_31, %c0_32, %c0_33] : memref<3x8x8xbf16, #tpu.memory_space<vmem>>, vector<1x8x8xbf16>
    %31 = vector.shape_cast %30 : vector<1x8x8xbf16> to vector<8x8xbf16>
    %cst_34 = arith.constant dense<0.000000e+00> : vector<8x4xf32>
    %32 = tpu.matmul %31, %29, %cst_34 {dimension_numbers = #tpu.dot_dimension_numbers<[1], [0], [0], [1], [0, 0, 1, 1], [], []>} : vector<8x8xbf16>, vector<8x4xbf16>, vector<8x4xf32> -> vector<8x4xf32>
    %33 = arith.addf %27, %32 : vector<8x4xf32>
    %c0_35 = arith.constant 0 : index
    %c0_36 = arith.constant 0 : index
    %c2_37 = arith.constant 2 : index
    %34 = vector.load %arg1[%c0_35, %c0_36, %c2_37] : memref<1x8x6xbf16, #tpu.memory_space<vmem>>, vector<1x8x4xbf16>
    %35 = vector.shape_cast %34 : vector<1x8x4xbf16> to vector<8x4xbf16>
    %c2_38 = arith.constant 2 : index
    %c0_39 = arith.constant 0 : index
    %c0_40 = arith.constant 0 : index
    %36 = vector.load %arg4[%c2_38, %c0_39, %c0_40] : memref<3x8x8xbf16, #tpu.memory_space<vmem>>, vector<1x8x8xbf16>
    %37 = vector.shape_cast %36 : vector<1x8x8xbf16> to vector<8x8xbf16>
    %cst_41 = arith.constant dense<0.000000e+00> : vector<8x4xf32>
    %38 = tpu.matmul %37, %35, %cst_41 {dimension_numbers = #tpu.dot_dimension_numbers<[1], [0], [0], [1], [0, 0, 1, 1], [], []>} : vector<8x8xbf16>, vector<8x4xbf16>, vector<8x4xf32> -> vector<8x4xf32>
    %39 = arith.addf %33, %38 : vector<8x4xf32>
    %40 = arith.negf %39 : vector<8x4xf32>
    %41 = math.exp %40 : vector<8x4xf32>
    %cst_42 = arith.constant 1.000000e+00 : f32
    %42 = vector.broadcast %cst_42 : f32 to vector<8x4xf32>
    %43 = arith.addf %42, %41 : vector<8x4xf32>
    %44 = arith.divf %42, %43 : vector<8x4xf32>
    %45 = arith.mulf %19, %44 : vector<8x4xf32>
    %46 = arith.truncf %45 : vector<8x4xf32> to vector<8x4xbf16>
    %c0_43 = arith.constant 0 : index
    %c0_44 = arith.constant 0 : index
    %c0_45 = arith.constant 0 : index
    %47 = vector.load %arg6[%c0_43, %c0_44, %c0_45] : memref<1x8x4xbf16, #tpu.memory_space<vmem>>, vector<1x8x4xbf16>
    %48 = vector.shape_cast %47 : vector<1x8x4xbf16> to vector<8x4xbf16>
    %49 = vector.shape_cast %46 : vector<8x4xbf16> to vector<1x8x4xbf16>
    tpu.vector_store %arg6[%c0_43, %c0_44, %c0_45], %49 {strides = array<i32>} : memref<1x8x4xbf16, #tpu.memory_space<vmem>>, vector<1x8x4xbf16>,
    return
  }
  func.func @transform_0(%arg0: i32) -> (i32, i32, i32) {
    %c0_i32 = arith.constant 0 : i32
    %c0_i32_0 = arith.constant 0 : i32
    %c0_i32_1 = arith.constant 0 : i32
    return %arg0, %c0_i32, %c0_i32_0 : i32, i32, i32
  }
  func.func @transform_1(%arg0: i32) -> (i32, i32, i32) {
    %c0_i32 = arith.constant 0 : i32
    %c0_i32_0 = arith.constant 0 : i32
    %c0_i32_1 = arith.constant 0 : i32
    %c0_i32_2 = arith.constant 0 : i32
    return %c0_i32, %c0_i32_0, %c0_i32_1 : i32, i32, i32
  }
  func.func @transform_2(%arg0: i32) -> (i32, i32) {
    %c0_i32 = arith.constant 0 : i32
    %c0_i32_0 = arith.constant 0 : i32
    %c0_i32_1 = arith.constant 0 : i32
    return %c0_i32, %c0_i32_0 : i32, i32
  }
  func.func @transform_3(%arg0: i32) -> (i32, i32, i32) {
    %c0_i32 = arith.constant 0 : i32
    %c0_i32_0 = arith.constant 0 : i32
    %c0_i32_1 = arith.constant 0 : i32
    %c0_i32_2 = arith.constant 0 : i32
    return %c0_i32, %c0_i32_0, %c0_i32_1 : i32, i32, i32
  }
  func.func @transform_4(%arg0: i32) -> (i32, i32) {
    %c0_i32 = arith.constant 0 : i32
    %c0_i32_0 = arith.constant 0 : i32
    %c0_i32_1 = arith.constant 0 : i32
    return %c0_i32, %c0_i32_0 : i32, i32
  }
  func.func @transform_5(%arg0: i32) -> (i32, i32, i32) {
    %c0_i32 = arith.constant 0 : i32
    %c0_i32_0 = arith.constant 0 : i32
    %c0_i32_1 = arith.constant 0 : i32
    return %arg0, %c0_i32, %c0_i32_0 : i32, i32, i32
  }
}

module attributes {stable_mosaic.version = 11 : i64} {
  func.func @_conv_act_kernel(%arg0: i32, %arg1: memref<1x8x15xbf16, #tpu.memory_space<vmem>>, %arg2: memref<8x8x8xbf16, #tpu.memory_space<vmem>>, %arg3: memref<8x1xf32, #tpu.memory_space<vmem>>, %arg4: memref<8x8x8xbf16, #tpu.memory_space<vmem>>, %arg5: memref<8x1xf32, #tpu.memory_space<vmem>>, %arg6: memref<1x8x8xbf16, #tpu.memory_space<vmem>>) attributes {dimension_semantics = [#tpu.dimension_semantics<parallel>], iteration_bounds = array<i64: 2>, scalar_prefetch = 0 : i64, scratch_operands = 0 : i64, tpu.core_type = #tpu.core_type<tc>, window_params = [{transform_indices = @transform_0, window_bounds = array<i64: 1, 8, 15>}, {pipeline_mode = #tpu.pipeline_mode<synchronous>, transform_indices = @transform_1, window_bounds = array<i64: 8, 8, 8>}, {pipeline_mode = #tpu.pipeline_mode<synchronous>, transform_indices = @transform_2, window_bounds = array<i64: 8, 1>}, {pipeline_mode = #tpu.pipeline_mode<synchronous>, transform_indices = @transform_3, window_bounds = array<i64: 8, 8, 8>}, {pipeline_mode = #tpu.pipeline_mode<synchronous>, transform_indices = @transform_4, window_bounds = array<i64: 8, 1>}, {transform_indices = @transform_5, window_bounds = array<i64: 1, 8, 8>}]} {
    %c0 = arith.constant 0 : index
    %c0_0 = arith.constant 0 : index
    %0 = vector.load %arg3[%c0, %c0_0] : memref<8x1xf32, #tpu.memory_space<vmem>>, vector<8x1xf32>
    %c0_1 = arith.constant 0 : index
    %c0_2 = arith.constant 0 : index
    %c0_3 = arith.constant 0 : index
    %1 = vector.load %arg1[%c0_1, %c0_2, %c0_3] : memref<1x8x15xbf16, #tpu.memory_space<vmem>>, vector<1x8x8xbf16>
    %2 = vector.shape_cast %1 : vector<1x8x8xbf16> to vector<8x8xbf16>
    %c0_4 = arith.constant 0 : index
    %c0_5 = arith.constant 0 : index
    %c0_6 = arith.constant 0 : index
    %3 = vector.load %arg2[%c0_4, %c0_5, %c0_6] : memref<8x8x8xbf16, #tpu.memory_space<vmem>>, vector<1x8x8xbf16>
    %4 = vector.shape_cast %3 : vector<1x8x8xbf16> to vector<8x8xbf16>
    %cst = arith.constant dense<0.000000e+00> : vector<8x8xf32>
    %5 = tpu.matmul %4, %2, %cst {dimension_numbers = #tpu.dot_dimension_numbers<[1], [0], [0], [1], [0, 0, 1, 1], [], []>} : vector<8x8xbf16>, vector<8x8xbf16>, vector<8x8xf32> -> vector<8x8xf32>
    %6 = vector.broadcast %0 : vector<8x1xf32> to vector<8x8xf32>
    %7 = arith.addf %6, %5 : vector<8x8xf32>
    %c0_7 = arith.constant 0 : index
    %c0_8 = arith.constant 0 : index
    %c1 = arith.constant 1 : index
    %8 = vector.load %arg1[%c0_7, %c0_8, %c1] : memref<1x8x15xbf16, #tpu.memory_space<vmem>>, vector<1x8x8xbf16>
    %9 = vector.shape_cast %8 : vector<1x8x8xbf16> to vector<8x8xbf16>
    %c1_9 = arith.constant 1 : index
    %c0_10 = arith.constant 0 : index
    %c0_11 = arith.constant 0 : index
    %10 = vector.load %arg2[%c1_9, %c0_10, %c0_11] : memref<8x8x8xbf16, #tpu.memory_space<vmem>>, vector<1x8x8xbf16>
    %11 = vector.shape_cast %10 : vector<1x8x8xbf16> to vector<8x8xbf16>
    %cst_12 = arith.constant dense<0.000000e+00> : vector<8x8xf32>
    %12 = tpu.matmul %11, %9, %cst_12 {dimension_numbers = #tpu.dot_dimension_numbers<[1], [0], [0], [1], [0, 0, 1, 1], [], []>} : vector<8x8xbf16>, vector<8x8xbf16>, vector<8x8xf32> -> vector<8x8xf32>
    %13 = arith.addf %7, %12 : vector<8x8xf32>
    %c0_13 = arith.constant 0 : index
    %c0_14 = arith.constant 0 : index
    %c2 = arith.constant 2 : index
    %14 = vector.load %arg1[%c0_13, %c0_14, %c2] : memref<1x8x15xbf16, #tpu.memory_space<vmem>>, vector<1x8x8xbf16>
    %15 = vector.shape_cast %14 : vector<1x8x8xbf16> to vector<8x8xbf16>
    %c2_15 = arith.constant 2 : index
    %c0_16 = arith.constant 0 : index
    %c0_17 = arith.constant 0 : index
    %16 = vector.load %arg2[%c2_15, %c0_16, %c0_17] : memref<8x8x8xbf16, #tpu.memory_space<vmem>>, vector<1x8x8xbf16>
    %17 = vector.shape_cast %16 : vector<1x8x8xbf16> to vector<8x8xbf16>
    %cst_18 = arith.constant dense<0.000000e+00> : vector<8x8xf32>
    %18 = tpu.matmul %17, %15, %cst_18 {dimension_numbers = #tpu.dot_dimension_numbers<[1], [0], [0], [1], [0, 0, 1, 1], [], []>} : vector<8x8xbf16>, vector<8x8xbf16>, vector<8x8xf32> -> vector<8x8xf32>
    %19 = arith.addf %13, %18 : vector<8x8xf32>
    %c0_19 = arith.constant 0 : index
    %c0_20 = arith.constant 0 : index
    %c3 = arith.constant 3 : index
    %20 = vector.load %arg1[%c0_19, %c0_20, %c3] : memref<1x8x15xbf16, #tpu.memory_space<vmem>>, vector<1x8x8xbf16>
    %21 = vector.shape_cast %20 : vector<1x8x8xbf16> to vector<8x8xbf16>
    %c3_21 = arith.constant 3 : index
    %c0_22 = arith.constant 0 : index
    %c0_23 = arith.constant 0 : index
    %22 = vector.load %arg2[%c3_21, %c0_22, %c0_23] : memref<8x8x8xbf16, #tpu.memory_space<vmem>>, vector<1x8x8xbf16>
    %23 = vector.shape_cast %22 : vector<1x8x8xbf16> to vector<8x8xbf16>
    %cst_24 = arith.constant dense<0.000000e+00> : vector<8x8xf32>
    %24 = tpu.matmul %23, %21, %cst_24 {dimension_numbers = #tpu.dot_dimension_numbers<[1], [0], [0], [1], [0, 0, 1, 1], [], []>} : vector<8x8xbf16>, vector<8x8xbf16>, vector<8x8xf32> -> vector<8x8xf32>
    %25 = arith.addf %19, %24 : vector<8x8xf32>
    %c0_25 = arith.constant 0 : index
    %c0_26 = arith.constant 0 : index
    %c4 = arith.constant 4 : index
    %26 = vector.load %arg1[%c0_25, %c0_26, %c4] : memref<1x8x15xbf16, #tpu.memory_space<vmem>>, vector<1x8x8xbf16>
    %27 = vector.shape_cast %26 : vector<1x8x8xbf16> to vector<8x8xbf16>
    %c4_27 = arith.constant 4 : index
    %c0_28 = arith.constant 0 : index
    %c0_29 = arith.constant 0 : index
    %28 = vector.load %arg2[%c4_27, %c0_28, %c0_29] : memref<8x8x8xbf16, #tpu.memory_space<vmem>>, vector<1x8x8xbf16>
    %29 = vector.shape_cast %28 : vector<1x8x8xbf16> to vector<8x8xbf16>
    %cst_30 = arith.constant dense<0.000000e+00> : vector<8x8xf32>
    %30 = tpu.matmul %29, %27, %cst_30 {dimension_numbers = #tpu.dot_dimension_numbers<[1], [0], [0], [1], [0, 0, 1, 1], [], []>} : vector<8x8xbf16>, vector<8x8xbf16>, vector<8x8xf32> -> vector<8x8xf32>
    %31 = arith.addf %25, %30 : vector<8x8xf32>
    %c0_31 = arith.constant 0 : index
    %c0_32 = arith.constant 0 : index
    %c5 = arith.constant 5 : index
    %32 = vector.load %arg1[%c0_31, %c0_32, %c5] : memref<1x8x15xbf16, #tpu.memory_space<vmem>>, vector<1x8x8xbf16>
    %33 = vector.shape_cast %32 : vector<1x8x8xbf16> to vector<8x8xbf16>
    %c5_33 = arith.constant 5 : index
    %c0_34 = arith.constant 0 : index
    %c0_35 = arith.constant 0 : index
    %34 = vector.load %arg2[%c5_33, %c0_34, %c0_35] : memref<8x8x8xbf16, #tpu.memory_space<vmem>>, vector<1x8x8xbf16>
    %35 = vector.shape_cast %34 : vector<1x8x8xbf16> to vector<8x8xbf16>
    %cst_36 = arith.constant dense<0.000000e+00> : vector<8x8xf32>
    %36 = tpu.matmul %35, %33, %cst_36 {dimension_numbers = #tpu.dot_dimension_numbers<[1], [0], [0], [1], [0, 0, 1, 1], [], []>} : vector<8x8xbf16>, vector<8x8xbf16>, vector<8x8xf32> -> vector<8x8xf32>
    %37 = arith.addf %31, %36 : vector<8x8xf32>
    %c0_37 = arith.constant 0 : index
    %c0_38 = arith.constant 0 : index
    %c6 = arith.constant 6 : index
    %38 = vector.load %arg1[%c0_37, %c0_38, %c6] : memref<1x8x15xbf16, #tpu.memory_space<vmem>>, vector<1x8x8xbf16>
    %39 = vector.shape_cast %38 : vector<1x8x8xbf16> to vector<8x8xbf16>
    %c6_39 = arith.constant 6 : index
    %c0_40 = arith.constant 0 : index
    %c0_41 = arith.constant 0 : index
    %40 = vector.load %arg2[%c6_39, %c0_40, %c0_41] : memref<8x8x8xbf16, #tpu.memory_space<vmem>>, vector<1x8x8xbf16>
    %41 = vector.shape_cast %40 : vector<1x8x8xbf16> to vector<8x8xbf16>
    %cst_42 = arith.constant dense<0.000000e+00> : vector<8x8xf32>
    %42 = tpu.matmul %41, %39, %cst_42 {dimension_numbers = #tpu.dot_dimension_numbers<[1], [0], [0], [1], [0, 0, 1, 1], [], []>} : vector<8x8xbf16>, vector<8x8xbf16>, vector<8x8xf32> -> vector<8x8xf32>
    %43 = arith.addf %37, %42 : vector<8x8xf32>
    %c0_43 = arith.constant 0 : index
    %c0_44 = arith.constant 0 : index
    %c7 = arith.constant 7 : index
    %44 = vector.load %arg1[%c0_43, %c0_44, %c7] : memref<1x8x15xbf16, #tpu.memory_space<vmem>>, vector<1x8x8xbf16>
    %45 = vector.shape_cast %44 : vector<1x8x8xbf16> to vector<8x8xbf16>
    %c7_45 = arith.constant 7 : index
    %c0_46 = arith.constant 0 : index
    %c0_47 = arith.constant 0 : index
    %46 = vector.load %arg2[%c7_45, %c0_46, %c0_47] : memref<8x8x8xbf16, #tpu.memory_space<vmem>>, vector<1x8x8xbf16>
    %47 = vector.shape_cast %46 : vector<1x8x8xbf16> to vector<8x8xbf16>
    %cst_48 = arith.constant dense<0.000000e+00> : vector<8x8xf32>
    %48 = tpu.matmul %47, %45, %cst_48 {dimension_numbers = #tpu.dot_dimension_numbers<[1], [0], [0], [1], [0, 0, 1, 1], [], []>} : vector<8x8xbf16>, vector<8x8xbf16>, vector<8x8xf32> -> vector<8x8xf32>
    %49 = arith.addf %43, %48 : vector<8x8xf32>
    %c0_49 = arith.constant 0 : index
    %c0_50 = arith.constant 0 : index
    %50 = vector.load %arg5[%c0_49, %c0_50] : memref<8x1xf32, #tpu.memory_space<vmem>>, vector<8x1xf32>
    %c0_51 = arith.constant 0 : index
    %c0_52 = arith.constant 0 : index
    %c0_53 = arith.constant 0 : index
    %51 = vector.load %arg1[%c0_51, %c0_52, %c0_53] : memref<1x8x15xbf16, #tpu.memory_space<vmem>>, vector<1x8x8xbf16>
    %52 = vector.shape_cast %51 : vector<1x8x8xbf16> to vector<8x8xbf16>
    %c0_54 = arith.constant 0 : index
    %c0_55 = arith.constant 0 : index
    %c0_56 = arith.constant 0 : index
    %53 = vector.load %arg4[%c0_54, %c0_55, %c0_56] : memref<8x8x8xbf16, #tpu.memory_space<vmem>>, vector<1x8x8xbf16>
    %54 = vector.shape_cast %53 : vector<1x8x8xbf16> to vector<8x8xbf16>
    %cst_57 = arith.constant dense<0.000000e+00> : vector<8x8xf32>
    %55 = tpu.matmul %54, %52, %cst_57 {dimension_numbers = #tpu.dot_dimension_numbers<[1], [0], [0], [1], [0, 0, 1, 1], [], []>} : vector<8x8xbf16>, vector<8x8xbf16>, vector<8x8xf32> -> vector<8x8xf32>
    %56 = vector.broadcast %50 : vector<8x1xf32> to vector<8x8xf32>
    %57 = arith.addf %56, %55 : vector<8x8xf32>
    %c0_58 = arith.constant 0 : index
    %c0_59 = arith.constant 0 : index
    %c1_60 = arith.constant 1 : index
    %58 = vector.load %arg1[%c0_58, %c0_59, %c1_60] : memref<1x8x15xbf16, #tpu.memory_space<vmem>>, vector<1x8x8xbf16>
    %59 = vector.shape_cast %58 : vector<1x8x8xbf16> to vector<8x8xbf16>
    %c1_61 = arith.constant 1 : index
    %c0_62 = arith.constant 0 : index
    %c0_63 = arith.constant 0 : index
    %60 = vector.load %arg4[%c1_61, %c0_62, %c0_63] : memref<8x8x8xbf16, #tpu.memory_space<vmem>>, vector<1x8x8xbf16>
    %61 = vector.shape_cast %60 : vector<1x8x8xbf16> to vector<8x8xbf16>
    %cst_64 = arith.constant dense<0.000000e+00> : vector<8x8xf32>
    %62 = tpu.matmul %61, %59, %cst_64 {dimension_numbers = #tpu.dot_dimension_numbers<[1], [0], [0], [1], [0, 0, 1, 1], [], []>} : vector<8x8xbf16>, vector<8x8xbf16>, vector<8x8xf32> -> vector<8x8xf32>
    %63 = arith.addf %57, %62 : vector<8x8xf32>
    %c0_65 = arith.constant 0 : index
    %c0_66 = arith.constant 0 : index
    %c2_67 = arith.constant 2 : index
    %64 = vector.load %arg1[%c0_65, %c0_66, %c2_67] : memref<1x8x15xbf16, #tpu.memory_space<vmem>>, vector<1x8x8xbf16>
    %65 = vector.shape_cast %64 : vector<1x8x8xbf16> to vector<8x8xbf16>
    %c2_68 = arith.constant 2 : index
    %c0_69 = arith.constant 0 : index
    %c0_70 = arith.constant 0 : index
    %66 = vector.load %arg4[%c2_68, %c0_69, %c0_70] : memref<8x8x8xbf16, #tpu.memory_space<vmem>>, vector<1x8x8xbf16>
    %67 = vector.shape_cast %66 : vector<1x8x8xbf16> to vector<8x8xbf16>
    %cst_71 = arith.constant dense<0.000000e+00> : vector<8x8xf32>
    %68 = tpu.matmul %67, %65, %cst_71 {dimension_numbers = #tpu.dot_dimension_numbers<[1], [0], [0], [1], [0, 0, 1, 1], [], []>} : vector<8x8xbf16>, vector<8x8xbf16>, vector<8x8xf32> -> vector<8x8xf32>
    %69 = arith.addf %63, %68 : vector<8x8xf32>
    %c0_72 = arith.constant 0 : index
    %c0_73 = arith.constant 0 : index
    %c3_74 = arith.constant 3 : index
    %70 = vector.load %arg1[%c0_72, %c0_73, %c3_74] : memref<1x8x15xbf16, #tpu.memory_space<vmem>>, vector<1x8x8xbf16>
    %71 = vector.shape_cast %70 : vector<1x8x8xbf16> to vector<8x8xbf16>
    %c3_75 = arith.constant 3 : index
    %c0_76 = arith.constant 0 : index
    %c0_77 = arith.constant 0 : index
    %72 = vector.load %arg4[%c3_75, %c0_76, %c0_77] : memref<8x8x8xbf16, #tpu.memory_space<vmem>>, vector<1x8x8xbf16>
    %73 = vector.shape_cast %72 : vector<1x8x8xbf16> to vector<8x8xbf16>
    %cst_78 = arith.constant dense<0.000000e+00> : vector<8x8xf32>
    %74 = tpu.matmul %73, %71, %cst_78 {dimension_numbers = #tpu.dot_dimension_numbers<[1], [0], [0], [1], [0, 0, 1, 1], [], []>} : vector<8x8xbf16>, vector<8x8xbf16>, vector<8x8xf32> -> vector<8x8xf32>
    %75 = arith.addf %69, %74 : vector<8x8xf32>
    %c0_79 = arith.constant 0 : index
    %c0_80 = arith.constant 0 : index
    %c4_81 = arith.constant 4 : index
    %76 = vector.load %arg1[%c0_79, %c0_80, %c4_81] : memref<1x8x15xbf16, #tpu.memory_space<vmem>>, vector<1x8x8xbf16>
    %77 = vector.shape_cast %76 : vector<1x8x8xbf16> to vector<8x8xbf16>
    %c4_82 = arith.constant 4 : index
    %c0_83 = arith.constant 0 : index
    %c0_84 = arith.constant 0 : index
    %78 = vector.load %arg4[%c4_82, %c0_83, %c0_84] : memref<8x8x8xbf16, #tpu.memory_space<vmem>>, vector<1x8x8xbf16>
    %79 = vector.shape_cast %78 : vector<1x8x8xbf16> to vector<8x8xbf16>
    %cst_85 = arith.constant dense<0.000000e+00> : vector<8x8xf32>
    %80 = tpu.matmul %79, %77, %cst_85 {dimension_numbers = #tpu.dot_dimension_numbers<[1], [0], [0], [1], [0, 0, 1, 1], [], []>} : vector<8x8xbf16>, vector<8x8xbf16>, vector<8x8xf32> -> vector<8x8xf32>
    %81 = arith.addf %75, %80 : vector<8x8xf32>
    %c0_86 = arith.constant 0 : index
    %c0_87 = arith.constant 0 : index
    %c5_88 = arith.constant 5 : index
    %82 = vector.load %arg1[%c0_86, %c0_87, %c5_88] : memref<1x8x15xbf16, #tpu.memory_space<vmem>>, vector<1x8x8xbf16>
    %83 = vector.shape_cast %82 : vector<1x8x8xbf16> to vector<8x8xbf16>
    %c5_89 = arith.constant 5 : index
    %c0_90 = arith.constant 0 : index
    %c0_91 = arith.constant 0 : index
    %84 = vector.load %arg4[%c5_89, %c0_90, %c0_91] : memref<8x8x8xbf16, #tpu.memory_space<vmem>>, vector<1x8x8xbf16>
    %85 = vector.shape_cast %84 : vector<1x8x8xbf16> to vector<8x8xbf16>
    %cst_92 = arith.constant dense<0.000000e+00> : vector<8x8xf32>
    %86 = tpu.matmul %85, %83, %cst_92 {dimension_numbers = #tpu.dot_dimension_numbers<[1], [0], [0], [1], [0, 0, 1, 1], [], []>} : vector<8x8xbf16>, vector<8x8xbf16>, vector<8x8xf32> -> vector<8x8xf32>
    %87 = arith.addf %81, %86 : vector<8x8xf32>
    %c0_93 = arith.constant 0 : index
    %c0_94 = arith.constant 0 : index
    %c6_95 = arith.constant 6 : index
    %88 = vector.load %arg1[%c0_93, %c0_94, %c6_95] : memref<1x8x15xbf16, #tpu.memory_space<vmem>>, vector<1x8x8xbf16>
    %89 = vector.shape_cast %88 : vector<1x8x8xbf16> to vector<8x8xbf16>
    %c6_96 = arith.constant 6 : index
    %c0_97 = arith.constant 0 : index
    %c0_98 = arith.constant 0 : index
    %90 = vector.load %arg4[%c6_96, %c0_97, %c0_98] : memref<8x8x8xbf16, #tpu.memory_space<vmem>>, vector<1x8x8xbf16>
    %91 = vector.shape_cast %90 : vector<1x8x8xbf16> to vector<8x8xbf16>
    %cst_99 = arith.constant dense<0.000000e+00> : vector<8x8xf32>
    %92 = tpu.matmul %91, %89, %cst_99 {dimension_numbers = #tpu.dot_dimension_numbers<[1], [0], [0], [1], [0, 0, 1, 1], [], []>} : vector<8x8xbf16>, vector<8x8xbf16>, vector<8x8xf32> -> vector<8x8xf32>
    %93 = arith.addf %87, %92 : vector<8x8xf32>
    %c0_100 = arith.constant 0 : index
    %c0_101 = arith.constant 0 : index
    %c7_102 = arith.constant 7 : index
    %94 = vector.load %arg1[%c0_100, %c0_101, %c7_102] : memref<1x8x15xbf16, #tpu.memory_space<vmem>>, vector<1x8x8xbf16>
    %95 = vector.shape_cast %94 : vector<1x8x8xbf16> to vector<8x8xbf16>
    %c7_103 = arith.constant 7 : index
    %c0_104 = arith.constant 0 : index
    %c0_105 = arith.constant 0 : index
    %96 = vector.load %arg4[%c7_103, %c0_104, %c0_105] : memref<8x8x8xbf16, #tpu.memory_space<vmem>>, vector<1x8x8xbf16>
    %97 = vector.shape_cast %96 : vector<1x8x8xbf16> to vector<8x8xbf16>
    %cst_106 = arith.constant dense<0.000000e+00> : vector<8x8xf32>
    %98 = tpu.matmul %97, %95, %cst_106 {dimension_numbers = #tpu.dot_dimension_numbers<[1], [0], [0], [1], [0, 0, 1, 1], [], []>} : vector<8x8xbf16>, vector<8x8xbf16>, vector<8x8xf32> -> vector<8x8xf32>
    %99 = arith.addf %93, %98 : vector<8x8xf32>
    %100 = arith.negf %99 : vector<8x8xf32>
    %101 = math.exp %100 : vector<8x8xf32>
    %cst_107 = arith.constant 1.000000e+00 : f32
    %102 = vector.broadcast %cst_107 : f32 to vector<8x8xf32>
    %103 = arith.addf %102, %101 : vector<8x8xf32>
    %104 = arith.divf %102, %103 : vector<8x8xf32>
    %105 = arith.mulf %49, %104 : vector<8x8xf32>
    %106 = arith.truncf %105 : vector<8x8xf32> to vector<8x8xbf16>
    %c0_108 = arith.constant 0 : index
    %c0_109 = arith.constant 0 : index
    %c0_110 = arith.constant 0 : index
    %107 = vector.load %arg6[%c0_108, %c0_109, %c0_110] : memref<1x8x8xbf16, #tpu.memory_space<vmem>>, vector<1x8x8xbf16>
    %108 = vector.shape_cast %107 : vector<1x8x8xbf16> to vector<8x8xbf16>
    %109 = vector.shape_cast %106 : vector<8x8xbf16> to vector<1x8x8xbf16>
    tpu.vector_store %arg6[%c0_108, %c0_109, %c0_110], %109 {strides = array<i32>} : memref<1x8x8xbf16, #tpu.memory_space<vmem>>, vector<1x8x8xbf16>,
    return
  }
  func.func @transform_0(%arg0: i32) -> (i32, i32, i32) {
    %c0_i32 = arith.constant 0 : i32
    %c0_i32_0 = arith.constant 0 : i32
    %c0_i32_1 = arith.constant 0 : i32
    return %arg0, %c0_i32, %c0_i32_0 : i32, i32, i32
  }
  func.func @transform_1(%arg0: i32) -> (i32, i32, i32) {
    %c0_i32 = arith.constant 0 : i32
    %c0_i32_0 = arith.constant 0 : i32
    %c0_i32_1 = arith.constant 0 : i32
    %c0_i32_2 = arith.constant 0 : i32
    return %c0_i32, %c0_i32_0, %c0_i32_1 : i32, i32, i32
  }
  func.func @transform_2(%arg0: i32) -> (i32, i32) {
    %c0_i32 = arith.constant 0 : i32
    %c0_i32_0 = arith.constant 0 : i32
    %c0_i32_1 = arith.constant 0 : i32
    return %c0_i32, %c0_i32_0 : i32, i32
  }
  func.func @transform_3(%arg0: i32) -> (i32, i32, i32) {
    %c0_i32 = arith.constant 0 : i32
    %c0_i32_0 = arith.constant 0 : i32
    %c0_i32_1 = arith.constant 0 : i32
    %c0_i32_2 = arith.constant 0 : i32
    return %c0_i32, %c0_i32_0, %c0_i32_1 : i32, i32, i32
  }
  func.func @transform_4(%arg0: i32) -> (i32, i32) {
    %c0_i32 = arith.constant 0 : i32
    %c0_i32_0 = arith.constant 0 : i32
    %c0_i32_1 = arith.constant 0 : i32
    return %c0_i32, %c0_i32_0 : i32, i32
  }
  func.func @transform_5(%arg0: i32) -> (i32, i32, i32) {
    %c0_i32 = arith.constant 0 : i32
    %c0_i32_0 = arith.constant 0 : i32
    %c0_i32_1 = arith.constant 0 : i32
    return %arg0, %c0_i32, %c0_i32_0 : i32, i32, i32
  }
}

module attributes {stable_mosaic.version = 11 : i64} {
  func.func @_conv_act_kernel(%arg0: i32, %arg1: memref<1x8x10xbf16, #tpu.memory_space<vmem>>, %arg2: memref<3x8x8xbf16, #tpu.memory_space<vmem>>, %arg3: memref<8x1xf32, #tpu.memory_space<vmem>>, %arg4: memref<3x8x8xbf16, #tpu.memory_space<vmem>>, %arg5: memref<8x1xf32, #tpu.memory_space<vmem>>, %arg6: memref<1x8x8xbf16, #tpu.memory_space<vmem>>) attributes {dimension_semantics = [#tpu.dimension_semantics<parallel>], iteration_bounds = array<i64: 2>, scalar_prefetch = 0 : i64, scratch_operands = 0 : i64, tpu.core_type = #tpu.core_type<tc>, window_params = [{transform_indices = @transform_0, window_bounds = array<i64: 1, 8, 10>}, {pipeline_mode = #tpu.pipeline_mode<synchronous>, transform_indices = @transform_1, window_bounds = array<i64: 3, 8, 8>}, {pipeline_mode = #tpu.pipeline_mode<synchronous>, transform_indices = @transform_2, window_bounds = array<i64: 8, 1>}, {pipeline_mode = #tpu.pipeline_mode<synchronous>, transform_indices = @transform_3, window_bounds = array<i64: 3, 8, 8>}, {pipeline_mode = #tpu.pipeline_mode<synchronous>, transform_indices = @transform_4, window_bounds = array<i64: 8, 1>}, {transform_indices = @transform_5, window_bounds = array<i64: 1, 8, 8>}]} {
    %c0 = arith.constant 0 : index
    %c0_0 = arith.constant 0 : index
    %0 = vector.load %arg3[%c0, %c0_0] : memref<8x1xf32, #tpu.memory_space<vmem>>, vector<8x1xf32>
    %c0_1 = arith.constant 0 : index
    %c0_2 = arith.constant 0 : index
    %c0_3 = arith.constant 0 : index
    %1 = vector.load %arg1[%c0_1, %c0_2, %c0_3] : memref<1x8x10xbf16, #tpu.memory_space<vmem>>, vector<1x8x8xbf16>
    %2 = vector.shape_cast %1 : vector<1x8x8xbf16> to vector<8x8xbf16>
    %c0_4 = arith.constant 0 : index
    %c0_5 = arith.constant 0 : index
    %c0_6 = arith.constant 0 : index
    %3 = vector.load %arg2[%c0_4, %c0_5, %c0_6] : memref<3x8x8xbf16, #tpu.memory_space<vmem>>, vector<1x8x8xbf16>
    %4 = vector.shape_cast %3 : vector<1x8x8xbf16> to vector<8x8xbf16>
    %cst = arith.constant dense<0.000000e+00> : vector<8x8xf32>
    %5 = tpu.matmul %4, %2, %cst {dimension_numbers = #tpu.dot_dimension_numbers<[1], [0], [0], [1], [0, 0, 1, 1], [], []>} : vector<8x8xbf16>, vector<8x8xbf16>, vector<8x8xf32> -> vector<8x8xf32>
    %6 = vector.broadcast %0 : vector<8x1xf32> to vector<8x8xf32>
    %7 = arith.addf %6, %5 : vector<8x8xf32>
    %c0_7 = arith.constant 0 : index
    %c0_8 = arith.constant 0 : index
    %c1 = arith.constant 1 : index
    %8 = vector.load %arg1[%c0_7, %c0_8, %c1] : memref<1x8x10xbf16, #tpu.memory_space<vmem>>, vector<1x8x8xbf16>
    %9 = vector.shape_cast %8 : vector<1x8x8xbf16> to vector<8x8xbf16>
    %c1_9 = arith.constant 1 : index
    %c0_10 = arith.constant 0 : index
    %c0_11 = arith.constant 0 : index
    %10 = vector.load %arg2[%c1_9, %c0_10, %c0_11] : memref<3x8x8xbf16, #tpu.memory_space<vmem>>, vector<1x8x8xbf16>
    %11 = vector.shape_cast %10 : vector<1x8x8xbf16> to vector<8x8xbf16>
    %cst_12 = arith.constant dense<0.000000e+00> : vector<8x8xf32>
    %12 = tpu.matmul %11, %9, %cst_12 {dimension_numbers = #tpu.dot_dimension_numbers<[1], [0], [0], [1], [0, 0, 1, 1], [], []>} : vector<8x8xbf16>, vector<8x8xbf16>, vector<8x8xf32> -> vector<8x8xf32>
    %13 = arith.addf %7, %12 : vector<8x8xf32>
    %c0_13 = arith.constant 0 : index
    %c0_14 = arith.constant 0 : index
    %c2 = arith.constant 2 : index
    %14 = vector.load %arg1[%c0_13, %c0_14, %c2] : memref<1x8x10xbf16, #tpu.memory_space<vmem>>, vector<1x8x8xbf16>
    %15 = vector.shape_cast %14 : vector<1x8x8xbf16> to vector<8x8xbf16>
    %c2_15 = arith.constant 2 : index
    %c0_16 = arith.constant 0 : index
    %c0_17 = arith.constant 0 : index
    %16 = vector.load %arg2[%c2_15, %c0_16, %c0_17] : memref<3x8x8xbf16, #tpu.memory_space<vmem>>, vector<1x8x8xbf16>
    %17 = vector.shape_cast %16 : vector<1x8x8xbf16> to vector<8x8xbf16>
    %cst_18 = arith.constant dense<0.000000e+00> : vector<8x8xf32>
    %18 = tpu.matmul %17, %15, %cst_18 {dimension_numbers = #tpu.dot_dimension_numbers<[1], [0], [0], [1], [0, 0, 1, 1], [], []>} : vector<8x8xbf16>, vector<8x8xbf16>, vector<8x8xf32> -> vector<8x8xf32>
    %19 = arith.addf %13, %18 : vector<8x8xf32>
    %c0_19 = arith.constant 0 : index
    %c0_20 = arith.constant 0 : index
    %20 = vector.load %arg5[%c0_19, %c0_20] : memref<8x1xf32, #tpu.memory_space<vmem>>, vector<8x1xf32>
    %c0_21 = arith.constant 0 : index
    %c0_22 = arith.constant 0 : index
    %c0_23 = arith.constant 0 : index
    %21 = vector.load %arg1[%c0_21, %c0_22, %c0_23] : memref<1x8x10xbf16, #tpu.memory_space<vmem>>, vector<1x8x8xbf16>
    %22 = vector.shape_cast %21 : vector<1x8x8xbf16> to vector<8x8xbf16>
    %c0_24 = arith.constant 0 : index
    %c0_25 = arith.constant 0 : index
    %c0_26 = arith.constant 0 : index
    %23 = vector.load %arg4[%c0_24, %c0_25, %c0_26] : memref<3x8x8xbf16, #tpu.memory_space<vmem>>, vector<1x8x8xbf16>
    %24 = vector.shape_cast %23 : vector<1x8x8xbf16> to vector<8x8xbf16>
    %cst_27 = arith.constant dense<0.000000e+00> : vector<8x8xf32>
    %25 = tpu.matmul %24, %22, %cst_27 {dimension_numbers = #tpu.dot_dimension_numbers<[1], [0], [0], [1], [0, 0, 1, 1], [], []>} : vector<8x8xbf16>, vector<8x8xbf16>, vector<8x8xf32> -> vector<8x8xf32>
    %26 = vector.broadcast %20 : vector<8x1xf32> to vector<8x8xf32>
    %27 = arith.addf %26, %25 : vector<8x8xf32>
    %c0_28 = arith.constant 0 : index
    %c0_29 = arith.constant 0 : index
    %c1_30 = arith.constant 1 : index
    %28 = vector.load %arg1[%c0_28, %c0_29, %c1_30] : memref<1x8x10xbf16, #tpu.memory_space<vmem>>, vector<1x8x8xbf16>
    %29 = vector.shape_cast %28 : vector<1x8x8xbf16> to vector<8x8xbf16>
    %c1_31 = arith.constant 1 : index
    %c0_32 = arith.constant 0 : index
    %c0_33 = arith.constant 0 : index
    %30 = vector.load %arg4[%c1_31, %c0_32, %c0_33] : memref<3x8x8xbf16, #tpu.memory_space<vmem>>, vector<1x8x8xbf16>
    %31 = vector.shape_cast %30 : vector<1x8x8xbf16> to vector<8x8xbf16>
    %cst_34 = arith.constant dense<0.000000e+00> : vector<8x8xf32>
    %32 = tpu.matmul %31, %29, %cst_34 {dimension_numbers = #tpu.dot_dimension_numbers<[1], [0], [0], [1], [0, 0, 1, 1], [], []>} : vector<8x8xbf16>, vector<8x8xbf16>, vector<8x8xf32> -> vector<8x8xf32>
    %33 = arith.addf %27, %32 : vector<8x8xf32>
    %c0_35 = arith.constant 0 : index
    %c0_36 = arith.constant 0 : index
    %c2_37 = arith.constant 2 : index
    %34 = vector.load %arg1[%c0_35, %c0_36, %c2_37] : memref<1x8x10xbf16, #tpu.memory_space<vmem>>, vector<1x8x8xbf16>
    %35 = vector.shape_cast %34 : vector<1x8x8xbf16> to vector<8x8xbf16>
    %c2_38 = arith.constant 2 : index
    %c0_39 = arith.constant 0 : index
    %c0_40 = arith.constant 0 : index
    %36 = vector.load %arg4[%c2_38, %c0_39, %c0_40] : memref<3x8x8xbf16, #tpu.memory_space<vmem>>, vector<1x8x8xbf16>
    %37 = vector.shape_cast %36 : vector<1x8x8xbf16> to vector<8x8xbf16>
    %cst_41 = arith.constant dense<0.000000e+00> : vector<8x8xf32>
    %38 = tpu.matmul %37, %35, %cst_41 {dimension_numbers = #tpu.dot_dimension_numbers<[1], [0], [0], [1], [0, 0, 1, 1], [], []>} : vector<8x8xbf16>, vector<8x8xbf16>, vector<8x8xf32> -> vector<8x8xf32>
    %39 = arith.addf %33, %38 : vector<8x8xf32>
    %40 = arith.negf %39 : vector<8x8xf32>
    %41 = math.exp %40 : vector<8x8xf32>
    %cst_42 = arith.constant 1.000000e+00 : f32
    %42 = vector.broadcast %cst_42 : f32 to vector<8x8xf32>
    %43 = arith.addf %42, %41 : vector<8x8xf32>
    %44 = arith.divf %42, %43 : vector<8x8xf32>
    %45 = arith.mulf %19, %44 : vector<8x8xf32>
    %46 = arith.truncf %45 : vector<8x8xf32> to vector<8x8xbf16>
    %c0_43 = arith.constant 0 : index
    %c0_44 = arith.constant 0 : index
    %c0_45 = arith.constant 0 : index
    %47 = vector.load %arg6[%c0_43, %c0_44, %c0_45] : memref<1x8x8xbf16, #tpu.memory_space<vmem>>, vector<1x8x8xbf16>
    %48 = vector.shape_cast %47 : vector<1x8x8xbf16> to vector<8x8xbf16>
    %49 = vector.shape_cast %46 : vector<8x8xbf16> to vector<1x8x8xbf16>
    tpu.vector_store %arg6[%c0_43, %c0_44, %c0_45], %49 {strides = array<i32>} : memref<1x8x8xbf16, #tpu.memory_space<vmem>>, vector<1x8x8xbf16>,
    return
  }
  func.func @transform_0(%arg0: i32) -> (i32, i32, i32) {
    %c0_i32 = arith.constant 0 : i32
    %c0_i32_0 = arith.constant 0 : i32
    %c0_i32_1 = arith.constant 0 : i32
    return %arg0, %c0_i32, %c0_i32_0 : i32, i32, i32
  }
  func.func @transform_1(%arg0: i32) -> (i32, i32, i32) {
    %c0_i32 = arith.constant 0 : i32
    %c0_i32_0 = arith.constant 0 : i32
    %c0_i32_1 = arith.constant 0 : i32
    %c0_i32_2 = arith.constant 0 : i32
    return %c0_i32, %c0_i32_0, %c0_i32_1 : i32, i32, i32
  }
  func.func @transform_2(%arg0: i32) -> (i32, i32) {
    %c0_i32 = arith.constant 0 : i32
    %c0_i32_0 = arith.constant 0 : i32
    %c0_i32_1 = arith.constant 0 : i32
    return %c0_i32, %c0_i32_0 : i32, i32
  }
  func.func @transform_3(%arg0: i32) -> (i32, i32, i32) {
    %c0_i32 = arith.constant 0 : i32
    %c0_i32_0 = arith.constant 0 : i32
    %c0_i32_1 = arith.constant 0 : i32
    %c0_i32_2 = arith.constant 0 : i32
    return %c0_i32, %c0_i32_0, %c0_i32_1 : i32, i32, i32
  }
  func.func @transform_4(%arg0: i32) -> (i32, i32) {
    %c0_i32 = arith.constant 0 : i32
    %c0_i32_0 = arith.constant 0 : i32
    %c0_i32_1 = arith.constant 0 : i32
    return %c0_i32, %c0_i32_0 : i32, i32
  }
  func.func @transform_5(%arg0: i32) -> (i32, i32, i32) {
    %c0_i32 = arith.constant 0 : i32
    %c0_i32_0 = arith.constant 0 : i32
    %c0_i32_1 = arith.constant 0 : i32
    return %arg0, %c0_i32, %c0_i32_0 : i32, i32, i32
  }
}

module attributes {stable_mosaic.version = 11 : i64} {
  func.func @_conv_act_kernel(%arg0: i32, %arg1: memref<1x8x22xbf16, #tpu.memory_space<vmem>>, %arg2: memref<15x4x8xbf16, #tpu.memory_space<vmem>>, %arg3: memref<4x1xf32, #tpu.memory_space<vmem>>, %arg4: memref<1x4x8xbf16, #tpu.memory_space<vmem>>) attributes {dimension_semantics = [#tpu.dimension_semantics<parallel>], iteration_bounds = array<i64: 2>, scalar_prefetch = 0 : i64, scratch_operands = 0 : i64, tpu.core_type = #tpu.core_type<tc>, window_params = [{transform_indices = @transform_0, window_bounds = array<i64: 1, 8, 22>}, {pipeline_mode = #tpu.pipeline_mode<synchronous>, transform_indices = @transform_1, window_bounds = array<i64: 15, 4, 8>}, {pipeline_mode = #tpu.pipeline_mode<synchronous>, transform_indices = @transform_2, window_bounds = array<i64: 4, 1>}, {transform_indices = @transform_3, window_bounds = array<i64: 1, 4, 8>}]} {
    %c0 = arith.constant 0 : index
    %c0_0 = arith.constant 0 : index
    %0 = vector.load %arg3[%c0, %c0_0] : memref<4x1xf32, #tpu.memory_space<vmem>>, vector<4x1xf32>
    %c0_1 = arith.constant 0 : index
    %c0_2 = arith.constant 0 : index
    %c0_3 = arith.constant 0 : index
    %1 = vector.load %arg1[%c0_1, %c0_2, %c0_3] : memref<1x8x22xbf16, #tpu.memory_space<vmem>>, vector<1x8x8xbf16>
    %2 = vector.shape_cast %1 : vector<1x8x8xbf16> to vector<8x8xbf16>
    %c0_4 = arith.constant 0 : index
    %c0_5 = arith.constant 0 : index
    %c0_6 = arith.constant 0 : index
    %3 = vector.load %arg2[%c0_4, %c0_5, %c0_6] : memref<15x4x8xbf16, #tpu.memory_space<vmem>>, vector<1x4x8xbf16>
    %4 = vector.shape_cast %3 : vector<1x4x8xbf16> to vector<4x8xbf16>
    %cst = arith.constant dense<0.000000e+00> : vector<4x8xf32>
    %5 = tpu.matmul %4, %2, %cst {dimension_numbers = #tpu.dot_dimension_numbers<[1], [0], [0], [1], [0, 0, 1, 1], [], []>} : vector<4x8xbf16>, vector<8x8xbf16>, vector<4x8xf32> -> vector<4x8xf32>
    %6 = vector.broadcast %0 : vector<4x1xf32> to vector<4x8xf32>
    %7 = arith.addf %6, %5 : vector<4x8xf32>
    %c0_7 = arith.constant 0 : index
    %c0_8 = arith.constant 0 : index
    %c1 = arith.constant 1 : index
    %8 = vector.load %arg1[%c0_7, %c0_8, %c1] : memref<1x8x22xbf16, #tpu.memory_space<vmem>>, vector<1x8x8xbf16>
    %9 = vector.shape_cast %8 : vector<1x8x8xbf16> to vector<8x8xbf16>
    %c1_9 = arith.constant 1 : index
    %c0_10 = arith.constant 0 : index
    %c0_11 = arith.constant 0 : index
    %10 = vector.load %arg2[%c1_9, %c0_10, %c0_11] : memref<15x4x8xbf16, #tpu.memory_space<vmem>>, vector<1x4x8xbf16>
    %11 = vector.shape_cast %10 : vector<1x4x8xbf16> to vector<4x8xbf16>
    %cst_12 = arith.constant dense<0.000000e+00> : vector<4x8xf32>
    %12 = tpu.matmul %11, %9, %cst_12 {dimension_numbers = #tpu.dot_dimension_numbers<[1], [0], [0], [1], [0, 0, 1, 1], [], []>} : vector<4x8xbf16>, vector<8x8xbf16>, vector<4x8xf32> -> vector<4x8xf32>
    %13 = arith.addf %7, %12 : vector<4x8xf32>
    %c0_13 = arith.constant 0 : index
    %c0_14 = arith.constant 0 : index
    %c2 = arith.constant 2 : index
    %14 = vector.load %arg1[%c0_13, %c0_14, %c2] : memref<1x8x22xbf16, #tpu.memory_space<vmem>>, vector<1x8x8xbf16>
    %15 = vector.shape_cast %14 : vector<1x8x8xbf16> to vector<8x8xbf16>
    %c2_15 = arith.constant 2 : index
    %c0_16 = arith.constant 0 : index
    %c0_17 = arith.constant 0 : index
    %16 = vector.load %arg2[%c2_15, %c0_16, %c0_17] : memref<15x4x8xbf16, #tpu.memory_space<vmem>>, vector<1x4x8xbf16>
    %17 = vector.shape_cast %16 : vector<1x4x8xbf16> to vector<4x8xbf16>
    %cst_18 = arith.constant dense<0.000000e+00> : vector<4x8xf32>
    %18 = tpu.matmul %17, %15, %cst_18 {dimension_numbers = #tpu.dot_dimension_numbers<[1], [0], [0], [1], [0, 0, 1, 1], [], []>} : vector<4x8xbf16>, vector<8x8xbf16>, vector<4x8xf32> -> vector<4x8xf32>
    %19 = arith.addf %13, %18 : vector<4x8xf32>
    %c0_19 = arith.constant 0 : index
    %c0_20 = arith.constant 0 : index
    %c3 = arith.constant 3 : index
    %20 = vector.load %arg1[%c0_19, %c0_20, %c3] : memref<1x8x22xbf16, #tpu.memory_space<vmem>>, vector<1x8x8xbf16>
    %21 = vector.shape_cast %20 : vector<1x8x8xbf16> to vector<8x8xbf16>
    %c3_21 = arith.constant 3 : index
    %c0_22 = arith.constant 0 : index
    %c0_23 = arith.constant 0 : index
    %22 = vector.load %arg2[%c3_21, %c0_22, %c0_23] : memref<15x4x8xbf16, #tpu.memory_space<vmem>>, vector<1x4x8xbf16>
    %23 = vector.shape_cast %22 : vector<1x4x8xbf16> to vector<4x8xbf16>
    %cst_24 = arith.constant dense<0.000000e+00> : vector<4x8xf32>
    %24 = tpu.matmul %23, %21, %cst_24 {dimension_numbers = #tpu.dot_dimension_numbers<[1], [0], [0], [1], [0, 0, 1, 1], [], []>} : vector<4x8xbf16>, vector<8x8xbf16>, vector<4x8xf32> -> vector<4x8xf32>
    %25 = arith.addf %19, %24 : vector<4x8xf32>
    %c0_25 = arith.constant 0 : index
    %c0_26 = arith.constant 0 : index
    %c4 = arith.constant 4 : index
    %26 = vector.load %arg1[%c0_25, %c0_26, %c4] : memref<1x8x22xbf16, #tpu.memory_space<vmem>>, vector<1x8x8xbf16>
    %27 = vector.shape_cast %26 : vector<1x8x8xbf16> to vector<8x8xbf16>
    %c4_27 = arith.constant 4 : index
    %c0_28 = arith.constant 0 : index
    %c0_29 = arith.constant 0 : index
    %28 = vector.load %arg2[%c4_27, %c0_28, %c0_29] : memref<15x4x8xbf16, #tpu.memory_space<vmem>>, vector<1x4x8xbf16>
    %29 = vector.shape_cast %28 : vector<1x4x8xbf16> to vector<4x8xbf16>
    %cst_30 = arith.constant dense<0.000000e+00> : vector<4x8xf32>
    %30 = tpu.matmul %29, %27, %cst_30 {dimension_numbers = #tpu.dot_dimension_numbers<[1], [0], [0], [1], [0, 0, 1, 1], [], []>} : vector<4x8xbf16>, vector<8x8xbf16>, vector<4x8xf32> -> vector<4x8xf32>
    %31 = arith.addf %25, %30 : vector<4x8xf32>
    %c0_31 = arith.constant 0 : index
    %c0_32 = arith.constant 0 : index
    %c5 = arith.constant 5 : index
    %32 = vector.load %arg1[%c0_31, %c0_32, %c5] : memref<1x8x22xbf16, #tpu.memory_space<vmem>>, vector<1x8x8xbf16>
    %33 = vector.shape_cast %32 : vector<1x8x8xbf16> to vector<8x8xbf16>
    %c5_33 = arith.constant 5 : index
    %c0_34 = arith.constant 0 : index
    %c0_35 = arith.constant 0 : index
    %34 = vector.load %arg2[%c5_33, %c0_34, %c0_35] : memref<15x4x8xbf16, #tpu.memory_space<vmem>>, vector<1x4x8xbf16>
    %35 = vector.shape_cast %34 : vector<1x4x8xbf16> to vector<4x8xbf16>
    %cst_36 = arith.constant dense<0.000000e+00> : vector<4x8xf32>
    %36 = tpu.matmul %35, %33, %cst_36 {dimension_numbers = #tpu.dot_dimension_numbers<[1], [0], [0], [1], [0, 0, 1, 1], [], []>} : vector<4x8xbf16>, vector<8x8xbf16>, vector<4x8xf32> -> vector<4x8xf32>
    %37 = arith.addf %31, %36 : vector<4x8xf32>
    %c0_37 = arith.constant 0 : index
    %c0_38 = arith.constant 0 : index
    %c6 = arith.constant 6 : index
    %38 = vector.load %arg1[%c0_37, %c0_38, %c6] : memref<1x8x22xbf16, #tpu.memory_space<vmem>>, vector<1x8x8xbf16>
    %39 = vector.shape_cast %38 : vector<1x8x8xbf16> to vector<8x8xbf16>
    %c6_39 = arith.constant 6 : index
    %c0_40 = arith.constant 0 : index
    %c0_41 = arith.constant 0 : index
    %40 = vector.load %arg2[%c6_39, %c0_40, %c0_41] : memref<15x4x8xbf16, #tpu.memory_space<vmem>>, vector<1x4x8xbf16>
    %41 = vector.shape_cast %40 : vector<1x4x8xbf16> to vector<4x8xbf16>
    %cst_42 = arith.constant dense<0.000000e+00> : vector<4x8xf32>
    %42 = tpu.matmul %41, %39, %cst_42 {dimension_numbers = #tpu.dot_dimension_numbers<[1], [0], [0], [1], [0, 0, 1, 1], [], []>} : vector<4x8xbf16>, vector<8x8xbf16>, vector<4x8xf32> -> vector<4x8xf32>
    %43 = arith.addf %37, %42 : vector<4x8xf32>
    %c0_43 = arith.constant 0 : index
    %c0_44 = arith.constant 0 : index
    %c7 = arith.constant 7 : index
    %44 = vector.load %arg1[%c0_43, %c0_44, %c7] : memref<1x8x22xbf16, #tpu.memory_space<vmem>>, vector<1x8x8xbf16>
    %45 = vector.shape_cast %44 : vector<1x8x8xbf16> to vector<8x8xbf16>
    %c7_45 = arith.constant 7 : index
    %c0_46 = arith.constant 0 : index
    %c0_47 = arith.constant 0 : index
    %46 = vector.load %arg2[%c7_45, %c0_46, %c0_47] : memref<15x4x8xbf16, #tpu.memory_space<vmem>>, vector<1x4x8xbf16>
    %47 = vector.shape_cast %46 : vector<1x4x8xbf16> to vector<4x8xbf16>
    %cst_48 = arith.constant dense<0.000000e+00> : vector<4x8xf32>
    %48 = tpu.matmul %47, %45, %cst_48 {dimension_numbers = #tpu.dot_dimension_numbers<[1], [0], [0], [1], [0, 0, 1, 1], [], []>} : vector<4x8xbf16>, vector<8x8xbf16>, vector<4x8xf32> -> vector<4x8xf32>
    %49 = arith.addf %43, %48 : vector<4x8xf32>
    %c0_49 = arith.constant 0 : index
    %c0_50 = arith.constant 0 : index
    %c8 = arith.constant 8 : index
    %50 = vector.load %arg1[%c0_49, %c0_50, %c8] : memref<1x8x22xbf16, #tpu.memory_space<vmem>>, vector<1x8x8xbf16>
    %51 = vector.shape_cast %50 : vector<1x8x8xbf16> to vector<8x8xbf16>
    %c8_51 = arith.constant 8 : index
    %c0_52 = arith.constant 0 : index
    %c0_53 = arith.constant 0 : index
    %52 = vector.load %arg2[%c8_51, %c0_52, %c0_53] : memref<15x4x8xbf16, #tpu.memory_space<vmem>>, vector<1x4x8xbf16>
    %53 = vector.shape_cast %52 : vector<1x4x8xbf16> to vector<4x8xbf16>
    %cst_54 = arith.constant dense<0.000000e+00> : vector<4x8xf32>
    %54 = tpu.matmul %53, %51, %cst_54 {dimension_numbers = #tpu.dot_dimension_numbers<[1], [0], [0], [1], [0, 0, 1, 1], [], []>} : vector<4x8xbf16>, vector<8x8xbf16>, vector<4x8xf32> -> vector<4x8xf32>
    %55 = arith.addf %49, %54 : vector<4x8xf32>
    %c0_55 = arith.constant 0 : index
    %c0_56 = arith.constant 0 : index
    %c9 = arith.constant 9 : index
    %56 = vector.load %arg1[%c0_55, %c0_56, %c9] : memref<1x8x22xbf16, #tpu.memory_space<vmem>>, vector<1x8x8xbf16>
    %57 = vector.shape_cast %56 : vector<1x8x8xbf16> to vector<8x8xbf16>
    %c9_57 = arith.constant 9 : index
    %c0_58 = arith.constant 0 : index
    %c0_59 = arith.constant 0 : index
    %58 = vector.load %arg2[%c9_57, %c0_58, %c0_59] : memref<15x4x8xbf16, #tpu.memory_space<vmem>>, vector<1x4x8xbf16>
    %59 = vector.shape_cast %58 : vector<1x4x8xbf16> to vector<4x8xbf16>
    %cst_60 = arith.constant dense<0.000000e+00> : vector<4x8xf32>
    %60 = tpu.matmul %59, %57, %cst_60 {dimension_numbers = #tpu.dot_dimension_numbers<[1], [0], [0], [1], [0, 0, 1, 1], [], []>} : vector<4x8xbf16>, vector<8x8xbf16>, vector<4x8xf32> -> vector<4x8xf32>
    %61 = arith.addf %55, %60 : vector<4x8xf32>
    %c0_61 = arith.constant 0 : index
    %c0_62 = arith.constant 0 : index
    %c10 = arith.constant 10 : index
    %62 = vector.load %arg1[%c0_61, %c0_62, %c10] : memref<1x8x22xbf16, #tpu.memory_space<vmem>>, vector<1x8x8xbf16>
    %63 = vector.shape_cast %62 : vector<1x8x8xbf16> to vector<8x8xbf16>
    %c10_63 = arith.constant 10 : index
    %c0_64 = arith.constant 0 : index
    %c0_65 = arith.constant 0 : index
    %64 = vector.load %arg2[%c10_63, %c0_64, %c0_65] : memref<15x4x8xbf16, #tpu.memory_space<vmem>>, vector<1x4x8xbf16>
    %65 = vector.shape_cast %64 : vector<1x4x8xbf16> to vector<4x8xbf16>
    %cst_66 = arith.constant dense<0.000000e+00> : vector<4x8xf32>
    %66 = tpu.matmul %65, %63, %cst_66 {dimension_numbers = #tpu.dot_dimension_numbers<[1], [0], [0], [1], [0, 0, 1, 1], [], []>} : vector<4x8xbf16>, vector<8x8xbf16>, vector<4x8xf32> -> vector<4x8xf32>
    %67 = arith.addf %61, %66 : vector<4x8xf32>
    %c0_67 = arith.constant 0 : index
    %c0_68 = arith.constant 0 : index
    %c11 = arith.constant 11 : index
    %68 = vector.load %arg1[%c0_67, %c0_68, %c11] : memref<1x8x22xbf16, #tpu.memory_space<vmem>>, vector<1x8x8xbf16>
    %69 = vector.shape_cast %68 : vector<1x8x8xbf16> to vector<8x8xbf16>
    %c11_69 = arith.constant 11 : index
    %c0_70 = arith.constant 0 : index
    %c0_71 = arith.constant 0 : index
    %70 = vector.load %arg2[%c11_69, %c0_70, %c0_71] : memref<15x4x8xbf16, #tpu.memory_space<vmem>>, vector<1x4x8xbf16>
    %71 = vector.shape_cast %70 : vector<1x4x8xbf16> to vector<4x8xbf16>
    %cst_72 = arith.constant dense<0.000000e+00> : vector<4x8xf32>
    %72 = tpu.matmul %71, %69, %cst_72 {dimension_numbers = #tpu.dot_dimension_numbers<[1], [0], [0], [1], [0, 0, 1, 1], [], []>} : vector<4x8xbf16>, vector<8x8xbf16>, vector<4x8xf32> -> vector<4x8xf32>
    %73 = arith.addf %67, %72 : vector<4x8xf32>
    %c0_73 = arith.constant 0 : index
    %c0_74 = arith.constant 0 : index
    %c12 = arith.constant 12 : index
    %74 = vector.load %arg1[%c0_73, %c0_74, %c12] : memref<1x8x22xbf16, #tpu.memory_space<vmem>>, vector<1x8x8xbf16>
    %75 = vector.shape_cast %74 : vector<1x8x8xbf16> to vector<8x8xbf16>
    %c12_75 = arith.constant 12 : index
    %c0_76 = arith.constant 0 : index
    %c0_77 = arith.constant 0 : index
    %76 = vector.load %arg2[%c12_75, %c0_76, %c0_77] : memref<15x4x8xbf16, #tpu.memory_space<vmem>>, vector<1x4x8xbf16>
    %77 = vector.shape_cast %76 : vector<1x4x8xbf16> to vector<4x8xbf16>
    %cst_78 = arith.constant dense<0.000000e+00> : vector<4x8xf32>
    %78 = tpu.matmul %77, %75, %cst_78 {dimension_numbers = #tpu.dot_dimension_numbers<[1], [0], [0], [1], [0, 0, 1, 1], [], []>} : vector<4x8xbf16>, vector<8x8xbf16>, vector<4x8xf32> -> vector<4x8xf32>
    %79 = arith.addf %73, %78 : vector<4x8xf32>
    %c0_79 = arith.constant 0 : index
    %c0_80 = arith.constant 0 : index
    %c13 = arith.constant 13 : index
    %80 = vector.load %arg1[%c0_79, %c0_80, %c13] : memref<1x8x22xbf16, #tpu.memory_space<vmem>>, vector<1x8x8xbf16>
    %81 = vector.shape_cast %80 : vector<1x8x8xbf16> to vector<8x8xbf16>
    %c13_81 = arith.constant 13 : index
    %c0_82 = arith.constant 0 : index
    %c0_83 = arith.constant 0 : index
    %82 = vector.load %arg2[%c13_81, %c0_82, %c0_83] : memref<15x4x8xbf16, #tpu.memory_space<vmem>>, vector<1x4x8xbf16>
    %83 = vector.shape_cast %82 : vector<1x4x8xbf16> to vector<4x8xbf16>
    %cst_84 = arith.constant dense<0.000000e+00> : vector<4x8xf32>
    %84 = tpu.matmul %83, %81, %cst_84 {dimension_numbers = #tpu.dot_dimension_numbers<[1], [0], [0], [1], [0, 0, 1, 1], [], []>} : vector<4x8xbf16>, vector<8x8xbf16>, vector<4x8xf32> -> vector<4x8xf32>
    %85 = arith.addf %79, %84 : vector<4x8xf32>
    %c0_85 = arith.constant 0 : index
    %c0_86 = arith.constant 0 : index
    %c14 = arith.constant 14 : index
    %86 = vector.load %arg1[%c0_85, %c0_86, %c14] : memref<1x8x22xbf16, #tpu.memory_space<vmem>>, vector<1x8x8xbf16>
    %87 = vector.shape_cast %86 : vector<1x8x8xbf16> to vector<8x8xbf16>
    %c14_87 = arith.constant 14 : index
    %c0_88 = arith.constant 0 : index
    %c0_89 = arith.constant 0 : index
    %88 = vector.load %arg2[%c14_87, %c0_88, %c0_89] : memref<15x4x8xbf16, #tpu.memory_space<vmem>>, vector<1x4x8xbf16>
    %89 = vector.shape_cast %88 : vector<1x4x8xbf16> to vector<4x8xbf16>
    %cst_90 = arith.constant dense<0.000000e+00> : vector<4x8xf32>
    %90 = tpu.matmul %89, %87, %cst_90 {dimension_numbers = #tpu.dot_dimension_numbers<[1], [0], [0], [1], [0, 0, 1, 1], [], []>} : vector<4x8xbf16>, vector<8x8xbf16>, vector<4x8xf32> -> vector<4x8xf32>
    %91 = arith.addf %85, %90 : vector<4x8xf32>
    %92 = arith.truncf %91 : vector<4x8xf32> to vector<4x8xbf16>
    %c0_91 = arith.constant 0 : index
    %c0_92 = arith.constant 0 : index
    %c0_93 = arith.constant 0 : index
    %93 = vector.load %arg4[%c0_91, %c0_92, %c0_93] : memref<1x4x8xbf16, #tpu.memory_space<vmem>>, vector<1x4x8xbf16>
    %94 = vector.shape_cast %93 : vector<1x4x8xbf16> to vector<4x8xbf16>
    %95 = vector.shape_cast %92 : vector<4x8xbf16> to vector<1x4x8xbf16>
    tpu.vector_store %arg4[%c0_91, %c0_92, %c0_93], %95 {strides = array<i32>} : memref<1x4x8xbf16, #tpu.memory_space<vmem>>, vector<1x4x8xbf16>,
    return
  }
  func.func @transform_0(%arg0: i32) -> (i32, i32, i32) {
    %c0_i32 = arith.constant 0 : i32
    %c0_i32_0 = arith.constant 0 : i32
    %c0_i32_1 = arith.constant 0 : i32
    return %arg0, %c0_i32, %c0_i32_0 : i32, i32, i32
  }
  func.func @transform_1(%arg0: i32) -> (i32, i32, i32) {
    %c0_i32 = arith.constant 0 : i32
    %c0_i32_0 = arith.constant 0 : i32
    %c0_i32_1 = arith.constant 0 : i32
    %c0_i32_2 = arith.constant 0 : i32
    return %c0_i32, %c0_i32_0, %c0_i32_1 : i32, i32, i32
  }
  func.func @transform_2(%arg0: i32) -> (i32, i32) {
    %c0_i32 = arith.constant 0 : i32
    %c0_i32_0 = arith.constant 0 : i32
    %c0_i32_1 = arith.constant 0 : i32
    return %c0_i32, %c0_i32_0 : i32, i32
  }
  func.func @transform_3(%arg0: i32) -> (i32, i32, i32) {
    %c0_i32 = arith.constant 0 : i32
    %c0_i32_0 = arith.constant 0 : i32
    %c0_i32_1 = arith.constant 0 : i32
    return %arg0, %c0_i32, %c0_i32_0 : i32, i32, i32
  }
}

module attributes {stable_mosaic.version = 11 : i64} {
  func.func @_conv_act_kernel(%arg0: i32, %arg1: memref<1x8x23xbf16, #tpu.memory_space<vmem>>, %arg2: memref<8x8x8xbf16, #tpu.memory_space<vmem>>, %arg3: memref<8x1xf32, #tpu.memory_space<vmem>>, %arg4: memref<8x8x8xbf16, #tpu.memory_space<vmem>>, %arg5: memref<8x1xf32, #tpu.memory_space<vmem>>, %arg6: memref<1x8x16xbf16, #tpu.memory_space<vmem>>) attributes {dimension_semantics = [#tpu.dimension_semantics<parallel>], iteration_bounds = array<i64: 2>, scalar_prefetch = 0 : i64, scratch_operands = 0 : i64, tpu.core_type = #tpu.core_type<tc>, window_params = [{transform_indices = @transform_0, window_bounds = array<i64: 1, 8, 23>}, {pipeline_mode = #tpu.pipeline_mode<synchronous>, transform_indices = @transform_1, window_bounds = array<i64: 8, 8, 8>}, {pipeline_mode = #tpu.pipeline_mode<synchronous>, transform_indices = @transform_2, window_bounds = array<i64: 8, 1>}, {pipeline_mode = #tpu.pipeline_mode<synchronous>, transform_indices = @transform_3, window_bounds = array<i64: 8, 8, 8>}, {pipeline_mode = #tpu.pipeline_mode<synchronous>, transform_indices = @transform_4, window_bounds = array<i64: 8, 1>}, {transform_indices = @transform_5, window_bounds = array<i64: 1, 8, 16>}]} {
    %c0 = arith.constant 0 : index
    %c0_0 = arith.constant 0 : index
    %0 = vector.load %arg3[%c0, %c0_0] : memref<8x1xf32, #tpu.memory_space<vmem>>, vector<8x1xf32>
    %c0_1 = arith.constant 0 : index
    %c0_2 = arith.constant 0 : index
    %c0_3 = arith.constant 0 : index
    %1 = vector.load %arg1[%c0_1, %c0_2, %c0_3] : memref<1x8x23xbf16, #tpu.memory_space<vmem>>, vector<1x8x16xbf16>
    %2 = vector.shape_cast %1 : vector<1x8x16xbf16> to vector<8x16xbf16>
    %c0_4 = arith.constant 0 : index
    %c0_5 = arith.constant 0 : index
    %c0_6 = arith.constant 0 : index
    %3 = vector.load %arg2[%c0_4, %c0_5, %c0_6] : memref<8x8x8xbf16, #tpu.memory_space<vmem>>, vector<1x8x8xbf16>
    %4 = vector.shape_cast %3 : vector<1x8x8xbf16> to vector<8x8xbf16>
    %cst = arith.constant dense<0.000000e+00> : vector<8x16xf32>
    %5 = tpu.matmul %4, %2, %cst {dimension_numbers = #tpu.dot_dimension_numbers<[1], [0], [0], [1], [0, 0, 1, 1], [], []>} : vector<8x8xbf16>, vector<8x16xbf16>, vector<8x16xf32> -> vector<8x16xf32>
    %6 = vector.broadcast %0 : vector<8x1xf32> to vector<8x16xf32>
    %7 = arith.addf %6, %5 : vector<8x16xf32>
    %c0_7 = arith.constant 0 : index
    %c0_8 = arith.constant 0 : index
    %c1 = arith.constant 1 : index
    %8 = vector.load %arg1[%c0_7, %c0_8, %c1] : memref<1x8x23xbf16, #tpu.memory_space<vmem>>, vector<1x8x16xbf16>
    %9 = vector.shape_cast %8 : vector<1x8x16xbf16> to vector<8x16xbf16>
    %c1_9 = arith.constant 1 : index
    %c0_10 = arith.constant 0 : index
    %c0_11 = arith.constant 0 : index
    %10 = vector.load %arg2[%c1_9, %c0_10, %c0_11] : memref<8x8x8xbf16, #tpu.memory_space<vmem>>, vector<1x8x8xbf16>
    %11 = vector.shape_cast %10 : vector<1x8x8xbf16> to vector<8x8xbf16>
    %cst_12 = arith.constant dense<0.000000e+00> : vector<8x16xf32>
    %12 = tpu.matmul %11, %9, %cst_12 {dimension_numbers = #tpu.dot_dimension_numbers<[1], [0], [0], [1], [0, 0, 1, 1], [], []>} : vector<8x8xbf16>, vector<8x16xbf16>, vector<8x16xf32> -> vector<8x16xf32>
    %13 = arith.addf %7, %12 : vector<8x16xf32>
    %c0_13 = arith.constant 0 : index
    %c0_14 = arith.constant 0 : index
    %c2 = arith.constant 2 : index
    %14 = vector.load %arg1[%c0_13, %c0_14, %c2] : memref<1x8x23xbf16, #tpu.memory_space<vmem>>, vector<1x8x16xbf16>
    %15 = vector.shape_cast %14 : vector<1x8x16xbf16> to vector<8x16xbf16>
    %c2_15 = arith.constant 2 : index
    %c0_16 = arith.constant 0 : index
    %c0_17 = arith.constant 0 : index
    %16 = vector.load %arg2[%c2_15, %c0_16, %c0_17] : memref<8x8x8xbf16, #tpu.memory_space<vmem>>, vector<1x8x8xbf16>
    %17 = vector.shape_cast %16 : vector<1x8x8xbf16> to vector<8x8xbf16>
    %cst_18 = arith.constant dense<0.000000e+00> : vector<8x16xf32>
    %18 = tpu.matmul %17, %15, %cst_18 {dimension_numbers = #tpu.dot_dimension_numbers<[1], [0], [0], [1], [0, 0, 1, 1], [], []>} : vector<8x8xbf16>, vector<8x16xbf16>, vector<8x16xf32> -> vector<8x16xf32>
    %19 = arith.addf %13, %18 : vector<8x16xf32>
    %c0_19 = arith.constant 0 : index
    %c0_20 = arith.constant 0 : index
    %c3 = arith.constant 3 : index
    %20 = vector.load %arg1[%c0_19, %c0_20, %c3] : memref<1x8x23xbf16, #tpu.memory_space<vmem>>, vector<1x8x16xbf16>
    %21 = vector.shape_cast %20 : vector<1x8x16xbf16> to vector<8x16xbf16>
    %c3_21 = arith.constant 3 : index
    %c0_22 = arith.constant 0 : index
    %c0_23 = arith.constant 0 : index
    %22 = vector.load %arg2[%c3_21, %c0_22, %c0_23] : memref<8x8x8xbf16, #tpu.memory_space<vmem>>, vector<1x8x8xbf16>
    %23 = vector.shape_cast %22 : vector<1x8x8xbf16> to vector<8x8xbf16>
    %cst_24 = arith.constant dense<0.000000e+00> : vector<8x16xf32>
    %24 = tpu.matmul %23, %21, %cst_24 {dimension_numbers = #tpu.dot_dimension_numbers<[1], [0], [0], [1], [0, 0, 1, 1], [], []>} : vector<8x8xbf16>, vector<8x16xbf16>, vector<8x16xf32> -> vector<8x16xf32>
    %25 = arith.addf %19, %24 : vector<8x16xf32>
    %c0_25 = arith.constant 0 : index
    %c0_26 = arith.constant 0 : index
    %c4 = arith.constant 4 : index
    %26 = vector.load %arg1[%c0_25, %c0_26, %c4] : memref<1x8x23xbf16, #tpu.memory_space<vmem>>, vector<1x8x16xbf16>
    %27 = vector.shape_cast %26 : vector<1x8x16xbf16> to vector<8x16xbf16>
    %c4_27 = arith.constant 4 : index
    %c0_28 = arith.constant 0 : index
    %c0_29 = arith.constant 0 : index
    %28 = vector.load %arg2[%c4_27, %c0_28, %c0_29] : memref<8x8x8xbf16, #tpu.memory_space<vmem>>, vector<1x8x8xbf16>
    %29 = vector.shape_cast %28 : vector<1x8x8xbf16> to vector<8x8xbf16>
    %cst_30 = arith.constant dense<0.000000e+00> : vector<8x16xf32>
    %30 = tpu.matmul %29, %27, %cst_30 {dimension_numbers = #tpu.dot_dimension_numbers<[1], [0], [0], [1], [0, 0, 1, 1], [], []>} : vector<8x8xbf16>, vector<8x16xbf16>, vector<8x16xf32> -> vector<8x16xf32>
    %31 = arith.addf %25, %30 : vector<8x16xf32>
    %c0_31 = arith.constant 0 : index
    %c0_32 = arith.constant 0 : index
    %c5 = arith.constant 5 : index
    %32 = vector.load %arg1[%c0_31, %c0_32, %c5] : memref<1x8x23xbf16, #tpu.memory_space<vmem>>, vector<1x8x16xbf16>
    %33 = vector.shape_cast %32 : vector<1x8x16xbf16> to vector<8x16xbf16>
    %c5_33 = arith.constant 5 : index
    %c0_34 = arith.constant 0 : index
    %c0_35 = arith.constant 0 : index
    %34 = vector.load %arg2[%c5_33, %c0_34, %c0_35] : memref<8x8x8xbf16, #tpu.memory_space<vmem>>, vector<1x8x8xbf16>
    %35 = vector.shape_cast %34 : vector<1x8x8xbf16> to vector<8x8xbf16>
    %cst_36 = arith.constant dense<0.000000e+00> : vector<8x16xf32>
    %36 = tpu.matmul %35, %33, %cst_36 {dimension_numbers = #tpu.dot_dimension_numbers<[1], [0], [0], [1], [0, 0, 1, 1], [], []>} : vector<8x8xbf16>, vector<8x16xbf16>, vector<8x16xf32> -> vector<8x16xf32>
    %37 = arith.addf %31, %36 : vector<8x16xf32>
    %c0_37 = arith.constant 0 : index
    %c0_38 = arith.constant 0 : index
    %c6 = arith.constant 6 : index
    %38 = vector.load %arg1[%c0_37, %c0_38, %c6] : memref<1x8x23xbf16, #tpu.memory_space<vmem>>, vector<1x8x16xbf16>
    %39 = vector.shape_cast %38 : vector<1x8x16xbf16> to vector<8x16xbf16>
    %c6_39 = arith.constant 6 : index
    %c0_40 = arith.constant 0 : index
    %c0_41 = arith.constant 0 : index
    %40 = vector.load %arg2[%c6_39, %c0_40, %c0_41] : memref<8x8x8xbf16, #tpu.memory_space<vmem>>, vector<1x8x8xbf16>
    %41 = vector.shape_cast %40 : vector<1x8x8xbf16> to vector<8x8xbf16>
    %cst_42 = arith.constant dense<0.000000e+00> : vector<8x16xf32>
    %42 = tpu.matmul %41, %39, %cst_42 {dimension_numbers = #tpu.dot_dimension_numbers<[1], [0], [0], [1], [0, 0, 1, 1], [], []>} : vector<8x8xbf16>, vector<8x16xbf16>, vector<8x16xf32> -> vector<8x16xf32>
    %43 = arith.addf %37, %42 : vector<8x16xf32>
    %c0_43 = arith.constant 0 : index
    %c0_44 = arith.constant 0 : index
    %c7 = arith.constant 7 : index
    %44 = vector.load %arg1[%c0_43, %c0_44, %c7] : memref<1x8x23xbf16, #tpu.memory_space<vmem>>, vector<1x8x16xbf16>
    %45 = vector.shape_cast %44 : vector<1x8x16xbf16> to vector<8x16xbf16>
    %c7_45 = arith.constant 7 : index
    %c0_46 = arith.constant 0 : index
    %c0_47 = arith.constant 0 : index
    %46 = vector.load %arg2[%c7_45, %c0_46, %c0_47] : memref<8x8x8xbf16, #tpu.memory_space<vmem>>, vector<1x8x8xbf16>
    %47 = vector.shape_cast %46 : vector<1x8x8xbf16> to vector<8x8xbf16>
    %cst_48 = arith.constant dense<0.000000e+00> : vector<8x16xf32>
    %48 = tpu.matmul %47, %45, %cst_48 {dimension_numbers = #tpu.dot_dimension_numbers<[1], [0], [0], [1], [0, 0, 1, 1], [], []>} : vector<8x8xbf16>, vector<8x16xbf16>, vector<8x16xf32> -> vector<8x16xf32>
    %49 = arith.addf %43, %48 : vector<8x16xf32>
    %c0_49 = arith.constant 0 : index
    %c0_50 = arith.constant 0 : index
    %50 = vector.load %arg5[%c0_49, %c0_50] : memref<8x1xf32, #tpu.memory_space<vmem>>, vector<8x1xf32>
    %c0_51 = arith.constant 0 : index
    %c0_52 = arith.constant 0 : index
    %c0_53 = arith.constant 0 : index
    %51 = vector.load %arg1[%c0_51, %c0_52, %c0_53] : memref<1x8x23xbf16, #tpu.memory_space<vmem>>, vector<1x8x16xbf16>
    %52 = vector.shape_cast %51 : vector<1x8x16xbf16> to vector<8x16xbf16>
    %c0_54 = arith.constant 0 : index
    %c0_55 = arith.constant 0 : index
    %c0_56 = arith.constant 0 : index
    %53 = vector.load %arg4[%c0_54, %c0_55, %c0_56] : memref<8x8x8xbf16, #tpu.memory_space<vmem>>, vector<1x8x8xbf16>
    %54 = vector.shape_cast %53 : vector<1x8x8xbf16> to vector<8x8xbf16>
    %cst_57 = arith.constant dense<0.000000e+00> : vector<8x16xf32>
    %55 = tpu.matmul %54, %52, %cst_57 {dimension_numbers = #tpu.dot_dimension_numbers<[1], [0], [0], [1], [0, 0, 1, 1], [], []>} : vector<8x8xbf16>, vector<8x16xbf16>, vector<8x16xf32> -> vector<8x16xf32>
    %56 = vector.broadcast %50 : vector<8x1xf32> to vector<8x16xf32>
    %57 = arith.addf %56, %55 : vector<8x16xf32>
    %c0_58 = arith.constant 0 : index
    %c0_59 = arith.constant 0 : index
    %c1_60 = arith.constant 1 : index
    %58 = vector.load %arg1[%c0_58, %c0_59, %c1_60] : memref<1x8x23xbf16, #tpu.memory_space<vmem>>, vector<1x8x16xbf16>
    %59 = vector.shape_cast %58 : vector<1x8x16xbf16> to vector<8x16xbf16>
    %c1_61 = arith.constant 1 : index
    %c0_62 = arith.constant 0 : index
    %c0_63 = arith.constant 0 : index
    %60 = vector.load %arg4[%c1_61, %c0_62, %c0_63] : memref<8x8x8xbf16, #tpu.memory_space<vmem>>, vector<1x8x8xbf16>
    %61 = vector.shape_cast %60 : vector<1x8x8xbf16> to vector<8x8xbf16>
    %cst_64 = arith.constant dense<0.000000e+00> : vector<8x16xf32>
    %62 = tpu.matmul %61, %59, %cst_64 {dimension_numbers = #tpu.dot_dimension_numbers<[1], [0], [0], [1], [0, 0, 1, 1], [], []>} : vector<8x8xbf16>, vector<8x16xbf16>, vector<8x16xf32> -> vector<8x16xf32>
    %63 = arith.addf %57, %62 : vector<8x16xf32>
    %c0_65 = arith.constant 0 : index
    %c0_66 = arith.constant 0 : index
    %c2_67 = arith.constant 2 : index
    %64 = vector.load %arg1[%c0_65, %c0_66, %c2_67] : memref<1x8x23xbf16, #tpu.memory_space<vmem>>, vector<1x8x16xbf16>
    %65 = vector.shape_cast %64 : vector<1x8x16xbf16> to vector<8x16xbf16>
    %c2_68 = arith.constant 2 : index
    %c0_69 = arith.constant 0 : index
    %c0_70 = arith.constant 0 : index
    %66 = vector.load %arg4[%c2_68, %c0_69, %c0_70] : memref<8x8x8xbf16, #tpu.memory_space<vmem>>, vector<1x8x8xbf16>
    %67 = vector.shape_cast %66 : vector<1x8x8xbf16> to vector<8x8xbf16>
    %cst_71 = arith.constant dense<0.000000e+00> : vector<8x16xf32>
    %68 = tpu.matmul %67, %65, %cst_71 {dimension_numbers = #tpu.dot_dimension_numbers<[1], [0], [0], [1], [0, 0, 1, 1], [], []>} : vector<8x8xbf16>, vector<8x16xbf16>, vector<8x16xf32> -> vector<8x16xf32>
    %69 = arith.addf %63, %68 : vector<8x16xf32>
    %c0_72 = arith.constant 0 : index
    %c0_73 = arith.constant 0 : index
    %c3_74 = arith.constant 3 : index
    %70 = vector.load %arg1[%c0_72, %c0_73, %c3_74] : memref<1x8x23xbf16, #tpu.memory_space<vmem>>, vector<1x8x16xbf16>
    %71 = vector.shape_cast %70 : vector<1x8x16xbf16> to vector<8x16xbf16>
    %c3_75 = arith.constant 3 : index
    %c0_76 = arith.constant 0 : index
    %c0_77 = arith.constant 0 : index
    %72 = vector.load %arg4[%c3_75, %c0_76, %c0_77] : memref<8x8x8xbf16, #tpu.memory_space<vmem>>, vector<1x8x8xbf16>
    %73 = vector.shape_cast %72 : vector<1x8x8xbf16> to vector<8x8xbf16>
    %cst_78 = arith.constant dense<0.000000e+00> : vector<8x16xf32>
    %74 = tpu.matmul %73, %71, %cst_78 {dimension_numbers = #tpu.dot_dimension_numbers<[1], [0], [0], [1], [0, 0, 1, 1], [], []>} : vector<8x8xbf16>, vector<8x16xbf16>, vector<8x16xf32> -> vector<8x16xf32>
    %75 = arith.addf %69, %74 : vector<8x16xf32>
    %c0_79 = arith.constant 0 : index
    %c0_80 = arith.constant 0 : index
    %c4_81 = arith.constant 4 : index
    %76 = vector.load %arg1[%c0_79, %c0_80, %c4_81] : memref<1x8x23xbf16, #tpu.memory_space<vmem>>, vector<1x8x16xbf16>
    %77 = vector.shape_cast %76 : vector<1x8x16xbf16> to vector<8x16xbf16>
    %c4_82 = arith.constant 4 : index
    %c0_83 = arith.constant 0 : index
    %c0_84 = arith.constant 0 : index
    %78 = vector.load %arg4[%c4_82, %c0_83, %c0_84] : memref<8x8x8xbf16, #tpu.memory_space<vmem>>, vector<1x8x8xbf16>
    %79 = vector.shape_cast %78 : vector<1x8x8xbf16> to vector<8x8xbf16>
    %cst_85 = arith.constant dense<0.000000e+00> : vector<8x16xf32>
    %80 = tpu.matmul %79, %77, %cst_85 {dimension_numbers = #tpu.dot_dimension_numbers<[1], [0], [0], [1], [0, 0, 1, 1], [], []>} : vector<8x8xbf16>, vector<8x16xbf16>, vector<8x16xf32> -> vector<8x16xf32>
    %81 = arith.addf %75, %80 : vector<8x16xf32>
    %c0_86 = arith.constant 0 : index
    %c0_87 = arith.constant 0 : index
    %c5_88 = arith.constant 5 : index
    %82 = vector.load %arg1[%c0_86, %c0_87, %c5_88] : memref<1x8x23xbf16, #tpu.memory_space<vmem>>, vector<1x8x16xbf16>
    %83 = vector.shape_cast %82 : vector<1x8x16xbf16> to vector<8x16xbf16>
    %c5_89 = arith.constant 5 : index
    %c0_90 = arith.constant 0 : index
    %c0_91 = arith.constant 0 : index
    %84 = vector.load %arg4[%c5_89, %c0_90, %c0_91] : memref<8x8x8xbf16, #tpu.memory_space<vmem>>, vector<1x8x8xbf16>
    %85 = vector.shape_cast %84 : vector<1x8x8xbf16> to vector<8x8xbf16>
    %cst_92 = arith.constant dense<0.000000e+00> : vector<8x16xf32>
    %86 = tpu.matmul %85, %83, %cst_92 {dimension_numbers = #tpu.dot_dimension_numbers<[1], [0], [0], [1], [0, 0, 1, 1], [], []>} : vector<8x8xbf16>, vector<8x16xbf16>, vector<8x16xf32> -> vector<8x16xf32>
    %87 = arith.addf %81, %86 : vector<8x16xf32>
    %c0_93 = arith.constant 0 : index
    %c0_94 = arith.constant 0 : index
    %c6_95 = arith.constant 6 : index
    %88 = vector.load %arg1[%c0_93, %c0_94, %c6_95] : memref<1x8x23xbf16, #tpu.memory_space<vmem>>, vector<1x8x16xbf16>
    %89 = vector.shape_cast %88 : vector<1x8x16xbf16> to vector<8x16xbf16>
    %c6_96 = arith.constant 6 : index
    %c0_97 = arith.constant 0 : index
    %c0_98 = arith.constant 0 : index
    %90 = vector.load %arg4[%c6_96, %c0_97, %c0_98] : memref<8x8x8xbf16, #tpu.memory_space<vmem>>, vector<1x8x8xbf16>
    %91 = vector.shape_cast %90 : vector<1x8x8xbf16> to vector<8x8xbf16>
    %cst_99 = arith.constant dense<0.000000e+00> : vector<8x16xf32>
    %92 = tpu.matmul %91, %89, %cst_99 {dimension_numbers = #tpu.dot_dimension_numbers<[1], [0], [0], [1], [0, 0, 1, 1], [], []>} : vector<8x8xbf16>, vector<8x16xbf16>, vector<8x16xf32> -> vector<8x16xf32>
    %93 = arith.addf %87, %92 : vector<8x16xf32>
    %c0_100 = arith.constant 0 : index
    %c0_101 = arith.constant 0 : index
    %c7_102 = arith.constant 7 : index
    %94 = vector.load %arg1[%c0_100, %c0_101, %c7_102] : memref<1x8x23xbf16, #tpu.memory_space<vmem>>, vector<1x8x16xbf16>
    %95 = vector.shape_cast %94 : vector<1x8x16xbf16> to vector<8x16xbf16>
    %c7_103 = arith.constant 7 : index
    %c0_104 = arith.constant 0 : index
    %c0_105 = arith.constant 0 : index
    %96 = vector.load %arg4[%c7_103, %c0_104, %c0_105] : memref<8x8x8xbf16, #tpu.memory_space<vmem>>, vector<1x8x8xbf16>
    %97 = vector.shape_cast %96 : vector<1x8x8xbf16> to vector<8x8xbf16>
    %cst_106 = arith.constant dense<0.000000e+00> : vector<8x16xf32>
    %98 = tpu.matmul %97, %95, %cst_106 {dimension_numbers = #tpu.dot_dimension_numbers<[1], [0], [0], [1], [0, 0, 1, 1], [], []>} : vector<8x8xbf16>, vector<8x16xbf16>, vector<8x16xf32> -> vector<8x16xf32>
    %99 = arith.addf %93, %98 : vector<8x16xf32>
    %100 = arith.negf %99 : vector<8x16xf32>
    %101 = math.exp %100 : vector<8x16xf32>
    %cst_107 = arith.constant 1.000000e+00 : f32
    %102 = vector.broadcast %cst_107 : f32 to vector<8x16xf32>
    %103 = arith.addf %102, %101 : vector<8x16xf32>
    %104 = arith.divf %102, %103 : vector<8x16xf32>
    %105 = arith.mulf %49, %104 : vector<8x16xf32>
    %106 = arith.truncf %105 : vector<8x16xf32> to vector<8x16xbf16>
    %c0_108 = arith.constant 0 : index
    %c0_109 = arith.constant 0 : index
    %c0_110 = arith.constant 0 : index
    %107 = vector.load %arg6[%c0_108, %c0_109, %c0_110] : memref<1x8x16xbf16, #tpu.memory_space<vmem>>, vector<1x8x16xbf16>
    %108 = vector.shape_cast %107 : vector<1x8x16xbf16> to vector<8x16xbf16>
    %109 = vector.shape_cast %106 : vector<8x16xbf16> to vector<1x8x16xbf16>
    tpu.vector_store %arg6[%c0_108, %c0_109, %c0_110], %109 {strides = array<i32>} : memref<1x8x16xbf16, #tpu.memory_space<vmem>>, vector<1x8x16xbf16>,
    return
  }
  func.func @transform_0(%arg0: i32) -> (i32, i32, i32) {
    %c0_i32 = arith.constant 0 : i32
    %c0_i32_0 = arith.constant 0 : i32
    %c0_i32_1 = arith.constant 0 : i32
    return %arg0, %c0_i32, %c0_i32_0 : i32, i32, i32
  }
  func.func @transform_1(%arg0: i32) -> (i32, i32, i32) {
    %c0_i32 = arith.constant 0 : i32
    %c0_i32_0 = arith.constant 0 : i32
    %c0_i32_1 = arith.constant 0 : i32
    %c0_i32_2 = arith.constant 0 : i32
    return %c0_i32, %c0_i32_0, %c0_i32_1 : i32, i32, i32
  }
  func.func @transform_2(%arg0: i32) -> (i32, i32) {
    %c0_i32 = arith.constant 0 : i32
    %c0_i32_0 = arith.constant 0 : i32
    %c0_i32_1 = arith.constant 0 : i32
    return %c0_i32, %c0_i32_0 : i32, i32
  }
  func.func @transform_3(%arg0: i32) -> (i32, i32, i32) {
    %c0_i32 = arith.constant 0 : i32
    %c0_i32_0 = arith.constant 0 : i32
    %c0_i32_1 = arith.constant 0 : i32
    %c0_i32_2 = arith.constant 0 : i32
    return %c0_i32, %c0_i32_0, %c0_i32_1 : i32, i32, i32
  }
  func.func @transform_4(%arg0: i32) -> (i32, i32) {
    %c0_i32 = arith.constant 0 : i32
    %c0_i32_0 = arith.constant 0 : i32
    %c0_i32_1 = arith.constant 0 : i32
    return %c0_i32, %c0_i32_0 : i32, i32
  }
  func.func @transform_5(%arg0: i32) -> (i32, i32, i32) {
    %c0_i32 = arith.constant 0 : i32
    %c0_i32_0 = arith.constant 0 : i32
    %c0_i32_1 = arith.constant 0 : i32
    return %arg0, %c0_i32, %c0_i32_0 : i32, i32, i32
  }
}

module attributes {stable_mosaic.version = 11 : i64} {
  func.func @_wavenet_block_kernel(%arg0: i32, %arg1: memref<1x8x18xbf16, #tpu.memory_space<vmem>>, %arg2: memref<1x8x16xf32, #tpu.memory_space<vmem>>, %arg3: memref<3x8x8xbf16, #tpu.memory_space<vmem>>, %arg4: memref<8x1xf32, #tpu.memory_space<vmem>>, %arg5: memref<3x8x8xbf16, #tpu.memory_space<vmem>>, %arg6: memref<8x1xf32, #tpu.memory_space<vmem>>, %arg7: memref<8x8xbf16, #tpu.memory_space<vmem>>, %arg8: memref<8x1xf32, #tpu.memory_space<vmem>>, %arg9: memref<8x8xbf16, #tpu.memory_space<vmem>>, %arg10: memref<8x1xf32, #tpu.memory_space<vmem>>, %arg11: memref<1x8x16xbf16, #tpu.memory_space<vmem>>, %arg12: memref<1x8x16xf32, #tpu.memory_space<vmem>>) attributes {dimension_semantics = [#tpu.dimension_semantics<parallel>], iteration_bounds = array<i64: 2>, scalar_prefetch = 0 : i64, scratch_operands = 0 : i64, tpu.core_type = #tpu.core_type<tc>, window_params = [{transform_indices = @transform_0, window_bounds = array<i64: 1, 8, 18>}, {transform_indices = @transform_1, window_bounds = array<i64: 1, 8, 16>}, {pipeline_mode = #tpu.pipeline_mode<synchronous>, transform_indices = @transform_2, window_bounds = array<i64: 3, 8, 8>}, {pipeline_mode = #tpu.pipeline_mode<synchronous>, transform_indices = @transform_3, window_bounds = array<i64: 8, 1>}, {pipeline_mode = #tpu.pipeline_mode<synchronous>, transform_indices = @transform_4, window_bounds = array<i64: 3, 8, 8>}, {pipeline_mode = #tpu.pipeline_mode<synchronous>, transform_indices = @transform_5, window_bounds = array<i64: 8, 1>}, {pipeline_mode = #tpu.pipeline_mode<synchronous>, transform_indices = @transform_6, window_bounds = array<i64: 8, 8>}, {pipeline_mode = #tpu.pipeline_mode<synchronous>, transform_indices = @transform_7, window_bounds = array<i64: 8, 1>}, {pipeline_mode = #tpu.pipeline_mode<synchronous>, transform_indices = @transform_8, window_bounds = array<i64: 8, 8>}, {pipeline_mode = #tpu.pipeline_mode<synchronous>, transform_indices = @transform_9, window_bounds = array<i64: 8, 1>}, {transform_indices = @transform_10, window_bounds = array<i64: 1, 8, 16>}, {transform_indices = @transform_11, window_bounds = array<i64: 1, 8, 16>}]} {
    %c0 = arith.constant 0 : index
    %c0_0 = arith.constant 0 : index
    %0 = vector.load %arg4[%c0, %c0_0] : memref<8x1xf32, #tpu.memory_space<vmem>>, vector<8x1xf32>
    %c0_1 = arith.constant 0 : index
    %c0_2 = arith.constant 0 : index
    %1 = vector.load %arg6[%c0_1, %c0_2] : memref<8x1xf32, #tpu.memory_space<vmem>>, vector<8x1xf32>
    %c0_3 = arith.constant 0 : index
    %c0_4 = arith.constant 0 : index
    %c0_5 = arith.constant 0 : index
    %2 = vector.load %arg1[%c0_3, %c0_4, %c0_5] : memref<1x8x18xbf16, #tpu.memory_space<vmem>>, vector<1x8x16xbf16>
    %3 = vector.shape_cast %2 : vector<1x8x16xbf16> to vector<8x16xbf16>
    %c0_6 = arith.constant 0 : index
    %c0_7 = arith.constant 0 : index
    %c0_8 = arith.constant 0 : index
    %4 = vector.load %arg3[%c0_6, %c0_7, %c0_8] : memref<3x8x8xbf16, #tpu.memory_space<vmem>>, vector<1x8x8xbf16>
    %5 = vector.shape_cast %4 : vector<1x8x8xbf16> to vector<8x8xbf16>
    %cst = arith.constant dense<0.000000e+00> : vector<8x16xf32>
    %6 = tpu.matmul %5, %3, %cst {dimension_numbers = #tpu.dot_dimension_numbers<[1], [0], [0], [1], [0, 0, 1, 1], [], []>} : vector<8x8xbf16>, vector<8x16xbf16>, vector<8x16xf32> -> vector<8x16xf32>
    %7 = vector.broadcast %0 : vector<8x1xf32> to vector<8x16xf32>
    %8 = arith.addf %7, %6 : vector<8x16xf32>
    %c0_9 = arith.constant 0 : index
    %c0_10 = arith.constant 0 : index
    %c0_11 = arith.constant 0 : index
    %9 = vector.load %arg5[%c0_9, %c0_10, %c0_11] : memref<3x8x8xbf16, #tpu.memory_space<vmem>>, vector<1x8x8xbf16>
    %10 = vector.shape_cast %9 : vector<1x8x8xbf16> to vector<8x8xbf16>
    %cst_12 = arith.constant dense<0.000000e+00> : vector<8x16xf32>
    %11 = tpu.matmul %10, %3, %cst_12 {dimension_numbers = #tpu.dot_dimension_numbers<[1], [0], [0], [1], [0, 0, 1, 1], [], []>} : vector<8x8xbf16>, vector<8x16xbf16>, vector<8x16xf32> -> vector<8x16xf32>
    %12 = vector.broadcast %1 : vector<8x1xf32> to vector<8x16xf32>
    %13 = arith.addf %12, %11 : vector<8x16xf32>
    %c0_13 = arith.constant 0 : index
    %c0_14 = arith.constant 0 : index
    %c1 = arith.constant 1 : index
    %14 = vector.load %arg1[%c0_13, %c0_14, %c1] : memref<1x8x18xbf16, #tpu.memory_space<vmem>>, vector<1x8x16xbf16>
    %15 = vector.shape_cast %14 : vector<1x8x16xbf16> to vector<8x16xbf16>
    %c1_15 = arith.constant 1 : index
    %c0_16 = arith.constant 0 : index
    %c0_17 = arith.constant 0 : index
    %16 = vector.load %arg3[%c1_15, %c0_16, %c0_17] : memref<3x8x8xbf16, #tpu.memory_space<vmem>>, vector<1x8x8xbf16>
    %17 = vector.shape_cast %16 : vector<1x8x8xbf16> to vector<8x8xbf16>
    %cst_18 = arith.constant dense<0.000000e+00> : vector<8x16xf32>
    %18 = tpu.matmul %17, %15, %cst_18 {dimension_numbers = #tpu.dot_dimension_numbers<[1], [0], [0], [1], [0, 0, 1, 1], [], []>} : vector<8x8xbf16>, vector<8x16xbf16>, vector<8x16xf32> -> vector<8x16xf32>
    %19 = arith.addf %8, %18 : vector<8x16xf32>
    %c1_19 = arith.constant 1 : index
    %c0_20 = arith.constant 0 : index
    %c0_21 = arith.constant 0 : index
    %20 = vector.load %arg5[%c1_19, %c0_20, %c0_21] : memref<3x8x8xbf16, #tpu.memory_space<vmem>>, vector<1x8x8xbf16>
    %21 = vector.shape_cast %20 : vector<1x8x8xbf16> to vector<8x8xbf16>
    %cst_22 = arith.constant dense<0.000000e+00> : vector<8x16xf32>
    %22 = tpu.matmul %21, %15, %cst_22 {dimension_numbers = #tpu.dot_dimension_numbers<[1], [0], [0], [1], [0, 0, 1, 1], [], []>} : vector<8x8xbf16>, vector<8x16xbf16>, vector<8x16xf32> -> vector<8x16xf32>
    %23 = arith.addf %13, %22 : vector<8x16xf32>
    %c0_23 = arith.constant 0 : index
    %c0_24 = arith.constant 0 : index
    %c2 = arith.constant 2 : index
    %24 = vector.load %arg1[%c0_23, %c0_24, %c2] : memref<1x8x18xbf16, #tpu.memory_space<vmem>>, vector<1x8x16xbf16>
    %25 = vector.shape_cast %24 : vector<1x8x16xbf16> to vector<8x16xbf16>
    %c2_25 = arith.constant 2 : index
    %c0_26 = arith.constant 0 : index
    %c0_27 = arith.constant 0 : index
    %26 = vector.load %arg3[%c2_25, %c0_26, %c0_27] : memref<3x8x8xbf16, #tpu.memory_space<vmem>>, vector<1x8x8xbf16>
    %27 = vector.shape_cast %26 : vector<1x8x8xbf16> to vector<8x8xbf16>
    %cst_28 = arith.constant dense<0.000000e+00> : vector<8x16xf32>
    %28 = tpu.matmul %27, %25, %cst_28 {dimension_numbers = #tpu.dot_dimension_numbers<[1], [0], [0], [1], [0, 0, 1, 1], [], []>} : vector<8x8xbf16>, vector<8x16xbf16>, vector<8x16xf32> -> vector<8x16xf32>
    %29 = arith.addf %19, %28 : vector<8x16xf32>
    %c2_29 = arith.constant 2 : index
    %c0_30 = arith.constant 0 : index
    %c0_31 = arith.constant 0 : index
    %30 = vector.load %arg5[%c2_29, %c0_30, %c0_31] : memref<3x8x8xbf16, #tpu.memory_space<vmem>>, vector<1x8x8xbf16>
    %31 = vector.shape_cast %30 : vector<1x8x8xbf16> to vector<8x8xbf16>
    %cst_32 = arith.constant dense<0.000000e+00> : vector<8x16xf32>
    %32 = tpu.matmul %31, %25, %cst_32 {dimension_numbers = #tpu.dot_dimension_numbers<[1], [0], [0], [1], [0, 0, 1, 1], [], []>} : vector<8x8xbf16>, vector<8x16xbf16>, vector<8x16xf32> -> vector<8x16xf32>
    %33 = arith.addf %23, %32 : vector<8x16xf32>
    %34 = math.tanh %29 : vector<8x16xf32>
    %35 = arith.negf %33 : vector<8x16xf32>
    %36 = math.exp %35 : vector<8x16xf32>
    %cst_33 = arith.constant 1.000000e+00 : f32
    %37 = vector.broadcast %cst_33 : f32 to vector<8x16xf32>
    %38 = arith.addf %37, %36 : vector<8x16xf32>
    %39 = arith.divf %37, %38 : vector<8x16xf32>
    %40 = arith.mulf %34, %39 : vector<8x16xf32>
    %41 = arith.truncf %40 : vector<8x16xf32> to vector<8x16xbf16>
    %c0_34 = arith.constant 0 : index
    %c0_35 = arith.constant 0 : index
    %42 = vector.load %arg7[%c0_34, %c0_35] : memref<8x8xbf16, #tpu.memory_space<vmem>>, vector<8x8xbf16>
    %cst_36 = arith.constant dense<0.000000e+00> : vector<8x16xf32>
    %43 = tpu.matmul %42, %41, %cst_36 {dimension_numbers = #tpu.dot_dimension_numbers<[1], [0], [0], [1], [0, 0, 1, 1], [], []>} : vector<8x8xbf16>, vector<8x16xbf16>, vector<8x16xf32> -> vector<8x16xf32>
    %c0_37 = arith.constant 0 : index
    %c0_38 = arith.constant 0 : index
    %44 = vector.load %arg8[%c0_37, %c0_38] : memref<8x1xf32, #tpu.memory_space<vmem>>, vector<8x1xf32>
    %45 = vector.broadcast %44 : vector<8x1xf32> to vector<8x16xf32>
    %46 = arith.addf %43, %45 : vector<8x16xf32>
    %c0_39 = arith.constant 0 : index
    %c0_40 = arith.constant 0 : index
    %47 = vector.load %arg9[%c0_39, %c0_40] : memref<8x8xbf16, #tpu.memory_space<vmem>>, vector<8x8xbf16>
    %cst_41 = arith.constant dense<0.000000e+00> : vector<8x16xf32>
    %48 = tpu.matmul %47, %41, %cst_41 {dimension_numbers = #tpu.dot_dimension_numbers<[1], [0], [0], [1], [0, 0, 1, 1], [], []>} : vector<8x8xbf16>, vector<8x16xbf16>, vector<8x16xf32> -> vector<8x16xf32>
    %c0_42 = arith.constant 0 : index
    %c0_43 = arith.constant 0 : index
    %49 = vector.load %arg10[%c0_42, %c0_43] : memref<8x1xf32, #tpu.memory_space<vmem>>, vector<8x1xf32>
    %50 = vector.broadcast %49 : vector<8x1xf32> to vector<8x16xf32>
    %51 = arith.addf %48, %50 : vector<8x16xf32>
    %c0_44 = arith.constant 0 : index
    %c0_45 = arith.constant 0 : index
    %c1_46 = arith.constant 1 : index
    %52 = vector.load %arg1[%c0_44, %c0_45, %c1_46] : memref<1x8x18xbf16, #tpu.memory_space<vmem>>, vector<1x8x16xbf16>
    %53 = vector.shape_cast %52 : vector<1x8x16xbf16> to vector<8x16xbf16>
    %54 = arith.extf %53 : vector<8x16xbf16> to vector<8x16xf32>
    %55 = arith.addf %54, %46 : vector<8x16xf32>
    %56 = arith.truncf %55 : vector<8x16xf32> to vector<8x16xbf16>
    %c0_47 = arith.constant 0 : index
    %c0_48 = arith.constant 0 : index
    %c0_49 = arith.constant 0 : index
    %57 = vector.load %arg11[%c0_47, %c0_48, %c0_49] : memref<1x8x16xbf16, #tpu.memory_space<vmem>>, vector<1x8x16xbf16>
    %58 = vector.shape_cast %57 : vector<1x8x16xbf16> to vector<8x16xbf16>
    %59 = vector.shape_cast %56 : vector<8x16xbf16> to vector<1x8x16xbf16>
    tpu.vector_store %arg11[%c0_47, %c0_48, %c0_49], %59 {strides = array<i32>} : memref<1x8x16xbf16, #tpu.memory_space<vmem>>, vector<1x8x16xbf16>,
    %c0_50 = arith.constant 0 : index
    %c0_51 = arith.constant 0 : index
    %c0_52 = arith.constant 0 : index
    %60 = vector.load %arg2[%c0_50, %c0_51, %c0_52] : memref<1x8x16xf32, #tpu.memory_space<vmem>>, vector<1x8x16xf32>
    %61 = vector.shape_cast %60 : vector<1x8x16xf32> to vector<8x16xf32>
    %62 = arith.addf %61, %51 : vector<8x16xf32>
    %c0_53 = arith.constant 0 : index
    %c0_54 = arith.constant 0 : index
    %c0_55 = arith.constant 0 : index
    %63 = vector.load %arg12[%c0_53, %c0_54, %c0_55] : memref<1x8x16xf32, #tpu.memory_space<vmem>>, vector<1x8x16xf32>
    %64 = vector.shape_cast %63 : vector<1x8x16xf32> to vector<8x16xf32>
    %65 = vector.shape_cast %62 : vector<8x16xf32> to vector<1x8x16xf32>
    tpu.vector_store %arg12[%c0_53, %c0_54, %c0_55], %65 {strides = array<i32>} : memref<1x8x16xf32, #tpu.memory_space<vmem>>, vector<1x8x16xf32>,
    return
  }
  func.func @transform_0(%arg0: i32) -> (i32, i32, i32) {
    %c0_i32 = arith.constant 0 : i32
    %c0_i32_0 = arith.constant 0 : i32
    %c0_i32_1 = arith.constant 0 : i32
    return %arg0, %c0_i32, %c0_i32_0 : i32, i32, i32
  }
  func.func @transform_1(%arg0: i32) -> (i32, i32, i32) {
    %c0_i32 = arith.constant 0 : i32
    %c0_i32_0 = arith.constant 0 : i32
    %c0_i32_1 = arith.constant 0 : i32
    return %arg0, %c0_i32, %c0_i32_0 : i32, i32, i32
  }
  func.func @transform_2(%arg0: i32) -> (i32, i32, i32) {
    %c0_i32 = arith.constant 0 : i32
    %c0_i32_0 = arith.constant 0 : i32
    %c0_i32_1 = arith.constant 0 : i32
    %c0_i32_2 = arith.constant 0 : i32
    return %c0_i32, %c0_i32_0, %c0_i32_1 : i32, i32, i32
  }
  func.func @transform_3(%arg0: i32) -> (i32, i32) {
    %c0_i32 = arith.constant 0 : i32
    %c0_i32_0 = arith.constant 0 : i32
    %c0_i32_1 = arith.constant 0 : i32
    return %c0_i32, %c0_i32_0 : i32, i32
  }
  func.func @transform_4(%arg0: i32) -> (i32, i32, i32) {
    %c0_i32 = arith.constant 0 : i32
    %c0_i32_0 = arith.constant 0 : i32
    %c0_i32_1 = arith.constant 0 : i32
    %c0_i32_2 = arith.constant 0 : i32
    return %c0_i32, %c0_i32_0, %c0_i32_1 : i32, i32, i32
  }
  func.func @transform_5(%arg0: i32) -> (i32, i32) {
    %c0_i32 = arith.constant 0 : i32
    %c0_i32_0 = arith.constant 0 : i32
    %c0_i32_1 = arith.constant 0 : i32
    return %c0_i32, %c0_i32_0 : i32, i32
  }
  func.func @transform_6(%arg0: i32) -> (i32, i32) {
    %c0_i32 = arith.constant 0 : i32
    %c0_i32_0 = arith.constant 0 : i32
    %c0_i32_1 = arith.constant 0 : i32
    return %c0_i32, %c0_i32_0 : i32, i32
  }
  func.func @transform_7(%arg0: i32) -> (i32, i32) {
    %c0_i32 = arith.constant 0 : i32
    %c0_i32_0 = arith.constant 0 : i32
    %c0_i32_1 = arith.constant 0 : i32
    return %c0_i32, %c0_i32_0 : i32, i32
  }
  func.func @transform_8(%arg0: i32) -> (i32, i32) {
    %c0_i32 = arith.constant 0 : i32
    %c0_i32_0 = arith.constant 0 : i32
    %c0_i32_1 = arith.constant 0 : i32
    return %c0_i32, %c0_i32_0 : i32, i32
  }
  func.func @transform_9(%arg0: i32) -> (i32, i32) {
    %c0_i32 = arith.constant 0 : i32
    %c0_i32_0 = arith.constant 0 : i32
    %c0_i32_1 = arith.constant 0 : i32
    return %c0_i32, %c0_i32_0 : i32, i32
  }
  func.func @transform_10(%arg0: i32) -> (i32, i32, i32) {
    %c0_i32 = arith.constant 0 : i32
    %c0_i32_0 = arith.constant 0 : i32
    %c0_i32_1 = arith.constant 0 : i32
    return %arg0, %c0_i32, %c0_i32_0 : i32, i32, i32
  }
  func.func @transform_11(%arg0: i32) -> (i32, i32, i32) {
    %c0_i32 = arith.constant 0 : i32
    %c0_i32_0 = arith.constant 0 : i32
    %c0_i32_1 = arith.constant 0 : i32
    return %arg0, %c0_i32, %c0_i32_0 : i32, i32, i32
  }
}

module attributes {stable_mosaic.version = 11 : i64} {
  func.func @_conv_act_kernel(%arg0: i32, %arg1: memref<1x8x18xbf16, #tpu.memory_space<vmem>>, %arg2: memref<3x8x8xbf16, #tpu.memory_space<vmem>>, %arg3: memref<8x1xf32, #tpu.memory_space<vmem>>, %arg4: memref<3x8x8xbf16, #tpu.memory_space<vmem>>, %arg5: memref<8x1xf32, #tpu.memory_space<vmem>>, %arg6: memref<1x8x16xbf16, #tpu.memory_space<vmem>>) attributes {dimension_semantics = [#tpu.dimension_semantics<parallel>], iteration_bounds = array<i64: 2>, scalar_prefetch = 0 : i64, scratch_operands = 0 : i64, tpu.core_type = #tpu.core_type<tc>, window_params = [{transform_indices = @transform_0, window_bounds = array<i64: 1, 8, 18>}, {pipeline_mode = #tpu.pipeline_mode<synchronous>, transform_indices = @transform_1, window_bounds = array<i64: 3, 8, 8>}, {pipeline_mode = #tpu.pipeline_mode<synchronous>, transform_indices = @transform_2, window_bounds = array<i64: 8, 1>}, {pipeline_mode = #tpu.pipeline_mode<synchronous>, transform_indices = @transform_3, window_bounds = array<i64: 3, 8, 8>}, {pipeline_mode = #tpu.pipeline_mode<synchronous>, transform_indices = @transform_4, window_bounds = array<i64: 8, 1>}, {transform_indices = @transform_5, window_bounds = array<i64: 1, 8, 16>}]} {
    %c0 = arith.constant 0 : index
    %c0_0 = arith.constant 0 : index
    %0 = vector.load %arg3[%c0, %c0_0] : memref<8x1xf32, #tpu.memory_space<vmem>>, vector<8x1xf32>
    %c0_1 = arith.constant 0 : index
    %c0_2 = arith.constant 0 : index
    %c0_3 = arith.constant 0 : index
    %1 = vector.load %arg1[%c0_1, %c0_2, %c0_3] : memref<1x8x18xbf16, #tpu.memory_space<vmem>>, vector<1x8x16xbf16>
    %2 = vector.shape_cast %1 : vector<1x8x16xbf16> to vector<8x16xbf16>
    %c0_4 = arith.constant 0 : index
    %c0_5 = arith.constant 0 : index
    %c0_6 = arith.constant 0 : index
    %3 = vector.load %arg2[%c0_4, %c0_5, %c0_6] : memref<3x8x8xbf16, #tpu.memory_space<vmem>>, vector<1x8x8xbf16>
    %4 = vector.shape_cast %3 : vector<1x8x8xbf16> to vector<8x8xbf16>
    %cst = arith.constant dense<0.000000e+00> : vector<8x16xf32>
    %5 = tpu.matmul %4, %2, %cst {dimension_numbers = #tpu.dot_dimension_numbers<[1], [0], [0], [1], [0, 0, 1, 1], [], []>} : vector<8x8xbf16>, vector<8x16xbf16>, vector<8x16xf32> -> vector<8x16xf32>
    %6 = vector.broadcast %0 : vector<8x1xf32> to vector<8x16xf32>
    %7 = arith.addf %6, %5 : vector<8x16xf32>
    %c0_7 = arith.constant 0 : index
    %c0_8 = arith.constant 0 : index
    %c1 = arith.constant 1 : index
    %8 = vector.load %arg1[%c0_7, %c0_8, %c1] : memref<1x8x18xbf16, #tpu.memory_space<vmem>>, vector<1x8x16xbf16>
    %9 = vector.shape_cast %8 : vector<1x8x16xbf16> to vector<8x16xbf16>
    %c1_9 = arith.constant 1 : index
    %c0_10 = arith.constant 0 : index
    %c0_11 = arith.constant 0 : index
    %10 = vector.load %arg2[%c1_9, %c0_10, %c0_11] : memref<3x8x8xbf16, #tpu.memory_space<vmem>>, vector<1x8x8xbf16>
    %11 = vector.shape_cast %10 : vector<1x8x8xbf16> to vector<8x8xbf16>
    %cst_12 = arith.constant dense<0.000000e+00> : vector<8x16xf32>
    %12 = tpu.matmul %11, %9, %cst_12 {dimension_numbers = #tpu.dot_dimension_numbers<[1], [0], [0], [1], [0, 0, 1, 1], [], []>} : vector<8x8xbf16>, vector<8x16xbf16>, vector<8x16xf32> -> vector<8x16xf32>
    %13 = arith.addf %7, %12 : vector<8x16xf32>
    %c0_13 = arith.constant 0 : index
    %c0_14 = arith.constant 0 : index
    %c2 = arith.constant 2 : index
    %14 = vector.load %arg1[%c0_13, %c0_14, %c2] : memref<1x8x18xbf16, #tpu.memory_space<vmem>>, vector<1x8x16xbf16>
    %15 = vector.shape_cast %14 : vector<1x8x16xbf16> to vector<8x16xbf16>
    %c2_15 = arith.constant 2 : index
    %c0_16 = arith.constant 0 : index
    %c0_17 = arith.constant 0 : index
    %16 = vector.load %arg2[%c2_15, %c0_16, %c0_17] : memref<3x8x8xbf16, #tpu.memory_space<vmem>>, vector<1x8x8xbf16>
    %17 = vector.shape_cast %16 : vector<1x8x8xbf16> to vector<8x8xbf16>
    %cst_18 = arith.constant dense<0.000000e+00> : vector<8x16xf32>
    %18 = tpu.matmul %17, %15, %cst_18 {dimension_numbers = #tpu.dot_dimension_numbers<[1], [0], [0], [1], [0, 0, 1, 1], [], []>} : vector<8x8xbf16>, vector<8x16xbf16>, vector<8x16xf32> -> vector<8x16xf32>
    %19 = arith.addf %13, %18 : vector<8x16xf32>
    %c0_19 = arith.constant 0 : index
    %c0_20 = arith.constant 0 : index
    %20 = vector.load %arg5[%c0_19, %c0_20] : memref<8x1xf32, #tpu.memory_space<vmem>>, vector<8x1xf32>
    %c0_21 = arith.constant 0 : index
    %c0_22 = arith.constant 0 : index
    %c0_23 = arith.constant 0 : index
    %21 = vector.load %arg1[%c0_21, %c0_22, %c0_23] : memref<1x8x18xbf16, #tpu.memory_space<vmem>>, vector<1x8x16xbf16>
    %22 = vector.shape_cast %21 : vector<1x8x16xbf16> to vector<8x16xbf16>
    %c0_24 = arith.constant 0 : index
    %c0_25 = arith.constant 0 : index
    %c0_26 = arith.constant 0 : index
    %23 = vector.load %arg4[%c0_24, %c0_25, %c0_26] : memref<3x8x8xbf16, #tpu.memory_space<vmem>>, vector<1x8x8xbf16>
    %24 = vector.shape_cast %23 : vector<1x8x8xbf16> to vector<8x8xbf16>
    %cst_27 = arith.constant dense<0.000000e+00> : vector<8x16xf32>
    %25 = tpu.matmul %24, %22, %cst_27 {dimension_numbers = #tpu.dot_dimension_numbers<[1], [0], [0], [1], [0, 0, 1, 1], [], []>} : vector<8x8xbf16>, vector<8x16xbf16>, vector<8x16xf32> -> vector<8x16xf32>
    %26 = vector.broadcast %20 : vector<8x1xf32> to vector<8x16xf32>
    %27 = arith.addf %26, %25 : vector<8x16xf32>
    %c0_28 = arith.constant 0 : index
    %c0_29 = arith.constant 0 : index
    %c1_30 = arith.constant 1 : index
    %28 = vector.load %arg1[%c0_28, %c0_29, %c1_30] : memref<1x8x18xbf16, #tpu.memory_space<vmem>>, vector<1x8x16xbf16>
    %29 = vector.shape_cast %28 : vector<1x8x16xbf16> to vector<8x16xbf16>
    %c1_31 = arith.constant 1 : index
    %c0_32 = arith.constant 0 : index
    %c0_33 = arith.constant 0 : index
    %30 = vector.load %arg4[%c1_31, %c0_32, %c0_33] : memref<3x8x8xbf16, #tpu.memory_space<vmem>>, vector<1x8x8xbf16>
    %31 = vector.shape_cast %30 : vector<1x8x8xbf16> to vector<8x8xbf16>
    %cst_34 = arith.constant dense<0.000000e+00> : vector<8x16xf32>
    %32 = tpu.matmul %31, %29, %cst_34 {dimension_numbers = #tpu.dot_dimension_numbers<[1], [0], [0], [1], [0, 0, 1, 1], [], []>} : vector<8x8xbf16>, vector<8x16xbf16>, vector<8x16xf32> -> vector<8x16xf32>
    %33 = arith.addf %27, %32 : vector<8x16xf32>
    %c0_35 = arith.constant 0 : index
    %c0_36 = arith.constant 0 : index
    %c2_37 = arith.constant 2 : index
    %34 = vector.load %arg1[%c0_35, %c0_36, %c2_37] : memref<1x8x18xbf16, #tpu.memory_space<vmem>>, vector<1x8x16xbf16>
    %35 = vector.shape_cast %34 : vector<1x8x16xbf16> to vector<8x16xbf16>
    %c2_38 = arith.constant 2 : index
    %c0_39 = arith.constant 0 : index
    %c0_40 = arith.constant 0 : index
    %36 = vector.load %arg4[%c2_38, %c0_39, %c0_40] : memref<3x8x8xbf16, #tpu.memory_space<vmem>>, vector<1x8x8xbf16>
    %37 = vector.shape_cast %36 : vector<1x8x8xbf16> to vector<8x8xbf16>
    %cst_41 = arith.constant dense<0.000000e+00> : vector<8x16xf32>
    %38 = tpu.matmul %37, %35, %cst_41 {dimension_numbers = #tpu.dot_dimension_numbers<[1], [0], [0], [1], [0, 0, 1, 1], [], []>} : vector<8x8xbf16>, vector<8x16xbf16>, vector<8x16xf32> -> vector<8x16xf32>
    %39 = arith.addf %33, %38 : vector<8x16xf32>
    %40 = arith.negf %39 : vector<8x16xf32>
    %41 = math.exp %40 : vector<8x16xf32>
    %cst_42 = arith.constant 1.000000e+00 : f32
    %42 = vector.broadcast %cst_42 : f32 to vector<8x16xf32>
    %43 = arith.addf %42, %41 : vector<8x16xf32>
    %44 = arith.divf %42, %43 : vector<8x16xf32>
    %45 = arith.mulf %19, %44 : vector<8x16xf32>
    %46 = arith.truncf %45 : vector<8x16xf32> to vector<8x16xbf16>
    %c0_43 = arith.constant 0 : index
    %c0_44 = arith.constant 0 : index
    %c0_45 = arith.constant 0 : index
    %47 = vector.load %arg6[%c0_43, %c0_44, %c0_45] : memref<1x8x16xbf16, #tpu.memory_space<vmem>>, vector<1x8x16xbf16>
    %48 = vector.shape_cast %47 : vector<1x8x16xbf16> to vector<8x16xbf16>
    %49 = vector.shape_cast %46 : vector<8x16xbf16> to vector<1x8x16xbf16>
    tpu.vector_store %arg6[%c0_43, %c0_44, %c0_45], %49 {strides = array<i32>} : memref<1x8x16xbf16, #tpu.memory_space<vmem>>, vector<1x8x16xbf16>,
    return
  }
  func.func @transform_0(%arg0: i32) -> (i32, i32, i32) {
    %c0_i32 = arith.constant 0 : i32
    %c0_i32_0 = arith.constant 0 : i32
    %c0_i32_1 = arith.constant 0 : i32
    return %arg0, %c0_i32, %c0_i32_0 : i32, i32, i32
  }
  func.func @transform_1(%arg0: i32) -> (i32, i32, i32) {
    %c0_i32 = arith.constant 0 : i32
    %c0_i32_0 = arith.constant 0 : i32
    %c0_i32_1 = arith.constant 0 : i32
    %c0_i32_2 = arith.constant 0 : i32
    return %c0_i32, %c0_i32_0, %c0_i32_1 : i32, i32, i32
  }
  func.func @transform_2(%arg0: i32) -> (i32, i32) {
    %c0_i32 = arith.constant 0 : i32
    %c0_i32_0 = arith.constant 0 : i32
    %c0_i32_1 = arith.constant 0 : i32
    return %c0_i32, %c0_i32_0 : i32, i32
  }
  func.func @transform_3(%arg0: i32) -> (i32, i32, i32) {
    %c0_i32 = arith.constant 0 : i32
    %c0_i32_0 = arith.constant 0 : i32
    %c0_i32_1 = arith.constant 0 : i32
    %c0_i32_2 = arith.constant 0 : i32
    return %c0_i32, %c0_i32_0, %c0_i32_1 : i32, i32, i32
  }
  func.func @transform_4(%arg0: i32) -> (i32, i32) {
    %c0_i32 = arith.constant 0 : i32
    %c0_i32_0 = arith.constant 0 : i32
    %c0_i32_1 = arith.constant 0 : i32
    return %c0_i32, %c0_i32_0 : i32, i32
  }
  func.func @transform_5(%arg0: i32) -> (i32, i32, i32) {
    %c0_i32 = arith.constant 0 : i32
    %c0_i32_0 = arith.constant 0 : i32
    %c0_i32_1 = arith.constant 0 : i32
    return %arg0, %c0_i32, %c0_i32_0 : i32, i32, i32
  }
}

module attributes {stable_mosaic.version = 11 : i64} {
  func.func @_wavenet_block_kernel(%arg0: i32, %arg1: memref<1x8x20xbf16, #tpu.memory_space<vmem>>, %arg2: memref<1x8x16xf32, #tpu.memory_space<vmem>>, %arg3: memref<3x8x8xbf16, #tpu.memory_space<vmem>>, %arg4: memref<8x1xf32, #tpu.memory_space<vmem>>, %arg5: memref<3x8x8xbf16, #tpu.memory_space<vmem>>, %arg6: memref<8x1xf32, #tpu.memory_space<vmem>>, %arg7: memref<8x8xbf16, #tpu.memory_space<vmem>>, %arg8: memref<8x1xf32, #tpu.memory_space<vmem>>, %arg9: memref<8x8xbf16, #tpu.memory_space<vmem>>, %arg10: memref<8x1xf32, #tpu.memory_space<vmem>>, %arg11: memref<1x8x16xbf16, #tpu.memory_space<vmem>>, %arg12: memref<1x8x16xf32, #tpu.memory_space<vmem>>) attributes {dimension_semantics = [#tpu.dimension_semantics<parallel>], iteration_bounds = array<i64: 2>, scalar_prefetch = 0 : i64, scratch_operands = 0 : i64, tpu.core_type = #tpu.core_type<tc>, window_params = [{transform_indices = @transform_0, window_bounds = array<i64: 1, 8, 20>}, {transform_indices = @transform_1, window_bounds = array<i64: 1, 8, 16>}, {pipeline_mode = #tpu.pipeline_mode<synchronous>, transform_indices = @transform_2, window_bounds = array<i64: 3, 8, 8>}, {pipeline_mode = #tpu.pipeline_mode<synchronous>, transform_indices = @transform_3, window_bounds = array<i64: 8, 1>}, {pipeline_mode = #tpu.pipeline_mode<synchronous>, transform_indices = @transform_4, window_bounds = array<i64: 3, 8, 8>}, {pipeline_mode = #tpu.pipeline_mode<synchronous>, transform_indices = @transform_5, window_bounds = array<i64: 8, 1>}, {pipeline_mode = #tpu.pipeline_mode<synchronous>, transform_indices = @transform_6, window_bounds = array<i64: 8, 8>}, {pipeline_mode = #tpu.pipeline_mode<synchronous>, transform_indices = @transform_7, window_bounds = array<i64: 8, 1>}, {pipeline_mode = #tpu.pipeline_mode<synchronous>, transform_indices = @transform_8, window_bounds = array<i64: 8, 8>}, {pipeline_mode = #tpu.pipeline_mode<synchronous>, transform_indices = @transform_9, window_bounds = array<i64: 8, 1>}, {transform_indices = @transform_10, window_bounds = array<i64: 1, 8, 16>}, {transform_indices = @transform_11, window_bounds = array<i64: 1, 8, 16>}]} {
    %c0 = arith.constant 0 : index
    %c0_0 = arith.constant 0 : index
    %0 = vector.load %arg4[%c0, %c0_0] : memref<8x1xf32, #tpu.memory_space<vmem>>, vector<8x1xf32>
    %c0_1 = arith.constant 0 : index
    %c0_2 = arith.constant 0 : index
    %1 = vector.load %arg6[%c0_1, %c0_2] : memref<8x1xf32, #tpu.memory_space<vmem>>, vector<8x1xf32>
    %c0_3 = arith.constant 0 : index
    %c0_4 = arith.constant 0 : index
    %c0_5 = arith.constant 0 : index
    %2 = vector.load %arg1[%c0_3, %c0_4, %c0_5] : memref<1x8x20xbf16, #tpu.memory_space<vmem>>, vector<1x8x16xbf16>
    %3 = vector.shape_cast %2 : vector<1x8x16xbf16> to vector<8x16xbf16>
    %c0_6 = arith.constant 0 : index
    %c0_7 = arith.constant 0 : index
    %c0_8 = arith.constant 0 : index
    %4 = vector.load %arg3[%c0_6, %c0_7, %c0_8] : memref<3x8x8xbf16, #tpu.memory_space<vmem>>, vector<1x8x8xbf16>
    %5 = vector.shape_cast %4 : vector<1x8x8xbf16> to vector<8x8xbf16>
    %cst = arith.constant dense<0.000000e+00> : vector<8x16xf32>
    %6 = tpu.matmul %5, %3, %cst {dimension_numbers = #tpu.dot_dimension_numbers<[1], [0], [0], [1], [0, 0, 1, 1], [], []>} : vector<8x8xbf16>, vector<8x16xbf16>, vector<8x16xf32> -> vector<8x16xf32>
    %7 = vector.broadcast %0 : vector<8x1xf32> to vector<8x16xf32>
    %8 = arith.addf %7, %6 : vector<8x16xf32>
    %c0_9 = arith.constant 0 : index
    %c0_10 = arith.constant 0 : index
    %c0_11 = arith.constant 0 : index
    %9 = vector.load %arg5[%c0_9, %c0_10, %c0_11] : memref<3x8x8xbf16, #tpu.memory_space<vmem>>, vector<1x8x8xbf16>
    %10 = vector.shape_cast %9 : vector<1x8x8xbf16> to vector<8x8xbf16>
    %cst_12 = arith.constant dense<0.000000e+00> : vector<8x16xf32>
    %11 = tpu.matmul %10, %3, %cst_12 {dimension_numbers = #tpu.dot_dimension_numbers<[1], [0], [0], [1], [0, 0, 1, 1], [], []>} : vector<8x8xbf16>, vector<8x16xbf16>, vector<8x16xf32> -> vector<8x16xf32>
    %12 = vector.broadcast %1 : vector<8x1xf32> to vector<8x16xf32>
    %13 = arith.addf %12, %11 : vector<8x16xf32>
    %c0_13 = arith.constant 0 : index
    %c0_14 = arith.constant 0 : index
    %c2 = arith.constant 2 : index
    %14 = vector.load %arg1[%c0_13, %c0_14, %c2] : memref<1x8x20xbf16, #tpu.memory_space<vmem>>, vector<1x8x16xbf16>
    %15 = vector.shape_cast %14 : vector<1x8x16xbf16> to vector<8x16xbf16>
    %c1 = arith.constant 1 : index
    %c0_15 = arith.constant 0 : index
    %c0_16 = arith.constant 0 : index
    %16 = vector.load %arg3[%c1, %c0_15, %c0_16] : memref<3x8x8xbf16, #tpu.memory_space<vmem>>, vector<1x8x8xbf16>
    %17 = vector.shape_cast %16 : vector<1x8x8xbf16> to vector<8x8xbf16>
    %cst_17 = arith.constant dense<0.000000e+00> : vector<8x16xf32>
    %18 = tpu.matmul %17, %15, %cst_17 {dimension_numbers = #tpu.dot_dimension_numbers<[1], [0], [0], [1], [0, 0, 1, 1], [], []>} : vector<8x8xbf16>, vector<8x16xbf16>, vector<8x16xf32> -> vector<8x16xf32>
    %19 = arith.addf %8, %18 : vector<8x16xf32>
    %c1_18 = arith.constant 1 : index
    %c0_19 = arith.constant 0 : index
    %c0_20 = arith.constant 0 : index
    %20 = vector.load %arg5[%c1_18, %c0_19, %c0_20] : memref<3x8x8xbf16, #tpu.memory_space<vmem>>, vector<1x8x8xbf16>
    %21 = vector.shape_cast %20 : vector<1x8x8xbf16> to vector<8x8xbf16>
    %cst_21 = arith.constant dense<0.000000e+00> : vector<8x16xf32>
    %22 = tpu.matmul %21, %15, %cst_21 {dimension_numbers = #tpu.dot_dimension_numbers<[1], [0], [0], [1], [0, 0, 1, 1], [], []>} : vector<8x8xbf16>, vector<8x16xbf16>, vector<8x16xf32> -> vector<8x16xf32>
    %23 = arith.addf %13, %22 : vector<8x16xf32>
    %c0_22 = arith.constant 0 : index
    %c0_23 = arith.constant 0 : index
    %c4 = arith.constant 4 : index
    %24 = vector.load %arg1[%c0_22, %c0_23, %c4] : memref<1x8x20xbf16, #tpu.memory_space<vmem>>, vector<1x8x16xbf16>
    %25 = vector.shape_cast %24 : vector<1x8x16xbf16> to vector<8x16xbf16>
    %c2_24 = arith.constant 2 : index
    %c0_25 = arith.constant 0 : index
    %c0_26 = arith.constant 0 : index
    %26 = vector.load %arg3[%c2_24, %c0_25, %c0_26] : memref<3x8x8xbf16, #tpu.memory_space<vmem>>, vector<1x8x8xbf16>
    %27 = vector.shape_cast %26 : vector<1x8x8xbf16> to vector<8x8xbf16>
    %cst_27 = arith.constant dense<0.000000e+00> : vector<8x16xf32>
    %28 = tpu.matmul %27, %25, %cst_27 {dimension_numbers = #tpu.dot_dimension_numbers<[1], [0], [0], [1], [0, 0, 1, 1], [], []>} : vector<8x8xbf16>, vector<8x16xbf16>, vector<8x16xf32> -> vector<8x16xf32>
    %29 = arith.addf %19, %28 : vector<8x16xf32>
    %c2_28 = arith.constant 2 : index
    %c0_29 = arith.constant 0 : index
    %c0_30 = arith.constant 0 : index
    %30 = vector.load %arg5[%c2_28, %c0_29, %c0_30] : memref<3x8x8xbf16, #tpu.memory_space<vmem>>, vector<1x8x8xbf16>
    %31 = vector.shape_cast %30 : vector<1x8x8xbf16> to vector<8x8xbf16>
    %cst_31 = arith.constant dense<0.000000e+00> : vector<8x16xf32>
    %32 = tpu.matmul %31, %25, %cst_31 {dimension_numbers = #tpu.dot_dimension_numbers<[1], [0], [0], [1], [0, 0, 1, 1], [], []>} : vector<8x8xbf16>, vector<8x16xbf16>, vector<8x16xf32> -> vector<8x16xf32>
    %33 = arith.addf %23, %32 : vector<8x16xf32>
    %34 = math.tanh %29 : vector<8x16xf32>
    %35 = arith.negf %33 : vector<8x16xf32>
    %36 = math.exp %35 : vector<8x16xf32>
    %cst_32 = arith.constant 1.000000e+00 : f32
    %37 = vector.broadcast %cst_32 : f32 to vector<8x16xf32>
    %38 = arith.addf %37, %36 : vector<8x16xf32>
    %39 = arith.divf %37, %38 : vector<8x16xf32>
    %40 = arith.mulf %34, %39 : vector<8x16xf32>
    %41 = arith.truncf %40 : vector<8x16xf32> to vector<8x16xbf16>
    %c0_33 = arith.constant 0 : index
    %c0_34 = arith.constant 0 : index
    %42 = vector.load %arg7[%c0_33, %c0_34] : memref<8x8xbf16, #tpu.memory_space<vmem>>, vector<8x8xbf16>
    %cst_35 = arith.constant dense<0.000000e+00> : vector<8x16xf32>
    %43 = tpu.matmul %42, %41, %cst_35 {dimension_numbers = #tpu.dot_dimension_numbers<[1], [0], [0], [1], [0, 0, 1, 1], [], []>} : vector<8x8xbf16>, vector<8x16xbf16>, vector<8x16xf32> -> vector<8x16xf32>
    %c0_36 = arith.constant 0 : index
    %c0_37 = arith.constant 0 : index
    %44 = vector.load %arg8[%c0_36, %c0_37] : memref<8x1xf32, #tpu.memory_space<vmem>>, vector<8x1xf32>
    %45 = vector.broadcast %44 : vector<8x1xf32> to vector<8x16xf32>
    %46 = arith.addf %43, %45 : vector<8x16xf32>
    %c0_38 = arith.constant 0 : index
    %c0_39 = arith.constant 0 : index
    %47 = vector.load %arg9[%c0_38, %c0_39] : memref<8x8xbf16, #tpu.memory_space<vmem>>, vector<8x8xbf16>
    %cst_40 = arith.constant dense<0.000000e+00> : vector<8x16xf32>
    %48 = tpu.matmul %47, %41, %cst_40 {dimension_numbers = #tpu.dot_dimension_numbers<[1], [0], [0], [1], [0, 0, 1, 1], [], []>} : vector<8x8xbf16>, vector<8x16xbf16>, vector<8x16xf32> -> vector<8x16xf32>
    %c0_41 = arith.constant 0 : index
    %c0_42 = arith.constant 0 : index
    %49 = vector.load %arg10[%c0_41, %c0_42] : memref<8x1xf32, #tpu.memory_space<vmem>>, vector<8x1xf32>
    %50 = vector.broadcast %49 : vector<8x1xf32> to vector<8x16xf32>
    %51 = arith.addf %48, %50 : vector<8x16xf32>
    %c0_43 = arith.constant 0 : index
    %c0_44 = arith.constant 0 : index
    %c2_45 = arith.constant 2 : index
    %52 = vector.load %arg1[%c0_43, %c0_44, %c2_45] : memref<1x8x20xbf16, #tpu.memory_space<vmem>>, vector<1x8x16xbf16>
    %53 = vector.shape_cast %52 : vector<1x8x16xbf16> to vector<8x16xbf16>
    %54 = arith.extf %53 : vector<8x16xbf16> to vector<8x16xf32>
    %55 = arith.addf %54, %46 : vector<8x16xf32>
    %56 = arith.truncf %55 : vector<8x16xf32> to vector<8x16xbf16>
    %c0_46 = arith.constant 0 : index
    %c0_47 = arith.constant 0 : index
    %c0_48 = arith.constant 0 : index
    %57 = vector.load %arg11[%c0_46, %c0_47, %c0_48] : memref<1x8x16xbf16, #tpu.memory_space<vmem>>, vector<1x8x16xbf16>
    %58 = vector.shape_cast %57 : vector<1x8x16xbf16> to vector<8x16xbf16>
    %59 = vector.shape_cast %56 : vector<8x16xbf16> to vector<1x8x16xbf16>
    tpu.vector_store %arg11[%c0_46, %c0_47, %c0_48], %59 {strides = array<i32>} : memref<1x8x16xbf16, #tpu.memory_space<vmem>>, vector<1x8x16xbf16>,
    %c0_49 = arith.constant 0 : index
    %c0_50 = arith.constant 0 : index
    %c0_51 = arith.constant 0 : index
    %60 = vector.load %arg2[%c0_49, %c0_50, %c0_51] : memref<1x8x16xf32, #tpu.memory_space<vmem>>, vector<1x8x16xf32>
    %61 = vector.shape_cast %60 : vector<1x8x16xf32> to vector<8x16xf32>
    %62 = arith.addf %61, %51 : vector<8x16xf32>
    %c0_52 = arith.constant 0 : index
    %c0_53 = arith.constant 0 : index
    %c0_54 = arith.constant 0 : index
    %63 = vector.load %arg12[%c0_52, %c0_53, %c0_54] : memref<1x8x16xf32, #tpu.memory_space<vmem>>, vector<1x8x16xf32>
    %64 = vector.shape_cast %63 : vector<1x8x16xf32> to vector<8x16xf32>
    %65 = vector.shape_cast %62 : vector<8x16xf32> to vector<1x8x16xf32>
    tpu.vector_store %arg12[%c0_52, %c0_53, %c0_54], %65 {strides = array<i32>} : memref<1x8x16xf32, #tpu.memory_space<vmem>>, vector<1x8x16xf32>,
    return
  }
  func.func @transform_0(%arg0: i32) -> (i32, i32, i32) {
    %c0_i32 = arith.constant 0 : i32
    %c0_i32_0 = arith.constant 0 : i32
    %c0_i32_1 = arith.constant 0 : i32
    return %arg0, %c0_i32, %c0_i32_0 : i32, i32, i32
  }
  func.func @transform_1(%arg0: i32) -> (i32, i32, i32) {
    %c0_i32 = arith.constant 0 : i32
    %c0_i32_0 = arith.constant 0 : i32
    %c0_i32_1 = arith.constant 0 : i32
    return %arg0, %c0_i32, %c0_i32_0 : i32, i32, i32
  }
  func.func @transform_2(%arg0: i32) -> (i32, i32, i32) {
    %c0_i32 = arith.constant 0 : i32
    %c0_i32_0 = arith.constant 0 : i32
    %c0_i32_1 = arith.constant 0 : i32
    %c0_i32_2 = arith.constant 0 : i32
    return %c0_i32, %c0_i32_0, %c0_i32_1 : i32, i32, i32
  }
  func.func @transform_3(%arg0: i32) -> (i32, i32) {
    %c0_i32 = arith.constant 0 : i32
    %c0_i32_0 = arith.constant 0 : i32
    %c0_i32_1 = arith.constant 0 : i32
    return %c0_i32, %c0_i32_0 : i32, i32
  }
  func.func @transform_4(%arg0: i32) -> (i32, i32, i32) {
    %c0_i32 = arith.constant 0 : i32
    %c0_i32_0 = arith.constant 0 : i32
    %c0_i32_1 = arith.constant 0 : i32
    %c0_i32_2 = arith.constant 0 : i32
    return %c0_i32, %c0_i32_0, %c0_i32_1 : i32, i32, i32
  }
  func.func @transform_5(%arg0: i32) -> (i32, i32) {
    %c0_i32 = arith.constant 0 : i32
    %c0_i32_0 = arith.constant 0 : i32
    %c0_i32_1 = arith.constant 0 : i32
    return %c0_i32, %c0_i32_0 : i32, i32
  }
  func.func @transform_6(%arg0: i32) -> (i32, i32) {
    %c0_i32 = arith.constant 0 : i32
    %c0_i32_0 = arith.constant 0 : i32
    %c0_i32_1 = arith.constant 0 : i32
    return %c0_i32, %c0_i32_0 : i32, i32
  }
  func.func @transform_7(%arg0: i32) -> (i32, i32) {
    %c0_i32 = arith.constant 0 : i32
    %c0_i32_0 = arith.constant 0 : i32
    %c0_i32_1 = arith.constant 0 : i32
    return %c0_i32, %c0_i32_0 : i32, i32
  }
  func.func @transform_8(%arg0: i32) -> (i32, i32) {
    %c0_i32 = arith.constant 0 : i32
    %c0_i32_0 = arith.constant 0 : i32
    %c0_i32_1 = arith.constant 0 : i32
    return %c0_i32, %c0_i32_0 : i32, i32
  }
  func.func @transform_9(%arg0: i32) -> (i32, i32) {
    %c0_i32 = arith.constant 0 : i32
    %c0_i32_0 = arith.constant 0 : i32
    %c0_i32_1 = arith.constant 0 : i32
    return %c0_i32, %c0_i32_0 : i32, i32
  }
  func.func @transform_10(%arg0: i32) -> (i32, i32, i32) {
    %c0_i32 = arith.constant 0 : i32
    %c0_i32_0 = arith.constant 0 : i32
    %c0_i32_1 = arith.constant 0 : i32
    return %arg0, %c0_i32, %c0_i32_0 : i32, i32, i32
  }
  func.func @transform_11(%arg0: i32) -> (i32, i32, i32) {
    %c0_i32 = arith.constant 0 : i32
    %c0_i32_0 = arith.constant 0 : i32
    %c0_i32_1 = arith.constant 0 : i32
    return %arg0, %c0_i32, %c0_i32_0 : i32, i32, i32
  }
}

module attributes {stable_mosaic.version = 11 : i64} {
  func.func @_conv_act_kernel(%arg0: i32, %arg1: memref<1x8x30xbf16, #tpu.memory_space<vmem>>, %arg2: memref<15x4x8xbf16, #tpu.memory_space<vmem>>, %arg3: memref<4x1xf32, #tpu.memory_space<vmem>>, %arg4: memref<1x4x16xbf16, #tpu.memory_space<vmem>>) attributes {dimension_semantics = [#tpu.dimension_semantics<parallel>], iteration_bounds = array<i64: 2>, scalar_prefetch = 0 : i64, scratch_operands = 0 : i64, tpu.core_type = #tpu.core_type<tc>, window_params = [{transform_indices = @transform_0, window_bounds = array<i64: 1, 8, 30>}, {pipeline_mode = #tpu.pipeline_mode<synchronous>, transform_indices = @transform_1, window_bounds = array<i64: 15, 4, 8>}, {pipeline_mode = #tpu.pipeline_mode<synchronous>, transform_indices = @transform_2, window_bounds = array<i64: 4, 1>}, {transform_indices = @transform_3, window_bounds = array<i64: 1, 4, 16>}]} {
    %c0 = arith.constant 0 : index
    %c0_0 = arith.constant 0 : index
    %0 = vector.load %arg3[%c0, %c0_0] : memref<4x1xf32, #tpu.memory_space<vmem>>, vector<4x1xf32>
    %c0_1 = arith.constant 0 : index
    %c0_2 = arith.constant 0 : index
    %c0_3 = arith.constant 0 : index
    %1 = vector.load %arg1[%c0_1, %c0_2, %c0_3] : memref<1x8x30xbf16, #tpu.memory_space<vmem>>, vector<1x8x16xbf16>
    %2 = vector.shape_cast %1 : vector<1x8x16xbf16> to vector<8x16xbf16>
    %c0_4 = arith.constant 0 : index
    %c0_5 = arith.constant 0 : index
    %c0_6 = arith.constant 0 : index
    %3 = vector.load %arg2[%c0_4, %c0_5, %c0_6] : memref<15x4x8xbf16, #tpu.memory_space<vmem>>, vector<1x4x8xbf16>
    %4 = vector.shape_cast %3 : vector<1x4x8xbf16> to vector<4x8xbf16>
    %cst = arith.constant dense<0.000000e+00> : vector<4x16xf32>
    %5 = tpu.matmul %4, %2, %cst {dimension_numbers = #tpu.dot_dimension_numbers<[1], [0], [0], [1], [0, 0, 1, 1], [], []>} : vector<4x8xbf16>, vector<8x16xbf16>, vector<4x16xf32> -> vector<4x16xf32>
    %6 = vector.broadcast %0 : vector<4x1xf32> to vector<4x16xf32>
    %7 = arith.addf %6, %5 : vector<4x16xf32>
    %c0_7 = arith.constant 0 : index
    %c0_8 = arith.constant 0 : index
    %c1 = arith.constant 1 : index
    %8 = vector.load %arg1[%c0_7, %c0_8, %c1] : memref<1x8x30xbf16, #tpu.memory_space<vmem>>, vector<1x8x16xbf16>
    %9 = vector.shape_cast %8 : vector<1x8x16xbf16> to vector<8x16xbf16>
    %c1_9 = arith.constant 1 : index
    %c0_10 = arith.constant 0 : index
    %c0_11 = arith.constant 0 : index
    %10 = vector.load %arg2[%c1_9, %c0_10, %c0_11] : memref<15x4x8xbf16, #tpu.memory_space<vmem>>, vector<1x4x8xbf16>
    %11 = vector.shape_cast %10 : vector<1x4x8xbf16> to vector<4x8xbf16>
    %cst_12 = arith.constant dense<0.000000e+00> : vector<4x16xf32>
    %12 = tpu.matmul %11, %9, %cst_12 {dimension_numbers = #tpu.dot_dimension_numbers<[1], [0], [0], [1], [0, 0, 1, 1], [], []>} : vector<4x8xbf16>, vector<8x16xbf16>, vector<4x16xf32> -> vector<4x16xf32>
    %13 = arith.addf %7, %12 : vector<4x16xf32>
    %c0_13 = arith.constant 0 : index
    %c0_14 = arith.constant 0 : index
    %c2 = arith.constant 2 : index
    %14 = vector.load %arg1[%c0_13, %c0_14, %c2] : memref<1x8x30xbf16, #tpu.memory_space<vmem>>, vector<1x8x16xbf16>
    %15 = vector.shape_cast %14 : vector<1x8x16xbf16> to vector<8x16xbf16>
    %c2_15 = arith.constant 2 : index
    %c0_16 = arith.constant 0 : index
    %c0_17 = arith.constant 0 : index
    %16 = vector.load %arg2[%c2_15, %c0_16, %c0_17] : memref<15x4x8xbf16, #tpu.memory_space<vmem>>, vector<1x4x8xbf16>
    %17 = vector.shape_cast %16 : vector<1x4x8xbf16> to vector<4x8xbf16>
    %cst_18 = arith.constant dense<0.000000e+00> : vector<4x16xf32>
    %18 = tpu.matmul %17, %15, %cst_18 {dimension_numbers = #tpu.dot_dimension_numbers<[1], [0], [0], [1], [0, 0, 1, 1], [], []>} : vector<4x8xbf16>, vector<8x16xbf16>, vector<4x16xf32> -> vector<4x16xf32>
    %19 = arith.addf %13, %18 : vector<4x16xf32>
    %c0_19 = arith.constant 0 : index
    %c0_20 = arith.constant 0 : index
    %c3 = arith.constant 3 : index
    %20 = vector.load %arg1[%c0_19, %c0_20, %c3] : memref<1x8x30xbf16, #tpu.memory_space<vmem>>, vector<1x8x16xbf16>
    %21 = vector.shape_cast %20 : vector<1x8x16xbf16> to vector<8x16xbf16>
    %c3_21 = arith.constant 3 : index
    %c0_22 = arith.constant 0 : index
    %c0_23 = arith.constant 0 : index
    %22 = vector.load %arg2[%c3_21, %c0_22, %c0_23] : memref<15x4x8xbf16, #tpu.memory_space<vmem>>, vector<1x4x8xbf16>
    %23 = vector.shape_cast %22 : vector<1x4x8xbf16> to vector<4x8xbf16>
    %cst_24 = arith.constant dense<0.000000e+00> : vector<4x16xf32>
    %24 = tpu.matmul %23, %21, %cst_24 {dimension_numbers = #tpu.dot_dimension_numbers<[1], [0], [0], [1], [0, 0, 1, 1], [], []>} : vector<4x8xbf16>, vector<8x16xbf16>, vector<4x16xf32> -> vector<4x16xf32>
    %25 = arith.addf %19, %24 : vector<4x16xf32>
    %c0_25 = arith.constant 0 : index
    %c0_26 = arith.constant 0 : index
    %c4 = arith.constant 4 : index
    %26 = vector.load %arg1[%c0_25, %c0_26, %c4] : memref<1x8x30xbf16, #tpu.memory_space<vmem>>, vector<1x8x16xbf16>
    %27 = vector.shape_cast %26 : vector<1x8x16xbf16> to vector<8x16xbf16>
    %c4_27 = arith.constant 4 : index
    %c0_28 = arith.constant 0 : index
    %c0_29 = arith.constant 0 : index
    %28 = vector.load %arg2[%c4_27, %c0_28, %c0_29] : memref<15x4x8xbf16, #tpu.memory_space<vmem>>, vector<1x4x8xbf16>
    %29 = vector.shape_cast %28 : vector<1x4x8xbf16> to vector<4x8xbf16>
    %cst_30 = arith.constant dense<0.000000e+00> : vector<4x16xf32>
    %30 = tpu.matmul %29, %27, %cst_30 {dimension_numbers = #tpu.dot_dimension_numbers<[1], [0], [0], [1], [0, 0, 1, 1], [], []>} : vector<4x8xbf16>, vector<8x16xbf16>, vector<4x16xf32> -> vector<4x16xf32>
    %31 = arith.addf %25, %30 : vector<4x16xf32>
    %c0_31 = arith.constant 0 : index
    %c0_32 = arith.constant 0 : index
    %c5 = arith.constant 5 : index
    %32 = vector.load %arg1[%c0_31, %c0_32, %c5] : memref<1x8x30xbf16, #tpu.memory_space<vmem>>, vector<1x8x16xbf16>
    %33 = vector.shape_cast %32 : vector<1x8x16xbf16> to vector<8x16xbf16>
    %c5_33 = arith.constant 5 : index
    %c0_34 = arith.constant 0 : index
    %c0_35 = arith.constant 0 : index
    %34 = vector.load %arg2[%c5_33, %c0_34, %c0_35] : memref<15x4x8xbf16, #tpu.memory_space<vmem>>, vector<1x4x8xbf16>
    %35 = vector.shape_cast %34 : vector<1x4x8xbf16> to vector<4x8xbf16>
    %cst_36 = arith.constant dense<0.000000e+00> : vector<4x16xf32>
    %36 = tpu.matmul %35, %33, %cst_36 {dimension_numbers = #tpu.dot_dimension_numbers<[1], [0], [0], [1], [0, 0, 1, 1], [], []>} : vector<4x8xbf16>, vector<8x16xbf16>, vector<4x16xf32> -> vector<4x16xf32>
    %37 = arith.addf %31, %36 : vector<4x16xf32>
    %c0_37 = arith.constant 0 : index
    %c0_38 = arith.constant 0 : index
    %c6 = arith.constant 6 : index
    %38 = vector.load %arg1[%c0_37, %c0_38, %c6] : memref<1x8x30xbf16, #tpu.memory_space<vmem>>, vector<1x8x16xbf16>
    %39 = vector.shape_cast %38 : vector<1x8x16xbf16> to vector<8x16xbf16>
    %c6_39 = arith.constant 6 : index
    %c0_40 = arith.constant 0 : index
    %c0_41 = arith.constant 0 : index
    %40 = vector.load %arg2[%c6_39, %c0_40, %c0_41] : memref<15x4x8xbf16, #tpu.memory_space<vmem>>, vector<1x4x8xbf16>
    %41 = vector.shape_cast %40 : vector<1x4x8xbf16> to vector<4x8xbf16>
    %cst_42 = arith.constant dense<0.000000e+00> : vector<4x16xf32>
    %42 = tpu.matmul %41, %39, %cst_42 {dimension_numbers = #tpu.dot_dimension_numbers<[1], [0], [0], [1], [0, 0, 1, 1], [], []>} : vector<4x8xbf16>, vector<8x16xbf16>, vector<4x16xf32> -> vector<4x16xf32>
    %43 = arith.addf %37, %42 : vector<4x16xf32>
    %c0_43 = arith.constant 0 : index
    %c0_44 = arith.constant 0 : index
    %c7 = arith.constant 7 : index
    %44 = vector.load %arg1[%c0_43, %c0_44, %c7] : memref<1x8x30xbf16, #tpu.memory_space<vmem>>, vector<1x8x16xbf16>
    %45 = vector.shape_cast %44 : vector<1x8x16xbf16> to vector<8x16xbf16>
    %c7_45 = arith.constant 7 : index
    %c0_46 = arith.constant 0 : index
    %c0_47 = arith.constant 0 : index
    %46 = vector.load %arg2[%c7_45, %c0_46, %c0_47] : memref<15x4x8xbf16, #tpu.memory_space<vmem>>, vector<1x4x8xbf16>
    %47 = vector.shape_cast %46 : vector<1x4x8xbf16> to vector<4x8xbf16>
    %cst_48 = arith.constant dense<0.000000e+00> : vector<4x16xf32>
    %48 = tpu.matmul %47, %45, %cst_48 {dimension_numbers = #tpu.dot_dimension_numbers<[1], [0], [0], [1], [0, 0, 1, 1], [], []>} : vector<4x8xbf16>, vector<8x16xbf16>, vector<4x16xf32> -> vector<4x16xf32>
    %49 = arith.addf %43, %48 : vector<4x16xf32>
    %c0_49 = arith.constant 0 : index
    %c0_50 = arith.constant 0 : index
    %c8 = arith.constant 8 : index
    %50 = vector.load %arg1[%c0_49, %c0_50, %c8] : memref<1x8x30xbf16, #tpu.memory_space<vmem>>, vector<1x8x16xbf16>
    %51 = vector.shape_cast %50 : vector<1x8x16xbf16> to vector<8x16xbf16>
    %c8_51 = arith.constant 8 : index
    %c0_52 = arith.constant 0 : index
    %c0_53 = arith.constant 0 : index
    %52 = vector.load %arg2[%c8_51, %c0_52, %c0_53] : memref<15x4x8xbf16, #tpu.memory_space<vmem>>, vector<1x4x8xbf16>
    %53 = vector.shape_cast %52 : vector<1x4x8xbf16> to vector<4x8xbf16>
    %cst_54 = arith.constant dense<0.000000e+00> : vector<4x16xf32>
    %54 = tpu.matmul %53, %51, %cst_54 {dimension_numbers = #tpu.dot_dimension_numbers<[1], [0], [0], [1], [0, 0, 1, 1], [], []>} : vector<4x8xbf16>, vector<8x16xbf16>, vector<4x16xf32> -> vector<4x16xf32>
    %55 = arith.addf %49, %54 : vector<4x16xf32>
    %c0_55 = arith.constant 0 : index
    %c0_56 = arith.constant 0 : index
    %c9 = arith.constant 9 : index
    %56 = vector.load %arg1[%c0_55, %c0_56, %c9] : memref<1x8x30xbf16, #tpu.memory_space<vmem>>, vector<1x8x16xbf16>
    %57 = vector.shape_cast %56 : vector<1x8x16xbf16> to vector<8x16xbf16>
    %c9_57 = arith.constant 9 : index
    %c0_58 = arith.constant 0 : index
    %c0_59 = arith.constant 0 : index
    %58 = vector.load %arg2[%c9_57, %c0_58, %c0_59] : memref<15x4x8xbf16, #tpu.memory_space<vmem>>, vector<1x4x8xbf16>
    %59 = vector.shape_cast %58 : vector<1x4x8xbf16> to vector<4x8xbf16>
    %cst_60 = arith.constant dense<0.000000e+00> : vector<4x16xf32>
    %60 = tpu.matmul %59, %57, %cst_60 {dimension_numbers = #tpu.dot_dimension_numbers<[1], [0], [0], [1], [0, 0, 1, 1], [], []>} : vector<4x8xbf16>, vector<8x16xbf16>, vector<4x16xf32> -> vector<4x16xf32>
    %61 = arith.addf %55, %60 : vector<4x16xf32>
    %c0_61 = arith.constant 0 : index
    %c0_62 = arith.constant 0 : index
    %c10 = arith.constant 10 : index
    %62 = vector.load %arg1[%c0_61, %c0_62, %c10] : memref<1x8x30xbf16, #tpu.memory_space<vmem>>, vector<1x8x16xbf16>
    %63 = vector.shape_cast %62 : vector<1x8x16xbf16> to vector<8x16xbf16>
    %c10_63 = arith.constant 10 : index
    %c0_64 = arith.constant 0 : index
    %c0_65 = arith.constant 0 : index
    %64 = vector.load %arg2[%c10_63, %c0_64, %c0_65] : memref<15x4x8xbf16, #tpu.memory_space<vmem>>, vector<1x4x8xbf16>
    %65 = vector.shape_cast %64 : vector<1x4x8xbf16> to vector<4x8xbf16>
    %cst_66 = arith.constant dense<0.000000e+00> : vector<4x16xf32>
    %66 = tpu.matmul %65, %63, %cst_66 {dimension_numbers = #tpu.dot_dimension_numbers<[1], [0], [0], [1], [0, 0, 1, 1], [], []>} : vector<4x8xbf16>, vector<8x16xbf16>, vector<4x16xf32> -> vector<4x16xf32>
    %67 = arith.addf %61, %66 : vector<4x16xf32>
    %c0_67 = arith.constant 0 : index
    %c0_68 = arith.constant 0 : index
    %c11 = arith.constant 11 : index
    %68 = vector.load %arg1[%c0_67, %c0_68, %c11] : memref<1x8x30xbf16, #tpu.memory_space<vmem>>, vector<1x8x16xbf16>
    %69 = vector.shape_cast %68 : vector<1x8x16xbf16> to vector<8x16xbf16>
    %c11_69 = arith.constant 11 : index
    %c0_70 = arith.constant 0 : index
    %c0_71 = arith.constant 0 : index
    %70 = vector.load %arg2[%c11_69, %c0_70, %c0_71] : memref<15x4x8xbf16, #tpu.memory_space<vmem>>, vector<1x4x8xbf16>
    %71 = vector.shape_cast %70 : vector<1x4x8xbf16> to vector<4x8xbf16>
    %cst_72 = arith.constant dense<0.000000e+00> : vector<4x16xf32>
    %72 = tpu.matmul %71, %69, %cst_72 {dimension_numbers = #tpu.dot_dimension_numbers<[1], [0], [0], [1], [0, 0, 1, 1], [], []>} : vector<4x8xbf16>, vector<8x16xbf16>, vector<4x16xf32> -> vector<4x16xf32>
    %73 = arith.addf %67, %72 : vector<4x16xf32>
    %c0_73 = arith.constant 0 : index
    %c0_74 = arith.constant 0 : index
    %c12 = arith.constant 12 : index
    %74 = vector.load %arg1[%c0_73, %c0_74, %c12] : memref<1x8x30xbf16, #tpu.memory_space<vmem>>, vector<1x8x16xbf16>
    %75 = vector.shape_cast %74 : vector<1x8x16xbf16> to vector<8x16xbf16>
    %c12_75 = arith.constant 12 : index
    %c0_76 = arith.constant 0 : index
    %c0_77 = arith.constant 0 : index
    %76 = vector.load %arg2[%c12_75, %c0_76, %c0_77] : memref<15x4x8xbf16, #tpu.memory_space<vmem>>, vector<1x4x8xbf16>
    %77 = vector.shape_cast %76 : vector<1x4x8xbf16> to vector<4x8xbf16>
    %cst_78 = arith.constant dense<0.000000e+00> : vector<4x16xf32>
    %78 = tpu.matmul %77, %75, %cst_78 {dimension_numbers = #tpu.dot_dimension_numbers<[1], [0], [0], [1], [0, 0, 1, 1], [], []>} : vector<4x8xbf16>, vector<8x16xbf16>, vector<4x16xf32> -> vector<4x16xf32>
    %79 = arith.addf %73, %78 : vector<4x16xf32>
    %c0_79 = arith.constant 0 : index
    %c0_80 = arith.constant 0 : index
    %c13 = arith.constant 13 : index
    %80 = vector.load %arg1[%c0_79, %c0_80, %c13] : memref<1x8x30xbf16, #tpu.memory_space<vmem>>, vector<1x8x16xbf16>
    %81 = vector.shape_cast %80 : vector<1x8x16xbf16> to vector<8x16xbf16>
    %c13_81 = arith.constant 13 : index
    %c0_82 = arith.constant 0 : index
    %c0_83 = arith.constant 0 : index
    %82 = vector.load %arg2[%c13_81, %c0_82, %c0_83] : memref<15x4x8xbf16, #tpu.memory_space<vmem>>, vector<1x4x8xbf16>
    %83 = vector.shape_cast %82 : vector<1x4x8xbf16> to vector<4x8xbf16>
    %cst_84 = arith.constant dense<0.000000e+00> : vector<4x16xf32>
    %84 = tpu.matmul %83, %81, %cst_84 {dimension_numbers = #tpu.dot_dimension_numbers<[1], [0], [0], [1], [0, 0, 1, 1], [], []>} : vector<4x8xbf16>, vector<8x16xbf16>, vector<4x16xf32> -> vector<4x16xf32>
    %85 = arith.addf %79, %84 : vector<4x16xf32>
    %c0_85 = arith.constant 0 : index
    %c0_86 = arith.constant 0 : index
    %c14 = arith.constant 14 : index
    %86 = vector.load %arg1[%c0_85, %c0_86, %c14] : memref<1x8x30xbf16, #tpu.memory_space<vmem>>, vector<1x8x16xbf16>
    %87 = vector.shape_cast %86 : vector<1x8x16xbf16> to vector<8x16xbf16>
    %c14_87 = arith.constant 14 : index
    %c0_88 = arith.constant 0 : index
    %c0_89 = arith.constant 0 : index
    %88 = vector.load %arg2[%c14_87, %c0_88, %c0_89] : memref<15x4x8xbf16, #tpu.memory_space<vmem>>, vector<1x4x8xbf16>
    %89 = vector.shape_cast %88 : vector<1x4x8xbf16> to vector<4x8xbf16>
    %cst_90 = arith.constant dense<0.000000e+00> : vector<4x16xf32>
    %90 = tpu.matmul %89, %87, %cst_90 {dimension_numbers = #tpu.dot_dimension_numbers<[1], [0], [0], [1], [0, 0, 1, 1], [], []>} : vector<4x8xbf16>, vector<8x16xbf16>, vector<4x16xf32> -> vector<4x16xf32>
    %91 = arith.addf %85, %90 : vector<4x16xf32>
    %92 = arith.truncf %91 : vector<4x16xf32> to vector<4x16xbf16>
    %c0_91 = arith.constant 0 : index
    %c0_92 = arith.constant 0 : index
    %c0_93 = arith.constant 0 : index
    %93 = vector.load %arg4[%c0_91, %c0_92, %c0_93] : memref<1x4x16xbf16, #tpu.memory_space<vmem>>, vector<1x4x16xbf16>
    %94 = vector.shape_cast %93 : vector<1x4x16xbf16> to vector<4x16xbf16>
    %95 = vector.shape_cast %92 : vector<4x16xbf16> to vector<1x4x16xbf16>
    tpu.vector_store %arg4[%c0_91, %c0_92, %c0_93], %95 {strides = array<i32>} : memref<1x4x16xbf16, #tpu.memory_space<vmem>>, vector<1x4x16xbf16>,
    return
  }
  func.func @transform_0(%arg0: i32) -> (i32, i32, i32) {
    %c0_i32 = arith.constant 0 : i32
    %c0_i32_0 = arith.constant 0 : i32
    %c0_i32_1 = arith.constant 0 : i32
    return %arg0, %c0_i32, %c0_i32_0 : i32, i32, i32
  }
  func.func @transform_1(%arg0: i32) -> (i32, i32, i32) {
    %c0_i32 = arith.constant 0 : i32
    %c0_i32_0 = arith.constant 0 : i32
    %c0_i32_1 = arith.constant 0 : i32
    %c0_i32_2 = arith.constant 0 : i32
    return %c0_i32, %c0_i32_0, %c0_i32_1 : i32, i32, i32
  }
  func.func @transform_2(%arg0: i32) -> (i32, i32) {
    %c0_i32 = arith.constant 0 : i32
    %c0_i32_0 = arith.constant 0 : i32
    %c0_i32_1 = arith.constant 0 : i32
    return %c0_i32, %c0_i32_0 : i32, i32
  }
  func.func @transform_3(%arg0: i32) -> (i32, i32, i32) {
    %c0_i32 = arith.constant 0 : i32
    %c0_i32_0 = arith.constant 0 : i32
    %c0_i32_1 = arith.constant 0 : i32
    return %arg0, %c0_i32, %c0_i32_0 : i32, i32, i32
  }
}

</mosaic_0001>

<bundles_post_ra>
// kernel: _lambda_.24
= control target key start
LH: loop header
LB: loop body
LE: loop exit
PB: predicated region body
PF: predicated region fallthrough
CT: control target
= control target key end

     0   :  { %s689_s15 = smov 0   ;;  %s746_s0 = inlined_call_operand.vmem [shape: bf16[2,4,20], index: 0, kind: input, shape index: {}]   ;;  %s747_s1 = inlined_call_operand.vmem [shape: bf16[5,8,4], index: 1, kind: input, shape index: {}]   ;;  %s748_s2 = inlined_call_operand.vmem [shape: f32[8,1], index: 2, kind: input, shape index: {}]   ;;  %s749_s3 = inlined_call_operand.vmem [shape: f32[8,1], index: 3, kind: input, shape index: {}]   ;;  %s750_s4 = inlined_call_operand.vmem [shape: bf16[2,8,16], index: 4, kind: output, shape index: {}]  }
   0x1 LB: > { %s555_s16 = sadd.s32 4294967295, %s654_s15   ;;  %p559_p0 = scmp.ge.s32.totalorder %s654_s15, 1  ;;  %s654_s15 = sphi %s689_s15, %s14_s15  }
   0x2   : > { %p161_p1 = scmp.lt.s32.totalorder %s654_s15, 3 }
   0x4   : > { %p162_p2 = pnand %p559_p0, %p161_p1 }
   0x5   : > { %p185_p3 = scmp.lt.s32.totalorder (!%p162_p2), %s555_s16, 1  ;;  %v257_v0 = vlaneseq (!%p162_p2)  ;;  %v656_v1 = vmov (!%p162_p2), 1983009808   ;;  %v657_v3 = vmov (!%p162_p2), 0.0   ;;  %vm658_vm0 = vmmov (!%p162_p2), 0   ;;  %s659_s21 = smov (!%p162_p2), 126  }
   0x6   : > { %165 = sbr.rel (%p162_p2) target bundleno = 380 (0x17c), region = 36  ;;  %v255_v2 = vunpack.c.l.s4 (!%p162_p2), %v656_v1  ;;  %586 = vmatprep.subr.bf16.mxu1 (!%p162_p2), %v657_v3  ;;  %598 = vmatprep.subr.bf16.mxu0 (!%p162_p2), %v657_v3  ;;  %vm201_vm1 = vcmask (!%p162_p2), 1041408   ;;  %v196_v11 = vld [vmem:[%s747_s1] sm:$0xf] (!%p162_p2)  ;;  %vm197_vm2 = vcmask (!%p162_p2), 31744   ;;  %s660_s24 = smov (!%p162_p2), 127  }
   0x7   : > { %v258_v4 = vshrl.u32 (!%p162_p2), %v257_v0, 7  ;;  %588 = vmatprep.mubr.msk.bf16.mxu1 (!%p162_p2), %vm658_vm0, %v657_v3  ;;  %600 = vmatprep.mubr.msk.bf16.mxu0 (!%p162_p2), %vm658_vm0, %v657_v3  ;;  %s661_s25 = smov (!%p162_p2), 125   ;;  %s662_s26 = smov (!%p162_p2), 124   ;;  %v194_v12 = vld [vmem:[%s748_s2] sm:$0xff] (!%p162_p2)  ;;  %v663_v14 = vmov (!%p162_p2), 0   ;;  %vm500_vm4 = vcmask (!%p162_p2), 125952  }
   0x8   : > { %v256_v5 = vunpack.c.0.s8 (!%p162_p2), %v255_v2  ;;  %v490_v13 = vld [vmem:[%s749_s3] sm:$0xff] (!%p162_p2)  ;;  %646 = vset.pattern.permute.xlu0 (!%p162_p2), %v663_v14  ;;  %647 = vset.pattern.permute.xlu1 (!%p162_p2), %v663_v14  ;;  %v565_v17 = vld [vmem:[%s747_s1 + $0x8] sm:$0xf] (!%p162_p2)  ;;  %v568_v24 = vld [vmem:[%s747_s1 + $0xc] sm:$0xf] (!%p162_p2) }
   0x9   : > { %v563_v21 = vld [vmem:[%s747_s1 + $0x4] sm:$0xf] (!%p162_p2)  ;;  %v571_v26 = vld [vmem:[%s747_s1 + $0x10] sm:$0xf] (!%p162_p2) }
   0xa   : > { %v259_v6 = vsub.s32 (!%p162_p2), %v256_v5, %v258_v4 }
   0xd   : > { %s752_s16 = smov (!%p185_p3, %s555_s16), 1 }
   0xe   : > { %s560_s17 = sshll.u32 %s752_s16, 1  ;;  %s561_s13 = sshll.u32 %s752_s16, 2 }
   0xf   : > { %s188_s20 = scalar_lea.vmem %s746_s0, %s560_s17  ;;  %s192_s18 = scalar_lea.vmem %s750_s4, %s561_s13 }
  0x10   : > { %v566_v7 = vld.sshfl [vmem:[%s188_s20] sm:$0x3 pattern:$0x76325410] }
  0x11   : > { %v195_v8 = vld [vmem:[%s188_s20] sm:$0x3]  ;;  %321 = vrot.lane.b32.xlu0 %v566_v7, %s659_s21 }
  0x12   : > { %v260_v9 = vrot.slane %v195_v8, %v259_v6  ;;  %v203_v10 = vsel %vm201_vm1, %v195_v8, 0 }
  0x13   : > { %587 = vmatpush3.bf16.msra.mxu1 %v203_v10 }
  0x14   : > { %261 = vrot.lane.b32.xlu1 %v260_v9, %s660_s24  ;;  %592 = vmatprep.subr.bf16.mxu1 %v657_v3 }
  0x15   : > { %381 = vrot.lane.b32.xlu0 %v566_v7, %s661_s25 }
  0x16   : > { %589 = vmatmul.mubr.msk.bf16.vlgmr.msra.gmra.mrb[0].mxu1 %vm197_vm2, %v196_v11 }
  0x17   : > { %594 = vmatprep.mubr.msk.bf16.mxu1 %vm658_vm0, %v657_v3 }
  0x18   : > { %441 = vrot.lane.b32.xlu1 %v566_v7, %s662_s26 }
  0x19   : > { %247 = vperm.xlu0 %646, %v194_v12  }
  0x1c   : > { %494 = vperm.xlu1 %647, %v490_v13  }
  0x83   : > { %v322_v15 = vpop.permute.xlu0 %321 }
  0x84   : > { %v327_v16 = vsel %vm201_vm1, %v322_v15, 0 }
  0x85   : > { %599 = vmatpush3.bf16.msra.mxu0 %v327_v16 }
  0x86   : > { %v262_v18 = vpop.permute.xlu1 %261  ;;  %604 = vmatprep.subr.bf16.mxu0 %v657_v3 }
  0x87   : > { %v267_v19 = vsel %vm201_vm1, %v262_v18, 0  ;;  %v382_v20 = vpop.permute.xlu0 %381 }
  0x88   : > { %593 = vmatpush3.bf16.msra.mxu1 %v267_v19  ;;  %v387_v22 = vsel %vm201_vm1, %v382_v20, 0  ;;  %601 = vmatmul.mubr.msk.bf16.vlgmr.msra.gmra.mrb[0].mxu0 %vm197_vm2, %v565_v17 }
  0x89   : > { %605 = vmatpush3.bf16.msra.mxu0 %v387_v22  ;;  %606 = vmatprep.mubr.msk.bf16.mxu0 %vm658_vm0, %v657_v3 }
  0x8a   : > { %610 = vmatprep.subr.bf16.mxu0 %v657_v3  ;;  %v442_v23 = vpop.permute.xlu1 %441 }
  0x8b   : > { %595 = vmatmul.mubr.msk.bf16.vlgmr.msra.gmra.mrb[0].mxu1 %vm197_vm2, %v563_v21  ;;  %v447_v25 = vsel %vm201_vm1, %v442_v23, 0 }
  0x94   : > { %607 = vmatmul.mubr.msk.bf16.vlgmr.msra.gmra.mrb[0].mxu0 %vm197_vm2, %v568_v24 }
  0x95   : > { %611 = vmatpush3.bf16.msra.mxu0 %v447_v25  ;;  %612 = vmatprep.mubr.msk.bf16.mxu0 %vm658_vm0, %v657_v3 }
  0x98   : > { %v248_v31 = vpop.permute.xlu0 %247 }
  0x9b   : > { %v495_v34 = vpop.permute.xlu1 %494 }
  0xa0   : > { %613 = vmatmul.mubr.msk.bf16.vlgmr.msra.gmra.mrb[0].mxu0 %vm197_vm2, %v571_v26 }
 0x15e   : > { %v303_v27 = vpop.f32.mrb[0].mxu1 }
 0x15f   : > { %v596_v28 = vpop.f32.mrb[1].mxu1  ;;  %v616_v32 = vadd.f32 %v303_v27, %v248_v31 }
 0x160   : > { %v306_v29 = vpop.f32.mrb[2].mxu1 }
 0x161   : > { %v597_v30 = vpop.f32.mrb[3].mxu1 }
 0x173   : > { %v483_v33 = vpop.f32.mrb[0].mxu0 }
 0x174   : > { %v617_v35 = vadd.f32 %v616_v32, %v483_v33  ;;  %v614_v36 = vpop.f32.mrb[1].mxu0 }
 0x175   : > { %v486_v37 = vpop.f32.mrb[2].mxu0 }
 0x176   : > { %vm491_vm3 = vcmp.ge.f32.partialorder %v617_v35, 0.0  ;;  %v497_v38 = vmul.f32 %v617_v35, %v495_v34  ;;  %v615_v39 = vpop.f32.mrb[3].mxu0 }
 0x178   : > { %v498_v40 = vsel %vm491_vm3, %v617_v35, %v497_v38 }
 0x179   : > { %v499_v41 = vpack.c.bf16 %v498_v40, %v498_v40 }
 0x17b   : > { %501 = vst.msk [vmem:[%s192_s18] sm:$0xf] %vm500_vm4, %v499_v41 }
 0x17c PF: > { %s14_s15 = sadd.s32 1, %s654_s15  }
 0x17d   : > { %p11_p4 = scmp.ge.s32.totalorder %s14_s15, 4  }
 0x17f   :  { %13 = sbr.rel (!%p11_p4) target bundleno = 1 (0x1), region = 70 }

// kernel: _lambda_.25
= control target key start
LH: loop header
LB: loop body
LE: loop exit
PB: predicated region body
PF: predicated region fallthrough
CT: control target
= control target key end

     0   :  { %s431_s15 = smov 0   ;;  %s461_s0 = inlined_call_operand.vmem [shape: bf16[2,64,8], index: 0, kind: input, shape index: {}]   ;;  %s462_s1 = inlined_call_operand.vmem [shape: bf16[1,8,64], index: 1, kind: input, shape index: {}]   ;;  %s463_s2 = inlined_call_operand.vmem [shape: f32[8,1], index: 2, kind: input, shape index: {}]   ;;  %s464_s3 = inlined_call_operand.vmem [shape: f32[8,1], index: 3, kind: input, shape index: {}]   ;;  %s465_s4 = inlined_call_operand.vmem [shape: bf16[2,8,8], index: 4, kind: output, shape index: {}]  }
   0x1 LB: > { %s346_s16 = sadd.s32 4294967295, %s401_s15   ;;  %p350_p0 = scmp.ge.s32.totalorder %s401_s15, 1  ;;  %s401_s15 = sphi %s431_s15, %s14_s15  }
   0x2   : > { %p162_p1 = scmp.lt.s32.totalorder %s401_s15, 3 }
   0x4   : > { %p163_p2 = pnand %p350_p0, %p162_p1 }
   0x5   : > { %p187_p3 = scmp.lt.s32.totalorder (!%p163_p2), %s346_s16, 1  ;;  %v403_v0 = vmov (!%p163_p2), 0.0   ;;  %vm404_vm0 = vmmov (!%p163_p2), 0   ;;  %v197_v1 = vld [vmem:[%s463_s2] sm:$0xff] (!%p163_p2)  ;;  %v405_v2 = vmov (!%p163_p2), 0   ;;  %vm231_vm1 = vcmask (!%p163_p2), 523264  }
   0x6   : > { %166 = sbr.rel (%p163_p2) target bundleno = 252 (0xfc), region = 36  ;;  %367 = vmatprep.subr.bf16.mxu0 (!%p163_p2), %v403_v0  ;;  %375 = vmatprep.mubr.msk.bf16.mxu0 (!%p163_p2), %vm404_vm0, %v403_v0  ;;  %v281_v3 = vld [vmem:[%s464_s3] sm:$0xff] (!%p163_p2)  ;;  %vm291_vm3 = vcmask (!%p163_p2), 60416  }
   0x7   : > { %390 = vset.pattern.permute.xlu0 (!%p163_p2), %v405_v2  ;;  %v206_v8 = vld [vmem:[%s462_s1] sm:$0xf] (!%p163_p2) }
   0x8   : > { %277 = vperm.xlu0 (!%p163_p2), %390, %v197_v1  }
   0xc   : > { %285 = vperm.xlu0 (!%p163_p2), %390, %v281_v3  }
   0xd   : > { %s467_s16 = smov (!%p187_p3, %s346_s16), 1 }
   0xe   : > { %s361_s19 = sshll.u32 %s467_s16, 5  ;;  %s353_s27 = sshll.u32 %s467_s16, 2 }
   0xf   : > { %s191_s24 = scalar_lea.vmem %s461_s0, %s361_s19  ;;  %s195_s30 = scalar_lea.vmem %s465_s4, %s353_s27 }
  0x10   : > { %v391_v4 = vld [vmem:[%s191_s24] sm:$0xff]   ;;  %v392_v5 = vld [vmem:[%s191_s24 + $0x8] sm:$0xff]   ;;  %v393_v6 = vld [vmem:[%s191_s24 + $0x10] sm:$0xff]  }
  0x11   : > { %368 = vmatpush3.bf16.msra.mxu0 %v391_v4  ;;  %v394_v7 = vld [vmem:[%s191_s24 + $0x18] sm:$0xff]  }
  0x12   : > { %369 = vmatprep.subr.bf16.mxu0 %v403_v0 }
  0x15   : > { %370 = vmatpush3.bf16.msra.mxu0 %v392_v5 }
  0x16   : > { %371 = vmatprep.subr.bf16.mxu0 %v403_v0 }
  0x19   : > { %372 = vmatpush3.bf16.msra.mxu0 %v393_v6 }
  0x1a   : > { %373 = vmatprep.subr.bf16.mxu0 %v403_v0 }
  0x1d   : > { %374 = vmatpush3.bf16.msra.mxu0 %v394_v7 }
  0x20   : > { %376 = vmatmul.mubr.msk.bf16.vlgmr.msra.gmra.mrb[0].mxu0 %vm231_vm1, %v206_v8 }
  0x87   : > { %v278_v9 = vpop.permute.xlu0 %277 }
  0x8b   : > { %v286_v13 = vpop.permute.xlu0 %285 }
  0xf3   : > { %v269_v10 = vpop.f32.mrb[0].mxu0 }
  0xf4   : > { %v280_v11 = vadd.f32 %v278_v9, %v269_v10  ;;  %v377_v12 = vpop.f32.mrb[1].mxu0 }
  0xf5   : > { %v272_v14 = vpop.f32.mrb[2].mxu0 }
  0xf6   : > { %vm282_vm2 = vcmp.ge.f32.partialorder %v280_v11, 0.0  ;;  %v288_v15 = vmul.f32 %v286_v13, %v280_v11  ;;  %v378_v16 = vpop.f32.mrb[3].mxu0 }
  0xf8   : > { %v289_v17 = vsel %vm282_vm2, %v280_v11, %v288_v15 }
  0xf9   : > { %v290_v18 = vpack.c.bf16 %v289_v17, %v289_v17 }
  0xfb   : > { %292 = vst.msk [vmem:[%s195_s30] sm:$0xf] %vm291_vm3, %v290_v18 }
  0xfc PF: > { %s14_s15 = sadd.s32 1, %s401_s15  }
  0xfd   : > { %p11_p4 = scmp.ge.s32.totalorder %s14_s15, 4  }
  0xff   :  { %13 = sbr.rel (!%p11_p4) target bundleno = 1 (0x1), region = 66 }

// kernel: _lambda_.26
= control target key start
LH: loop header
LB: loop body
LE: loop exit
PB: predicated region body
PF: predicated region fallthrough
CT: control target
= control target key end

     0   :  { %s1148_s17 = smov 0   ;;  %s1244_s0 = inlined_call_operand.vmem [shape: bf16[2,8,10], index: 0, kind: input, shape index: {}]   ;;  %s1245_s1 = inlined_call_operand.vmem [shape: f32[2,8,8], index: 1, kind: input, shape index: {}]   ;;  %s1246_s2 = inlined_call_operand.vmem [shape: bf16[3,8,8], index: 2, kind: input, shape index: {}]   ;;  %s1247_s3 = inlined_call_operand.vmem [shape: f32[8,1], index: 3, kind: input, shape index: {}]   ;;  %s1248_s4 = inlined_call_operand.vmem [shape: bf16[3,8,8], index: 4, kind: input, shape index: {}]   ;;  %s1249_s5 = inlined_call_operand.vmem [shape: f32[8,1], index: 5, kind: input, shape index: {}]   ;;  %s1250_s6 = inlined_call_operand.vmem [shape: bf16[8,8], index: 6, kind: input, shape index: {}]   ;;  %s1251_s7 = inlined_call_operand.vmem [shape: f32[8,1], index: 7, kind: input, shape index: {}]   ;;  %s1252_s8 = inlined_call_operand.vmem [shape: bf16[8,8], index: 8, kind: input, shape index: {}]   ;;  %s1253_s9 = inlined_call_operand.vmem [shape: f32[8,1], index: 9, kind: input, shape index: {}]   ;;  %s1254_s10 = inlined_call_operand.vmem [shape: bf16[2,8,8], index: 10, kind: output, shape index: {0}]   ;;  %s1255_s11 = inlined_call_operand.vmem [shape: f32[2,8,8], index: 11, kind: output, shape index: {1}]  }
   0x1 LB: > { %s942_s18 = sadd.s32 4294967295, %s1080_s17   ;;  %p946_p0 = scmp.ge.s32.totalorder %s1080_s17, 1  ;;  %s1080_s17 = sphi %s1148_s17, %s22_s17  }
   0x2   : > { %p348_p1 = scmp.lt.s32.totalorder %s1080_s17, 3 }
   0x4   : > { %p349_p2 = pnand %p946_p0, %p348_p1 }
   0x5   : > { %p394_p3 = scmp.lt.s32.totalorder (!%p349_p2), %s942_s18, 1  ;;  %v1082_v0 = vmov (!%p349_p2), 0.0   ;;  %vm1083_vm0 = vmmov (!%p349_p2), 0   ;;  %vm419_vm1 = vcmask (!%p349_p2), 1043456   ;;  %v414_v4 = vld [vmem:[%s1246_s2] sm:$0xf] (!%p349_p2) }
   0x6   : > { %352 = sbr.rel (%p349_p2) target bundleno = 847 (0x34f), region = 60  ;;  %985 = vmatprep.subr.bf16.mxu0 (!%p349_p2), %v1082_v0  ;;  %991 = vmatprep.subr.bf16.mxu1 (!%p349_p2), %v1082_v0  ;;  %vm415_vm2 = vcmask (!%p349_p2), 64512   ;;  %v469_v5 = vld [vmem:[%s1248_s4] sm:$0xf] (!%p349_p2)  ;;  %s1084_s27 = smov (!%p349_p2), 127   ;;  %v1086_v7 = vmov (!%p349_p2), 0  }
   0x7   : > { %987 = vmatprep.mubr.msk.bf16.mxu0 (!%p349_p2), %vm1083_vm0, %v1082_v0  ;;  %993 = vmatprep.mubr.msk.bf16.mxu1 (!%p349_p2), %vm1083_vm0, %v1082_v0  ;;  %v412_v6 = vld [vmem:[%s1249_s5] sm:$0xff] (!%p349_p2)  ;;  %s1085_s30 = smov (!%p349_p2), 126   ;;  %v958_v15 = vld [vmem:[%s1246_s2 + $0x8] sm:$0xf] (!%p349_p2)  ;;  %s1087_s13 = smov (!%p349_p2), 1   ;;  %vm841_vm3 = vcmask (!%p349_p2), 60416  }
   0x8   : > { %1065 = vset.pattern.permute.xlu1 (!%p349_p2), %v1086_v7  ;;  %1066 = vset.pattern.permute.xlu0 (!%p349_p2), %v1086_v7  ;;  %v411_v8 = vld [vmem:[%s1247_s3] sm:$0xff] (!%p349_p2)  ;;  %v960_v16 = vld [vmem:[%s1248_s4 + $0x8] sm:$0xf] (!%p349_p2) }
   0x9   : > { %515 = vperm.xlu1 (!%p349_p2), %1065, %v412_v6   ;;  %v953_v11 = vld [vmem:[%s1246_s2 + $0x4] sm:$0xf] (!%p349_p2)  ;;  %v725_v38 = vld [vmem:[%s1250_s6] sm:$0xf] (!%p349_p2) }
   0xa   : > { %v956_v12 = vld [vmem:[%s1248_s4 + $0x4] sm:$0xf] (!%p349_p2)  ;;  %v778_v39 = vld [vmem:[%s1252_s8] sm:$0xf] (!%p349_p2) }
   0xb   : > { %v726_v17 = vld [vmem:[%s1251_s7] sm:$0xff] (!%p349_p2) }
   0xc   : > { %v779_v50 = vld [vmem:[%s1253_s9] sm:$0xff] (!%p349_p2) }
   0xd   : > { %s1257_s18 = smov (!%p394_p3, %s942_s18), 1  ;;  %465 = vperm.xlu1 %1065, %v411_v8  }
   0xe   : > { %s947_s19 = sshll.u32 %s1257_s18, 2  ;;  %s948_s16 = sshll.u32 %s1257_s18, 3 }
   0xf   : > { %s397_s22 = scalar_lea.vmem %s1244_s0, %s947_s19  ;;  %s409_s25 = scalar_lea.vmem %s1255_s11, %s948_s16 }
  0x10   : > { %v1166_v1 = vld [vmem:[%s397_s22] sm:$0xf]  ;;  %s401_s22 = scalar_lea.vmem %s1245_s1, %s948_s16 }
  0x11   : > { %v954_v2 = vcombine.low %v1166_v1, %v1166_v1  ;;  %v421_v3 = vsel %vm419_vm1, %v1166_v1, 0  ;;  %v828_v51 = vunpack.c.l.bf16 %v1166_v1  ;;  %v843_v55 = vld [vmem:[%s401_s22] sm:$0xff] }
  0x12   : > { %986 = vmatpush3.bf16.msra.mxu0 %v421_v3  ;;  %992 = vmatpush3.bf16.msra.mxu1 %v421_v3 }
  0x13   : > { %524 = vrot.lane.b32.xlu0 %v954_v2, %s1084_s27  ;;  %997 = vmatprep.subr.bf16.mxu0 %v1082_v0 }
  0x14   : > { %1003 = vmatprep.subr.bf16.mxu1 %v1082_v0 }
  0x15   : > { %988 = vmatmul.mubr.msk.bf16.vlgmr.msra.gmra.mrb[0].mxu0 %vm415_vm2, %v414_v4  ;;  %994 = vmatmul.mubr.msk.bf16.vlgmr.msra.gmra.mrb[0].mxu1 %vm415_vm2, %v469_v5 }
  0x16   : > { %999 = vmatprep.mubr.msk.bf16.mxu0 %vm1083_vm0, %v1082_v0  ;;  %1005 = vmatprep.mubr.msk.bf16.mxu1 %vm1083_vm0, %v1082_v0 }
  0x17   : > { %621 = vrot.lane.b32.xlu0 %v954_v2, %s1085_s30 }
  0x1b   : > { %729 = vperm.xlu0 %1066, %v726_v17  }
  0x85   : > { %v525_v9 = vpop.permute.xlu0 %524 }
  0x86   : > { %v530_v10 = vsel %vm419_vm1, %v525_v9, 0 }
  0x87   : > { %998 = vmatpush3.bf16.msra.mxu0 %v530_v10  ;;  %1004 = vmatpush3.bf16.msra.mxu1 %v530_v10 }
  0x88   : > { %1009 = vmatprep.subr.bf16.mxu0 %v1082_v0  ;;  %1015 = vmatprep.subr.bf16.mxu1 %v1082_v0  ;;  %v516_v18 = vpop.permute.xlu1 %515 }
  0x89   : > { %v622_v13 = vpop.permute.xlu0 %621 }
  0x8a   : > { %1000 = vmatmul.mubr.msk.bf16.vlgmr.msra.gmra.mrb[0].mxu0 %vm415_vm2, %v953_v11  ;;  %1006 = vmatmul.mubr.msk.bf16.vlgmr.msra.gmra.mrb[0].mxu1 %vm415_vm2, %v956_v12  ;;  %v627_v14 = vsel %vm419_vm1, %v622_v13, 0 }
  0x8b   : > { %1010 = vmatpush3.bf16.msra.mxu0 %v627_v14  ;;  %1016 = vmatpush3.bf16.msra.mxu1 %v627_v14 }
  0x8c   : > { %1011 = vmatprep.mubr.msk.bf16.mxu0 %vm1083_vm0, %v1082_v0  ;;  %1017 = vmatprep.mubr.msk.bf16.mxu1 %vm1083_vm0, %v1082_v0  ;;  %v466_v29 = vpop.permute.xlu1 %465 }
  0x8d   : > { %1021 = vmatprep.subr.bf16.mxu0 %v1082_v0  ;;  %1027 = vmatprep.subr.bf16.mxu1 %v1082_v0 }
  0x96   : > { %1012 = vmatmul.mubr.msk.bf16.vlgmr.msra.gmra.mrb[0].mxu0 %vm415_vm2, %v958_v15  ;;  %1018 = vmatmul.mubr.msk.bf16.vlgmr.msra.gmra.mrb[0].mxu1 %vm415_vm2, %v960_v16 }
  0x97   : > { %1023 = vmatprep.mubr.msk.bf16.mxu0 %vm1083_vm0, %v1082_v0  ;;  %1029 = vmatprep.mubr.msk.bf16.mxu1 %vm1083_vm0, %v1082_v0 }
  0x9a   : > { %v730_v40 = vpop.permute.xlu0 %729 }
 0x169   : > { %v663_v19 = vpop.f32.mrb[0].mxu0  ;;  %v709_v20 = vpop.f32.mrb[0].mxu1 }
 0x16a   : > { %v1034_v21 = vadd.f32 %v709_v20, %v516_v18  ;;  %v1013_v22 = vpop.f32.mrb[1].mxu0  ;;  %v1019_v23 = vpop.f32.mrb[1].mxu1  ;;  %v1033_v30 = vadd.f32 %v663_v19, %v466_v29 }
 0x16b   : > { %v666_v24 = vpop.f32.mrb[2].mxu0  ;;  %v712_v25 = vpop.f32.mrb[2].mxu1 }
 0x16c   : > { %v962_v26 = vmul.f32 -1.442695, %v1034_v21  ;;  %v1014_v27 = vpop.f32.mrb[3].mxu0  ;;  %v1020_v28 = vpop.f32.mrb[3].mxu1 }
 0x16e   : > { %1068 = vpow2.f32 %v962_v26 }
 0x16f   : > { %1070 = vtanh.f32 %v1033_v30 }
 0x178   : > { %v1069_v31 = vpop.eup %1068 }
 0x179   : > { %v720_v32 = vadd.f32 1.0, %v1069_v31  ;;  %v1071_v33 = vpop.eup %1070 }
 0x17b   : > { %1072 = vrcp.f32 %v720_v32 }
 0x185   : > { %v1073_v34 = vpop.eup %1072 }
 0x186   : > { %v723_v35 = vmul.f32 %v1073_v34, %v1071_v33 }
 0x188   : > { %v724_v36 = vpack.c.bf16 %v723_v35, %v723_v35 }
 0x18a   : > { %v736_v37 = vsel %vm419_vm1, %v724_v36, 0 }
 0x18b   : > { %1022 = vmatpush3.bf16.msra.mxu0 %v736_v37  ;;  %1028 = vmatpush3.bf16.msra.mxu1 %v736_v37 }
 0x18e   : > { %1024 = vmatmul.mubr.msk.bf16.vlgmr.msra.gmra.mrb[4].mxu0 %vm415_vm2, %v725_v38  ;;  %1030 = vmatmul.mubr.msk.bf16.vlgmr.msra.gmra.mrb[4].mxu1 %vm415_vm2, %v778_v39 }
 0x261   : > { %v772_v41 = vpop.f32.mrb[4].mxu0  ;;  %v822_v42 = vpop.f32.mrb[4].mxu1 }
 0x262   : > { %v773_v43 = vadd.f32 %v772_v41, %v730_v40  ;;  %v1025_v44 = vpop.f32.mrb[5].mxu0  ;;  %v1031_v45 = vpop.f32.mrb[5].mxu1 }
 0x263   : > { %v775_v46 = vpop.f32.mrb[6].mxu0  ;;  %v825_v47 = vpop.f32.mrb[6].mxu1 }
 0x264   : > { %830 = vrot.lane.b32.xlu1 %v773_v43, %s1087_s13  ;;  %v1026_v48 = vpop.f32.mrb[7].mxu0  ;;  %v1032_v49 = vpop.f32.mrb[7].mxu1 }
 0x268   : > { %782 = vperm.xlu1 %1065, %v779_v50  }
 0x2d6   : > { %v831_v52 = vpop.permute.xlu1 %830 }
 0x2d7   : > { %v833_v53 = vadd.f32 %v831_v52, %v828_v51 }
 0x2d9   : > { %v968_v54 = vpack.c.bf16 %v833_v53, %v833_v53 }
 0x2db   : > { %838 = vrot.lane.b32.xlu0 %v968_v54, %s1084_s27  ;;  %s405_s27 = scalar_lea.vmem %s1254_s10, %s947_s19 }
 0x2e7   : > { %v783_v56 = vpop.permute.xlu1 %782 }
 0x2e8   : > { %v823_v57 = vadd.f32 %v822_v42, %v783_v56 }
 0x2ea   : > { %v844_v58 = vadd.f32 %v843_v55, %v823_v57 }
 0x2ec   : > { %845 = vst.msk [vmem:[%s409_s25] sm:$0xff] %vm415_vm2, %v844_v58 }
 0x34d   : > { %v839_v59 = vpop.permute.xlu0 %838 }
 0x34e   : > { %842 = vst.msk [vmem:[%s405_s27] sm:$0xf] %vm841_vm3, %v839_v59 }
 0x34f PF: > { %s22_s17 = sadd.s32 1, %s1080_s17  }
 0x350   : > { %p19_p4 = scmp.ge.s32.totalorder %s22_s17, 4  }
 0x352   :  { %21 = sbr.rel (!%p19_p4) target bundleno = 1 (0x1), region = 109 }

// kernel: _lambda_.27
= control target key start
LH: loop header
LB: loop body
LE: loop exit
PB: predicated region body
PF: predicated region fallthrough
CT: control target
= control target key end

     0   :  { %s1432_s0 = inlined_call_operand.vmem [shape: bf16[2,8,12], index: 0, kind: input, shape index: {}]   ;;  %s1433_s1 = inlined_call_operand.vmem [shape: f32[2,8,8], index: 1, kind: input, shape index: {}]   ;;  %s1434_s2 = inlined_call_operand.vmem [shape: bf16[3,8,8], index: 2, kind: input, shape index: {}]   ;;  %s1435_s3 = inlined_call_operand.vmem [shape: f32[8,1], index: 3, kind: input, shape index: {}]   ;;  %s1436_s4 = inlined_call_operand.vmem [shape: bf16[3,8,8], index: 4, kind: input, shape index: {}]   ;;  %s1437_s5 = inlined_call_operand.vmem [shape: f32[8,1], index: 5, kind: input, shape index: {}]   ;;  %s1438_s6 = inlined_call_operand.vmem [shape: bf16[8,8], index: 6, kind: input, shape index: {}]   ;;  %s1439_s7 = inlined_call_operand.vmem [shape: f32[8,1], index: 7, kind: input, shape index: {}]   ;;  %s1440_s8 = inlined_call_operand.vmem [shape: bf16[8,8], index: 8, kind: input, shape index: {}]   ;;  %s1441_s9 = inlined_call_operand.vmem [shape: f32[8,1], index: 9, kind: input, shape index: {}]   ;;  %s1442_s10 = inlined_call_operand.hbm [shape: bf16[2,8,8], index: 10, kind: output, shape index: {0}]   ;;  %s1443_s11 = inlined_call_operand.vmem [shape: f32[2,8,8], index: 11, kind: output, shape index: {1}]  }
   0x1   :  { %1444 = sst [smem:[#allocation5_spill]] %s1432_s0 }
   0x2   :  { %1445 = sst [smem:[#allocation6_spill]] %s1434_s2 }
   0x3   :  { %1446 = sst [smem:[#allocation7_spill]] %s1435_s3 }
   0x4   :  { %17 = vsyncpa [#allocation3], 0 }
   0x5   :  { %19 = vsyncpa [#allocation3 + $0x1], 0  ;;  %s1257_s17 = smov 0   ;;  %s1259_s18 = smov 0  }
   0x6   :  { %s1261_s19 = smov 0   ;;  %s1263_s20 = smov 0  }
   0x7 LB: > { %s1278_s21 = sadd.s32 4294967295, %s1188_s20   ;;  %s962_s22 = sadd.s32 4294967294, %s1188_s20   ;;  %s1188_s20 = sphi %s1263_s20, %s1455_s20   ;;  %s1184_s19 = sphi %s1261_s19, %s1454_s19   ;;  %s1180_s18 = sphi %s1259_s18, %s1453_s18   ;;  %s1176_s17 = sphi %s1257_s17, %s1452_s17  }
   0x8   : > { %s1282_s23 = sadd.s32 1, %s1188_s20   ;;  %s252_s24 = sadd.s32 1, %s1184_s19 }
   0x9   : > { %s249_s25 = ssub.s32 %s1188_s20, %s1282_s23  ;;  %p262_p0 = scmp.ne.s32.totalorder %s1184_s19, %s1180_s18 }
   0xa   : > { %p250_p1 = scmp.eq.s32.totalorder %s249_s25, 0  ;;  %p263_p2 = scmp.eq.s32.totalorder %s1278_s21, 1 }
   0xb   : > { %p268_p3 = scmp.ne.s32.totalorder %s1180_s18, %s1176_s17  ;;  %p269_p4 = scmp.eq.s32.totalorder %s962_s22, 1 }
   0xc   : > { %s1293_s26 = scalar_select %p250_p1, %s1184_s19, %s252_s24  }
   0xd   : > { %p1295_p5 = por %p263_p2, %p262_p0  ;;  %p1299_p6 = por %p269_p4, %p268_p3 }
   0xe   : > { %p965_p7 = scmp.ge.s32.totalorder %s1188_s20, 1  ;;  %p351_p8 = scmp.lt.s32.totalorder %s1188_s20, 3 }
  0x10   : > { %p352_p9 = pnand %p965_p7, %p351_p8 }
  0x11   : > { %p398_p10 = scmp.lt.s32.totalorder (!%p352_p9), %s1278_s21, 1  ;;  %v1190_v0 = vmov (!%p352_p9), 0.0   ;;  %vm1191_vm0 = vmmov (!%p352_p9), 0   ;;  %vm419_vm1 = vcmask (!%p352_p9), 1043456   ;;  %s1449_s0 = sld [smem:[#allocation5_spill]] (!%p352_p9)  ;;  %vm415_vm2 = vcmask (!%p352_p9), 64512  }
  0x12   : > { %355 = sbr.rel (%p352_p9) target bundleno = 873 (0x369), region = 60  ;;  %1006 = vmatprep.subr.bf16.mxu0 (!%p352_p9), %v1190_v0  ;;  %1012 = vmatprep.subr.bf16.mxu1 (!%p352_p9), %v1190_v0  ;;  %s1450_s2 = sld [smem:[#allocation6_spill]] (!%p352_p9)  ;;  %v469_v5 = vld [vmem:[%s1436_s4] sm:$0xf] (!%p352_p9)  ;;  %v1194_v7 = vmov (!%p352_p9), 0   ;;  %vm841_vm3 = vcmask (!%p352_p9), 60416  }
  0x13   : > { %1008 = vmatprep.mubr.msk.bf16.mxu0 (!%p352_p9), %vm1191_vm0, %v1190_v0  ;;  %1014 = vmatprep.mubr.msk.bf16.mxu1 (!%p352_p9), %vm1191_vm0, %v1190_v0  ;;  %s1192_s25 = smov (!%p352_p9), 126   ;;  %v412_v6 = vld [vmem:[%s1437_s5] sm:$0xff] (!%p352_p9)  ;;  %s1193_s13 = smov (!%p352_p9), 124   ;;  %v979_v16 = vld [vmem:[%s1436_s4 + $0x8] sm:$0xf] (!%p352_p9) }
  0x14   : > { %1117 = vset.pattern.permute.xlu1 (!%p352_p9), %v1194_v7  ;;  %1118 = vset.pattern.permute.xlu0 (!%p352_p9), %v1194_v7  ;;  %s1451_s3 = sld [smem:[#allocation7_spill]] (!%p352_p9)  ;;  %v975_v12 = vld [vmem:[%s1436_s4 + $0x4] sm:$0xf] (!%p352_p9)  ;;  %v725_v38 = vld [vmem:[%s1438_s6] sm:$0xf] (!%p352_p9)  ;;  %s389_s16 = sand.u32 (!%p352_p9), 1, %s1180_s18  }
  0x15   : > { %515 = vperm.xlu1 (!%p352_p9), %1117, %v412_v6   ;;  %v726_v17 = vld [vmem:[%s1439_s7] sm:$0xff] (!%p352_p9) }
  0x16   : > { %v778_v39 = vld [vmem:[%s1440_s8] sm:$0xf] (!%p352_p9) }
  0x17   : > { %v779_v50 = vld [vmem:[%s1441_s9] sm:$0xff] (!%p352_p9) }
  0x18   : > { %v414_v4 = vld [vmem:[%s1450_s2] sm:$0xf] (!%p352_p9)  ;;  %v972_v11 = vld [vmem:[%s1450_s2 + $0x4] sm:$0xf] (!%p352_p9)  ;;  %v977_v15 = vld [vmem:[%s1450_s2 + $0x8] sm:$0xf] (!%p352_p9) }
  0x19   : > { %s1307_s29 = scalar_select %p398_p10, %s1278_s21, 1 }
  0x1a   : > { %v411_v8 = vld [vmem:[%s1451_s3] sm:$0xff]  ;;  %s986_s2 = sshll.u32 %s1278_s21, 6 }
  0x1b   : > { %s967_s30 = sshll.u32 %s1307_s29, 2  ;;  %465 = vperm.xlu1 %1117, %v411_v8   ;;  %s968_s22 = sshll.u32 %s1307_s29, 3 }
  0x1c   : > { %s401_s14 = scalar_lea.vmem %s1449_s0, %s967_s30  ;;  %s405_s12 = scalar_lea.vmem %s1433_s1, %s968_s22 }
  0x1d   : > { %v1315_v1 = vld [vmem:[%s401_s14] sm:$0xf]  ;;  %s1195_s14 = smov 2   ;;  %s409_s15 = scalar_lea.vmem %s1443_s11, %s968_s22 }
  0x1e   : > { %v973_v2 = vcombine.low %v1315_v1, %v1315_v1  ;;  %v421_v3 = vsel %vm419_vm1, %v1315_v1, 0  ;;  %v828_v51 = vunpack.c.l.bf16 %v1315_v1  ;;  %v843_v55 = vld [vmem:[%s405_s12] sm:$0xff]  ;;  %s966_s0 = sshll.u32 %s389_s16, 2  ;;  %s1390_s30 = scalar_lea.hbm %s1442_s10, %s986_s2 }
  0x1f   : > { %1007 = vmatpush3.bf16.msra.mxu0 %v421_v3  ;;  %1013 = vmatpush3.bf16.msra.mxu1 %v421_v3  ;;  %s847_s22 = scalar_lea.sflag [#allocation3], %s389_s16 }
  0x20   : > { %524 = vrot.lane.b32.xlu0 %v973_v2, %s1192_s25  ;;  %1018 = vmatprep.subr.bf16.mxu0 %v1190_v0 }
  0x21   : > { %1024 = vmatprep.subr.bf16.mxu1 %v1190_v0 }
  0x22   : > { %1009 = vmatmul.mubr.msk.bf16.vlgmr.msra.gmra.mrb[0].mxu0 %vm415_vm2, %v414_v4  ;;  %1015 = vmatmul.mubr.msk.bf16.vlgmr.msra.gmra.mrb[0].mxu1 %vm415_vm2, %v469_v5 }
  0x23   : > { %1020 = vmatprep.mubr.msk.bf16.mxu0 %vm1191_vm0, %v1190_v0  ;;  %1026 = vmatprep.mubr.msk.bf16.mxu1 %vm1191_vm0, %v1190_v0 }
  0x24   : > { %621 = vrot.lane.b32.xlu0 %v973_v2, %s1193_s13 }
  0x28   : > { %729 = vperm.xlu0 %1118, %v726_v17  }
  0x92   : > { %v525_v9 = vpop.permute.xlu0 %524 }
  0x93   : > { %v530_v10 = vsel %vm419_vm1, %v525_v9, 0 }
  0x94   : > { %1019 = vmatpush3.bf16.msra.mxu0 %v530_v10  ;;  %1025 = vmatpush3.bf16.msra.mxu1 %v530_v10  ;;  %v516_v18 = vpop.permute.xlu1 %515 }
  0x95   : > { %1030 = vmatprep.subr.bf16.mxu0 %v1190_v0  ;;  %1036 = vmatprep.subr.bf16.mxu1 %v1190_v0 }
  0x96   : > { %v622_v13 = vpop.permute.xlu0 %621 }
  0x97   : > { %1021 = vmatmul.mubr.msk.bf16.vlgmr.msra.gmra.mrb[0].mxu0 %vm415_vm2, %v972_v11  ;;  %1027 = vmatmul.mubr.msk.bf16.vlgmr.msra.gmra.mrb[0].mxu1 %vm415_vm2, %v975_v12  ;;  %v627_v14 = vsel %vm419_vm1, %v622_v13, 0 }
  0x98   : > { %1031 = vmatpush3.bf16.msra.mxu0 %v627_v14  ;;  %1037 = vmatpush3.bf16.msra.mxu1 %v627_v14 }
  0x99   : > { %1032 = vmatprep.mubr.msk.bf16.mxu0 %vm1191_vm0, %v1190_v0  ;;  %1038 = vmatprep.mubr.msk.bf16.mxu1 %vm1191_vm0, %v1190_v0 }
  0x9a   : > { %1042 = vmatprep.subr.bf16.mxu0 %v1190_v0  ;;  %1048 = vmatprep.subr.bf16.mxu1 %v1190_v0  ;;  %v466_v29 = vpop.permute.xlu1 %465 }
  0xa3   : > { %1033 = vmatmul.mubr.msk.bf16.vlgmr.msra.gmra.mrb[0].mxu0 %vm415_vm2, %v977_v15  ;;  %1039 = vmatmul.mubr.msk.bf16.vlgmr.msra.gmra.mrb[0].mxu1 %vm415_vm2, %v979_v16 }
  0xa4   : > { %1044 = vmatprep.mubr.msk.bf16.mxu0 %vm1191_vm0, %v1190_v0  ;;  %1050 = vmatprep.mubr.msk.bf16.mxu1 %vm1191_vm0, %v1190_v0 }
  0xa7   : > { %v730_v40 = vpop.permute.xlu0 %729 }
 0x176   : > { %v663_v19 = vpop.f32.mrb[0].mxu0  ;;  %v709_v20 = vpop.f32.mrb[0].mxu1 }
 0x177   : > { %v1055_v21 = vadd.f32 %v709_v20, %v516_v18  ;;  %v1034_v22 = vpop.f32.mrb[1].mxu0  ;;  %v1040_v23 = vpop.f32.mrb[1].mxu1  ;;  %v1054_v30 = vadd.f32 %v663_v19, %v466_v29 }
 0x178   : > { %v666_v24 = vpop.f32.mrb[2].mxu0  ;;  %v712_v25 = vpop.f32.mrb[2].mxu1 }
 0x179   : > { %v981_v26 = vmul.f32 -1.442695, %v1055_v21  ;;  %v1035_v27 = vpop.f32.mrb[3].mxu0  ;;  %v1041_v28 = vpop.f32.mrb[3].mxu1 }
 0x17b   : > { %1120 = vpow2.f32 %v981_v26 }
 0x17c   : > { %1122 = vtanh.f32 %v1054_v30 }
 0x185   : > { %v1121_v31 = vpop.eup %1120 }
 0x186   : > { %v720_v32 = vadd.f32 1.0, %v1121_v31  ;;  %v1123_v33 = vpop.eup %1122 }
 0x188   : > { %1124 = vrcp.f32 %v720_v32 }
 0x192   : > { %v1125_v34 = vpop.eup %1124 }
 0x193   : > { %v723_v35 = vmul.f32 %v1125_v34, %v1123_v33 }
 0x195   : > { %v724_v36 = vpack.c.bf16 %v723_v35, %v723_v35 }
 0x197   : > { %v736_v37 = vsel %vm419_vm1, %v724_v36, 0 }
 0x198   : > { %1043 = vmatpush3.bf16.msra.mxu0 %v736_v37  ;;  %1049 = vmatpush3.bf16.msra.mxu1 %v736_v37 }
 0x19b   : > { %1045 = vmatmul.mubr.msk.bf16.vlgmr.msra.gmra.mrb[4].mxu0 %vm415_vm2, %v725_v38  ;;  %1051 = vmatmul.mubr.msk.bf16.vlgmr.msra.gmra.mrb[4].mxu1 %vm415_vm2, %v778_v39 }
 0x26e   : > { %v772_v41 = vpop.f32.mrb[4].mxu0  ;;  %v822_v42 = vpop.f32.mrb[4].mxu1 }
 0x26f   : > { %v773_v43 = vadd.f32 %v772_v41, %v730_v40  ;;  %v1046_v44 = vpop.f32.mrb[5].mxu0  ;;  %v1052_v45 = vpop.f32.mrb[5].mxu1 }
 0x270   : > { %v775_v46 = vpop.f32.mrb[6].mxu0  ;;  %v825_v47 = vpop.f32.mrb[6].mxu1 }
 0x271   : > { %830 = vrot.lane.b32.xlu1 %v773_v43, %s1195_s14  ;;  %v1047_v48 = vpop.f32.mrb[7].mxu0  ;;  %v1053_v49 = vpop.f32.mrb[7].mxu1 }
 0x275   : > { %782 = vperm.xlu1 %1117, %v779_v50  }
 0x2e3   : > { %v831_v52 = vpop.permute.xlu1 %830 }
 0x2e4   : > { %v833_v53 = vadd.f32 %v831_v52, %v828_v51 }
 0x2e6   : > { %v989_v54 = vpack.c.bf16 %v833_v53, %v833_v53 }
 0x2e8   : > { %838 = vrot.lane.b32.xlu0 %v989_v54, %s1192_s25  ;;  %s391_s25 = scalar_lea.vmem [#allocation2], %s966_s0  ;;  %s1196_s0 = smov [#allocation2]  }
 0x2e9   : > { %s864_s29 = sshll.u32 %s391_s25, 4  ;;  %s1130_s21 = sshll.u32 %s1196_s0, 4  ;;  %s1392_s29 = int_to_ptr.vmem [resolvable:$true] %s864_s29  ;;  %s1131_s21 = int_to_ptr.vmem [resolvable:$false] %s1130_s21 }
 0x2ea   : > { %s1126_s12 = scalar_lea.vmem %s1392_s29, 64  ;;  %s1132_s13 = scalar_lea.vmem %s1131_s21, 128 }
 0x2eb   : > { %p1127_p11 = scmp.ne.s32.totalorder %s1392_s29, %s1126_s12  ;;  %p1133_p0 = scmp.lt.s32.totalorder %s1392_s29, %s1131_s21 }
 0x2ec   : > { %p1134_p1 = scmp.lt.s32.totalorder %s1132_s13, %s1126_s12 }
 0x2ed   : > { %p1128_p12 = pnand %p1127_p11, %p1295_p5 }
 0x2ee   : > { %p1135_p2 = por %p1134_p1, %p1133_p0 }
 0x2ef   : > { %p1129_p13 = pneg %p1128_p12 }
 0x2f1   : > { %p1136_p3 = pnand %p1135_p2, %p1129_p13 }
 0x2f4   : > { %v783_v56 = vpop.permute.xlu1 %782 }
 0x2f5   : > { %v823_v57 = vadd.f32 %v822_v42, %v783_v56 }
 0x2f7   : > { %v844_v58 = vadd.f32 %v843_v55, %v823_v57 }
 0x2f9   : > { %845 = vst.msk [vmem:[%s409_s15] sm:$0xff] %vm415_vm2, %v844_v58 }
 0x35a   : > { %v839_v59 = vpop.permute.xlu0 %838 }
 0x35b   : > { %842 = vst.msk [vmem:[%s391_s25] sm:$0xf] %vm841_vm3, %v839_v59 }
 0x35c   : > { %1139 = shalt.err (!%p1136_p3)
}
 0x35d   : > { %s1140_s2 = scalar_lea.hbm %s1390_s30, 64  ;;  %s1144_s15 = scalar_lea.hbm %s1442_s10, 128 }
 0x35e   : > { %p1141_p4 = scmp.ne.s32.totalorder %s1390_s30, %s1140_s2  ;;  %p1145_p9 = scmp.lt.u32.totalorder %s1390_s30, %s1442_s10 }
 0x35f   : > { %p1146_p10 = scmp.lt.u32.totalorder %s1144_s15, %s1140_s2  ;;  %p1148_p12 = scmp.lt.u32.totalorder %s1140_s2, %s1390_s30 }
 0x360   : > { %p1142_p7 = pnand %p1141_p4, %p1295_p5 }
 0x361   : > { %p1147_p11 = por %p1146_p10, %p1145_p9 }
 0x362   : > { %p1143_p8 = pneg %p1142_p7 }
 0x363   : > { %p1149_p13 = por %p1148_p12, %p1147_p11 }
 0x365   : > { %p1150_p0 = pnand %p1149_p13, %p1143_p8 }
 0x367   : > { %1153 = shalt.err (!%p1150_p0)
}
 0x368   : > { %1072 = dma.vmem_to_hbm [thread:$0]  (%p1295_p5), %s1392_s29, 64, %s1390_s30, %s847_s22  }
 0x369 PF: > { %p1078_p1 = scmp.ge.s32.totalorder %s1188_s20, 2  ;;  %s879_s24 = sand.u32 1, %s1176_s17  }
 0x36a   : > { %s880_s12 = scalar_lea.sflag [#allocation3], %s879_s24 }
 0x36b   : > { %p1075_p2 = pnand %p1078_p1, %p1299_p6 }
 0x36d   : > { %1171 = dma.done.wait (!%p1075_p2), %s880_s12, 64  }
 0x36e   : > { %1173 = vsyncadd (!%p1075_p2), %s880_s12, 4294967232  ;;  %p22_p3 = scmp.ge.s32.totalorder %s1282_s23, 4   ;;  %s1452_s17 = smov %s1180_s18 }
 0x36f   : > { %s1453_s18 = smov %s1184_s19  ;;  %s1454_s19 = smov %s1293_s26 }
 0x370   : > { %s1455_s20 = smov %s1282_s23  ;;  %24 = sbr.rel (!%p22_p3) target bundleno = 7 (0x7), region = 114 }
 0x377   :  { %892 = vsyncpa [#allocation3], 1 }
 0x378   :  { %894 = vsyncpa [#allocation3 + $0x1], 1 }

// kernel: _lambda_.28
= control target key start
LH: loop header
LB: loop body
LE: loop exit
PB: predicated region body
PF: predicated region fallthrough
CT: control target
= control target key end

     0   :  { %s520_s15 = smov 0   ;;  %s568_s0 = inlined_call_operand.vmem [shape: bf16[2,8,10], index: 0, kind: input, shape index: {}]   ;;  %s569_s1 = inlined_call_operand.vmem [shape: bf16[3,8,8], index: 1, kind: input, shape index: {}]   ;;  %s570_s2 = inlined_call_operand.vmem [shape: f32[8,1], index: 2, kind: input, shape index: {}]   ;;  %s571_s3 = inlined_call_operand.vmem [shape: f32[8,1], index: 3, kind: input, shape index: {}]   ;;  %s572_s4 = inlined_call_operand.vmem [shape: bf16[2,8,8], index: 4, kind: output, shape index: {}]  }
   0x1 LB: > { %s421_s16 = sadd.s32 4294967295, %s488_s15   ;;  %p425_p0 = scmp.ge.s32.totalorder %s488_s15, 1  ;;  %s488_s15 = sphi %s520_s15, %s14_s15  }
   0x2   : > { %p161_p1 = scmp.lt.s32.totalorder %s488_s15, 3 }
   0x4   : > { %p162_p2 = pnand %p425_p0, %p161_p1 }
   0x5   : > { %p185_p3 = scmp.lt.s32.totalorder (!%p162_p2), %s421_s16, 1  ;;  %v490_v0 = vmov (!%p162_p2), 0.0   ;;  %vm491_vm0 = vmmov (!%p162_p2), 0   ;;  %vm201_vm1 = vcmask (!%p162_p2), 1043456   ;;  %v196_v4 = vld [vmem:[%s569_s1] sm:$0xf] (!%p162_p2) }
   0x6   : > { %165 = sbr.rel (%p162_p2) target bundleno = 370 (0x172), region = 36  ;;  %448 = vmatprep.subr.bf16.mxu0 (!%p162_p2), %v490_v0  ;;  %450 = vmatprep.mubr.msk.bf16.mxu0 (!%p162_p2), %vm491_vm0, %v490_v0  ;;  %s492_s23 = smov (!%p162_p2), 127   ;;  %vm197_vm2 = vcmask (!%p162_p2), 64512   ;;  %v194_v5 = vld [vmem:[%s570_s2] sm:$0xff] (!%p162_p2)  ;;  %v494_v6 = vmov (!%p162_p2), 0   ;;  %vm366_vm4 = vcmask (!%p162_p2), 60416  }
   0x7   : > { %442 = vmatprep.subr.bf16.mxu1 (!%p162_p2), %v490_v0  ;;  %444 = vmatprep.mubr.msk.bf16.mxu1 (!%p162_p2), %vm491_vm0, %v490_v0  ;;  %s493_s26 = smov (!%p162_p2), 126   ;;  %v356_v7 = vld [vmem:[%s571_s3] sm:$0xff] (!%p162_p2)  ;;  %v432_v13 = vld [vmem:[%s569_s1 + $0x8] sm:$0xf] (!%p162_p2) }
   0x8   : > { %479 = vset.pattern.permute.xlu1 (!%p162_p2), %v494_v6  ;;  %480 = vset.pattern.permute.xlu0 (!%p162_p2), %v494_v6  ;;  %v429_v10 = vld [vmem:[%s569_s1 + $0x4] sm:$0xf] (!%p162_p2) }
   0x9   : > { %247 = vperm.xlu1 (!%p162_p2), %479, %v194_v5  }
   0xd   : > { %s574_s16 = smov (!%p185_p3, %s421_s16), 1  ;;  %360 = vperm.xlu1 %479, %v356_v7  }
   0xe   : > { %s426_s17 = sshll.u32 %s574_s16, 2 }
   0xf   : > { %s188_s20 = scalar_lea.vmem %s568_s0, %s426_s17  ;;  %s192_s9 = scalar_lea.vmem %s572_s4, %s426_s17 }
  0x10   : > { %v195_v1 = vld [vmem:[%s188_s20] sm:$0xf] }
  0x11   : > { %v430_v2 = vcombine.low %v195_v1, %v195_v1  ;;  %v203_v3 = vsel %vm201_vm1, %v195_v1, 0 }
  0x12   : > { %443 = vmatpush3.bf16.msra.mxu1 %v203_v3 }
  0x13   : > { %256 = vrot.lane.b32.xlu0 %v430_v2, %s492_s23 }
  0x15   : > { %445 = vmatmul.mubr.msk.bf16.vlgmr.msra.gmra.mrb[0].mxu1 %vm197_vm2, %v196_v4 }
  0x17   : > { %307 = vrot.lane.b32.xlu0 %v430_v2, %s493_s26 }
  0x85   : > { %v257_v8 = vpop.permute.xlu0 %256 }
  0x86   : > { %v262_v9 = vsel %vm201_vm1, %v257_v8, 0 }
  0x87   : > { %449 = vmatpush3.bf16.msra.mxu0 %v262_v9 }
  0x88   : > { %454 = vmatprep.subr.bf16.mxu0 %v490_v0  ;;  %v248_v18 = vpop.permute.xlu1 %247 }
  0x89   : > { %v308_v11 = vpop.permute.xlu0 %307 }
  0x8a   : > { %v313_v12 = vsel %vm201_vm1, %v308_v11, 0  ;;  %451 = vmatmul.mubr.msk.bf16.vlgmr.msra.gmra.mrb[0].mxu0 %vm197_vm2, %v429_v10 }
  0x8b   : > { %455 = vmatpush3.bf16.msra.mxu0 %v313_v12  ;;  %456 = vmatprep.mubr.msk.bf16.mxu0 %vm491_vm0, %v490_v0 }
  0x8c   : > { %v361_v23 = vpop.permute.xlu1 %360 }
  0x96   : > { %457 = vmatmul.mubr.msk.bf16.vlgmr.msra.gmra.mrb[0].mxu0 %vm197_vm2, %v432_v13 }
  0xe8   : > { %v239_v14 = vpop.f32.mrb[0].mxu1 }
  0xe9   : > { %v446_v15 = vpop.f32.mrb[1].mxu1  ;;  %v250_v19 = vadd.f32 %v248_v18, %v239_v14 }
  0xea   : > { %v242_v16 = vpop.f32.mrb[2].mxu1 }
  0xeb   : > { %v447_v17 = vpop.f32.mrb[3].mxu1 }
 0x169   : > { %v349_v20 = vpop.f32.mrb[0].mxu0 }
 0x16a   : > { %v461_v21 = vadd.f32 %v349_v20, %v250_v19  ;;  %v458_v22 = vpop.f32.mrb[1].mxu0 }
 0x16b   : > { %v352_v24 = vpop.f32.mrb[2].mxu0 }
 0x16c   : > { %vm357_vm3 = vcmp.ge.f32.partialorder %v461_v21, 0.0  ;;  %v363_v25 = vmul.f32 %v461_v21, %v361_v23  ;;  %v459_v26 = vpop.f32.mrb[3].mxu0 }
 0x16e   : > { %v364_v27 = vsel %vm357_vm3, %v461_v21, %v363_v25 }
 0x16f   : > { %v365_v28 = vpack.c.bf16 %v364_v27, %v364_v27 }
 0x171   : > { %367 = vst.msk [vmem:[%s192_s9] sm:$0xf] %vm366_vm4, %v365_v28 }
 0x172 PF: > { %s14_s15 = sadd.s32 1, %s488_s15  }
 0x173   : > { %p11_p4 = scmp.ge.s32.totalorder %s14_s15, 4  }
 0x175   :  { %13 = sbr.rel (!%p11_p4) target bundleno = 1 (0x1), region = 68 }

// kernel: _lambda_.29
= control target key start
LH: loop header
LB: loop body
LE: loop exit
PB: predicated region body
PF: predicated region fallthrough
CT: control target
= control target key end

     0   :  { %s341_s12 = smov 0   ;;  %s364_s0 = inlined_call_operand.vmem [shape: bf16[2,8,8], index: 0, kind: input, shape index: {}]   ;;  %s365_s1 = inlined_call_operand.vmem [shape: bf16[1,8,8], index: 1, kind: input, shape index: {}]   ;;  %s366_s2 = inlined_call_operand.vmem [shape: f32[8,1], index: 2, kind: input, shape index: {}]   ;;  %s367_s3 = inlined_call_operand.vmem [shape: bf16[2,8,8], index: 3, kind: output, shape index: {}]  }
   0x1 LB: > { %s280_s13 = sadd.s32 4294967295, %s316_s12   ;;  %p284_p0 = scmp.ge.s32.totalorder %s316_s12, 1  ;;  %s316_s12 = sphi %s341_s12, %s13_s12  }
   0x2   : > { %p136_p1 = scmp.lt.s32.totalorder %s316_s12, 3 }
   0x4   : > { %p137_p2 = pnand %p284_p0, %p136_p1 }
   0x5   : > { %p158_p3 = scmp.lt.s32.totalorder (!%p137_p2), %s280_s13, 1  ;;  %v318_v0 = vmov (!%p137_p2), 0.0   ;;  %vm319_vm0 = vmmov (!%p137_p2), 0   ;;  %v167_v1 = vld [vmem:[%s366_s2] sm:$0xff] (!%p137_p2)  ;;  %v320_v2 = vmov (!%p137_p2), 0   ;;  %vm174_vm1 = vcmask (!%p137_p2), 1043456  }
   0x6   : > { %140 = sbr.rel (%p137_p2) target bundleno = 238 (0xee), region = 32  ;;  %292 = vmatprep.subr.bf16.mxu0 (!%p137_p2), %v318_v0  ;;  %294 = vmatprep.mubr.msk.bf16.mxu0 (!%p137_p2), %vm319_vm0, %v318_v0  ;;  %v169_v5 = vld [vmem:[%s365_s1] sm:$0xf] (!%p137_p2)  ;;  %vm170_vm2 = vcmask (!%p137_p2), 64512   ;;  %vm225_vm3 = vcmask (!%p137_p2), 60416  }
   0x7   : > { %309 = vset.pattern.permute.xlu0 (!%p137_p2), %v320_v2 }
   0x8   : > { %220 = vperm.xlu0 (!%p137_p2), %309, %v167_v1  }
   0xd   : > { %s369_s13 = smov (!%p158_p3, %s280_s13), 1 }
   0xe   : > { %s285_s16 = sshll.u32 %s369_s13, 2 }
   0xf   : > { %s161_s19 = scalar_lea.vmem %s364_s0, %s285_s16  ;;  %s165_s24 = scalar_lea.vmem %s367_s3, %s285_s16 }
  0x10   : > { %v168_v3 = vld [vmem:[%s161_s19] sm:$0xf] }
  0x11   : > { %v176_v4 = vsel %vm174_vm1, %v168_v3, 0 }
  0x12   : > { %293 = vmatpush3.bf16.msra.mxu0 %v176_v4 }
  0x15   : > { %295 = vmatmul.mubr.msk.bf16.vlgmr.msra.gmra.mrb[0].mxu0 %vm170_vm2, %v169_v5 }
  0x87   : > { %v221_v6 = vpop.permute.xlu0 %220 }
  0xe8   : > { %v212_v7 = vpop.f32.mrb[0].mxu0 }
  0xe9   : > { %v223_v8 = vadd.f32 %v221_v6, %v212_v7  ;;  %v296_v9 = vpop.f32.mrb[1].mxu0 }
  0xea   : > { %v215_v10 = vpop.f32.mrb[2].mxu0 }
  0xeb   : > { %v224_v11 = vpack.c.bf16 %v223_v8, %v223_v8  ;;  %v297_v12 = vpop.f32.mrb[3].mxu0 }
  0xed   : > { %226 = vst.msk [vmem:[%s165_s24] sm:$0xf] %vm225_vm3, %v224_v11 }
  0xee PF: > { %s13_s12 = sadd.s32 1, %s316_s12  }
  0xef   : > { %p10_p4 = scmp.ge.s32.totalorder %s13_s12, 4  }
  0xf1   :  { %12 = sbr.rel (!%p10_p4) target bundleno = 1 (0x1), region = 62 }

// kernel: _lambda_.30
= control target key start
LH: loop header
LB: loop body
LE: loop exit
PB: predicated region body
PF: predicated region fallthrough
CT: control target
= control target key end

     0   :  { %s689_s15 = smov 0   ;;  %s746_s0 = inlined_call_operand.vmem [shape: bf16[2,4,12], index: 0, kind: input, shape index: {}]   ;;  %s747_s1 = inlined_call_operand.vmem [shape: bf16[5,8,4], index: 1, kind: input, shape index: {}]   ;;  %s748_s2 = inlined_call_operand.vmem [shape: f32[8,1], index: 2, kind: input, shape index: {}]   ;;  %s749_s3 = inlined_call_operand.vmem [shape: f32[8,1], index: 3, kind: input, shape index: {}]   ;;  %s750_s4 = inlined_call_operand.vmem [shape: bf16[2,8,8], index: 4, kind: output, shape index: {}]  }
   0x1 LB: > { %s555_s16 = sadd.s32 4294967295, %s654_s15   ;;  %p559_p0 = scmp.ge.s32.totalorder %s654_s15, 1  ;;  %s654_s15 = sphi %s689_s15, %s14_s15  }
   0x2   : > { %p161_p1 = scmp.lt.s32.totalorder %s654_s15, 3 }
   0x4   : > { %p162_p2 = pnand %p559_p0, %p161_p1 }
   0x5   : > { %p185_p3 = scmp.lt.s32.totalorder (!%p162_p2), %s555_s16, 1  ;;  %v257_v0 = vlaneseq (!%p162_p2)  ;;  %v656_v1 = vmov (!%p162_p2), 1983009808   ;;  %v657_v3 = vmov (!%p162_p2), 0.0   ;;  %vm658_vm0 = vmmov (!%p162_p2), 0   ;;  %s659_s21 = smov (!%p162_p2), 126  }
   0x6   : > { %165 = sbr.rel (%p162_p2) target bundleno = 380 (0x17c), region = 36  ;;  %v255_v2 = vunpack.c.l.s4 (!%p162_p2), %v656_v1  ;;  %586 = vmatprep.subr.bf16.mxu1 (!%p162_p2), %v657_v3  ;;  %598 = vmatprep.subr.bf16.mxu0 (!%p162_p2), %v657_v3  ;;  %vm201_vm1 = vcmask (!%p162_p2), 1041408   ;;  %v196_v11 = vld [vmem:[%s747_s1] sm:$0xf] (!%p162_p2)  ;;  %vm197_vm2 = vcmask (!%p162_p2), 31744   ;;  %s660_s24 = smov (!%p162_p2), 127  }
   0x7   : > { %v258_v4 = vshrl.u32 (!%p162_p2), %v257_v0, 7  ;;  %588 = vmatprep.mubr.msk.bf16.mxu1 (!%p162_p2), %vm658_vm0, %v657_v3  ;;  %600 = vmatprep.mubr.msk.bf16.mxu0 (!%p162_p2), %vm658_vm0, %v657_v3  ;;  %s661_s25 = smov (!%p162_p2), 125   ;;  %s662_s26 = smov (!%p162_p2), 124   ;;  %v194_v12 = vld [vmem:[%s748_s2] sm:$0xff] (!%p162_p2)  ;;  %v663_v14 = vmov (!%p162_p2), 0   ;;  %vm500_vm4 = vcmask (!%p162_p2), 60416  }
   0x8   : > { %v256_v5 = vunpack.c.0.s8 (!%p162_p2), %v255_v2  ;;  %v490_v13 = vld [vmem:[%s749_s3] sm:$0xff] (!%p162_p2)  ;;  %646 = vset.pattern.permute.xlu0 (!%p162_p2), %v663_v14  ;;  %647 = vset.pattern.permute.xlu1 (!%p162_p2), %v663_v14  ;;  %v565_v17 = vld [vmem:[%s747_s1 + $0x8] sm:$0xf] (!%p162_p2)  ;;  %v568_v24 = vld [vmem:[%s747_s1 + $0xc] sm:$0xf] (!%p162_p2) }
   0x9   : > { %v563_v21 = vld [vmem:[%s747_s1 + $0x4] sm:$0xf] (!%p162_p2)  ;;  %v571_v26 = vld [vmem:[%s747_s1 + $0x10] sm:$0xf] (!%p162_p2) }
   0xa   : > { %v259_v6 = vsub.s32 (!%p162_p2), %v256_v5, %v258_v4 }
   0xd   : > { %s752_s16 = smov (!%p185_p3, %s555_s16), 1 }
   0xe   : > { %s560_s17 = sshll.u32 %s752_s16, 1  ;;  %s561_s13 = sshll.u32 %s752_s16, 2 }
   0xf   : > { %s188_s20 = scalar_lea.vmem %s746_s0, %s560_s17  ;;  %s192_s18 = scalar_lea.vmem %s750_s4, %s561_s13 }
  0x10   : > { %v566_v7 = vld.sshfl [vmem:[%s188_s20] sm:$0x3 pattern:$0x76325410] }
  0x11   : > { %v195_v8 = vld [vmem:[%s188_s20] sm:$0x3]  ;;  %321 = vrot.lane.b32.xlu0 %v566_v7, %s659_s21 }
  0x12   : > { %v260_v9 = vrot.slane %v195_v8, %v259_v6  ;;  %v203_v10 = vsel %vm201_vm1, %v195_v8, 0 }
  0x13   : > { %587 = vmatpush3.bf16.msra.mxu1 %v203_v10 }
  0x14   : > { %261 = vrot.lane.b32.xlu1 %v260_v9, %s660_s24  ;;  %592 = vmatprep.subr.bf16.mxu1 %v657_v3 }
  0x15   : > { %381 = vrot.lane.b32.xlu0 %v566_v7, %s661_s25 }
  0x16   : > { %589 = vmatmul.mubr.msk.bf16.vlgmr.msra.gmra.mrb[0].mxu1 %vm197_vm2, %v196_v11 }
  0x17   : > { %594 = vmatprep.mubr.msk.bf16.mxu1 %vm658_vm0, %v657_v3 }
  0x18   : > { %441 = vrot.lane.b32.xlu1 %v566_v7, %s662_s26 }
  0x19   : > { %247 = vperm.xlu0 %646, %v194_v12  }
  0x1c   : > { %494 = vperm.xlu1 %647, %v490_v13  }
  0x83   : > { %v322_v15 = vpop.permute.xlu0 %321 }
  0x84   : > { %v327_v16 = vsel %vm201_vm1, %v322_v15, 0 }
  0x85   : > { %599 = vmatpush3.bf16.msra.mxu0 %v327_v16 }
  0x86   : > { %v262_v18 = vpop.permute.xlu1 %261  ;;  %604 = vmatprep.subr.bf16.mxu0 %v657_v3 }
  0x87   : > { %v267_v19 = vsel %vm201_vm1, %v262_v18, 0  ;;  %v382_v20 = vpop.permute.xlu0 %381 }
  0x88   : > { %593 = vmatpush3.bf16.msra.mxu1 %v267_v19  ;;  %v387_v22 = vsel %vm201_vm1, %v382_v20, 0  ;;  %601 = vmatmul.mubr.msk.bf16.vlgmr.msra.gmra.mrb[0].mxu0 %vm197_vm2, %v565_v17 }
  0x89   : > { %605 = vmatpush3.bf16.msra.mxu0 %v387_v22  ;;  %606 = vmatprep.mubr.msk.bf16.mxu0 %vm658_vm0, %v657_v3 }
  0x8a   : > { %610 = vmatprep.subr.bf16.mxu0 %v657_v3  ;;  %v442_v23 = vpop.permute.xlu1 %441 }
  0x8b   : > { %595 = vmatmul.mubr.msk.bf16.vlgmr.msra.gmra.mrb[0].mxu1 %vm197_vm2, %v563_v21  ;;  %v447_v25 = vsel %vm201_vm1, %v442_v23, 0 }
  0x94   : > { %607 = vmatmul.mubr.msk.bf16.vlgmr.msra.gmra.mrb[0].mxu0 %vm197_vm2, %v568_v24 }
  0x95   : > { %611 = vmatpush3.bf16.msra.mxu0 %v447_v25  ;;  %612 = vmatprep.mubr.msk.bf16.mxu0 %vm658_vm0, %v657_v3 }
  0x98   : > { %v248_v31 = vpop.permute.xlu0 %247 }
  0x9b   : > { %v495_v34 = vpop.permute.xlu1 %494 }
  0xa0   : > { %613 = vmatmul.mubr.msk.bf16.vlgmr.msra.gmra.mrb[0].mxu0 %vm197_vm2, %v571_v26 }
 0x15e   : > { %v303_v27 = vpop.f32.mrb[0].mxu1 }
 0x15f   : > { %v596_v28 = vpop.f32.mrb[1].mxu1  ;;  %v616_v32 = vadd.f32 %v303_v27, %v248_v31 }
 0x160   : > { %v306_v29 = vpop.f32.mrb[2].mxu1 }
 0x161   : > { %v597_v30 = vpop.f32.mrb[3].mxu1 }
 0x173   : > { %v483_v33 = vpop.f32.mrb[0].mxu0 }
 0x174   : > { %v617_v35 = vadd.f32 %v616_v32, %v483_v33  ;;  %v614_v36 = vpop.f32.mrb[1].mxu0 }
 0x175   : > { %v486_v37 = vpop.f32.mrb[2].mxu0 }
 0x176   : > { %vm491_vm3 = vcmp.ge.f32.partialorder %v617_v35, 0.0  ;;  %v497_v38 = vmul.f32 %v617_v35, %v495_v34  ;;  %v615_v39 = vpop.f32.mrb[3].mxu0 }
 0x178   : > { %v498_v40 = vsel %vm491_vm3, %v617_v35, %v497_v38 }
 0x179   : > { %v499_v41 = vpack.c.bf16 %v498_v40, %v498_v40 }
 0x17b   : > { %501 = vst.msk [vmem:[%s192_s18] sm:$0xf] %vm500_vm4, %v499_v41 }
 0x17c PF: > { %s14_s15 = sadd.s32 1, %s654_s15  }
 0x17d   : > { %p11_p4 = scmp.ge.s32.totalorder %s14_s15, 4  }
 0x17f   :  { %13 = sbr.rel (!%p11_p4) target bundleno = 1 (0x1), region = 70 }

// kernel: _lambda_.31
= control target key start
LH: loop header
LB: loop body
LE: loop exit
PB: predicated region body
PF: predicated region fallthrough
CT: control target
= control target key end

     0   :  { %s431_s15 = smov 0   ;;  %s461_s0 = inlined_call_operand.vmem [shape: bf16[2,64,4], index: 0, kind: input, shape index: {}]   ;;  %s462_s1 = inlined_call_operand.vmem [shape: bf16[1,8,64], index: 1, kind: input, shape index: {}]   ;;  %s463_s2 = inlined_call_operand.vmem [shape: f32[8,1], index: 2, kind: input, shape index: {}]   ;;  %s464_s3 = inlined_call_operand.vmem [shape: f32[8,1], index: 3, kind: input, shape index: {}]   ;;  %s465_s4 = inlined_call_operand.vmem [shape: bf16[2,8,4], index: 4, kind: output, shape index: {}]  }
   0x1 LB: > { %s346_s16 = sadd.s32 4294967295, %s401_s15   ;;  %p350_p0 = scmp.ge.s32.totalorder %s401_s15, 1  ;;  %s401_s15 = sphi %s431_s15, %s14_s15  }
   0x2   : > { %p162_p1 = scmp.lt.s32.totalorder %s401_s15, 3 }
   0x4   : > { %p163_p2 = pnand %p350_p0, %p162_p1 }
   0x5   : > { %p187_p3 = scmp.lt.s32.totalorder (!%p163_p2), %s346_s16, 1  ;;  %v403_v0 = vmov (!%p163_p2), 0.0   ;;  %vm404_vm0 = vmmov (!%p163_p2), 0   ;;  %v197_v1 = vld [vmem:[%s463_s2] sm:$0xff] (!%p163_p2)  ;;  %v405_v2 = vmov (!%p163_p2), 0   ;;  %vm231_vm1 = vcmask (!%p163_p2), 523264  }
   0x6   : > { %166 = sbr.rel (%p163_p2) target bundleno = 252 (0xfc), region = 36  ;;  %367 = vmatprep.subr.bf16.mxu0 (!%p163_p2), %v403_v0  ;;  %375 = vmatprep.mubr.msk.bf16.mxu0 (!%p163_p2), %vm404_vm0, %v403_v0  ;;  %v281_v3 = vld [vmem:[%s464_s3] sm:$0xff] (!%p163_p2)  ;;  %vm291_vm3 = vcmask (!%p163_p2), 27648  }
   0x7   : > { %390 = vset.pattern.permute.xlu0 (!%p163_p2), %v405_v2  ;;  %v206_v8 = vld [vmem:[%s462_s1] sm:$0xf] (!%p163_p2) }
   0x8   : > { %277 = vperm.xlu0 (!%p163_p2), %390, %v197_v1  }
   0xc   : > { %285 = vperm.xlu0 (!%p163_p2), %390, %v281_v3  }
   0xd   : > { %s467_s16 = smov (!%p187_p3, %s346_s16), 1 }
   0xe   : > { %s361_s19 = sshll.u32 %s467_s16, 5  ;;  %s353_s27 = sshll.u32 %s467_s16, 2 }
   0xf   : > { %s191_s24 = scalar_lea.vmem %s461_s0, %s361_s19  ;;  %s195_s30 = scalar_lea.vmem %s465_s4, %s353_s27 }
  0x10   : > { %v391_v4 = vld [vmem:[%s191_s24] sm:$0xff]   ;;  %v392_v5 = vld [vmem:[%s191_s24 + $0x8] sm:$0xff]   ;;  %v393_v6 = vld [vmem:[%s191_s24 + $0x10] sm:$0xff]  }
  0x11   : > { %368 = vmatpush3.bf16.msra.mxu0 %v391_v4  ;;  %v394_v7 = vld [vmem:[%s191_s24 + $0x18] sm:$0xff]  }
  0x12   : > { %369 = vmatprep.subr.bf16.mxu0 %v403_v0 }
  0x15   : > { %370 = vmatpush3.bf16.msra.mxu0 %v392_v5 }
  0x16   : > { %371 = vmatprep.subr.bf16.mxu0 %v403_v0 }
  0x19   : > { %372 = vmatpush3.bf16.msra.mxu0 %v393_v6 }
  0x1a   : > { %373 = vmatprep.subr.bf16.mxu0 %v403_v0 }
  0x1d   : > { %374 = vmatpush3.bf16.msra.mxu0 %v394_v7 }
  0x20   : > { %376 = vmatmul.mubr.msk.bf16.vlgmr.msra.gmra.mrb[0].mxu0 %vm231_vm1, %v206_v8 }
  0x87   : > { %v278_v9 = vpop.permute.xlu0 %277 }
  0x8b   : > { %v286_v13 = vpop.permute.xlu0 %285 }
  0xf3   : > { %v269_v10 = vpop.f32.mrb[0].mxu0 }
  0xf4   : > { %v280_v11 = vadd.f32 %v278_v9, %v269_v10  ;;  %v377_v12 = vpop.f32.mrb[1].mxu0 }
  0xf5   : > { %v272_v14 = vpop.f32.mrb[2].mxu0 }
  0xf6   : > { %vm282_vm2 = vcmp.ge.f32.partialorder %v280_v11, 0.0  ;;  %v288_v15 = vmul.f32 %v286_v13, %v280_v11  ;;  %v378_v16 = vpop.f32.mrb[3].mxu0 }
  0xf8   : > { %v289_v17 = vsel %vm282_vm2, %v280_v11, %v288_v15 }
  0xf9   : > { %v290_v18 = vpack.c.bf16 %v289_v17, %v289_v17 }
  0xfb   : > { %292 = vst.msk [vmem:[%s195_s30] sm:$0xf] %vm291_vm3, %v290_v18 }
  0xfc PF: > { %s14_s15 = sadd.s32 1, %s401_s15  }
  0xfd   : > { %p11_p4 = scmp.ge.s32.totalorder %s14_s15, 4  }
  0xff   :  { %13 = sbr.rel (!%p11_p4) target bundleno = 1 (0x1), region = 66 }

// kernel: _lambda_.32
= control target key start
LH: loop header
LB: loop body
LE: loop exit
PB: predicated region body
PF: predicated region fallthrough
CT: control target
= control target key end

     0   :  { %s1149_s17 = smov 0   ;;  %s1244_s0 = inlined_call_operand.vmem [shape: bf16[2,8,6], index: 0, kind: input, shape index: {}]   ;;  %s1245_s1 = inlined_call_operand.vmem [shape: f32[2,8,4], index: 1, kind: input, shape index: {}]   ;;  %s1246_s2 = inlined_call_operand.vmem [shape: bf16[3,8,8], index: 2, kind: input, shape index: {}]   ;;  %s1247_s3 = inlined_call_operand.vmem [shape: f32[8,1], index: 3, kind: input, shape index: {}]   ;;  %s1248_s4 = inlined_call_operand.vmem [shape: bf16[3,8,8], index: 4, kind: input, shape index: {}]   ;;  %s1249_s5 = inlined_call_operand.vmem [shape: f32[8,1], index: 5, kind: input, shape index: {}]   ;;  %s1250_s6 = inlined_call_operand.vmem [shape: bf16[8,8], index: 6, kind: input, shape index: {}]   ;;  %s1251_s7 = inlined_call_operand.vmem [shape: f32[8,1], index: 7, kind: input, shape index: {}]   ;;  %s1252_s8 = inlined_call_operand.vmem [shape: bf16[8,8], index: 8, kind: input, shape index: {}]   ;;  %s1253_s9 = inlined_call_operand.vmem [shape: f32[8,1], index: 9, kind: input, shape index: {}]   ;;  %s1254_s10 = inlined_call_operand.vmem [shape: bf16[2,8,4], index: 10, kind: output, shape index: {0}]   ;;  %s1255_s11 = inlined_call_operand.vmem [shape: f32[2,8,4], index: 11, kind: output, shape index: {1}]  }
   0x1 LB: > { %s943_s18 = sadd.s32 4294967295, %s1081_s17   ;;  %p947_p0 = scmp.ge.s32.totalorder %s1081_s17, 1  ;;  %s1081_s17 = sphi %s1149_s17, %s22_s17  }
   0x2   : > { %p348_p1 = scmp.lt.s32.totalorder %s1081_s17, 3 }
   0x4   : > { %p349_p2 = pnand %p947_p0, %p348_p1 }
   0x5   : > { %p394_p3 = scmp.lt.s32.totalorder (!%p349_p2), %s943_s18, 1  ;;  %v1083_v0 = vmov (!%p349_p2), 0.0   ;;  %vm1084_vm0 = vmmov (!%p349_p2), 0   ;;  %vm419_vm1 = vcmask (!%p349_p2), 1043456   ;;  %v414_v4 = vld [vmem:[%s1246_s2] sm:$0xf] (!%p349_p2) }
   0x6   : > { %352 = sbr.rel (%p349_p2) target bundleno = 847 (0x34f), region = 60  ;;  %986 = vmatprep.subr.bf16.mxu0 (!%p349_p2), %v1083_v0  ;;  %992 = vmatprep.subr.bf16.mxu1 (!%p349_p2), %v1083_v0  ;;  %vm415_vm2 = vcmask (!%p349_p2), 64512   ;;  %v469_v5 = vld [vmem:[%s1248_s4] sm:$0xf] (!%p349_p2)  ;;  %s1085_s27 = smov (!%p349_p2), 127   ;;  %v1087_v7 = vmov (!%p349_p2), 0  }
   0x7   : > { %988 = vmatprep.mubr.msk.bf16.mxu0 (!%p349_p2), %vm1084_vm0, %v1083_v0  ;;  %994 = vmatprep.mubr.msk.bf16.mxu1 (!%p349_p2), %vm1084_vm0, %v1083_v0  ;;  %v412_v6 = vld [vmem:[%s1249_s5] sm:$0xff] (!%p349_p2)  ;;  %s1086_s30 = smov (!%p349_p2), 126   ;;  %v959_v15 = vld [vmem:[%s1246_s2 + $0x8] sm:$0xf] (!%p349_p2)  ;;  %s1088_s13 = smov (!%p349_p2), 1   ;;  %vm845_vm3 = vcmask (!%p349_p2), 31744  }
   0x8   : > { %1066 = vset.pattern.permute.xlu1 (!%p349_p2), %v1087_v7  ;;  %1067 = vset.pattern.permute.xlu0 (!%p349_p2), %v1087_v7  ;;  %v411_v8 = vld [vmem:[%s1247_s3] sm:$0xff] (!%p349_p2)  ;;  %v961_v16 = vld [vmem:[%s1248_s4 + $0x8] sm:$0xf] (!%p349_p2)  ;;  %vm841_vm4 = vcmask (!%p349_p2), 27648  }
   0x9   : > { %515 = vperm.xlu1 (!%p349_p2), %1066, %v412_v6   ;;  %v954_v11 = vld [vmem:[%s1246_s2 + $0x4] sm:$0xf] (!%p349_p2)  ;;  %v725_v38 = vld [vmem:[%s1250_s6] sm:$0xf] (!%p349_p2) }
   0xa   : > { %v957_v12 = vld [vmem:[%s1248_s4 + $0x4] sm:$0xf] (!%p349_p2)  ;;  %v778_v39 = vld [vmem:[%s1252_s8] sm:$0xf] (!%p349_p2) }
   0xb   : > { %v726_v17 = vld [vmem:[%s1251_s7] sm:$0xff] (!%p349_p2) }
   0xc   : > { %v779_v50 = vld [vmem:[%s1253_s9] sm:$0xff] (!%p349_p2) }
   0xd   : > { %s1257_s18 = smov (!%p394_p3, %s943_s18), 1  ;;  %465 = vperm.xlu1 %1066, %v411_v8  }
   0xe   : > { %s948_s19 = sshll.u32 %s1257_s18, 2  ;;  %s949_s16 = sshll.u32 %s1257_s18, 3 }
   0xf   : > { %s397_s22 = scalar_lea.vmem %s1244_s0, %s948_s19  ;;  %s409_s25 = scalar_lea.vmem %s1255_s11, %s949_s16 }
  0x10   : > { %v1167_v1 = vld [vmem:[%s397_s22] sm:$0xf]  ;;  %s401_s22 = scalar_lea.vmem %s1245_s1, %s949_s16 }
  0x11   : > { %v955_v2 = vcombine.low %v1167_v1, %v1167_v1  ;;  %v421_v3 = vsel %vm419_vm1, %v1167_v1, 0  ;;  %v828_v51 = vunpack.c.l.bf16 %v1167_v1  ;;  %v843_v55 = vld [vmem:[%s401_s22] sm:$0xff] }
  0x12   : > { %987 = vmatpush3.bf16.msra.mxu0 %v421_v3  ;;  %993 = vmatpush3.bf16.msra.mxu1 %v421_v3 }
  0x13   : > { %524 = vrot.lane.b32.xlu0 %v955_v2, %s1085_s27  ;;  %998 = vmatprep.subr.bf16.mxu0 %v1083_v0 }
  0x14   : > { %1004 = vmatprep.subr.bf16.mxu1 %v1083_v0 }
  0x15   : > { %989 = vmatmul.mubr.msk.bf16.vlgmr.msra.gmra.mrb[0].mxu0 %vm415_vm2, %v414_v4  ;;  %995 = vmatmul.mubr.msk.bf16.vlgmr.msra.gmra.mrb[0].mxu1 %vm415_vm2, %v469_v5 }
  0x16   : > { %1000 = vmatprep.mubr.msk.bf16.mxu0 %vm1084_vm0, %v1083_v0  ;;  %1006 = vmatprep.mubr.msk.bf16.mxu1 %vm1084_vm0, %v1083_v0 }
  0x17   : > { %621 = vrot.lane.b32.xlu0 %v955_v2, %s1086_s30 }
  0x1b   : > { %729 = vperm.xlu0 %1067, %v726_v17  }
  0x85   : > { %v525_v9 = vpop.permute.xlu0 %524 }
  0x86   : > { %v530_v10 = vsel %vm419_vm1, %v525_v9, 0 }
  0x87   : > { %999 = vmatpush3.bf16.msra.mxu0 %v530_v10  ;;  %1005 = vmatpush3.bf16.msra.mxu1 %v530_v10 }
  0x88   : > { %1010 = vmatprep.subr.bf16.mxu0 %v1083_v0  ;;  %1016 = vmatprep.subr.bf16.mxu1 %v1083_v0  ;;  %v516_v18 = vpop.permute.xlu1 %515 }
  0x89   : > { %v622_v13 = vpop.permute.xlu0 %621 }
  0x8a   : > { %1001 = vmatmul.mubr.msk.bf16.vlgmr.msra.gmra.mrb[0].mxu0 %vm415_vm2, %v954_v11  ;;  %1007 = vmatmul.mubr.msk.bf16.vlgmr.msra.gmra.mrb[0].mxu1 %vm415_vm2, %v957_v12  ;;  %v627_v14 = vsel %vm419_vm1, %v622_v13, 0 }
  0x8b   : > { %1011 = vmatpush3.bf16.msra.mxu0 %v627_v14  ;;  %1017 = vmatpush3.bf16.msra.mxu1 %v627_v14 }
  0x8c   : > { %1012 = vmatprep.mubr.msk.bf16.mxu0 %vm1084_vm0, %v1083_v0  ;;  %1018 = vmatprep.mubr.msk.bf16.mxu1 %vm1084_vm0, %v1083_v0  ;;  %v466_v29 = vpop.permute.xlu1 %465 }
  0x8d   : > { %1022 = vmatprep.subr.bf16.mxu0 %v1083_v0  ;;  %1028 = vmatprep.subr.bf16.mxu1 %v1083_v0 }
  0x96   : > { %1013 = vmatmul.mubr.msk.bf16.vlgmr.msra.gmra.mrb[0].mxu0 %vm415_vm2, %v959_v15  ;;  %1019 = vmatmul.mubr.msk.bf16.vlgmr.msra.gmra.mrb[0].mxu1 %vm415_vm2, %v961_v16 }
  0x97   : > { %1024 = vmatprep.mubr.msk.bf16.mxu0 %vm1084_vm0, %v1083_v0  ;;  %1030 = vmatprep.mubr.msk.bf16.mxu1 %vm1084_vm0, %v1083_v0 }
  0x9a   : > { %v730_v40 = vpop.permute.xlu0 %729 }
 0x169   : > { %v663_v19 = vpop.f32.mrb[0].mxu0  ;;  %v709_v20 = vpop.f32.mrb[0].mxu1 }
 0x16a   : > { %v1035_v21 = vadd.f32 %v709_v20, %v516_v18  ;;  %v1014_v22 = vpop.f32.mrb[1].mxu0  ;;  %v1020_v23 = vpop.f32.mrb[1].mxu1  ;;  %v1034_v30 = vadd.f32 %v663_v19, %v466_v29 }
 0x16b   : > { %v666_v24 = vpop.f32.mrb[2].mxu0  ;;  %v712_v25 = vpop.f32.mrb[2].mxu1 }
 0x16c   : > { %v963_v26 = vmul.f32 -1.442695, %v1035_v21  ;;  %v1015_v27 = vpop.f32.mrb[3].mxu0  ;;  %v1021_v28 = vpop.f32.mrb[3].mxu1 }
 0x16e   : > { %1069 = vpow2.f32 %v963_v26 }
 0x16f   : > { %1071 = vtanh.f32 %v1034_v30 }
 0x178   : > { %v1070_v31 = vpop.eup %1069 }
 0x179   : > { %v720_v32 = vadd.f32 1.0, %v1070_v31  ;;  %v1072_v33 = vpop.eup %1071 }
 0x17b   : > { %1073 = vrcp.f32 %v720_v32 }
 0x185   : > { %v1074_v34 = vpop.eup %1073 }
 0x186   : > { %v723_v35 = vmul.f32 %v1074_v34, %v1072_v33 }
 0x188   : > { %v724_v36 = vpack.c.bf16 %v723_v35, %v723_v35 }
 0x18a   : > { %v736_v37 = vsel %vm419_vm1, %v724_v36, 0 }
 0x18b   : > { %1023 = vmatpush3.bf16.msra.mxu0 %v736_v37  ;;  %1029 = vmatpush3.bf16.msra.mxu1 %v736_v37 }
 0x18e   : > { %1025 = vmatmul.mubr.msk.bf16.vlgmr.msra.gmra.mrb[4].mxu0 %vm415_vm2, %v725_v38  ;;  %1031 = vmatmul.mubr.msk.bf16.vlgmr.msra.gmra.mrb[4].mxu1 %vm415_vm2, %v778_v39 }
 0x261   : > { %v772_v41 = vpop.f32.mrb[4].mxu0  ;;  %v822_v42 = vpop.f32.mrb[4].mxu1 }
 0x262   : > { %v773_v43 = vadd.f32 %v772_v41, %v730_v40  ;;  %v1026_v44 = vpop.f32.mrb[5].mxu0  ;;  %v1032_v45 = vpop.f32.mrb[5].mxu1 }
 0x263   : > { %v775_v46 = vpop.f32.mrb[6].mxu0  ;;  %v825_v47 = vpop.f32.mrb[6].mxu1 }
 0x264   : > { %830 = vrot.lane.b32.xlu1 %v773_v43, %s1088_s13  ;;  %v1027_v48 = vpop.f32.mrb[7].mxu0  ;;  %v1033_v49 = vpop.f32.mrb[7].mxu1 }
 0x268   : > { %782 = vperm.xlu1 %1066, %v779_v50  }
 0x2d6   : > { %v831_v52 = vpop.permute.xlu1 %830 }
 0x2d7   : > { %v833_v53 = vadd.f32 %v831_v52, %v828_v51 }
 0x2d9   : > { %v969_v54 = vpack.c.bf16 %v833_v53, %v833_v53 }
 0x2db   : > { %838 = vrot.lane.b32.xlu0 %v969_v54, %s1085_s27  ;;  %s405_s27 = scalar_lea.vmem %s1254_s10, %s948_s19 }
 0x2e7   : > { %v783_v56 = vpop.permute.xlu1 %782 }
 0x2e8   : > { %v823_v57 = vadd.f32 %v822_v42, %v783_v56 }
 0x2ea   : > { %v844_v58 = vadd.f32 %v843_v55, %v823_v57 }
 0x2ec   : > { %846 = vst.msk [vmem:[%s409_s25] sm:$0xff] %vm845_vm3, %v844_v58 }
 0x34d   : > { %v839_v59 = vpop.permute.xlu0 %838 }
 0x34e   : > { %842 = vst.msk [vmem:[%s405_s27] sm:$0xf] %vm841_vm4, %v839_v59 }
 0x34f PF: > { %s22_s17 = sadd.s32 1, %s1081_s17  }
 0x350   : > { %p19_p4 = scmp.ge.s32.totalorder %s22_s17, 4  }
 0x352   :  { %21 = sbr.rel (!%p19_p4) target bundleno = 1 (0x1), region = 109 }

// kernel: _lambda_.34
= control target key start
LH: loop header
LB: loop body
LE: loop exit
PB: predicated region body
PF: predicated region fallthrough
CT: control target
= control target key end

     0   :  { %s520_s15 = smov 0   ;;  %s568_s0 = inlined_call_operand.vmem [shape: bf16[2,8,6], index: 0, kind: input, shape index: {}]   ;;  %s569_s1 = inlined_call_operand.vmem [shape: bf16[3,8,8], index: 1, kind: input, shape index: {}]   ;;  %s570_s2 = inlined_call_operand.vmem [shape: f32[8,1], index: 2, kind: input, shape index: {}]   ;;  %s571_s3 = inlined_call_operand.vmem [shape: f32[8,1], index: 3, kind: input, shape index: {}]   ;;  %s572_s4 = inlined_call_operand.vmem [shape: bf16[2,8,4], index: 4, kind: output, shape index: {}]  }
   0x1 LB: > { %s421_s16 = sadd.s32 4294967295, %s488_s15   ;;  %p425_p0 = scmp.ge.s32.totalorder %s488_s15, 1  ;;  %s488_s15 = sphi %s520_s15, %s14_s15  }
   0x2   : > { %p161_p1 = scmp.lt.s32.totalorder %s488_s15, 3 }
   0x4   : > { %p162_p2 = pnand %p425_p0, %p161_p1 }
   0x5   : > { %p185_p3 = scmp.lt.s32.totalorder (!%p162_p2), %s421_s16, 1  ;;  %v490_v0 = vmov (!%p162_p2), 0.0   ;;  %vm491_vm0 = vmmov (!%p162_p2), 0   ;;  %vm201_vm1 = vcmask (!%p162_p2), 1043456   ;;  %v196_v4 = vld [vmem:[%s569_s1] sm:$0xf] (!%p162_p2) }
   0x6   : > { %165 = sbr.rel (%p162_p2) target bundleno = 370 (0x172), region = 36  ;;  %448 = vmatprep.subr.bf16.mxu0 (!%p162_p2), %v490_v0  ;;  %450 = vmatprep.mubr.msk.bf16.mxu0 (!%p162_p2), %vm491_vm0, %v490_v0  ;;  %s492_s23 = smov (!%p162_p2), 127   ;;  %vm197_vm2 = vcmask (!%p162_p2), 64512   ;;  %v194_v5 = vld [vmem:[%s570_s2] sm:$0xff] (!%p162_p2)  ;;  %v494_v6 = vmov (!%p162_p2), 0   ;;  %vm366_vm4 = vcmask (!%p162_p2), 27648  }
   0x7   : > { %442 = vmatprep.subr.bf16.mxu1 (!%p162_p2), %v490_v0  ;;  %444 = vmatprep.mubr.msk.bf16.mxu1 (!%p162_p2), %vm491_vm0, %v490_v0  ;;  %s493_s26 = smov (!%p162_p2), 126   ;;  %v356_v7 = vld [vmem:[%s571_s3] sm:$0xff] (!%p162_p2)  ;;  %v432_v13 = vld [vmem:[%s569_s1 + $0x8] sm:$0xf] (!%p162_p2) }
   0x8   : > { %479 = vset.pattern.permute.xlu1 (!%p162_p2), %v494_v6  ;;  %480 = vset.pattern.permute.xlu0 (!%p162_p2), %v494_v6  ;;  %v429_v10 = vld [vmem:[%s569_s1 + $0x4] sm:$0xf] (!%p162_p2) }
   0x9   : > { %247 = vperm.xlu1 (!%p162_p2), %479, %v194_v5  }
   0xd   : > { %s574_s16 = smov (!%p185_p3, %s421_s16), 1  ;;  %360 = vperm.xlu1 %479, %v356_v7  }
   0xe   : > { %s426_s17 = sshll.u32 %s574_s16, 2 }
   0xf   : > { %s188_s20 = scalar_lea.vmem %s568_s0, %s426_s17  ;;  %s192_s9 = scalar_lea.vmem %s572_s4, %s426_s17 }
  0x10   : > { %v195_v1 = vld [vmem:[%s188_s20] sm:$0xf] }
  0x11   : > { %v430_v2 = vcombine.low %v195_v1, %v195_v1  ;;  %v203_v3 = vsel %vm201_vm1, %v195_v1, 0 }
  0x12   : > { %443 = vmatpush3.bf16.msra.mxu1 %v203_v3 }
  0x13   : > { %256 = vrot.lane.b32.xlu0 %v430_v2, %s492_s23 }
  0x15   : > { %445 = vmatmul.mubr.msk.bf16.vlgmr.msra.gmra.mrb[0].mxu1 %vm197_vm2, %v196_v4 }
  0x17   : > { %307 = vrot.lane.b32.xlu0 %v430_v2, %s493_s26 }
  0x85   : > { %v257_v8 = vpop.permute.xlu0 %256 }
  0x86   : > { %v262_v9 = vsel %vm201_vm1, %v257_v8, 0 }
  0x87   : > { %449 = vmatpush3.bf16.msra.mxu0 %v262_v9 }
  0x88   : > { %454 = vmatprep.subr.bf16.mxu0 %v490_v0  ;;  %v248_v18 = vpop.permute.xlu1 %247 }
  0x89   : > { %v308_v11 = vpop.permute.xlu0 %307 }
  0x8a   : > { %v313_v12 = vsel %vm201_vm1, %v308_v11, 0  ;;  %451 = vmatmul.mubr.msk.bf16.vlgmr.msra.gmra.mrb[0].mxu0 %vm197_vm2, %v429_v10 }
  0x8b   : > { %455 = vmatpush3.bf16.msra.mxu0 %v313_v12  ;;  %456 = vmatprep.mubr.msk.bf16.mxu0 %vm491_vm0, %v490_v0 }
  0x8c   : > { %v361_v23 = vpop.permute.xlu1 %360 }
  0x96   : > { %457 = vmatmul.mubr.msk.bf16.vlgmr.msra.gmra.mrb[0].mxu0 %vm197_vm2, %v432_v13 }
  0xe8   : > { %v239_v14 = vpop.f32.mrb[0].mxu1 }
  0xe9   : > { %v446_v15 = vpop.f32.mrb[1].mxu1  ;;  %v250_v19 = vadd.f32 %v248_v18, %v239_v14 }
  0xea   : > { %v242_v16 = vpop.f32.mrb[2].mxu1 }
  0xeb   : > { %v447_v17 = vpop.f32.mrb[3].mxu1 }
 0x169   : > { %v349_v20 = vpop.f32.mrb[0].mxu0 }
 0x16a   : > { %v461_v21 = vadd.f32 %v349_v20, %v250_v19  ;;  %v458_v22 = vpop.f32.mrb[1].mxu0 }
 0x16b   : > { %v352_v24 = vpop.f32.mrb[2].mxu0 }
 0x16c   : > { %vm357_vm3 = vcmp.ge.f32.partialorder %v461_v21, 0.0  ;;  %v363_v25 = vmul.f32 %v461_v21, %v361_v23  ;;  %v459_v26 = vpop.f32.mrb[3].mxu0 }
 0x16e   : > { %v364_v27 = vsel %vm357_vm3, %v461_v21, %v363_v25 }
 0x16f   : > { %v365_v28 = vpack.c.bf16 %v364_v27, %v364_v27 }
 0x171   : > { %367 = vst.msk [vmem:[%s192_s9] sm:$0xf] %vm366_vm4, %v365_v28 }
 0x172 PF: > { %s14_s15 = sadd.s32 1, %s488_s15  }
 0x173   : > { %p11_p4 = scmp.ge.s32.totalorder %s14_s15, 4  }
 0x175   :  { %13 = sbr.rel (!%p11_p4) target bundleno = 1 (0x1), region = 68 }

// kernel: _lambda_.33
= control target key start
LH: loop header
LB: loop body
LE: loop exit
PB: predicated region body
PF: predicated region fallthrough
CT: control target
= control target key end

     0   :  { %s1432_s0 = inlined_call_operand.vmem [shape: bf16[2,8,8], index: 0, kind: input, shape index: {}]   ;;  %s1433_s1 = inlined_call_operand.vmem [shape: f32[2,8,4], index: 1, kind: input, shape index: {}]   ;;  %s1434_s2 = inlined_call_operand.vmem [shape: bf16[3,8,8], index: 2, kind: input, shape index: {}]   ;;  %s1435_s3 = inlined_call_operand.vmem [shape: f32[8,1], index: 3, kind: input, shape index: {}]   ;;  %s1436_s4 = inlined_call_operand.vmem [shape: bf16[3,8,8], index: 4, kind: input, shape index: {}]   ;;  %s1437_s5 = inlined_call_operand.vmem [shape: f32[8,1], index: 5, kind: input, shape index: {}]   ;;  %s1438_s6 = inlined_call_operand.vmem [shape: bf16[8,8], index: 6, kind: input, shape index: {}]   ;;  %s1439_s7 = inlined_call_operand.vmem [shape: f32[8,1], index: 7, kind: input, shape index: {}]   ;;  %s1440_s8 = inlined_call_operand.vmem [shape: bf16[8,8], index: 8, kind: input, shape index: {}]   ;;  %s1441_s9 = inlined_call_operand.vmem [shape: f32[8,1], index: 9, kind: input, shape index: {}]   ;;  %s1442_s10 = inlined_call_operand.hbm [shape: bf16[2,8,4], index: 10, kind: output, shape index: {0}]   ;;  %s1443_s11 = inlined_call_operand.vmem [shape: f32[2,8,4], index: 11, kind: output, shape index: {1}]  }
   0x1   :  { %1444 = sst [smem:[#allocation5_spill]] %s1432_s0 }
   0x2   :  { %1445 = sst [smem:[#allocation6_spill]] %s1434_s2 }
   0x3   :  { %1446 = sst [smem:[#allocation7_spill]] %s1435_s3 }
   0x4   :  { %17 = vsyncpa [#allocation3], 0 }
   0x5   :  { %19 = vsyncpa [#allocation3 + $0x1], 0  ;;  %s1258_s17 = smov 0   ;;  %s1260_s18 = smov 0  }
   0x6   :  { %s1262_s19 = smov 0   ;;  %s1264_s20 = smov 0  }
   0x7 LB: > { %s1279_s21 = sadd.s32 4294967295, %s1189_s20   ;;  %s963_s22 = sadd.s32 4294967294, %s1189_s20   ;;  %s1189_s20 = sphi %s1264_s20, %s1455_s20   ;;  %s1185_s19 = sphi %s1262_s19, %s1454_s19   ;;  %s1181_s18 = sphi %s1260_s18, %s1453_s18   ;;  %s1177_s17 = sphi %s1258_s17, %s1452_s17  }
   0x8   : > { %s1283_s23 = sadd.s32 1, %s1189_s20   ;;  %s252_s24 = sadd.s32 1, %s1185_s19 }
   0x9   : > { %s249_s25 = ssub.s32 %s1189_s20, %s1283_s23  ;;  %p262_p0 = scmp.ne.s32.totalorder %s1185_s19, %s1181_s18 }
   0xa   : > { %p250_p1 = scmp.eq.s32.totalorder %s249_s25, 0  ;;  %p263_p2 = scmp.eq.s32.totalorder %s1279_s21, 1 }
   0xb   : > { %p268_p3 = scmp.ne.s32.totalorder %s1181_s18, %s1177_s17  ;;  %p269_p4 = scmp.eq.s32.totalorder %s963_s22, 1 }
   0xc   : > { %s1294_s26 = scalar_select %p250_p1, %s1185_s19, %s252_s24  }
   0xd   : > { %p1296_p5 = por %p263_p2, %p262_p0  ;;  %p1300_p6 = por %p269_p4, %p268_p3 }
   0xe   : > { %p966_p7 = scmp.ge.s32.totalorder %s1189_s20, 1  ;;  %p351_p8 = scmp.lt.s32.totalorder %s1189_s20, 3 }
  0x10   : > { %p352_p9 = pnand %p966_p7, %p351_p8 }
  0x11   : > { %p398_p10 = scmp.lt.s32.totalorder (!%p352_p9), %s1279_s21, 1  ;;  %v1191_v0 = vmov (!%p352_p9), 0.0   ;;  %vm1192_vm0 = vmmov (!%p352_p9), 0   ;;  %vm419_vm1 = vcmask (!%p352_p9), 1043456   ;;  %s1449_s0 = sld [smem:[#allocation5_spill]] (!%p352_p9)  ;;  %vm415_vm2 = vcmask (!%p352_p9), 64512  }
  0x12   : > { %355 = sbr.rel (%p352_p9) target bundleno = 873 (0x369), region = 60  ;;  %1007 = vmatprep.subr.bf16.mxu0 (!%p352_p9), %v1191_v0  ;;  %1013 = vmatprep.subr.bf16.mxu1 (!%p352_p9), %v1191_v0  ;;  %s1450_s2 = sld [smem:[#allocation6_spill]] (!%p352_p9)  ;;  %v469_v5 = vld [vmem:[%s1436_s4] sm:$0xf] (!%p352_p9)  ;;  %v1195_v7 = vmov (!%p352_p9), 0   ;;  %vm845_vm3 = vcmask (!%p352_p9), 31744  }
  0x13   : > { %1009 = vmatprep.mubr.msk.bf16.mxu0 (!%p352_p9), %vm1192_vm0, %v1191_v0  ;;  %1015 = vmatprep.mubr.msk.bf16.mxu1 (!%p352_p9), %vm1192_vm0, %v1191_v0  ;;  %s1193_s25 = smov (!%p352_p9), 126   ;;  %v412_v6 = vld [vmem:[%s1437_s5] sm:$0xff] (!%p352_p9)  ;;  %s1194_s13 = smov (!%p352_p9), 124   ;;  %v980_v16 = vld [vmem:[%s1436_s4 + $0x8] sm:$0xf] (!%p352_p9)  ;;  %vm841_vm4 = vcmask (!%p352_p9), 27648  }
  0x14   : > { %1118 = vset.pattern.permute.xlu1 (!%p352_p9), %v1195_v7  ;;  %1119 = vset.pattern.permute.xlu0 (!%p352_p9), %v1195_v7  ;;  %s1451_s3 = sld [smem:[#allocation7_spill]] (!%p352_p9)  ;;  %v976_v12 = vld [vmem:[%s1436_s4 + $0x4] sm:$0xf] (!%p352_p9)  ;;  %v725_v38 = vld [vmem:[%s1438_s6] sm:$0xf] (!%p352_p9)  ;;  %s389_s16 = sand.u32 (!%p352_p9), 1, %s1181_s18  }
  0x15   : > { %515 = vperm.xlu1 (!%p352_p9), %1118, %v412_v6   ;;  %v726_v17 = vld [vmem:[%s1439_s7] sm:$0xff] (!%p352_p9) }
  0x16   : > { %v778_v39 = vld [vmem:[%s1440_s8] sm:$0xf] (!%p352_p9) }
  0x17   : > { %v779_v50 = vld [vmem:[%s1441_s9] sm:$0xff] (!%p352_p9) }
  0x18   : > { %v414_v4 = vld [vmem:[%s1450_s2] sm:$0xf] (!%p352_p9)  ;;  %v973_v11 = vld [vmem:[%s1450_s2 + $0x4] sm:$0xf] (!%p352_p9)  ;;  %v978_v15 = vld [vmem:[%s1450_s2 + $0x8] sm:$0xf] (!%p352_p9) }
  0x19   : > { %s1308_s29 = scalar_select %p398_p10, %s1279_s21, 1 }
  0x1a   : > { %v411_v8 = vld [vmem:[%s1451_s3] sm:$0xff]  ;;  %s987_s2 = sshll.u32 %s1279_s21, 6 }
  0x1b   : > { %s968_s30 = sshll.u32 %s1308_s29, 2  ;;  %465 = vperm.xlu1 %1118, %v411_v8   ;;  %s969_s22 = sshll.u32 %s1308_s29, 3 }
  0x1c   : > { %s401_s14 = scalar_lea.vmem %s1449_s0, %s968_s30  ;;  %s405_s12 = scalar_lea.vmem %s1433_s1, %s969_s22 }
  0x1d   : > { %v1316_v1 = vld [vmem:[%s401_s14] sm:$0xf]  ;;  %s1196_s14 = smov 2   ;;  %s409_s15 = scalar_lea.vmem %s1443_s11, %s969_s22 }
  0x1e   : > { %v974_v2 = vcombine.low %v1316_v1, %v1316_v1  ;;  %v421_v3 = vsel %vm419_vm1, %v1316_v1, 0  ;;  %v828_v51 = vunpack.c.l.bf16 %v1316_v1  ;;  %v843_v55 = vld [vmem:[%s405_s12] sm:$0xff]  ;;  %s967_s0 = sshll.u32 %s389_s16, 2  ;;  %s1390_s30 = scalar_lea.hbm %s1442_s10, %s987_s2 }
  0x1f   : > { %1008 = vmatpush3.bf16.msra.mxu0 %v421_v3  ;;  %1014 = vmatpush3.bf16.msra.mxu1 %v421_v3  ;;  %s848_s22 = scalar_lea.sflag [#allocation3], %s389_s16 }
  0x20   : > { %524 = vrot.lane.b32.xlu0 %v974_v2, %s1193_s25  ;;  %1019 = vmatprep.subr.bf16.mxu0 %v1191_v0 }
  0x21   : > { %1025 = vmatprep.subr.bf16.mxu1 %v1191_v0 }
  0x22   : > { %1010 = vmatmul.mubr.msk.bf16.vlgmr.msra.gmra.mrb[0].mxu0 %vm415_vm2, %v414_v4  ;;  %1016 = vmatmul.mubr.msk.bf16.vlgmr.msra.gmra.mrb[0].mxu1 %vm415_vm2, %v469_v5 }
  0x23   : > { %1021 = vmatprep.mubr.msk.bf16.mxu0 %vm1192_vm0, %v1191_v0  ;;  %1027 = vmatprep.mubr.msk.bf16.mxu1 %vm1192_vm0, %v1191_v0 }
  0x24   : > { %621 = vrot.lane.b32.xlu0 %v974_v2, %s1194_s13 }
  0x28   : > { %729 = vperm.xlu0 %1119, %v726_v17  }
  0x92   : > { %v525_v9 = vpop.permute.xlu0 %524 }
  0x93   : > { %v530_v10 = vsel %vm419_vm1, %v525_v9, 0 }
  0x94   : > { %1020 = vmatpush3.bf16.msra.mxu0 %v530_v10  ;;  %1026 = vmatpush3.bf16.msra.mxu1 %v530_v10  ;;  %v516_v18 = vpop.permute.xlu1 %515 }
  0x95   : > { %1031 = vmatprep.subr.bf16.mxu0 %v1191_v0  ;;  %1037 = vmatprep.subr.bf16.mxu1 %v1191_v0 }
  0x96   : > { %v622_v13 = vpop.permute.xlu0 %621 }
  0x97   : > { %1022 = vmatmul.mubr.msk.bf16.vlgmr.msra.gmra.mrb[0].mxu0 %vm415_vm2, %v973_v11  ;;  %1028 = vmatmul.mubr.msk.bf16.vlgmr.msra.gmra.mrb[0].mxu1 %vm415_vm2, %v976_v12  ;;  %v627_v14 = vsel %vm419_vm1, %v622_v13, 0 }
  0x98   : > { %1032 = vmatpush3.bf16.msra.mxu0 %v627_v14  ;;  %1038 = vmatpush3.bf16.msra.mxu1 %v627_v14 }
  0x99   : > { %1033 = vmatprep.mubr.msk.bf16.mxu0 %vm1192_vm0, %v1191_v0  ;;  %1039 = vmatprep.mubr.msk.bf16.mxu1 %vm1192_vm0, %v1191_v0 }
  0x9a   : > { %1043 = vmatprep.subr.bf16.mxu0 %v1191_v0  ;;  %1049 = vmatprep.subr.bf16.mxu1 %v1191_v0  ;;  %v466_v29 = vpop.permute.xlu1 %465 }
  0xa3   : > { %1034 = vmatmul.mubr.msk.bf16.vlgmr.msra.gmra.mrb[0].mxu0 %vm415_vm2, %v978_v15  ;;  %1040 = vmatmul.mubr.msk.bf16.vlgmr.msra.gmra.mrb[0].mxu1 %vm415_vm2, %v980_v16 }
  0xa4   : > { %1045 = vmatprep.mubr.msk.bf16.mxu0 %vm1192_vm0, %v1191_v0  ;;  %1051 = vmatprep.mubr.msk.bf16.mxu1 %vm1192_vm0, %v1191_v0 }
  0xa7   : > { %v730_v40 = vpop.permute.xlu0 %729 }
 0x176   : > { %v663_v19 = vpop.f32.mrb[0].mxu0  ;;  %v709_v20 = vpop.f32.mrb[0].mxu1 }
 0x177   : > { %v1056_v21 = vadd.f32 %v709_v20, %v516_v18  ;;  %v1035_v22 = vpop.f32.mrb[1].mxu0  ;;  %v1041_v23 = vpop.f32.mrb[1].mxu1  ;;  %v1055_v30 = vadd.f32 %v663_v19, %v466_v29 }
 0x178   : > { %v666_v24 = vpop.f32.mrb[2].mxu0  ;;  %v712_v25 = vpop.f32.mrb[2].mxu1 }
 0x179   : > { %v982_v26 = vmul.f32 -1.442695, %v1056_v21  ;;  %v1036_v27 = vpop.f32.mrb[3].mxu0  ;;  %v1042_v28 = vpop.f32.mrb[3].mxu1 }
 0x17b   : > { %1121 = vpow2.f32 %v982_v26 }
 0x17c   : > { %1123 = vtanh.f32 %v1055_v30 }
 0x185   : > { %v1122_v31 = vpop.eup %1121 }
 0x186   : > { %v720_v32 = vadd.f32 1.0, %v1122_v31  ;;  %v1124_v33 = vpop.eup %1123 }
 0x188   : > { %1125 = vrcp.f32 %v720_v32 }
 0x192   : > { %v1126_v34 = vpop.eup %1125 }
 0x193   : > { %v723_v35 = vmul.f32 %v1126_v34, %v1124_v33 }
 0x195   : > { %v724_v36 = vpack.c.bf16 %v723_v35, %v723_v35 }
 0x197   : > { %v736_v37 = vsel %vm419_vm1, %v724_v36, 0 }
 0x198   : > { %1044 = vmatpush3.bf16.msra.mxu0 %v736_v37  ;;  %1050 = vmatpush3.bf16.msra.mxu1 %v736_v37 }
 0x19b   : > { %1046 = vmatmul.mubr.msk.bf16.vlgmr.msra.gmra.mrb[4].mxu0 %vm415_vm2, %v725_v38  ;;  %1052 = vmatmul.mubr.msk.bf16.vlgmr.msra.gmra.mrb[4].mxu1 %vm415_vm2, %v778_v39 }
 0x26e   : > { %v772_v41 = vpop.f32.mrb[4].mxu0  ;;  %v822_v42 = vpop.f32.mrb[4].mxu1 }
 0x26f   : > { %v773_v43 = vadd.f32 %v772_v41, %v730_v40  ;;  %v1047_v44 = vpop.f32.mrb[5].mxu0  ;;  %v1053_v45 = vpop.f32.mrb[5].mxu1 }
 0x270   : > { %v775_v46 = vpop.f32.mrb[6].mxu0  ;;  %v825_v47 = vpop.f32.mrb[6].mxu1 }
 0x271   : > { %830 = vrot.lane.b32.xlu1 %v773_v43, %s1196_s14  ;;  %v1048_v48 = vpop.f32.mrb[7].mxu0  ;;  %v1054_v49 = vpop.f32.mrb[7].mxu1 }
 0x275   : > { %782 = vperm.xlu1 %1118, %v779_v50  }
 0x2e3   : > { %v831_v52 = vpop.permute.xlu1 %830 }
 0x2e4   : > { %v833_v53 = vadd.f32 %v831_v52, %v828_v51 }
 0x2e6   : > { %v990_v54 = vpack.c.bf16 %v833_v53, %v833_v53 }
 0x2e8   : > { %838 = vrot.lane.b32.xlu0 %v990_v54, %s1193_s25  ;;  %s391_s25 = scalar_lea.vmem [#allocation2], %s967_s0  ;;  %s1197_s0 = smov [#allocation2]  }
 0x2e9   : > { %s865_s29 = sshll.u32 %s391_s25, 4  ;;  %s1131_s21 = sshll.u32 %s1197_s0, 4  ;;  %s1392_s29 = int_to_ptr.vmem [resolvable:$true] %s865_s29  ;;  %s1132_s21 = int_to_ptr.vmem [resolvable:$false] %s1131_s21 }
 0x2ea   : > { %s1127_s12 = scalar_lea.vmem %s1392_s29, 64  ;;  %s1133_s13 = scalar_lea.vmem %s1132_s21, 128 }
 0x2eb   : > { %p1128_p11 = scmp.ne.s32.totalorder %s1392_s29, %s1127_s12  ;;  %p1134_p0 = scmp.lt.s32.totalorder %s1392_s29, %s1132_s21 }
 0x2ec   : > { %p1135_p1 = scmp.lt.s32.totalorder %s1133_s13, %s1127_s12 }
 0x2ed   : > { %p1129_p12 = pnand %p1128_p11, %p1296_p5 }
 0x2ee   : > { %p1136_p2 = por %p1135_p1, %p1134_p0 }
 0x2ef   : > { %p1130_p13 = pneg %p1129_p12 }
 0x2f1   : > { %p1137_p3 = pnand %p1136_p2, %p1130_p13 }
 0x2f4   : > { %v783_v56 = vpop.permute.xlu1 %782 }
 0x2f5   : > { %v823_v57 = vadd.f32 %v822_v42, %v783_v56 }
 0x2f7   : > { %v844_v58 = vadd.f32 %v843_v55, %v823_v57 }
 0x2f9   : > { %846 = vst.msk [vmem:[%s409_s15] sm:$0xff] %vm845_vm3, %v844_v58 }
 0x35a   : > { %v839_v59 = vpop.permute.xlu0 %838 }
 0x35b   : > { %842 = vst.msk [vmem:[%s391_s25] sm:$0xf] %vm841_vm4, %v839_v59 }
 0x35c   : > { %1140 = shalt.err (!%p1137_p3)
}
 0x35d   : > { %s1141_s2 = scalar_lea.hbm %s1390_s30, 64  ;;  %s1145_s15 = scalar_lea.hbm %s1442_s10, 128 }
 0x35e   : > { %p1142_p4 = scmp.ne.s32.totalorder %s1390_s30, %s1141_s2  ;;  %p1146_p9 = scmp.lt.u32.totalorder %s1390_s30, %s1442_s10 }
 0x35f   : > { %p1147_p10 = scmp.lt.u32.totalorder %s1145_s15, %s1141_s2  ;;  %p1149_p12 = scmp.lt.u32.totalorder %s1141_s2, %s1390_s30 }
 0x360   : > { %p1143_p7 = pnand %p1142_p4, %p1296_p5 }
 0x361   : > { %p1148_p11 = por %p1147_p10, %p1146_p9 }
 0x362   : > { %p1144_p8 = pneg %p1143_p7 }
 0x363   : > { %p1150_p13 = por %p1149_p12, %p1148_p11 }
 0x365   : > { %p1151_p0 = pnand %p1150_p13, %p1144_p8 }
 0x367   : > { %1154 = shalt.err (!%p1151_p0)
}
 0x368   : > { %1073 = dma.vmem_to_hbm [thread:$0]  (%p1296_p5), %s1392_s29, 64, %s1390_s30, %s848_s22  }
 0x369 PF: > { %p1079_p1 = scmp.ge.s32.totalorder %s1189_s20, 2  ;;  %s880_s24 = sand.u32 1, %s1177_s17  }
 0x36a   : > { %s881_s12 = scalar_lea.sflag [#allocation3], %s880_s24 }
 0x36b   : > { %p1076_p2 = pnand %p1079_p1, %p1300_p6 }
 0x36d   : > { %1172 = dma.done.wait (!%p1076_p2), %s881_s12, 64  }
 0x36e   : > { %1174 = vsyncadd (!%p1076_p2), %s881_s12, 4294967232  ;;  %p22_p3 = scmp.ge.s32.totalorder %s1283_s23, 4   ;;  %s1452_s17 = smov %s1181_s18 }
 0x36f   : > { %s1453_s18 = smov %s1185_s19  ;;  %s1454_s19 = smov %s1294_s26 }
 0x370   : > { %s1455_s20 = smov %s1283_s23  ;;  %24 = sbr.rel (!%p22_p3) target bundleno = 7 (0x7), region = 114 }
 0x377   :  { %893 = vsyncpa [#allocation3], 1 }
 0x378   :  { %895 = vsyncpa [#allocation3 + $0x1], 1 }

// kernel: _lambda_.35
= control target key start
LH: loop header
LB: loop body
LE: loop exit
PB: predicated region body
PF: predicated region fallthrough
CT: control target
= control target key end

     0   :  { %s341_s12 = smov 0   ;;  %s364_s0 = inlined_call_operand.vmem [shape: bf16[2,8,4], index: 0, kind: input, shape index: {}]   ;;  %s365_s1 = inlined_call_operand.vmem [shape: bf16[1,8,8], index: 1, kind: input, shape index: {}]   ;;  %s366_s2 = inlined_call_operand.vmem [shape: f32[8,1], index: 2, kind: input, shape index: {}]   ;;  %s367_s3 = inlined_call_operand.vmem [shape: bf16[2,8,4], index: 3, kind: output, shape index: {}]  }
   0x1 LB: > { %s280_s13 = sadd.s32 4294967295, %s316_s12   ;;  %p284_p0 = scmp.ge.s32.totalorder %s316_s12, 1  ;;  %s316_s12 = sphi %s341_s12, %s13_s12  }
   0x2   : > { %p136_p1 = scmp.lt.s32.totalorder %s316_s12, 3 }
   0x4   : > { %p137_p2 = pnand %p284_p0, %p136_p1 }
   0x5   : > { %p158_p3 = scmp.lt.s32.totalorder (!%p137_p2), %s280_s13, 1  ;;  %v318_v0 = vmov (!%p137_p2), 0.0   ;;  %vm319_vm0 = vmmov (!%p137_p2), 0   ;;  %v167_v1 = vld [vmem:[%s366_s2] sm:$0xff] (!%p137_p2)  ;;  %v320_v2 = vmov (!%p137_p2), 0   ;;  %vm174_vm1 = vcmask (!%p137_p2), 1043456  }
   0x6   : > { %140 = sbr.rel (%p137_p2) target bundleno = 238 (0xee), region = 32  ;;  %292 = vmatprep.subr.bf16.mxu0 (!%p137_p2), %v318_v0  ;;  %294 = vmatprep.mubr.msk.bf16.mxu0 (!%p137_p2), %vm319_vm0, %v318_v0  ;;  %v169_v5 = vld [vmem:[%s365_s1] sm:$0xf] (!%p137_p2)  ;;  %vm170_vm2 = vcmask (!%p137_p2), 64512   ;;  %vm225_vm3 = vcmask (!%p137_p2), 27648  }
   0x7   : > { %309 = vset.pattern.permute.xlu0 (!%p137_p2), %v320_v2 }
   0x8   : > { %220 = vperm.xlu0 (!%p137_p2), %309, %v167_v1  }
   0xd   : > { %s369_s13 = smov (!%p158_p3, %s280_s13), 1 }
   0xe   : > { %s285_s16 = sshll.u32 %s369_s13, 2 }
   0xf   : > { %s161_s19 = scalar_lea.vmem %s364_s0, %s285_s16  ;;  %s165_s24 = scalar_lea.vmem %s367_s3, %s285_s16 }
  0x10   : > { %v168_v3 = vld [vmem:[%s161_s19] sm:$0xf] }
  0x11   : > { %v176_v4 = vsel %vm174_vm1, %v168_v3, 0 }
  0x12   : > { %293 = vmatpush3.bf16.msra.mxu0 %v176_v4 }
  0x15   : > { %295 = vmatmul.mubr.msk.bf16.vlgmr.msra.gmra.mrb[0].mxu0 %vm170_vm2, %v169_v5 }
  0x87   : > { %v221_v6 = vpop.permute.xlu0 %220 }
  0xe8   : > { %v212_v7 = vpop.f32.mrb[0].mxu0 }
  0xe9   : > { %v223_v8 = vadd.f32 %v221_v6, %v212_v7  ;;  %v296_v9 = vpop.f32.mrb[1].mxu0 }
  0xea   : > { %v215_v10 = vpop.f32.mrb[2].mxu0 }
  0xeb   : > { %v224_v11 = vpack.c.bf16 %v223_v8, %v223_v8  ;;  %v297_v12 = vpop.f32.mrb[3].mxu0 }
  0xed   : > { %226 = vst.msk [vmem:[%s165_s24] sm:$0xf] %vm225_vm3, %v224_v11 }
  0xee PF: > { %s13_s12 = sadd.s32 1, %s316_s12  }
  0xef   : > { %p10_p4 = scmp.ge.s32.totalorder %s13_s12, 4  }
  0xf1   :  { %12 = sbr.rel (!%p10_p4) target bundleno = 1 (0x1), region = 62 }

// kernel: _lambda_.36
= control target key start
LH: loop header
LB: loop body
LE: loop exit
PB: predicated region body
PF: predicated region fallthrough
CT: control target
= control target key end

     0   :  { %s739_s18 = smov 0   ;;  %s802_s0 = inlined_call_operand.vmem [shape: bf16[2,8,6], index: 0, kind: input, shape index: {}]   ;;  %s803_s1 = inlined_call_operand.vmem [shape: bf16[3,8,8], index: 1, kind: input, shape index: {}]   ;;  %s804_s2 = inlined_call_operand.vmem [shape: f32[8,1], index: 2, kind: input, shape index: {}]   ;;  %s805_s3 = inlined_call_operand.vmem [shape: bf16[3,8,8], index: 3, kind: input, shape index: {}]   ;;  %s806_s4 = inlined_call_operand.vmem [shape: f32[8,1], index: 4, kind: input, shape index: {}]   ;;  %s807_s5 = inlined_call_operand.vmem [shape: bf16[2,8,4], index: 5, kind: output, shape index: {}]  }
   0x1 LB: > { %s589_s19 = sadd.s32 4294967295, %s702_s18   ;;  %p593_p0 = scmp.ge.s32.totalorder %s702_s18, 1  ;;  %s702_s18 = sphi %s739_s18, %s15_s18  }
   0x2   : > { %p186_p1 = scmp.lt.s32.totalorder %s702_s18, 3 }
   0x4   : > { %p187_p2 = pnand %p593_p0, %p186_p1 }
   0x5   : > { %p212_p3 = scmp.lt.s32.totalorder (!%p187_p2), %s589_s19, 1  ;;  %v704_v0 = vmov (!%p187_p2), 0.0   ;;  %vm705_vm0 = vmmov (!%p187_p2), 0   ;;  %vm228_vm1 = vcmask (!%p187_p2), 1043456   ;;  %vm224_vm2 = vcmask (!%p187_p2), 64512   ;;  %s706_s28 = smov (!%p187_p2), 127  }
   0x6   : > { %190 = sbr.rel (%p187_p2) target bundleno = 395 (0x18b), region = 40  ;;  %640 = vmatprep.subr.bf16.mxu1 (!%p187_p2), %v704_v0  ;;  %642 = vmatprep.mubr.msk.bf16.mxu1 (!%p187_p2), %vm705_vm0, %v704_v0  ;;  %v384_v4 = vld [vmem:[%s805_s3] sm:$0xf] (!%p187_p2)  ;;  %s707_s6 = smov (!%p187_p2), 126   ;;  %v708_v7 = vmov (!%p187_p2), 0   ;;  %vm534_vm3 = vcmask (!%p187_p2), 27648  }
   0x7   : > { %622 = vmatprep.subr.bf16.mxu0 (!%p187_p2), %v704_v0  ;;  %624 = vmatprep.mubr.msk.bf16.mxu0 (!%p187_p2), %vm705_vm0, %v704_v0  ;;  %v223_v5 = vld [vmem:[%s803_s1] sm:$0xf] (!%p187_p2)  ;;  %v603_v11 = vld [vmem:[%s805_s3 + $0x4] sm:$0xf] (!%p187_p2)  ;;  %v605_v15 = vld [vmem:[%s805_s3 + $0x8] sm:$0xf] (!%p187_p2) }
   0x8   : > { %v383_v6 = vld [vmem:[%s806_s4] sm:$0xff] (!%p187_p2)  ;;  %689 = vset.pattern.permute.xlu1 (!%p187_p2), %v708_v7  ;;  %690 = vset.pattern.permute.xlu0 (!%p187_p2), %v708_v7  ;;  %v600_v16 = vld [vmem:[%s803_s1 + $0x8] sm:$0xf] (!%p187_p2) }
   0x9   : > { %430 = vperm.xlu1 (!%p187_p2), %689, %v383_v6   ;;  %v221_v8 = vld [vmem:[%s804_s2] sm:$0xff] (!%p187_p2) }
   0xa   : > { %v597_v12 = vld [vmem:[%s803_s1 + $0x4] sm:$0xf] (!%p187_p2) }
   0xd   : > { %s809_s19 = smov (!%p212_p3, %s589_s19), 1  ;;  %274 = vperm.xlu1 %689, %v221_v8  }
   0xe   : > { %s594_s20 = sshll.u32 %s809_s19, 2 }
   0xf   : > { %s215_s23 = scalar_lea.vmem %s802_s0, %s594_s20  ;;  %s219_s22 = scalar_lea.vmem %s807_s5, %s594_s20 }
  0x10   : > { %v222_v1 = vld [vmem:[%s215_s23] sm:$0xf] }
  0x11   : > { %v598_v2 = vcombine.low %v222_v1, %v222_v1  ;;  %v230_v3 = vsel %vm228_vm1, %v222_v1, 0 }
  0x12   : > { %641 = vmatpush3.bf16.msra.mxu1 %v230_v3  ;;  %623 = vmatpush3.bf16.msra.mxu0 %v230_v3 }
  0x13   : > { %283 = vrot.lane.b32.xlu0 %v598_v2, %s706_s28  ;;  %628 = vmatprep.subr.bf16.mxu0 %v704_v0 }
  0x14   : > { %646 = vmatprep.subr.bf16.mxu1 %v704_v0 }
  0x15   : > { %643 = vmatmul.mubr.msk.bf16.vlgmr.msra.gmra.mrb[0].mxu1 %vm224_vm2, %v384_v4  ;;  %625 = vmatmul.mubr.msk.bf16.vlgmr.msra.gmra.mrb[0].mxu0 %vm224_vm2, %v223_v5 }
  0x16   : > { %648 = vmatprep.mubr.msk.bf16.mxu1 %vm705_vm0, %v704_v0  ;;  %630 = vmatprep.mubr.msk.bf16.mxu0 %vm705_vm0, %v704_v0 }
  0x17   : > { %334 = vrot.lane.b32.xlu0 %v598_v2, %s707_s6 }
  0x85   : > { %v284_v9 = vpop.permute.xlu0 %283 }
  0x86   : > { %v289_v10 = vsel %vm228_vm1, %v284_v9, 0 }
  0x87   : > { %629 = vmatpush3.bf16.msra.mxu0 %v289_v10  ;;  %647 = vmatpush3.bf16.msra.mxu1 %v289_v10 }
  0x88   : > { %634 = vmatprep.subr.bf16.mxu0 %v704_v0  ;;  %652 = vmatprep.subr.bf16.mxu1 %v704_v0  ;;  %v431_v17 = vpop.permute.xlu1 %430 }
  0x89   : > { %v335_v13 = vpop.permute.xlu0 %334 }
  0x8a   : > { %649 = vmatmul.mubr.msk.bf16.vlgmr.msra.gmra.mrb[0].mxu1 %vm224_vm2, %v603_v11  ;;  %v340_v14 = vsel %vm228_vm1, %v335_v13, 0  ;;  %631 = vmatmul.mubr.msk.bf16.vlgmr.msra.gmra.mrb[0].mxu0 %vm224_vm2, %v597_v12 }
  0x8b   : > { %635 = vmatpush3.bf16.msra.mxu0 %v340_v14  ;;  %653 = vmatpush3.bf16.msra.mxu1 %v340_v14 }
  0x8c   : > { %654 = vmatprep.mubr.msk.bf16.mxu1 %vm705_vm0, %v704_v0  ;;  %636 = vmatprep.mubr.msk.bf16.mxu0 %vm705_vm0, %v704_v0  ;;  %v275_v30 = vpop.permute.xlu1 %274 }
  0x96   : > { %655 = vmatmul.mubr.msk.bf16.vlgmr.msra.gmra.mrb[0].mxu1 %vm224_vm2, %v605_v15  ;;  %637 = vmatmul.mubr.msk.bf16.vlgmr.msra.gmra.mrb[0].mxu0 %vm224_vm2, %v600_v16 }
 0x169   : > { %v519_v18 = vpop.f32.mrb[0].mxu1  ;;  %v376_v19 = vpop.f32.mrb[0].mxu0 }
 0x16a   : > { %v659_v20 = vadd.f32 %v519_v18, %v431_v17  ;;  %v656_v21 = vpop.f32.mrb[1].mxu1  ;;  %v638_v22 = vpop.f32.mrb[1].mxu0  ;;  %v658_v31 = vadd.f32 %v376_v19, %v275_v30 }
 0x16b   : > { %v522_v23 = vpop.f32.mrb[2].mxu1  ;;  %v379_v24 = vpop.f32.mrb[2].mxu0 }
 0x16c   : > { %v607_v25 = vmul.f32 -1.442695, %v659_v20  ;;  %v657_v26 = vpop.f32.mrb[3].mxu1  ;;  %v639_v27 = vpop.f32.mrb[3].mxu0 }
 0x16e   : > { %692 = vpow2.f32 %v607_v25 }
 0x178   : > { %v693_v28 = vpop.eup %692 }
 0x179   : > { %v529_v29 = vadd.f32 1.0, %v693_v28 }
 0x17b   : > { %694 = vrcp.f32 %v529_v29 }
 0x185   : > { %v695_v32 = vpop.eup %694 }
 0x186   : > { %v532_v33 = vmul.f32 %v695_v32, %v658_v31 }
 0x188   : > { %v533_v34 = vpack.c.bf16 %v532_v33, %v532_v33 }
 0x18a   : > { %535 = vst.msk [vmem:[%s219_s22] sm:$0xf] %vm534_vm3, %v533_v34 }
 0x18b PF: > { %s15_s18 = sadd.s32 1, %s702_s18  }
 0x18c   : > { %p12_p4 = scmp.ge.s32.totalorder %s15_s18, 4  }
 0x18e   :  { %14 = sbr.rel (!%p12_p4) target bundleno = 1 (0x1), region = 74 }

// kernel: _lambda_.40
= control target key start
LH: loop header
LB: loop body
LE: loop exit
PB: predicated region body
PF: predicated region fallthrough
CT: control target
= control target key end

     0   :  { %s739_s18 = smov 0   ;;  %s802_s0 = inlined_call_operand.vmem [shape: bf16[2,8,10], index: 0, kind: input, shape index: {}]   ;;  %s803_s1 = inlined_call_operand.vmem [shape: bf16[3,8,8], index: 1, kind: input, shape index: {}]   ;;  %s804_s2 = inlined_call_operand.vmem [shape: f32[8,1], index: 2, kind: input, shape index: {}]   ;;  %s805_s3 = inlined_call_operand.vmem [shape: bf16[3,8,8], index: 3, kind: input, shape index: {}]   ;;  %s806_s4 = inlined_call_operand.vmem [shape: f32[8,1], index: 4, kind: input, shape index: {}]   ;;  %s807_s5 = inlined_call_operand.vmem [shape: bf16[2,8,8], index: 5, kind: output, shape index: {}]  }
   0x1 LB: > { %s589_s19 = sadd.s32 4294967295, %s702_s18   ;;  %p593_p0 = scmp.ge.s32.totalorder %s702_s18, 1  ;;  %s702_s18 = sphi %s739_s18, %s15_s18  }
   0x2   : > { %p186_p1 = scmp.lt.s32.totalorder %s702_s18, 3 }
   0x4   : > { %p187_p2 = pnand %p593_p0, %p186_p1 }
   0x5   : > { %p212_p3 = scmp.lt.s32.totalorder (!%p187_p2), %s589_s19, 1  ;;  %v704_v0 = vmov (!%p187_p2), 0.0   ;;  %vm705_vm0 = vmmov (!%p187_p2), 0   ;;  %vm228_vm1 = vcmask (!%p187_p2), 1043456   ;;  %vm224_vm2 = vcmask (!%p187_p2), 64512   ;;  %s706_s28 = smov (!%p187_p2), 127  }
   0x6   : > { %190 = sbr.rel (%p187_p2) target bundleno = 395 (0x18b), region = 40  ;;  %640 = vmatprep.subr.bf16.mxu1 (!%p187_p2), %v704_v0  ;;  %642 = vmatprep.mubr.msk.bf16.mxu1 (!%p187_p2), %vm705_vm0, %v704_v0  ;;  %v384_v4 = vld [vmem:[%s805_s3] sm:$0xf] (!%p187_p2)  ;;  %s707_s6 = smov (!%p187_p2), 126   ;;  %v708_v7 = vmov (!%p187_p2), 0   ;;  %vm534_vm3 = vcmask (!%p187_p2), 60416  }
   0x7   : > { %622 = vmatprep.subr.bf16.mxu0 (!%p187_p2), %v704_v0  ;;  %624 = vmatprep.mubr.msk.bf16.mxu0 (!%p187_p2), %vm705_vm0, %v704_v0  ;;  %v223_v5 = vld [vmem:[%s803_s1] sm:$0xf] (!%p187_p2)  ;;  %v603_v11 = vld [vmem:[%s805_s3 + $0x4] sm:$0xf] (!%p187_p2)  ;;  %v605_v15 = vld [vmem:[%s805_s3 + $0x8] sm:$0xf] (!%p187_p2) }
   0x8   : > { %v383_v6 = vld [vmem:[%s806_s4] sm:$0xff] (!%p187_p2)  ;;  %689 = vset.pattern.permute.xlu1 (!%p187_p2), %v708_v7  ;;  %690 = vset.pattern.permute.xlu0 (!%p187_p2), %v708_v7  ;;  %v600_v16 = vld [vmem:[%s803_s1 + $0x8] sm:$0xf] (!%p187_p2) }
   0x9   : > { %430 = vperm.xlu1 (!%p187_p2), %689, %v383_v6   ;;  %v221_v8 = vld [vmem:[%s804_s2] sm:$0xff] (!%p187_p2) }
   0xa   : > { %v597_v12 = vld [vmem:[%s803_s1 + $0x4] sm:$0xf] (!%p187_p2) }
   0xd   : > { %s809_s19 = smov (!%p212_p3, %s589_s19), 1  ;;  %274 = vperm.xlu1 %689, %v221_v8  }
   0xe   : > { %s594_s20 = sshll.u32 %s809_s19, 2 }
   0xf   : > { %s215_s23 = scalar_lea.vmem %s802_s0, %s594_s20  ;;  %s219_s22 = scalar_lea.vmem %s807_s5, %s594_s20 }
  0x10   : > { %v222_v1 = vld [vmem:[%s215_s23] sm:$0xf] }
  0x11   : > { %v598_v2 = vcombine.low %v222_v1, %v222_v1  ;;  %v230_v3 = vsel %vm228_vm1, %v222_v1, 0 }
  0x12   : > { %641 = vmatpush3.bf16.msra.mxu1 %v230_v3  ;;  %623 = vmatpush3.bf16.msra.mxu0 %v230_v3 }
  0x13   : > { %283 = vrot.lane.b32.xlu0 %v598_v2, %s706_s28  ;;  %628 = vmatprep.subr.bf16.mxu0 %v704_v0 }
  0x14   : > { %646 = vmatprep.subr.bf16.mxu1 %v704_v0 }
  0x15   : > { %643 = vmatmul.mubr.msk.bf16.vlgmr.msra.gmra.mrb[0].mxu1 %vm224_vm2, %v384_v4  ;;  %625 = vmatmul.mubr.msk.bf16.vlgmr.msra.gmra.mrb[0].mxu0 %vm224_vm2, %v223_v5 }
  0x16   : > { %648 = vmatprep.mubr.msk.bf16.mxu1 %vm705_vm0, %v704_v0  ;;  %630 = vmatprep.mubr.msk.bf16.mxu0 %vm705_vm0, %v704_v0 }
  0x17   : > { %334 = vrot.lane.b32.xlu0 %v598_v2, %s707_s6 }
  0x85   : > { %v284_v9 = vpop.permute.xlu0 %283 }
  0x86   : > { %v289_v10 = vsel %vm228_vm1, %v284_v9, 0 }
  0x87   : > { %629 = vmatpush3.bf16.msra.mxu0 %v289_v10  ;;  %647 = vmatpush3.bf16.msra.mxu1 %v289_v10 }
  0x88   : > { %634 = vmatprep.subr.bf16.mxu0 %v704_v0  ;;  %652 = vmatprep.subr.bf16.mxu1 %v704_v0  ;;  %v431_v17 = vpop.permute.xlu1 %430 }
  0x89   : > { %v335_v13 = vpop.permute.xlu0 %334 }
  0x8a   : > { %649 = vmatmul.mubr.msk.bf16.vlgmr.msra.gmra.mrb[0].mxu1 %vm224_vm2, %v603_v11  ;;  %v340_v14 = vsel %vm228_vm1, %v335_v13, 0  ;;  %631 = vmatmul.mubr.msk.bf16.vlgmr.msra.gmra.mrb[0].mxu0 %vm224_vm2, %v597_v12 }
  0x8b   : > { %635 = vmatpush3.bf16.msra.mxu0 %v340_v14  ;;  %653 = vmatpush3.bf16.msra.mxu1 %v340_v14 }
  0x8c   : > { %654 = vmatprep.mubr.msk.bf16.mxu1 %vm705_vm0, %v704_v0  ;;  %636 = vmatprep.mubr.msk.bf16.mxu0 %vm705_vm0, %v704_v0  ;;  %v275_v30 = vpop.permute.xlu1 %274 }
  0x96   : > { %655 = vmatmul.mubr.msk.bf16.vlgmr.msra.gmra.mrb[0].mxu1 %vm224_vm2, %v605_v15  ;;  %637 = vmatmul.mubr.msk.bf16.vlgmr.msra.gmra.mrb[0].mxu0 %vm224_vm2, %v600_v16 }
 0x169   : > { %v519_v18 = vpop.f32.mrb[0].mxu1  ;;  %v376_v19 = vpop.f32.mrb[0].mxu0 }
 0x16a   : > { %v659_v20 = vadd.f32 %v519_v18, %v431_v17  ;;  %v656_v21 = vpop.f32.mrb[1].mxu1  ;;  %v638_v22 = vpop.f32.mrb[1].mxu0  ;;  %v658_v31 = vadd.f32 %v376_v19, %v275_v30 }
 0x16b   : > { %v522_v23 = vpop.f32.mrb[2].mxu1  ;;  %v379_v24 = vpop.f32.mrb[2].mxu0 }
 0x16c   : > { %v607_v25 = vmul.f32 -1.442695, %v659_v20  ;;  %v657_v26 = vpop.f32.mrb[3].mxu1  ;;  %v639_v27 = vpop.f32.mrb[3].mxu0 }
 0x16e   : > { %692 = vpow2.f32 %v607_v25 }
 0x178   : > { %v693_v28 = vpop.eup %692 }
 0x179   : > { %v529_v29 = vadd.f32 1.0, %v693_v28 }
 0x17b   : > { %694 = vrcp.f32 %v529_v29 }
 0x185   : > { %v695_v32 = vpop.eup %694 }
 0x186   : > { %v532_v33 = vmul.f32 %v695_v32, %v658_v31 }
 0x188   : > { %v533_v34 = vpack.c.bf16 %v532_v33, %v532_v33 }
 0x18a   : > { %535 = vst.msk [vmem:[%s219_s22] sm:$0xf] %vm534_vm3, %v533_v34 }
 0x18b PF: > { %s15_s18 = sadd.s32 1, %s702_s18  }
 0x18c   : > { %p12_p4 = scmp.ge.s32.totalorder %s15_s18, 4  }
 0x18e   :  { %14 = sbr.rel (!%p12_p4) target bundleno = 1 (0x1), region = 74 }

// kernel: _lambda_.37
= control target key start
LH: loop header
LB: loop body
LE: loop exit
PB: predicated region body
PF: predicated region fallthrough
CT: control target
= control target key end

     0   :  { %s1374_s18 = smov 0   ;;  %s1524_s0 = inlined_call_operand.vmem [shape: bf16[2,8,15], index: 0, kind: input, shape index: {}]   ;;  %s1525_s1 = inlined_call_operand.vmem [shape: bf16[8,8,8], index: 1, kind: input, shape index: {}]   ;;  %s1526_s2 = inlined_call_operand.vmem [shape: f32[8,1], index: 2, kind: input, shape index: {}]   ;;  %s1527_s3 = inlined_call_operand.vmem [shape: bf16[8,8,8], index: 3, kind: input, shape index: {}]   ;;  %s1528_s4 = inlined_call_operand.vmem [shape: f32[8,1], index: 4, kind: input, shape index: {}]   ;;  %s1529_s5 = inlined_call_operand.vmem [shape: bf16[2,8,8], index: 5, kind: output, shape index: {}]  }
   0x1 LB: > { %s1074_s19 = sadd.s32 4294967295, %s1332_s18   ;;  %p1078_p0 = scmp.ge.s32.totalorder %s1332_s18, 1  ;;  %s1332_s18 = sphi %s1374_s18, %s15_s18  }
   0x2   : > { %p186_p1 = scmp.lt.s32.totalorder %s1332_s18, 3 }
   0x4   : > { %p187_p2 = pnand %p1078_p0, %p186_p1 }
   0x5   : > { %p212_p3 = scmp.lt.s32.totalorder (!%p187_p2), %s1074_s19, 1  ;;  %v1334_v0 = vmov (!%p187_p2), 0.0   ;;  %vm1335_vm0 = vmmov (!%p187_p2), 0   ;;  %vm228_vm1 = vcmask (!%p187_p2), 1043456   ;;  %v223_v4 = vld [vmem:[%s1525_s1] sm:$0xf] (!%p187_p2) }
   0x6   : > { %190 = sbr.rel (%p187_p2) target bundleno = 455 (0x1c7), region = 40  ;;  %1147 = vmatprep.subr.bf16.mxu0 (!%p187_p2), %v1334_v0  ;;  %1195 = vmatprep.subr.bf16.mxu1 (!%p187_p2), %v1334_v0  ;;  %vm224_vm2 = vcmask (!%p187_p2), 64512   ;;  %v639_v5 = vld [vmem:[%s1527_s3] sm:$0xf] (!%p187_p2)  ;;  %s1336_s28 = smov (!%p187_p2), 127   ;;  %v1343_v8 = vmov (!%p187_p2), 0  }
   0x7   : > { %1149 = vmatprep.mubr.msk.bf16.mxu0 (!%p187_p2), %vm1335_vm0, %v1334_v0  ;;  %1197 = vmatprep.mubr.msk.bf16.mxu1 (!%p187_p2), %vm1335_vm0, %v1334_v0  ;;  %s1337_s29 = smov (!%p187_p2), 125   ;;  %s1338_s30 = smov (!%p187_p2), 126   ;;  %v638_v6 = vld [vmem:[%s1528_s4] sm:$0xff] (!%p187_p2)  ;;  %v1085_v16 = vld [vmem:[%s1525_s1 + $0x8] sm:$0xf] (!%p187_p2)  ;;  %vm1019_vm3 = vcmask (!%p187_p2), 60416  }
   0x8   : > { %s1339_s6 = smov (!%p187_p2), 124   ;;  %s1340_s7 = smov (!%p187_p2), 123   ;;  %v221_v7 = vld [vmem:[%s1526_s2] sm:$0xff] (!%p187_p2)  ;;  %1320 = vset.pattern.permute.xlu0 (!%p187_p2), %v1343_v8  ;;  %1319 = vset.pattern.permute.xlu1 (!%p187_p2), %v1343_v8  ;;  %v1100_v17 = vld [vmem:[%s1527_s3 + $0x8] sm:$0xf] (!%p187_p2) }
   0x9   : > { %s1341_s8 = smov (!%p187_p2), 122   ;;  %s1342_s9 = smov (!%p187_p2), 121   ;;  %v1082_v11 = vld [vmem:[%s1525_s1 + $0x4] sm:$0xf] (!%p187_p2)  ;;  %v1087_v20 = vld [vmem:[%s1525_s1 + $0xc] sm:$0xf] (!%p187_p2) }
   0xa   : > { %v1098_v12 = vld [vmem:[%s1527_s3 + $0x4] sm:$0xf] (!%p187_p2)  ;;  %v1102_v21 = vld [vmem:[%s1527_s3 + $0xc] sm:$0xf] (!%p187_p2)  ;;  %v1089_v24 = vld [vmem:[%s1525_s1 + $0x10] sm:$0xf] (!%p187_p2) }
   0xb   : > { %v1104_v25 = vld [vmem:[%s1527_s3 + $0x10] sm:$0xf] (!%p187_p2)  ;;  %v1091_v28 = vld [vmem:[%s1525_s1 + $0x14] sm:$0xf] (!%p187_p2)  ;;  %v1093_v32 = vld [vmem:[%s1525_s1 + $0x18] sm:$0xf] (!%p187_p2) }
   0xc   : > { %v1106_v29 = vld [vmem:[%s1527_s3 + $0x14] sm:$0xf] (!%p187_p2)  ;;  %v1108_v33 = vld [vmem:[%s1527_s3 + $0x18] sm:$0xf] (!%p187_p2)  ;;  %v1095_v35 = vld [vmem:[%s1525_s1 + $0x1c] sm:$0xf] (!%p187_p2) }
   0xd   : > { %s1531_s19 = smov (!%p212_p3, %s1074_s19), 1  ;;  %v1110_v36 = vld [vmem:[%s1527_s3 + $0x1c] sm:$0xf] }
   0xe   : > { %s1079_s20 = sshll.u32 %s1531_s19, 2 }
   0xf   : > { %s215_s23 = scalar_lea.vmem %s1524_s0, %s1079_s20  ;;  %s219_s25 = scalar_lea.vmem %s1529_s5, %s1079_s20 }
  0x10   : > { %v222_v1 = vld [vmem:[%s215_s23] sm:$0xf] }
  0x11   : > { %v1083_v2 = vcombine.low %v222_v1, %v222_v1  ;;  %v230_v3 = vsel %vm228_vm1, %v222_v1, 0 }
  0x12   : > { %1148 = vmatpush3.bf16.msra.mxu0 %v230_v3  ;;  %1196 = vmatpush3.bf16.msra.mxu1 %v230_v3 }
  0x13   : > { %283 = vrot.lane.b32.xlu0 %v1083_v2, %s1336_s28  ;;  %385 = vrot.lane.b32.xlu1 %v1083_v2, %s1337_s29 }
  0x14   : > { %1153 = vmatprep.subr.bf16.mxu0 %v1334_v0  ;;  %1201 = vmatprep.subr.bf16.mxu1 %v1334_v0 }
  0x15   : > { %1150 = vmatmul.mubr.msk.bf16.vlgmr.msra.gmra.mrb[0].mxu0 %vm224_vm2, %v223_v4  ;;  %1198 = vmatmul.mubr.msk.bf16.vlgmr.msra.gmra.mrb[0].mxu1 %vm224_vm2, %v639_v5 }
  0x16   : > { %1155 = vmatprep.mubr.msk.bf16.mxu0 %vm1335_vm0, %v1334_v0  ;;  %1203 = vmatprep.mubr.msk.bf16.mxu1 %vm1335_vm0, %v1334_v0 }
  0x17   : > { %334 = vrot.lane.b32.xlu0 %v1083_v2, %s1338_s30  ;;  %436 = vrot.lane.b32.xlu1 %v1083_v2, %s1339_s6 }
  0x1b   : > { %487 = vrot.lane.b32.xlu0 %v1083_v2, %s1340_s7  ;;  %538 = vrot.lane.b32.xlu1 %v1083_v2, %s1341_s8 }
  0x1f   : > { %589 = vrot.lane.b32.xlu0 %v1083_v2, %s1342_s9  ;;  %685 = vperm.xlu1 %1319, %v638_v6  }
  0x23   : > { %274 = vperm.xlu0 %1320, %v221_v7  }
  0x85   : > { %v284_v9 = vpop.permute.xlu0 %283  ;;  %v386_v15 = vpop.permute.xlu1 %385 }
  0x86   : > { %v289_v10 = vsel %vm228_vm1, %v284_v9, 0  ;;  %v391_v18 = vsel %vm228_vm1, %v386_v15, 0 }
  0x87   : > { %1154 = vmatpush3.bf16.msra.mxu0 %v289_v10  ;;  %1202 = vmatpush3.bf16.msra.mxu1 %v289_v10 }
  0x88   : > { %1159 = vmatprep.subr.bf16.mxu0 %v1334_v0  ;;  %1207 = vmatprep.subr.bf16.mxu1 %v1334_v0 }
  0x89   : > { %v335_v13 = vpop.permute.xlu0 %334  ;;  %v437_v19 = vpop.permute.xlu1 %436 }
  0x8a   : > { %1156 = vmatmul.mubr.msk.bf16.vlgmr.msra.gmra.mrb[0].mxu0 %vm224_vm2, %v1082_v11  ;;  %1204 = vmatmul.mubr.msk.bf16.vlgmr.msra.gmra.mrb[0].mxu1 %vm224_vm2, %v1098_v12  ;;  %v340_v14 = vsel %vm228_vm1, %v335_v13, 0  ;;  %v442_v22 = vsel %vm228_vm1, %v437_v19, 0 }
  0x8b   : > { %1160 = vmatpush3.bf16.msra.mxu0 %v340_v14  ;;  %1208 = vmatpush3.bf16.msra.mxu1 %v340_v14 }
  0x8c   : > { %1161 = vmatprep.mubr.msk.bf16.mxu0 %vm1335_vm0, %v1334_v0  ;;  %1209 = vmatprep.mubr.msk.bf16.mxu1 %vm1335_vm0, %v1334_v0 }
  0x8d   : > { %1165 = vmatprep.subr.bf16.mxu0 %v1334_v0  ;;  %1213 = vmatprep.subr.bf16.mxu1 %v1334_v0  ;;  %v488_v23 = vpop.permute.xlu0 %487  ;;  %v539_v27 = vpop.permute.xlu1 %538 }
  0x8e   : > { %v493_v26 = vsel %vm228_vm1, %v488_v23, 0  ;;  %v544_v30 = vsel %vm228_vm1, %v539_v27, 0 }
  0x91   : > { %v590_v31 = vpop.permute.xlu0 %589 }
  0x92   : > { %v595_v34 = vsel %vm228_vm1, %v590_v31, 0 }
  0x96   : > { %1162 = vmatmul.mubr.msk.bf16.vlgmr.msra.gmra.mrb[0].mxu0 %vm224_vm2, %v1085_v16  ;;  %1210 = vmatmul.mubr.msk.bf16.vlgmr.msra.gmra.mrb[0].mxu1 %vm224_vm2, %v1100_v17 }
  0x97   : > { %1166 = vmatpush3.bf16.msra.mxu0 %v391_v18  ;;  %1214 = vmatpush3.bf16.msra.mxu1 %v391_v18 }
  0x98   : > { %1167 = vmatprep.mubr.msk.bf16.mxu0 %vm1335_vm0, %v1334_v0  ;;  %1215 = vmatprep.mubr.msk.bf16.mxu1 %vm1335_vm0, %v1334_v0 }
  0x99   : > { %1171 = vmatprep.subr.bf16.mxu0 %v1334_v0  ;;  %1219 = vmatprep.subr.bf16.mxu1 %v1334_v0 }
  0x9e   : > { %v686_v37 = vpop.permute.xlu1 %685 }
  0xa2   : > { %1168 = vmatmul.mubr.msk.bf16.vlgmr.msra.gmra.mrb[0].mxu0 %vm224_vm2, %v1087_v20  ;;  %1216 = vmatmul.mubr.msk.bf16.vlgmr.msra.gmra.mrb[0].mxu1 %vm224_vm2, %v1102_v21  ;;  %v275_v50 = vpop.permute.xlu0 %274 }
  0xa3   : > { %1172 = vmatpush3.bf16.msra.mxu0 %v442_v22  ;;  %1220 = vmatpush3.bf16.msra.mxu1 %v442_v22 }
  0xa4   : > { %1173 = vmatprep.mubr.msk.bf16.mxu0 %vm1335_vm0, %v1334_v0  ;;  %1221 = vmatprep.mubr.msk.bf16.mxu1 %vm1335_vm0, %v1334_v0 }
  0xa5   : > { %1177 = vmatprep.subr.bf16.mxu0 %v1334_v0  ;;  %1225 = vmatprep.subr.bf16.mxu1 %v1334_v0 }
  0xae   : > { %1174 = vmatmul.mubr.msk.bf16.vlgmr.msra.gmra.mrb[0].mxu0 %vm224_vm2, %v1089_v24  ;;  %1222 = vmatmul.mubr.msk.bf16.vlgmr.msra.gmra.mrb[0].mxu1 %vm224_vm2, %v1104_v25 }
  0xaf   : > { %1178 = vmatpush3.bf16.msra.mxu0 %v493_v26  ;;  %1226 = vmatpush3.bf16.msra.mxu1 %v493_v26 }
  0xb0   : > { %1179 = vmatprep.mubr.msk.bf16.mxu0 %vm1335_vm0, %v1334_v0  ;;  %1227 = vmatprep.mubr.msk.bf16.mxu1 %vm1335_vm0, %v1334_v0 }
  0xb1   : > { %1183 = vmatprep.subr.bf16.mxu0 %v1334_v0  ;;  %1231 = vmatprep.subr.bf16.mxu1 %v1334_v0 }
  0xba   : > { %1180 = vmatmul.mubr.msk.bf16.vlgmr.msra.gmra.mrb[0].mxu0 %vm224_vm2, %v1091_v28  ;;  %1228 = vmatmul.mubr.msk.bf16.vlgmr.msra.gmra.mrb[0].mxu1 %vm224_vm2, %v1106_v29 }
  0xbb   : > { %1184 = vmatpush3.bf16.msra.mxu0 %v544_v30  ;;  %1232 = vmatpush3.bf16.msra.mxu1 %v544_v30 }
  0xbc   : > { %1185 = vmatprep.mubr.msk.bf16.mxu0 %vm1335_vm0, %v1334_v0  ;;  %1233 = vmatprep.mubr.msk.bf16.mxu1 %vm1335_vm0, %v1334_v0 }
  0xbd   : > { %1189 = vmatprep.subr.bf16.mxu0 %v1334_v0  ;;  %1237 = vmatprep.subr.bf16.mxu1 %v1334_v0 }
  0xc6   : > { %1186 = vmatmul.mubr.msk.bf16.vlgmr.msra.gmra.mrb[0].mxu0 %vm224_vm2, %v1093_v32  ;;  %1234 = vmatmul.mubr.msk.bf16.vlgmr.msra.gmra.mrb[0].mxu1 %vm224_vm2, %v1108_v33 }
  0xc7   : > { %1190 = vmatpush3.bf16.msra.mxu0 %v595_v34  ;;  %1238 = vmatpush3.bf16.msra.mxu1 %v595_v34 }
  0xc8   : > { %1191 = vmatprep.mubr.msk.bf16.mxu0 %vm1335_vm0, %v1334_v0  ;;  %1239 = vmatprep.mubr.msk.bf16.mxu1 %vm1335_vm0, %v1334_v0 }
  0xd2   : > { %1192 = vmatmul.mubr.msk.bf16.vlgmr.msra.gmra.mrb[0].mxu0 %vm224_vm2, %v1095_v35  ;;  %1240 = vmatmul.mubr.msk.bf16.vlgmr.msra.gmra.mrb[0].mxu1 %vm224_vm2, %v1110_v36 }
 0x1a5   : > { %v631_v38 = vpop.f32.mrb[0].mxu0  ;;  %v1004_v39 = vpop.f32.mrb[0].mxu1 }
 0x1a6   : > { %v1244_v40 = vadd.f32 %v1004_v39, %v686_v37  ;;  %v1193_v41 = vpop.f32.mrb[1].mxu0  ;;  %v1241_v42 = vpop.f32.mrb[1].mxu1  ;;  %v1243_v51 = vadd.f32 %v631_v38, %v275_v50 }
 0x1a7   : > { %v634_v43 = vpop.f32.mrb[2].mxu0  ;;  %v1007_v44 = vpop.f32.mrb[2].mxu1 }
 0x1a8   : > { %v1112_v45 = vmul.f32 -1.442695, %v1244_v40  ;;  %v1194_v46 = vpop.f32.mrb[3].mxu0  ;;  %v1242_v47 = vpop.f32.mrb[3].mxu1 }
 0x1aa   : > { %1322 = vpow2.f32 %v1112_v45 }
 0x1b4   : > { %v1323_v48 = vpop.eup %1322 }
 0x1b5   : > { %v1014_v49 = vadd.f32 1.0, %v1323_v48 }
 0x1b7   : > { %1324 = vrcp.f32 %v1014_v49 }
 0x1c1   : > { %v1325_v52 = vpop.eup %1324 }
 0x1c2   : > { %v1017_v53 = vmul.f32 %v1325_v52, %v1243_v51 }
 0x1c4   : > { %v1018_v54 = vpack.c.bf16 %v1017_v53, %v1017_v53 }
 0x1c6   : > { %1020 = vst.msk [vmem:[%s219_s25] sm:$0xf] %vm1019_vm3, %v1018_v54 }
 0x1c7 PF: > { %s15_s18 = sadd.s32 1, %s1332_s18  }
 0x1c8   : > { %p12_p4 = scmp.ge.s32.totalorder %s15_s18, 4  }
 0x1ca   :  { %14 = sbr.rel (!%p12_p4) target bundleno = 1 (0x1), region = 84 }

// kernel: _lambda_.41
= control target key start
LH: loop header
LB: loop body
LE: loop exit
PB: predicated region body
PF: predicated region fallthrough
CT: control target
= control target key end

     0   :  { %s1282_s12 = smov 0   ;;  %s1426_s0 = inlined_call_operand.vmem [shape: bf16[2,8,22], index: 0, kind: input, shape index: {}]   ;;  %s1427_s1 = inlined_call_operand.vmem [shape: bf16[15,4,8], index: 1, kind: input, shape index: {}]   ;;  %s1428_s2 = inlined_call_operand.vmem [shape: f32[4,1], index: 2, kind: input, shape index: {}]   ;;  %s1429_s3 = inlined_call_operand.vmem [shape: bf16[2,4,8], index: 3, kind: output, shape index: {}]  }
   0x1 LB: > { %s997_s13 = sadd.s32 4294967295, %s1243_s12   ;;  %p1001_p0 = scmp.ge.s32.totalorder %s1243_s12, 1  ;;  %s1243_s12 = sphi %s1282_s12, %s13_s12  }
   0x2   : > { %p136_p1 = scmp.lt.s32.totalorder %s1243_s12, 3 }
   0x4   : > { %p137_p2 = pnand %p1001_p0, %p136_p1 }
   0x5   : > { %p158_p3 = scmp.lt.s32.totalorder (!%p137_p2), %s997_s13, 1  ;;  %v1245_v0 = vmov (!%p137_p2), 0.0   ;;  %vm1246_vm0 = vmmov (!%p137_p2), 0   ;;  %vm174_vm1 = vcmask (!%p137_p2), 1043456   ;;  %v169_v4 = vld [vmem:[%s1427_s1] sm:$0x3] (!%p137_p2) }
   0x6   : > { %140 = sbr.rel (%p137_p2) target bundleno = 439 (0x1b7), region = 32  ;;  %1066 = vmatprep.subr.bf16.mxu1 (!%p137_p2), %v1245_v0  ;;  %1068 = vmatprep.mubr.msk.bf16.mxu1 (!%p137_p2), %vm1246_vm0, %v1245_v0  ;;  %vm170_vm2 = vcmask (!%p137_p2), 64512   ;;  %s1247_s20 = smov (!%p137_p2), 127   ;;  %v167_v5 = vld [vmem:[%s1428_s2] sm:$0xf] (!%p137_p2)  ;;  %v1261_v6 = vmov (!%p137_p2), 0  }
   0x7   : > { %1108 = vmatprep.subr.bf16.mxu0 (!%p137_p2), %v1245_v0  ;;  %1110 = vmatprep.mubr.msk.bf16.mxu0 (!%p137_p2), %vm1246_vm0, %v1245_v0  ;;  %s1248_s21 = smov (!%p137_p2), 121   ;;  %s1249_s22 = smov (!%p137_p2), 120   ;;  %v1005_v11 = vld [vmem:[%s1427_s1 + $0x2] sm:$0x3] (!%p137_p2)  ;;  %v1018_v12 = vld [vmem:[%s1427_s1 + $0xe] sm:$0x3] (!%p137_p2) }
   0x8   : > { %s1250_s23 = smov (!%p137_p2), 119   ;;  %s1251_s24 = smov (!%p137_p2), 126   ;;  %1235 = vset.pattern.permute.xlu0 (!%p137_p2), %v1261_v6  ;;  %v1008_v19 = vld [vmem:[%s1427_s1 + $0x4] sm:$0x3] (!%p137_p2)  ;;  %v1020_v20 = vld [vmem:[%s1427_s1 + $0x10] sm:$0x3] (!%p137_p2) }
   0x9   : > { %s1252_s25 = smov (!%p137_p2), 118   ;;  %s1253_s26 = smov (!%p137_p2), 125   ;;  %v1010_v25 = vld [vmem:[%s1427_s1 + $0x6] sm:$0x3] (!%p137_p2)  ;;  %v1022_v26 = vld [vmem:[%s1427_s1 + $0x12] sm:$0x3] (!%p137_p2) }
   0xa   : > { %s1254_s27 = smov (!%p137_p2), 117   ;;  %s1255_s28 = smov (!%p137_p2), 124   ;;  %v1012_v31 = vld [vmem:[%s1427_s1 + $0x8] sm:$0x3] (!%p137_p2)  ;;  %v1024_v32 = vld [vmem:[%s1427_s1 + $0x14] sm:$0x3] (!%p137_p2) }
   0xb   : > { %s1256_s29 = smov (!%p137_p2), 116   ;;  %s1257_s30 = smov (!%p137_p2), 123   ;;  %v1014_v37 = vld [vmem:[%s1427_s1 + $0xa] sm:$0x3] (!%p137_p2)  ;;  %v1026_v38 = vld [vmem:[%s1427_s1 + $0x16] sm:$0x3] (!%p137_p2) }
   0xc   : > { %s1258_s4 = smov (!%p137_p2), 115   ;;  %s1259_s5 = smov (!%p137_p2), 122   ;;  %v1016_v42 = vld [vmem:[%s1427_s1 + $0xc] sm:$0x3] (!%p137_p2)  ;;  %v1028_v43 = vld [vmem:[%s1427_s1 + $0x18] sm:$0x3] (!%p137_p2) }
   0xd   : > { %s1431_s13 = smov (!%p158_p3, %s997_s13), 1  ;;  %s1260_s6 = smov 114   ;;  %v1030_v46 = vld [vmem:[%s1427_s1 + $0x1a] sm:$0x3]  ;;  %v1032_v48 = vld [vmem:[%s1427_s1 + $0x1c] sm:$0x3] }
   0xe   : > { %s1002_s14 = sshll.u32 %s1431_s13, 2  ;;  %vm942_vm3 = vcmask 58368  }
   0xf   : > { %s161_s17 = scalar_lea.vmem %s1426_s0, %s1002_s14  ;;  %s1003_s14 = sshll.u32 %s1431_s13, 1 }
  0x10   : > { %v168_v1 = vld [vmem:[%s161_s17] sm:$0xf]  ;;  %s165_s17 = scalar_lea.vmem %s1429_s3, %s1003_s14 }
  0x11   : > { %v1006_v2 = vcombine.low %v168_v1, %v168_v1  ;;  %v176_v3 = vsel %vm174_vm1, %v168_v1, 0 }
  0x12   : > { %1067 = vmatpush3.bf16.msra.mxu1 %v176_v3 }
  0x13   : > { %229 = vrot.lane.b32.xlu1 %v1006_v2, %s1247_s20  ;;  %535 = vrot.lane.b32.xlu0 %v1006_v2, %s1248_s21 }
  0x14   : > { %1072 = vmatprep.subr.bf16.mxu1 %v1245_v0 }
  0x15   : > { %1069 = vmatmul.mubr.msk.bf16.vlgmr.msra.gmra.mrb[0].mxu1 %vm170_vm2, %v169_v4 }
  0x16   : > { %1074 = vmatprep.mubr.msk.bf16.mxu1 %vm1246_vm0, %v1245_v0 }
  0x17   : > { %586 = vrot.lane.b32.xlu0 %v1006_v2, %s1249_s22  ;;  %637 = vrot.lane.b32.xlu1 %v1006_v2, %s1250_s23 }
  0x1b   : > { %280 = vrot.lane.b32.xlu0 %v1006_v2, %s1251_s24  ;;  %688 = vrot.lane.b32.xlu1 %v1006_v2, %s1252_s25 }
  0x1f   : > { %331 = vrot.lane.b32.xlu0 %v1006_v2, %s1253_s26  ;;  %739 = vrot.lane.b32.xlu1 %v1006_v2, %s1254_s27 }
  0x23   : > { %382 = vrot.lane.b32.xlu0 %v1006_v2, %s1255_s28  ;;  %790 = vrot.lane.b32.xlu1 %v1006_v2, %s1256_s29 }
  0x27   : > { %433 = vrot.lane.b32.xlu0 %v1006_v2, %s1257_s30  ;;  %841 = vrot.lane.b32.xlu1 %v1006_v2, %s1258_s4 }
  0x2b   : > { %484 = vrot.lane.b32.xlu0 %v1006_v2, %s1259_s5  ;;  %892 = vrot.lane.b32.xlu1 %v1006_v2, %s1260_s6 }
  0x2f   : > { %220 = vperm.xlu0 %1235, %v167_v5  }
  0x85   : > { %v230_v7 = vpop.permute.xlu1 %229  ;;  %v536_v8 = vpop.permute.xlu0 %535 }
  0x86   : > { %v235_v9 = vsel %vm174_vm1, %v230_v7, 0  ;;  %v541_v10 = vsel %vm174_vm1, %v536_v8, 0 }
  0x87   : > { %1073 = vmatpush3.bf16.msra.mxu1 %v235_v9  ;;  %1109 = vmatpush3.bf16.msra.mxu0 %v541_v10 }
  0x88   : > { %1114 = vmatprep.subr.bf16.mxu0 %v1245_v0  ;;  %1078 = vmatprep.subr.bf16.mxu1 %v1245_v0 }
  0x89   : > { %v587_v13 = vpop.permute.xlu0 %586  ;;  %v638_v17 = vpop.permute.xlu1 %637 }
  0x8a   : > { %v592_v14 = vsel %vm174_vm1, %v587_v13, 0  ;;  %1075 = vmatmul.mubr.msk.bf16.vlgmr.msra.gmra.mrb[0].mxu1 %vm170_vm2, %v1005_v11  ;;  %1111 = vmatmul.mubr.msk.bf16.vlgmr.msra.gmra.mrb[0].mxu0 %vm170_vm2, %v1018_v12  ;;  %v643_v21 = vsel %vm174_vm1, %v638_v17, 0 }
  0x8b   : > { %1115 = vmatpush3.bf16.msra.mxu0 %v592_v14  ;;  %1080 = vmatprep.mubr.msk.bf16.mxu1 %vm1246_vm0, %v1245_v0 }
  0x8c   : > { %1116 = vmatprep.mubr.msk.bf16.mxu0 %vm1246_vm0, %v1245_v0  ;;  %1120 = vmatprep.subr.bf16.mxu0 %v1245_v0 }
  0x8d   : > { %v281_v15 = vpop.permute.xlu0 %280  ;;  %v689_v23 = vpop.permute.xlu1 %688 }
  0x8e   : > { %v286_v16 = vsel %vm174_vm1, %v281_v15, 0  ;;  %v694_v27 = vsel %vm174_vm1, %v689_v23, 0 }
  0x8f   : > { %1079 = vmatpush3.bf16.msra.mxu1 %v286_v16 }
  0x90   : > { %1084 = vmatprep.subr.bf16.mxu1 %v1245_v0 }
  0x91   : > { %v332_v18 = vpop.permute.xlu0 %331  ;;  %v740_v29 = vpop.permute.xlu1 %739 }
  0x92   : > { %v337_v22 = vsel %vm174_vm1, %v332_v18, 0  ;;  %v745_v33 = vsel %vm174_vm1, %v740_v29, 0 }
  0x95   : > { %v383_v24 = vpop.permute.xlu0 %382  ;;  %v791_v35 = vpop.permute.xlu1 %790 }
  0x96   : > { %1081 = vmatmul.mubr.msk.bf16.vlgmr.msra.gmra.mrb[0].mxu1 %vm170_vm2, %v1008_v19  ;;  %1117 = vmatmul.mubr.msk.bf16.vlgmr.msra.gmra.mrb[0].mxu0 %vm170_vm2, %v1020_v20  ;;  %v388_v28 = vsel %vm174_vm1, %v383_v24, 0  ;;  %v796_v39 = vsel %vm174_vm1, %v791_v35, 0 }
  0x97   : > { %1121 = vmatpush3.bf16.msra.mxu0 %v643_v21  ;;  %1085 = vmatpush3.bf16.msra.mxu1 %v337_v22 }
  0x98   : > { %1086 = vmatprep.mubr.msk.bf16.mxu1 %vm1246_vm0, %v1245_v0  ;;  %1122 = vmatprep.mubr.msk.bf16.mxu0 %vm1246_vm0, %v1245_v0 }
  0x99   : > { %1126 = vmatprep.subr.bf16.mxu0 %v1245_v0  ;;  %1090 = vmatprep.subr.bf16.mxu1 %v1245_v0  ;;  %v434_v30 = vpop.permute.xlu0 %433  ;;  %v842_v41 = vpop.permute.xlu1 %841 }
  0x9a   : > { %v439_v34 = vsel %vm174_vm1, %v434_v30, 0  ;;  %v847_v44 = vsel %vm174_vm1, %v842_v41, 0 }
  0x9d   : > { %v485_v36 = vpop.permute.xlu0 %484  ;;  %v893_v45 = vpop.permute.xlu1 %892 }
  0x9e   : > { %v490_v40 = vsel %vm174_vm1, %v485_v36, 0  ;;  %v898_v47 = vsel %vm174_vm1, %v893_v45, 0 }
  0xa2   : > { %1087 = vmatmul.mubr.msk.bf16.vlgmr.msra.gmra.mrb[0].mxu1 %vm170_vm2, %v1010_v25  ;;  %1123 = vmatmul.mubr.msk.bf16.vlgmr.msra.gmra.mrb[0].mxu0 %vm170_vm2, %v1022_v26 }
  0xa3   : > { %1127 = vmatpush3.bf16.msra.mxu0 %v694_v27  ;;  %1091 = vmatpush3.bf16.msra.mxu1 %v388_v28 }
  0xa4   : > { %1092 = vmatprep.mubr.msk.bf16.mxu1 %vm1246_vm0, %v1245_v0  ;;  %1128 = vmatprep.mubr.msk.bf16.mxu0 %vm1246_vm0, %v1245_v0 }
  0xa5   : > { %1132 = vmatprep.subr.bf16.mxu0 %v1245_v0  ;;  %1096 = vmatprep.subr.bf16.mxu1 %v1245_v0 }
  0xae   : > { %1093 = vmatmul.mubr.msk.bf16.vlgmr.msra.gmra.mrb[0].mxu1 %vm170_vm2, %v1012_v31  ;;  %1129 = vmatmul.mubr.msk.bf16.vlgmr.msra.gmra.mrb[0].mxu0 %vm170_vm2, %v1024_v32  ;;  %v221_v53 = vpop.permute.xlu0 %220 }
  0xaf   : > { %1133 = vmatpush3.bf16.msra.mxu0 %v745_v33  ;;  %1097 = vmatpush3.bf16.msra.mxu1 %v439_v34 }
  0xb0   : > { %1098 = vmatprep.mubr.msk.bf16.mxu1 %vm1246_vm0, %v1245_v0  ;;  %1134 = vmatprep.mubr.msk.bf16.mxu0 %vm1246_vm0, %v1245_v0 }
  0xb1   : > { %1138 = vmatprep.subr.bf16.mxu0 %v1245_v0  ;;  %1102 = vmatprep.subr.bf16.mxu1 %v1245_v0 }
  0xba   : > { %1099 = vmatmul.mubr.msk.bf16.vlgmr.msra.gmra.mrb[0].mxu1 %vm170_vm2, %v1014_v37  ;;  %1135 = vmatmul.mubr.msk.bf16.vlgmr.msra.gmra.mrb[0].mxu0 %vm170_vm2, %v1026_v38 }
  0xbb   : > { %1139 = vmatpush3.bf16.msra.mxu0 %v796_v39  ;;  %1103 = vmatpush3.bf16.msra.mxu1 %v490_v40 }
  0xbc   : > { %1104 = vmatprep.mubr.msk.bf16.mxu1 %vm1246_vm0, %v1245_v0  ;;  %1140 = vmatprep.mubr.msk.bf16.mxu0 %vm1246_vm0, %v1245_v0 }
  0xbd   : > { %1144 = vmatprep.subr.bf16.mxu0 %v1245_v0 }
  0xc6   : > { %1105 = vmatmul.mubr.msk.bf16.vlgmr.msra.gmra.mrb[0].mxu1 %vm170_vm2, %v1016_v42  ;;  %1141 = vmatmul.mubr.msk.bf16.vlgmr.msra.gmra.mrb[0].mxu0 %vm170_vm2, %v1028_v43 }
  0xc7   : > { %1145 = vmatpush3.bf16.msra.mxu0 %v847_v44  ;;  %1146 = vmatprep.mubr.msk.bf16.mxu0 %vm1246_vm0, %v1245_v0 }
  0xc8   : > { %1150 = vmatprep.subr.bf16.mxu0 %v1245_v0 }
  0xd2   : > { %1147 = vmatmul.mubr.msk.bf16.vlgmr.msra.gmra.mrb[0].mxu0 %vm170_vm2, %v1030_v46 }
  0xd3   : > { %1151 = vmatpush3.bf16.msra.mxu0 %v898_v47  ;;  %1152 = vmatprep.mubr.msk.bf16.mxu0 %vm1246_vm0, %v1245_v0 }
  0xde   : > { %1153 = vmatmul.mubr.msk.bf16.vlgmr.msra.gmra.mrb[0].mxu0 %vm170_vm2, %v1032_v48 }
 0x199   : > { %v526_v49 = vpop.f32.mrb[0].mxu1 }
 0x19a   : > { %v1106_v50 = vpop.f32.mrb[1].mxu1  ;;  %v1156_v54 = vadd.f32 %v526_v49, %v221_v53 }
 0x19b   : > { %v529_v51 = vpop.f32.mrb[2].mxu1 }
 0x19c   : > { %v1107_v52 = vpop.f32.mrb[3].mxu1 }
 0x1b1   : > { %v934_v55 = vpop.f32.mrb[0].mxu0 }
 0x1b2   : > { %v1157_v56 = vadd.f32 %v1156_v54, %v934_v55  ;;  %v1154_v57 = vpop.f32.mrb[1].mxu0 }
 0x1b3   : > { %v937_v58 = vpop.f32.mrb[2].mxu0 }
 0x1b4   : > { %v941_v59 = vpack.c.bf16 %v1157_v56, %v1157_v56  ;;  %v1155_v60 = vpop.f32.mrb[3].mxu0 }
 0x1b6   : > { %943 = vst.msk [vmem:[%s165_s17] sm:$0x3] %vm942_vm3, %v941_v59 }
 0x1b7 PF: > { %s13_s12 = sadd.s32 1, %s1243_s12  }
 0x1b8   : > { %p10_p4 = scmp.ge.s32.totalorder %s13_s12, 4  }
 0x1ba   :  { %12 = sbr.rel (!%p10_p4) target bundleno = 1 (0x1), region = 76 }

// kernel: _lambda_.43
= control target key start
LH: loop header
LB: loop body
LE: loop exit
PB: predicated region body
PF: predicated region fallthrough
CT: control target
= control target key end

     0   :  { %s1374_s18 = smov 0   ;;  %s1524_s0 = inlined_call_operand.vmem [shape: bf16[2,8,23], index: 0, kind: input, shape index: {}]   ;;  %s1525_s1 = inlined_call_operand.vmem [shape: bf16[8,8,8], index: 1, kind: input, shape index: {}]   ;;  %s1526_s2 = inlined_call_operand.vmem [shape: f32[8,1], index: 2, kind: input, shape index: {}]   ;;  %s1527_s3 = inlined_call_operand.vmem [shape: bf16[8,8,8], index: 3, kind: input, shape index: {}]   ;;  %s1528_s4 = inlined_call_operand.vmem [shape: f32[8,1], index: 4, kind: input, shape index: {}]   ;;  %s1529_s5 = inlined_call_operand.vmem [shape: bf16[2,8,16], index: 5, kind: output, shape index: {}]  }
   0x1 LB: > { %s1074_s19 = sadd.s32 4294967295, %s1332_s18   ;;  %p1078_p0 = scmp.ge.s32.totalorder %s1332_s18, 1  ;;  %s1332_s18 = sphi %s1374_s18, %s15_s18  }
   0x2   : > { %p186_p1 = scmp.lt.s32.totalorder %s1332_s18, 3 }
   0x4   : > { %p187_p2 = pnand %p1078_p0, %p186_p1 }
   0x5   : > { %p212_p3 = scmp.lt.s32.totalorder (!%p187_p2), %s1074_s19, 1  ;;  %v1334_v0 = vmov (!%p187_p2), 0.0   ;;  %vm1335_vm0 = vmmov (!%p187_p2), 0   ;;  %vm228_vm1 = vcmask (!%p187_p2), 1043456   ;;  %v223_v4 = vld [vmem:[%s1525_s1] sm:$0xf] (!%p187_p2) }
   0x6   : > { %190 = sbr.rel (%p187_p2) target bundleno = 455 (0x1c7), region = 40  ;;  %1147 = vmatprep.subr.bf16.mxu0 (!%p187_p2), %v1334_v0  ;;  %1195 = vmatprep.subr.bf16.mxu1 (!%p187_p2), %v1334_v0  ;;  %vm224_vm2 = vcmask (!%p187_p2), 64512   ;;  %v639_v5 = vld [vmem:[%s1527_s3] sm:$0xf] (!%p187_p2)  ;;  %s1336_s28 = smov (!%p187_p2), 127   ;;  %v1343_v8 = vmov (!%p187_p2), 0  }
   0x7   : > { %1149 = vmatprep.mubr.msk.bf16.mxu0 (!%p187_p2), %vm1335_vm0, %v1334_v0  ;;  %1197 = vmatprep.mubr.msk.bf16.mxu1 (!%p187_p2), %vm1335_vm0, %v1334_v0  ;;  %s1337_s29 = smov (!%p187_p2), 125   ;;  %s1338_s30 = smov (!%p187_p2), 126   ;;  %v638_v6 = vld [vmem:[%s1528_s4] sm:$0xff] (!%p187_p2)  ;;  %v1085_v16 = vld [vmem:[%s1525_s1 + $0x8] sm:$0xf] (!%p187_p2)  ;;  %vm1019_vm3 = vcmask (!%p187_p2), 125952  }
   0x8   : > { %s1339_s6 = smov (!%p187_p2), 124   ;;  %s1340_s7 = smov (!%p187_p2), 123   ;;  %v221_v7 = vld [vmem:[%s1526_s2] sm:$0xff] (!%p187_p2)  ;;  %1320 = vset.pattern.permute.xlu0 (!%p187_p2), %v1343_v8  ;;  %1319 = vset.pattern.permute.xlu1 (!%p187_p2), %v1343_v8  ;;  %v1100_v17 = vld [vmem:[%s1527_s3 + $0x8] sm:$0xf] (!%p187_p2) }
   0x9   : > { %s1341_s8 = smov (!%p187_p2), 122   ;;  %s1342_s9 = smov (!%p187_p2), 121   ;;  %v1082_v11 = vld [vmem:[%s1525_s1 + $0x4] sm:$0xf] (!%p187_p2)  ;;  %v1087_v20 = vld [vmem:[%s1525_s1 + $0xc] sm:$0xf] (!%p187_p2) }
   0xa   : > { %v1098_v12 = vld [vmem:[%s1527_s3 + $0x4] sm:$0xf] (!%p187_p2)  ;;  %v1102_v21 = vld [vmem:[%s1527_s3 + $0xc] sm:$0xf] (!%p187_p2)  ;;  %v1089_v24 = vld [vmem:[%s1525_s1 + $0x10] sm:$0xf] (!%p187_p2) }
   0xb   : > { %v1104_v25 = vld [vmem:[%s1527_s3 + $0x10] sm:$0xf] (!%p187_p2)  ;;  %v1091_v28 = vld [vmem:[%s1525_s1 + $0x14] sm:$0xf] (!%p187_p2)  ;;  %v1093_v32 = vld [vmem:[%s1525_s1 + $0x18] sm:$0xf] (!%p187_p2) }
   0xc   : > { %v1106_v29 = vld [vmem:[%s1527_s3 + $0x14] sm:$0xf] (!%p187_p2)  ;;  %v1108_v33 = vld [vmem:[%s1527_s3 + $0x18] sm:$0xf] (!%p187_p2)  ;;  %v1095_v35 = vld [vmem:[%s1525_s1 + $0x1c] sm:$0xf] (!%p187_p2) }
   0xd   : > { %s1531_s19 = smov (!%p212_p3, %s1074_s19), 1  ;;  %v1110_v36 = vld [vmem:[%s1527_s3 + $0x1c] sm:$0xf] }
   0xe   : > { %s1079_s20 = sshll.u32 %s1531_s19, 2 }
   0xf   : > { %s215_s23 = scalar_lea.vmem %s1524_s0, %s1079_s20  ;;  %s219_s25 = scalar_lea.vmem %s1529_s5, %s1079_s20 }
  0x10   : > { %v222_v1 = vld [vmem:[%s215_s23] sm:$0xf] }
  0x11   : > { %v1083_v2 = vcombine.low %v222_v1, %v222_v1  ;;  %v230_v3 = vsel %vm228_vm1, %v222_v1, 0 }
  0x12   : > { %1148 = vmatpush3.bf16.msra.mxu0 %v230_v3  ;;  %1196 = vmatpush3.bf16.msra.mxu1 %v230_v3 }
  0x13   : > { %283 = vrot.lane.b32.xlu0 %v1083_v2, %s1336_s28  ;;  %385 = vrot.lane.b32.xlu1 %v1083_v2, %s1337_s29 }
  0x14   : > { %1153 = vmatprep.subr.bf16.mxu0 %v1334_v0  ;;  %1201 = vmatprep.subr.bf16.mxu1 %v1334_v0 }
  0x15   : > { %1150 = vmatmul.mubr.msk.bf16.vlgmr.msra.gmra.mrb[0].mxu0 %vm224_vm2, %v223_v4  ;;  %1198 = vmatmul.mubr.msk.bf16.vlgmr.msra.gmra.mrb[0].mxu1 %vm224_vm2, %v639_v5 }
  0x16   : > { %1155 = vmatprep.mubr.msk.bf16.mxu0 %vm1335_vm0, %v1334_v0  ;;  %1203 = vmatprep.mubr.msk.bf16.mxu1 %vm1335_vm0, %v1334_v0 }
  0x17   : > { %334 = vrot.lane.b32.xlu0 %v1083_v2, %s1338_s30  ;;  %436 = vrot.lane.b32.xlu1 %v1083_v2, %s1339_s6 }
  0x1b   : > { %487 = vrot.lane.b32.xlu0 %v1083_v2, %s1340_s7  ;;  %538 = vrot.lane.b32.xlu1 %v1083_v2, %s1341_s8 }
  0x1f   : > { %589 = vrot.lane.b32.xlu0 %v1083_v2, %s1342_s9  ;;  %685 = vperm.xlu1 %1319, %v638_v6  }
  0x23   : > { %274 = vperm.xlu0 %1320, %v221_v7  }
  0x85   : > { %v284_v9 = vpop.permute.xlu0 %283  ;;  %v386_v15 = vpop.permute.xlu1 %385 }
  0x86   : > { %v289_v10 = vsel %vm228_vm1, %v284_v9, 0  ;;  %v391_v18 = vsel %vm228_vm1, %v386_v15, 0 }
  0x87   : > { %1154 = vmatpush3.bf16.msra.mxu0 %v289_v10  ;;  %1202 = vmatpush3.bf16.msra.mxu1 %v289_v10 }
  0x88   : > { %1159 = vmatprep.subr.bf16.mxu0 %v1334_v0  ;;  %1207 = vmatprep.subr.bf16.mxu1 %v1334_v0 }
  0x89   : > { %v335_v13 = vpop.permute.xlu0 %334  ;;  %v437_v19 = vpop.permute.xlu1 %436 }
  0x8a   : > { %1156 = vmatmul.mubr.msk.bf16.vlgmr.msra.gmra.mrb[0].mxu0 %vm224_vm2, %v1082_v11  ;;  %1204 = vmatmul.mubr.msk.bf16.vlgmr.msra.gmra.mrb[0].mxu1 %vm224_vm2, %v1098_v12  ;;  %v340_v14 = vsel %vm228_vm1, %v335_v13, 0  ;;  %v442_v22 = vsel %vm228_vm1, %v437_v19, 0 }
  0x8b   : > { %1160 = vmatpush3.bf16.msra.mxu0 %v340_v14  ;;  %1208 = vmatpush3.bf16.msra.mxu1 %v340_v14 }
  0x8c   : > { %1161 = vmatprep.mubr.msk.bf16.mxu0 %vm1335_vm0, %v1334_v0  ;;  %1209 = vmatprep.mubr.msk.bf16.mxu1 %vm1335_vm0, %v1334_v0 }
  0x8d   : > { %1165 = vmatprep.subr.bf16.mxu0 %v1334_v0  ;;  %1213 = vmatprep.subr.bf16.mxu1 %v1334_v0  ;;  %v488_v23 = vpop.permute.xlu0 %487  ;;  %v539_v27 = vpop.permute.xlu1 %538 }
  0x8e   : > { %v493_v26 = vsel %vm228_vm1, %v488_v23, 0  ;;  %v544_v30 = vsel %vm228_vm1, %v539_v27, 0 }
  0x91   : > { %v590_v31 = vpop.permute.xlu0 %589 }
  0x92   : > { %v595_v34 = vsel %vm228_vm1, %v590_v31, 0 }
  0x96   : > { %1162 = vmatmul.mubr.msk.bf16.vlgmr.msra.gmra.mrb[0].mxu0 %vm224_vm2, %v1085_v16  ;;  %1210 = vmatmul.mubr.msk.bf16.vlgmr.msra.gmra.mrb[0].mxu1 %vm224_vm2, %v1100_v17 }
  0x97   : > { %1166 = vmatpush3.bf16.msra.mxu0 %v391_v18  ;;  %1214 = vmatpush3.bf16.msra.mxu1 %v391_v18 }
  0x98   : > { %1167 = vmatprep.mubr.msk.bf16.mxu0 %vm1335_vm0, %v1334_v0  ;;  %1215 = vmatprep.mubr.msk.bf16.mxu1 %vm1335_vm0, %v1334_v0 }
  0x99   : > { %1171 = vmatprep.subr.bf16.mxu0 %v1334_v0  ;;  %1219 = vmatprep.subr.bf16.mxu1 %v1334_v0 }
  0x9e   : > { %v686_v37 = vpop.permute.xlu1 %685 }
  0xa2   : > { %1168 = vmatmul.mubr.msk.bf16.vlgmr.msra.gmra.mrb[0].mxu0 %vm224_vm2, %v1087_v20  ;;  %1216 = vmatmul.mubr.msk.bf16.vlgmr.msra.gmra.mrb[0].mxu1 %vm224_vm2, %v1102_v21  ;;  %v275_v50 = vpop.permute.xlu0 %274 }
  0xa3   : > { %1172 = vmatpush3.bf16.msra.mxu0 %v442_v22  ;;  %1220 = vmatpush3.bf16.msra.mxu1 %v442_v22 }
  0xa4   : > { %1173 = vmatprep.mubr.msk.bf16.mxu0 %vm1335_vm0, %v1334_v0  ;;  %1221 = vmatprep.mubr.msk.bf16.mxu1 %vm1335_vm0, %v1334_v0 }
  0xa5   : > { %1177 = vmatprep.subr.bf16.mxu0 %v1334_v0  ;;  %1225 = vmatprep.subr.bf16.mxu1 %v1334_v0 }
  0xae   : > { %1174 = vmatmul.mubr.msk.bf16.vlgmr.msra.gmra.mrb[0].mxu0 %vm224_vm2, %v1089_v24  ;;  %1222 = vmatmul.mubr.msk.bf16.vlgmr.msra.gmra.mrb[0].mxu1 %vm224_vm2, %v1104_v25 }
  0xaf   : > { %1178 = vmatpush3.bf16.msra.mxu0 %v493_v26  ;;  %1226 = vmatpush3.bf16.msra.mxu1 %v493_v26 }
  0xb0   : > { %1179 = vmatprep.mubr.msk.bf16.mxu0 %vm1335_vm0, %v1334_v0  ;;  %1227 = vmatprep.mubr.msk.bf16.mxu1 %vm1335_vm0, %v1334_v0 }
  0xb1   : > { %1183 = vmatprep.subr.bf16.mxu0 %v1334_v0  ;;  %1231 = vmatprep.subr.bf16.mxu1 %v1334_v0 }
  0xba   : > { %1180 = vmatmul.mubr.msk.bf16.vlgmr.msra.gmra.mrb[0].mxu0 %vm224_vm2, %v1091_v28  ;;  %1228 = vmatmul.mubr.msk.bf16.vlgmr.msra.gmra.mrb[0].mxu1 %vm224_vm2, %v1106_v29 }
  0xbb   : > { %1184 = vmatpush3.bf16.msra.mxu0 %v544_v30  ;;  %1232 = vmatpush3.bf16.msra.mxu1 %v544_v30 }
  0xbc   : > { %1185 = vmatprep.mubr.msk.bf16.mxu0 %vm1335_vm0, %v1334_v0  ;;  %1233 = vmatprep.mubr.msk.bf16.mxu1 %vm1335_vm0, %v1334_v0 }
  0xbd   : > { %1189 = vmatprep.subr.bf16.mxu0 %v1334_v0  ;;  %1237 = vmatprep.subr.bf16.mxu1 %v1334_v0 }
  0xc6   : > { %1186 = vmatmul.mubr.msk.bf16.vlgmr.msra.gmra.mrb[0].mxu0 %vm224_vm2, %v1093_v32  ;;  %1234 = vmatmul.mubr.msk.bf16.vlgmr.msra.gmra.mrb[0].mxu1 %vm224_vm2, %v1108_v33 }
  0xc7   : > { %1190 = vmatpush3.bf16.msra.mxu0 %v595_v34  ;;  %1238 = vmatpush3.bf16.msra.mxu1 %v595_v34 }
  0xc8   : > { %1191 = vmatprep.mubr.msk.bf16.mxu0 %vm1335_vm0, %v1334_v0  ;;  %1239 = vmatprep.mubr.msk.bf16.mxu1 %vm1335_vm0, %v1334_v0 }
  0xd2   : > { %1192 = vmatmul.mubr.msk.bf16.vlgmr.msra.gmra.mrb[0].mxu0 %vm224_vm2, %v1095_v35  ;;  %1240 = vmatmul.mubr.msk.bf16.vlgmr.msra.gmra.mrb[0].mxu1 %vm224_vm2, %v1110_v36 }
 0x1a5   : > { %v631_v38 = vpop.f32.mrb[0].mxu0  ;;  %v1004_v39 = vpop.f32.mrb[0].mxu1 }
 0x1a6   : > { %v1244_v40 = vadd.f32 %v1004_v39, %v686_v37  ;;  %v1193_v41 = vpop.f32.mrb[1].mxu0  ;;  %v1241_v42 = vpop.f32.mrb[1].mxu1  ;;  %v1243_v51 = vadd.f32 %v631_v38, %v275_v50 }
 0x1a7   : > { %v634_v43 = vpop.f32.mrb[2].mxu0  ;;  %v1007_v44 = vpop.f32.mrb[2].mxu1 }
 0x1a8   : > { %v1112_v45 = vmul.f32 -1.442695, %v1244_v40  ;;  %v1194_v46 = vpop.f32.mrb[3].mxu0  ;;  %v1242_v47 = vpop.f32.mrb[3].mxu1 }
 0x1aa   : > { %1322 = vpow2.f32 %v1112_v45 }
 0x1b4   : > { %v1323_v48 = vpop.eup %1322 }
 0x1b5   : > { %v1014_v49 = vadd.f32 1.0, %v1323_v48 }
 0x1b7   : > { %1324 = vrcp.f32 %v1014_v49 }
 0x1c1   : > { %v1325_v52 = vpop.eup %1324 }
 0x1c2   : > { %v1017_v53 = vmul.f32 %v1325_v52, %v1243_v51 }
 0x1c4   : > { %v1018_v54 = vpack.c.bf16 %v1017_v53, %v1017_v53 }
 0x1c6   : > { %1020 = vst.msk [vmem:[%s219_s25] sm:$0xf] %vm1019_vm3, %v1018_v54 }
 0x1c7 PF: > { %s15_s18 = sadd.s32 1, %s1332_s18  }
 0x1c8   : > { %p12_p4 = scmp.ge.s32.totalorder %s15_s18, 4  }
 0x1ca   :  { %14 = sbr.rel (!%p12_p4) target bundleno = 1 (0x1), region = 84 }

// kernel: _lambda_.46
= control target key start
LH: loop header
LB: loop body
LE: loop exit
PB: predicated region body
PF: predicated region fallthrough
CT: control target
= control target key end

     0   :  { %s739_s18 = smov 0   ;;  %s802_s0 = inlined_call_operand.vmem [shape: bf16[2,8,18], index: 0, kind: input, shape index: {}]   ;;  %s803_s1 = inlined_call_operand.vmem [shape: bf16[3,8,8], index: 1, kind: input, shape index: {}]   ;;  %s804_s2 = inlined_call_operand.vmem [shape: f32[8,1], index: 2, kind: input, shape index: {}]   ;;  %s805_s3 = inlined_call_operand.vmem [shape: bf16[3,8,8], index: 3, kind: input, shape index: {}]   ;;  %s806_s4 = inlined_call_operand.vmem [shape: f32[8,1], index: 4, kind: input, shape index: {}]   ;;  %s807_s5 = inlined_call_operand.vmem [shape: bf16[2,8,16], index: 5, kind: output, shape index: {}]  }
   0x1 LB: > { %s589_s19 = sadd.s32 4294967295, %s702_s18   ;;  %p593_p0 = scmp.ge.s32.totalorder %s702_s18, 1  ;;  %s702_s18 = sphi %s739_s18, %s15_s18  }
   0x2   : > { %p186_p1 = scmp.lt.s32.totalorder %s702_s18, 3 }
   0x4   : > { %p187_p2 = pnand %p593_p0, %p186_p1 }
   0x5   : > { %p212_p3 = scmp.lt.s32.totalorder (!%p187_p2), %s589_s19, 1  ;;  %v704_v0 = vmov (!%p187_p2), 0.0   ;;  %vm705_vm0 = vmmov (!%p187_p2), 0   ;;  %vm228_vm1 = vcmask (!%p187_p2), 1043456   ;;  %vm224_vm2 = vcmask (!%p187_p2), 64512   ;;  %s706_s28 = smov (!%p187_p2), 127  }
   0x6   : > { %190 = sbr.rel (%p187_p2) target bundleno = 395 (0x18b), region = 40  ;;  %640 = vmatprep.subr.bf16.mxu1 (!%p187_p2), %v704_v0  ;;  %642 = vmatprep.mubr.msk.bf16.mxu1 (!%p187_p2), %vm705_vm0, %v704_v0  ;;  %v384_v4 = vld [vmem:[%s805_s3] sm:$0xf] (!%p187_p2)  ;;  %s707_s6 = smov (!%p187_p2), 126   ;;  %v708_v7 = vmov (!%p187_p2), 0   ;;  %vm534_vm3 = vcmask (!%p187_p2), 125952  }
   0x7   : > { %622 = vmatprep.subr.bf16.mxu0 (!%p187_p2), %v704_v0  ;;  %624 = vmatprep.mubr.msk.bf16.mxu0 (!%p187_p2), %vm705_vm0, %v704_v0  ;;  %v223_v5 = vld [vmem:[%s803_s1] sm:$0xf] (!%p187_p2)  ;;  %v603_v11 = vld [vmem:[%s805_s3 + $0x4] sm:$0xf] (!%p187_p2)  ;;  %v605_v15 = vld [vmem:[%s805_s3 + $0x8] sm:$0xf] (!%p187_p2) }
   0x8   : > { %v383_v6 = vld [vmem:[%s806_s4] sm:$0xff] (!%p187_p2)  ;;  %689 = vset.pattern.permute.xlu1 (!%p187_p2), %v708_v7  ;;  %690 = vset.pattern.permute.xlu0 (!%p187_p2), %v708_v7  ;;  %v600_v16 = vld [vmem:[%s803_s1 + $0x8] sm:$0xf] (!%p187_p2) }
   0x9   : > { %430 = vperm.xlu1 (!%p187_p2), %689, %v383_v6   ;;  %v221_v8 = vld [vmem:[%s804_s2] sm:$0xff] (!%p187_p2) }
   0xa   : > { %v597_v12 = vld [vmem:[%s803_s1 + $0x4] sm:$0xf] (!%p187_p2) }
   0xd   : > { %s809_s19 = smov (!%p212_p3, %s589_s19), 1  ;;  %274 = vperm.xlu1 %689, %v221_v8  }
   0xe   : > { %s594_s20 = sshll.u32 %s809_s19, 2 }
   0xf   : > { %s215_s23 = scalar_lea.vmem %s802_s0, %s594_s20  ;;  %s219_s22 = scalar_lea.vmem %s807_s5, %s594_s20 }
  0x10   : > { %v222_v1 = vld [vmem:[%s215_s23] sm:$0xf] }
  0x11   : > { %v598_v2 = vcombine.low %v222_v1, %v222_v1  ;;  %v230_v3 = vsel %vm228_vm1, %v222_v1, 0 }
  0x12   : > { %641 = vmatpush3.bf16.msra.mxu1 %v230_v3  ;;  %623 = vmatpush3.bf16.msra.mxu0 %v230_v3 }
  0x13   : > { %283 = vrot.lane.b32.xlu0 %v598_v2, %s706_s28  ;;  %628 = vmatprep.subr.bf16.mxu0 %v704_v0 }
  0x14   : > { %646 = vmatprep.subr.bf16.mxu1 %v704_v0 }
  0x15   : > { %643 = vmatmul.mubr.msk.bf16.vlgmr.msra.gmra.mrb[0].mxu1 %vm224_vm2, %v384_v4  ;;  %625 = vmatmul.mubr.msk.bf16.vlgmr.msra.gmra.mrb[0].mxu0 %vm224_vm2, %v223_v5 }
  0x16   : > { %648 = vmatprep.mubr.msk.bf16.mxu1 %vm705_vm0, %v704_v0  ;;  %630 = vmatprep.mubr.msk.bf16.mxu0 %vm705_vm0, %v704_v0 }
  0x17   : > { %334 = vrot.lane.b32.xlu0 %v598_v2, %s707_s6 }
  0x85   : > { %v284_v9 = vpop.permute.xlu0 %283 }
  0x86   : > { %v289_v10 = vsel %vm228_vm1, %v284_v9, 0 }
  0x87   : > { %629 = vmatpush3.bf16.msra.mxu0 %v289_v10  ;;  %647 = vmatpush3.bf16.msra.mxu1 %v289_v10 }
  0x88   : > { %634 = vmatprep.subr.bf16.mxu0 %v704_v0  ;;  %652 = vmatprep.subr.bf16.mxu1 %v704_v0  ;;  %v431_v17 = vpop.permute.xlu1 %430 }
  0x89   : > { %v335_v13 = vpop.permute.xlu0 %334 }
  0x8a   : > { %649 = vmatmul.mubr.msk.bf16.vlgmr.msra.gmra.mrb[0].mxu1 %vm224_vm2, %v603_v11  ;;  %v340_v14 = vsel %vm228_vm1, %v335_v13, 0  ;;  %631 = vmatmul.mubr.msk.bf16.vlgmr.msra.gmra.mrb[0].mxu0 %vm224_vm2, %v597_v12 }
  0x8b   : > { %635 = vmatpush3.bf16.msra.mxu0 %v340_v14  ;;  %653 = vmatpush3.bf16.msra.mxu1 %v340_v14 }
  0x8c   : > { %654 = vmatprep.mubr.msk.bf16.mxu1 %vm705_vm0, %v704_v0  ;;  %636 = vmatprep.mubr.msk.bf16.mxu0 %vm705_vm0, %v704_v0  ;;  %v275_v30 = vpop.permute.xlu1 %274 }
  0x96   : > { %655 = vmatmul.mubr.msk.bf16.vlgmr.msra.gmra.mrb[0].mxu1 %vm224_vm2, %v605_v15  ;;  %637 = vmatmul.mubr.msk.bf16.vlgmr.msra.gmra.mrb[0].mxu0 %vm224_vm2, %v600_v16 }
 0x169   : > { %v519_v18 = vpop.f32.mrb[0].mxu1  ;;  %v376_v19 = vpop.f32.mrb[0].mxu0 }
 0x16a   : > { %v659_v20 = vadd.f32 %v519_v18, %v431_v17  ;;  %v656_v21 = vpop.f32.mrb[1].mxu1  ;;  %v638_v22 = vpop.f32.mrb[1].mxu0  ;;  %v658_v31 = vadd.f32 %v376_v19, %v275_v30 }
 0x16b   : > { %v522_v23 = vpop.f32.mrb[2].mxu1  ;;  %v379_v24 = vpop.f32.mrb[2].mxu0 }
 0x16c   : > { %v607_v25 = vmul.f32 -1.442695, %v659_v20  ;;  %v657_v26 = vpop.f32.mrb[3].mxu1  ;;  %v639_v27 = vpop.f32.mrb[3].mxu0 }
 0x16e   : > { %692 = vpow2.f32 %v607_v25 }
 0x178   : > { %v693_v28 = vpop.eup %692 }
 0x179   : > { %v529_v29 = vadd.f32 1.0, %v693_v28 }
 0x17b   : > { %694 = vrcp.f32 %v529_v29 }
 0x185   : > { %v695_v32 = vpop.eup %694 }
 0x186   : > { %v532_v33 = vmul.f32 %v695_v32, %v658_v31 }
 0x188   : > { %v533_v34 = vpack.c.bf16 %v532_v33, %v532_v33 }
 0x18a   : > { %535 = vst.msk [vmem:[%s219_s22] sm:$0xf] %vm534_vm3, %v533_v34 }
 0x18b PF: > { %s15_s18 = sadd.s32 1, %s702_s18  }
 0x18c   : > { %p12_p4 = scmp.ge.s32.totalorder %s15_s18, 4  }
 0x18e   :  { %14 = sbr.rel (!%p12_p4) target bundleno = 1 (0x1), region = 74 }

// kernel: _lambda_.44
= control target key start
LH: loop header
LB: loop body
LE: loop exit
PB: predicated region body
PF: predicated region fallthrough
CT: control target
= control target key end

     0   :  { %s1149_s17 = smov 0   ;;  %s1244_s0 = inlined_call_operand.vmem [shape: bf16[2,8,18], index: 0, kind: input, shape index: {}]   ;;  %s1245_s1 = inlined_call_operand.vmem [shape: f32[2,8,16], index: 1, kind: input, shape index: {}]   ;;  %s1246_s2 = inlined_call_operand.vmem [shape: bf16[3,8,8], index: 2, kind: input, shape index: {}]   ;;  %s1247_s3 = inlined_call_operand.vmem [shape: f32[8,1], index: 3, kind: input, shape index: {}]   ;;  %s1248_s4 = inlined_call_operand.vmem [shape: bf16[3,8,8], index: 4, kind: input, shape index: {}]   ;;  %s1249_s5 = inlined_call_operand.vmem [shape: f32[8,1], index: 5, kind: input, shape index: {}]   ;;  %s1250_s6 = inlined_call_operand.vmem [shape: bf16[8,8], index: 6, kind: input, shape index: {}]   ;;  %s1251_s7 = inlined_call_operand.vmem [shape: f32[8,1], index: 7, kind: input, shape index: {}]   ;;  %s1252_s8 = inlined_call_operand.vmem [shape: bf16[8,8], index: 8, kind: input, shape index: {}]   ;;  %s1253_s9 = inlined_call_operand.vmem [shape: f32[8,1], index: 9, kind: input, shape index: {}]   ;;  %s1254_s10 = inlined_call_operand.vmem [shape: bf16[2,8,16], index: 10, kind: output, shape index: {0}]   ;;  %s1255_s11 = inlined_call_operand.vmem [shape: f32[2,8,16], index: 11, kind: output, shape index: {1}]  }
   0x1 LB: > { %s943_s18 = sadd.s32 4294967295, %s1081_s17   ;;  %p947_p0 = scmp.ge.s32.totalorder %s1081_s17, 1  ;;  %s1081_s17 = sphi %s1149_s17, %s22_s17  }
   0x2   : > { %p348_p1 = scmp.lt.s32.totalorder %s1081_s17, 3 }
   0x4   : > { %p349_p2 = pnand %p947_p0, %p348_p1 }
   0x5   : > { %p394_p3 = scmp.lt.s32.totalorder (!%p349_p2), %s943_s18, 1  ;;  %v1083_v0 = vmov (!%p349_p2), 0.0   ;;  %vm1084_vm0 = vmmov (!%p349_p2), 0   ;;  %vm419_vm1 = vcmask (!%p349_p2), 1043456   ;;  %v414_v4 = vld [vmem:[%s1246_s2] sm:$0xf] (!%p349_p2) }
   0x6   : > { %352 = sbr.rel (%p349_p2) target bundleno = 847 (0x34f), region = 60  ;;  %986 = vmatprep.subr.bf16.mxu0 (!%p349_p2), %v1083_v0  ;;  %992 = vmatprep.subr.bf16.mxu1 (!%p349_p2), %v1083_v0  ;;  %vm415_vm2 = vcmask (!%p349_p2), 64512   ;;  %v469_v5 = vld [vmem:[%s1248_s4] sm:$0xf] (!%p349_p2)  ;;  %s1085_s27 = smov (!%p349_p2), 127   ;;  %v1087_v7 = vmov (!%p349_p2), 0  }
   0x7   : > { %988 = vmatprep.mubr.msk.bf16.mxu0 (!%p349_p2), %vm1084_vm0, %v1083_v0  ;;  %994 = vmatprep.mubr.msk.bf16.mxu1 (!%p349_p2), %vm1084_vm0, %v1083_v0  ;;  %v412_v6 = vld [vmem:[%s1249_s5] sm:$0xff] (!%p349_p2)  ;;  %s1086_s30 = smov (!%p349_p2), 126   ;;  %v959_v15 = vld [vmem:[%s1246_s2 + $0x8] sm:$0xf] (!%p349_p2)  ;;  %s1088_s13 = smov (!%p349_p2), 1   ;;  %vm845_vm3 = vcmask (!%p349_p2), 130048  }
   0x8   : > { %1066 = vset.pattern.permute.xlu1 (!%p349_p2), %v1087_v7  ;;  %1067 = vset.pattern.permute.xlu0 (!%p349_p2), %v1087_v7  ;;  %v411_v8 = vld [vmem:[%s1247_s3] sm:$0xff] (!%p349_p2)  ;;  %v961_v16 = vld [vmem:[%s1248_s4 + $0x8] sm:$0xf] (!%p349_p2)  ;;  %vm841_vm4 = vcmask (!%p349_p2), 125952  }
   0x9   : > { %515 = vperm.xlu1 (!%p349_p2), %1066, %v412_v6   ;;  %v954_v11 = vld [vmem:[%s1246_s2 + $0x4] sm:$0xf] (!%p349_p2)  ;;  %v725_v38 = vld [vmem:[%s1250_s6] sm:$0xf] (!%p349_p2) }
   0xa   : > { %v957_v12 = vld [vmem:[%s1248_s4 + $0x4] sm:$0xf] (!%p349_p2)  ;;  %v778_v39 = vld [vmem:[%s1252_s8] sm:$0xf] (!%p349_p2) }
   0xb   : > { %v726_v17 = vld [vmem:[%s1251_s7] sm:$0xff] (!%p349_p2) }
   0xc   : > { %v779_v50 = vld [vmem:[%s1253_s9] sm:$0xff] (!%p349_p2) }
   0xd   : > { %s1257_s18 = smov (!%p394_p3, %s943_s18), 1  ;;  %465 = vperm.xlu1 %1066, %v411_v8  }
   0xe   : > { %s948_s19 = sshll.u32 %s1257_s18, 2  ;;  %s949_s16 = sshll.u32 %s1257_s18, 3 }
   0xf   : > { %s397_s22 = scalar_lea.vmem %s1244_s0, %s948_s19  ;;  %s409_s25 = scalar_lea.vmem %s1255_s11, %s949_s16 }
  0x10   : > { %v1167_v1 = vld [vmem:[%s397_s22] sm:$0xf]  ;;  %s401_s22 = scalar_lea.vmem %s1245_s1, %s949_s16 }
  0x11   : > { %v955_v2 = vcombine.low %v1167_v1, %v1167_v1  ;;  %v421_v3 = vsel %vm419_vm1, %v1167_v1, 0  ;;  %v828_v51 = vunpack.c.l.bf16 %v1167_v1  ;;  %v843_v55 = vld [vmem:[%s401_s22] sm:$0xff] }
  0x12   : > { %987 = vmatpush3.bf16.msra.mxu0 %v421_v3  ;;  %993 = vmatpush3.bf16.msra.mxu1 %v421_v3 }
  0x13   : > { %524 = vrot.lane.b32.xlu0 %v955_v2, %s1085_s27  ;;  %998 = vmatprep.subr.bf16.mxu0 %v1083_v0 }
  0x14   : > { %1004 = vmatprep.subr.bf16.mxu1 %v1083_v0 }
  0x15   : > { %989 = vmatmul.mubr.msk.bf16.vlgmr.msra.gmra.mrb[0].mxu0 %vm415_vm2, %v414_v4  ;;  %995 = vmatmul.mubr.msk.bf16.vlgmr.msra.gmra.mrb[0].mxu1 %vm415_vm2, %v469_v5 }
  0x16   : > { %1000 = vmatprep.mubr.msk.bf16.mxu0 %vm1084_vm0, %v1083_v0  ;;  %1006 = vmatprep.mubr.msk.bf16.mxu1 %vm1084_vm0, %v1083_v0 }
  0x17   : > { %621 = vrot.lane.b32.xlu0 %v955_v2, %s1086_s30 }
  0x1b   : > { %729 = vperm.xlu0 %1067, %v726_v17  }
  0x85   : > { %v525_v9 = vpop.permute.xlu0 %524 }
  0x86   : > { %v530_v10 = vsel %vm419_vm1, %v525_v9, 0 }
  0x87   : > { %999 = vmatpush3.bf16.msra.mxu0 %v530_v10  ;;  %1005 = vmatpush3.bf16.msra.mxu1 %v530_v10 }
  0x88   : > { %1010 = vmatprep.subr.bf16.mxu0 %v1083_v0  ;;  %1016 = vmatprep.subr.bf16.mxu1 %v1083_v0  ;;  %v516_v18 = vpop.permute.xlu1 %515 }
  0x89   : > { %v622_v13 = vpop.permute.xlu0 %621 }
  0x8a   : > { %1001 = vmatmul.mubr.msk.bf16.vlgmr.msra.gmra.mrb[0].mxu0 %vm415_vm2, %v954_v11  ;;  %1007 = vmatmul.mubr.msk.bf16.vlgmr.msra.gmra.mrb[0].mxu1 %vm415_vm2, %v957_v12  ;;  %v627_v14 = vsel %vm419_vm1, %v622_v13, 0 }
  0x8b   : > { %1011 = vmatpush3.bf16.msra.mxu0 %v627_v14  ;;  %1017 = vmatpush3.bf16.msra.mxu1 %v627_v14 }
  0x8c   : > { %1012 = vmatprep.mubr.msk.bf16.mxu0 %vm1084_vm0, %v1083_v0  ;;  %1018 = vmatprep.mubr.msk.bf16.mxu1 %vm1084_vm0, %v1083_v0  ;;  %v466_v29 = vpop.permute.xlu1 %465 }
  0x8d   : > { %1022 = vmatprep.subr.bf16.mxu0 %v1083_v0  ;;  %1028 = vmatprep.subr.bf16.mxu1 %v1083_v0 }
  0x96   : > { %1013 = vmatmul.mubr.msk.bf16.vlgmr.msra.gmra.mrb[0].mxu0 %vm415_vm2, %v959_v15  ;;  %1019 = vmatmul.mubr.msk.bf16.vlgmr.msra.gmra.mrb[0].mxu1 %vm415_vm2, %v961_v16 }
  0x97   : > { %1024 = vmatprep.mubr.msk.bf16.mxu0 %vm1084_vm0, %v1083_v0  ;;  %1030 = vmatprep.mubr.msk.bf16.mxu1 %vm1084_vm0, %v1083_v0 }
  0x9a   : > { %v730_v40 = vpop.permute.xlu0 %729 }
 0x169   : > { %v663_v19 = vpop.f32.mrb[0].mxu0  ;;  %v709_v20 = vpop.f32.mrb[0].mxu1 }
 0x16a   : > { %v1035_v21 = vadd.f32 %v709_v20, %v516_v18  ;;  %v1014_v22 = vpop.f32.mrb[1].mxu0  ;;  %v1020_v23 = vpop.f32.mrb[1].mxu1  ;;  %v1034_v30 = vadd.f32 %v663_v19, %v466_v29 }
 0x16b   : > { %v666_v24 = vpop.f32.mrb[2].mxu0  ;;  %v712_v25 = vpop.f32.mrb[2].mxu1 }
 0x16c   : > { %v963_v26 = vmul.f32 -1.442695, %v1035_v21  ;;  %v1015_v27 = vpop.f32.mrb[3].mxu0  ;;  %v1021_v28 = vpop.f32.mrb[3].mxu1 }
 0x16e   : > { %1069 = vpow2.f32 %v963_v26 }
 0x16f   : > { %1071 = vtanh.f32 %v1034_v30 }
 0x178   : > { %v1070_v31 = vpop.eup %1069 }
 0x179   : > { %v720_v32 = vadd.f32 1.0, %v1070_v31  ;;  %v1072_v33 = vpop.eup %1071 }
 0x17b   : > { %1073 = vrcp.f32 %v720_v32 }
 0x185   : > { %v1074_v34 = vpop.eup %1073 }
 0x186   : > { %v723_v35 = vmul.f32 %v1074_v34, %v1072_v33 }
 0x188   : > { %v724_v36 = vpack.c.bf16 %v723_v35, %v723_v35 }
 0x18a   : > { %v736_v37 = vsel %vm419_vm1, %v724_v36, 0 }
 0x18b   : > { %1023 = vmatpush3.bf16.msra.mxu0 %v736_v37  ;;  %1029 = vmatpush3.bf16.msra.mxu1 %v736_v37 }
 0x18e   : > { %1025 = vmatmul.mubr.msk.bf16.vlgmr.msra.gmra.mrb[4].mxu0 %vm415_vm2, %v725_v38  ;;  %1031 = vmatmul.mubr.msk.bf16.vlgmr.msra.gmra.mrb[4].mxu1 %vm415_vm2, %v778_v39 }
 0x261   : > { %v772_v41 = vpop.f32.mrb[4].mxu0  ;;  %v822_v42 = vpop.f32.mrb[4].mxu1 }
 0x262   : > { %v773_v43 = vadd.f32 %v772_v41, %v730_v40  ;;  %v1026_v44 = vpop.f32.mrb[5].mxu0  ;;  %v1032_v45 = vpop.f32.mrb[5].mxu1 }
 0x263   : > { %v775_v46 = vpop.f32.mrb[6].mxu0  ;;  %v825_v47 = vpop.f32.mrb[6].mxu1 }
 0x264   : > { %830 = vrot.lane.b32.xlu1 %v773_v43, %s1088_s13  ;;  %v1027_v48 = vpop.f32.mrb[7].mxu0  ;;  %v1033_v49 = vpop.f32.mrb[7].mxu1 }
 0x268   : > { %782 = vperm.xlu1 %1066, %v779_v50  }
 0x2d6   : > { %v831_v52 = vpop.permute.xlu1 %830 }
 0x2d7   : > { %v833_v53 = vadd.f32 %v831_v52, %v828_v51 }
 0x2d9   : > { %v969_v54 = vpack.c.bf16 %v833_v53, %v833_v53 }
 0x2db   : > { %838 = vrot.lane.b32.xlu0 %v969_v54, %s1085_s27  ;;  %s405_s27 = scalar_lea.vmem %s1254_s10, %s948_s19 }
 0x2e7   : > { %v783_v56 = vpop.permute.xlu1 %782 }
 0x2e8   : > { %v823_v57 = vadd.f32 %v822_v42, %v783_v56 }
 0x2ea   : > { %v844_v58 = vadd.f32 %v843_v55, %v823_v57 }
 0x2ec   : > { %846 = vst.msk [vmem:[%s409_s25] sm:$0xff] %vm845_vm3, %v844_v58 }
 0x34d   : > { %v839_v59 = vpop.permute.xlu0 %838 }
 0x34e   : > { %842 = vst.msk [vmem:[%s405_s27] sm:$0xf] %vm841_vm4, %v839_v59 }
 0x34f PF: > { %s22_s17 = sadd.s32 1, %s1081_s17  }
 0x350   : > { %p19_p4 = scmp.ge.s32.totalorder %s22_s17, 4  }
 0x352   :  { %21 = sbr.rel (!%p19_p4) target bundleno = 1 (0x1), region = 109 }

// kernel: _lambda_.45
= control target key start
LH: loop header
LB: loop body
LE: loop exit
PB: predicated region body
PF: predicated region fallthrough
CT: control target
= control target key end

     0   :  { %s1432_s0 = inlined_call_operand.vmem [shape: bf16[2,8,20], index: 0, kind: input, shape index: {}]   ;;  %s1433_s1 = inlined_call_operand.vmem [shape: f32[2,8,16], index: 1, kind: input, shape index: {}]   ;;  %s1434_s2 = inlined_call_operand.vmem [shape: bf16[3,8,8], index: 2, kind: input, shape index: {}]   ;;  %s1435_s3 = inlined_call_operand.vmem [shape: f32[8,1], index: 3, kind: input, shape index: {}]   ;;  %s1436_s4 = inlined_call_operand.vmem [shape: bf16[3,8,8], index: 4, kind: input, shape index: {}]   ;;  %s1437_s5 = inlined_call_operand.vmem [shape: f32[8,1], index: 5, kind: input, shape index: {}]   ;;  %s1438_s6 = inlined_call_operand.vmem [shape: bf16[8,8], index: 6, kind: input, shape index: {}]   ;;  %s1439_s7 = inlined_call_operand.vmem [shape: f32[8,1], index: 7, kind: input, shape index: {}]   ;;  %s1440_s8 = inlined_call_operand.vmem [shape: bf16[8,8], index: 8, kind: input, shape index: {}]   ;;  %s1441_s9 = inlined_call_operand.vmem [shape: f32[8,1], index: 9, kind: input, shape index: {}]   ;;  %s1442_s10 = inlined_call_operand.hbm [shape: bf16[2,8,16], index: 10, kind: output, shape index: {0}]   ;;  %s1443_s11 = inlined_call_operand.vmem [shape: f32[2,8,16], index: 11, kind: output, shape index: {1}]  }
   0x1   :  { %1444 = sst [smem:[#allocation5_spill]] %s1432_s0 }
   0x2   :  { %1445 = sst [smem:[#allocation6_spill]] %s1434_s2 }
   0x3   :  { %1446 = sst [smem:[#allocation7_spill]] %s1435_s3 }
   0x4   :  { %17 = vsyncpa [#allocation3], 0 }
   0x5   :  { %19 = vsyncpa [#allocation3 + $0x1], 0  ;;  %s1258_s17 = smov 0   ;;  %s1260_s18 = smov 0  }
   0x6   :  { %s1262_s19 = smov 0   ;;  %s1264_s20 = smov 0  }
   0x7 LB: > { %s1279_s21 = sadd.s32 4294967295, %s1189_s20   ;;  %s963_s22 = sadd.s32 4294967294, %s1189_s20   ;;  %s1189_s20 = sphi %s1264_s20, %s1455_s20   ;;  %s1185_s19 = sphi %s1262_s19, %s1454_s19   ;;  %s1181_s18 = sphi %s1260_s18, %s1453_s18   ;;  %s1177_s17 = sphi %s1258_s17, %s1452_s17  }
   0x8   : > { %s1283_s23 = sadd.s32 1, %s1189_s20   ;;  %s252_s24 = sadd.s32 1, %s1185_s19 }
   0x9   : > { %s249_s25 = ssub.s32 %s1189_s20, %s1283_s23  ;;  %p262_p0 = scmp.ne.s32.totalorder %s1185_s19, %s1181_s18 }
   0xa   : > { %p250_p1 = scmp.eq.s32.totalorder %s249_s25, 0  ;;  %p263_p2 = scmp.eq.s32.totalorder %s1279_s21, 1 }
   0xb   : > { %p268_p3 = scmp.ne.s32.totalorder %s1181_s18, %s1177_s17  ;;  %p269_p4 = scmp.eq.s32.totalorder %s963_s22, 1 }
   0xc   : > { %s1294_s26 = scalar_select %p250_p1, %s1185_s19, %s252_s24  }
   0xd   : > { %p1296_p5 = por %p263_p2, %p262_p0  ;;  %p1300_p6 = por %p269_p4, %p268_p3 }
   0xe   : > { %p966_p7 = scmp.ge.s32.totalorder %s1189_s20, 1  ;;  %p351_p8 = scmp.lt.s32.totalorder %s1189_s20, 3 }
  0x10   : > { %p352_p9 = pnand %p966_p7, %p351_p8 }
  0x11   : > { %p398_p10 = scmp.lt.s32.totalorder (!%p352_p9), %s1279_s21, 1  ;;  %v1191_v0 = vmov (!%p352_p9), 0.0   ;;  %vm1192_vm0 = vmmov (!%p352_p9), 0   ;;  %vm419_vm1 = vcmask (!%p352_p9), 1043456   ;;  %s1449_s0 = sld [smem:[#allocation5_spill]] (!%p352_p9)  ;;  %vm415_vm2 = vcmask (!%p352_p9), 64512  }
  0x12   : > { %355 = sbr.rel (%p352_p9) target bundleno = 873 (0x369), region = 60  ;;  %1007 = vmatprep.subr.bf16.mxu0 (!%p352_p9), %v1191_v0  ;;  %1013 = vmatprep.subr.bf16.mxu1 (!%p352_p9), %v1191_v0  ;;  %s1450_s2 = sld [smem:[#allocation6_spill]] (!%p352_p9)  ;;  %v469_v5 = vld [vmem:[%s1436_s4] sm:$0xf] (!%p352_p9)  ;;  %v1195_v7 = vmov (!%p352_p9), 0   ;;  %vm845_vm3 = vcmask (!%p352_p9), 130048  }
  0x13   : > { %1009 = vmatprep.mubr.msk.bf16.mxu0 (!%p352_p9), %vm1192_vm0, %v1191_v0  ;;  %1015 = vmatprep.mubr.msk.bf16.mxu1 (!%p352_p9), %vm1192_vm0, %v1191_v0  ;;  %s1193_s25 = smov (!%p352_p9), 126   ;;  %v412_v6 = vld [vmem:[%s1437_s5] sm:$0xff] (!%p352_p9)  ;;  %s1194_s13 = smov (!%p352_p9), 124   ;;  %v980_v16 = vld [vmem:[%s1436_s4 + $0x8] sm:$0xf] (!%p352_p9)  ;;  %vm841_vm4 = vcmask (!%p352_p9), 125952  }
  0x14   : > { %1118 = vset.pattern.permute.xlu1 (!%p352_p9), %v1195_v7  ;;  %1119 = vset.pattern.permute.xlu0 (!%p352_p9), %v1195_v7  ;;  %s1451_s3 = sld [smem:[#allocation7_spill]] (!%p352_p9)  ;;  %v976_v12 = vld [vmem:[%s1436_s4 + $0x4] sm:$0xf] (!%p352_p9)  ;;  %v725_v38 = vld [vmem:[%s1438_s6] sm:$0xf] (!%p352_p9)  ;;  %s389_s16 = sand.u32 (!%p352_p9), 1, %s1181_s18  }
  0x15   : > { %515 = vperm.xlu1 (!%p352_p9), %1118, %v412_v6   ;;  %v726_v17 = vld [vmem:[%s1439_s7] sm:$0xff] (!%p352_p9) }
  0x16   : > { %v778_v39 = vld [vmem:[%s1440_s8] sm:$0xf] (!%p352_p9) }
  0x17   : > { %v779_v50 = vld [vmem:[%s1441_s9] sm:$0xff] (!%p352_p9) }
  0x18   : > { %v414_v4 = vld [vmem:[%s1450_s2] sm:$0xf] (!%p352_p9)  ;;  %v973_v11 = vld [vmem:[%s1450_s2 + $0x4] sm:$0xf] (!%p352_p9)  ;;  %v978_v15 = vld [vmem:[%s1450_s2 + $0x8] sm:$0xf] (!%p352_p9) }
  0x19   : > { %s1308_s29 = scalar_select %p398_p10, %s1279_s21, 1 }
  0x1a   : > { %v411_v8 = vld [vmem:[%s1451_s3] sm:$0xff]  ;;  %s987_s2 = sshll.u32 %s1279_s21, 6 }
  0x1b   : > { %s968_s30 = sshll.u32 %s1308_s29, 2  ;;  %465 = vperm.xlu1 %1118, %v411_v8   ;;  %s969_s22 = sshll.u32 %s1308_s29, 3 }
  0x1c   : > { %s401_s14 = scalar_lea.vmem %s1449_s0, %s968_s30  ;;  %s405_s12 = scalar_lea.vmem %s1433_s1, %s969_s22 }
  0x1d   : > { %v1316_v1 = vld [vmem:[%s401_s14] sm:$0xf]  ;;  %s1196_s14 = smov 2   ;;  %s409_s15 = scalar_lea.vmem %s1443_s11, %s969_s22 }
  0x1e   : > { %v974_v2 = vcombine.low %v1316_v1, %v1316_v1  ;;  %v421_v3 = vsel %vm419_vm1, %v1316_v1, 0  ;;  %v828_v51 = vunpack.c.l.bf16 %v1316_v1  ;;  %v843_v55 = vld [vmem:[%s405_s12] sm:$0xff]  ;;  %s967_s0 = sshll.u32 %s389_s16, 2  ;;  %s1390_s30 = scalar_lea.hbm %s1442_s10, %s987_s2 }
  0x1f   : > { %1008 = vmatpush3.bf16.msra.mxu0 %v421_v3  ;;  %1014 = vmatpush3.bf16.msra.mxu1 %v421_v3  ;;  %s848_s22 = scalar_lea.sflag [#allocation3], %s389_s16 }
  0x20   : > { %524 = vrot.lane.b32.xlu0 %v974_v2, %s1193_s25  ;;  %1019 = vmatprep.subr.bf16.mxu0 %v1191_v0 }
  0x21   : > { %1025 = vmatprep.subr.bf16.mxu1 %v1191_v0 }
  0x22   : > { %1010 = vmatmul.mubr.msk.bf16.vlgmr.msra.gmra.mrb[0].mxu0 %vm415_vm2, %v414_v4  ;;  %1016 = vmatmul.mubr.msk.bf16.vlgmr.msra.gmra.mrb[0].mxu1 %vm415_vm2, %v469_v5 }
  0x23   : > { %1021 = vmatprep.mubr.msk.bf16.mxu0 %vm1192_vm0, %v1191_v0  ;;  %1027 = vmatprep.mubr.msk.bf16.mxu1 %vm1192_vm0, %v1191_v0 }
  0x24   : > { %621 = vrot.lane.b32.xlu0 %v974_v2, %s1194_s13 }
  0x28   : > { %729 = vperm.xlu0 %1119, %v726_v17  }
  0x92   : > { %v525_v9 = vpop.permute.xlu0 %524 }
  0x93   : > { %v530_v10 = vsel %vm419_vm1, %v525_v9, 0 }
  0x94   : > { %1020 = vmatpush3.bf16.msra.mxu0 %v530_v10  ;;  %1026 = vmatpush3.bf16.msra.mxu1 %v530_v10  ;;  %v516_v18 = vpop.permute.xlu1 %515 }
  0x95   : > { %1031 = vmatprep.subr.bf16.mxu0 %v1191_v0  ;;  %1037 = vmatprep.subr.bf16.mxu1 %v1191_v0 }
  0x96   : > { %v622_v13 = vpop.permute.xlu0 %621 }
  0x97   : > { %1022 = vmatmul.mubr.msk.bf16.vlgmr.msra.gmra.mrb[0].mxu0 %vm415_vm2, %v973_v11  ;;  %1028 = vmatmul.mubr.msk.bf16.vlgmr.msra.gmra.mrb[0].mxu1 %vm415_vm2, %v976_v12  ;;  %v627_v14 = vsel %vm419_vm1, %v622_v13, 0 }
  0x98   : > { %1032 = vmatpush3.bf16.msra.mxu0 %v627_v14  ;;  %1038 = vmatpush3.bf16.msra.mxu1 %v627_v14 }
  0x99   : > { %1033 = vmatprep.mubr.msk.bf16.mxu0 %vm1192_vm0, %v1191_v0  ;;  %1039 = vmatprep.mubr.msk.bf16.mxu1 %vm1192_vm0, %v1191_v0 }
  0x9a   : > { %1043 = vmatprep.subr.bf16.mxu0 %v1191_v0  ;;  %1049 = vmatprep.subr.bf16.mxu1 %v1191_v0  ;;  %v466_v29 = vpop.permute.xlu1 %465 }
  0xa3   : > { %1034 = vmatmul.mubr.msk.bf16.vlgmr.msra.gmra.mrb[0].mxu0 %vm415_vm2, %v978_v15  ;;  %1040 = vmatmul.mubr.msk.bf16.vlgmr.msra.gmra.mrb[0].mxu1 %vm415_vm2, %v980_v16 }
  0xa4   : > { %1045 = vmatprep.mubr.msk.bf16.mxu0 %vm1192_vm0, %v1191_v0  ;;  %1051 = vmatprep.mubr.msk.bf16.mxu1 %vm1192_vm0, %v1191_v0 }
  0xa7   : > { %v730_v40 = vpop.permute.xlu0 %729 }
 0x176   : > { %v663_v19 = vpop.f32.mrb[0].mxu0  ;;  %v709_v20 = vpop.f32.mrb[0].mxu1 }
 0x177   : > { %v1056_v21 = vadd.f32 %v709_v20, %v516_v18  ;;  %v1035_v22 = vpop.f32.mrb[1].mxu0  ;;  %v1041_v23 = vpop.f32.mrb[1].mxu1  ;;  %v1055_v30 = vadd.f32 %v663_v19, %v466_v29 }
 0x178   : > { %v666_v24 = vpop.f32.mrb[2].mxu0  ;;  %v712_v25 = vpop.f32.mrb[2].mxu1 }
 0x179   : > { %v982_v26 = vmul.f32 -1.442695, %v1056_v21  ;;  %v1036_v27 = vpop.f32.mrb[3].mxu0  ;;  %v1042_v28 = vpop.f32.mrb[3].mxu1 }
 0x17b   : > { %1121 = vpow2.f32 %v982_v26 }
 0x17c   : > { %1123 = vtanh.f32 %v1055_v30 }
 0x185   : > { %v1122_v31 = vpop.eup %1121 }
 0x186   : > { %v720_v32 = vadd.f32 1.0, %v1122_v31  ;;  %v1124_v33 = vpop.eup %1123 }
 0x188   : > { %1125 = vrcp.f32 %v720_v32 }
 0x192   : > { %v1126_v34 = vpop.eup %1125 }
 0x193   : > { %v723_v35 = vmul.f32 %v1126_v34, %v1124_v33 }
 0x195   : > { %v724_v36 = vpack.c.bf16 %v723_v35, %v723_v35 }
 0x197   : > { %v736_v37 = vsel %vm419_vm1, %v724_v36, 0 }
 0x198   : > { %1044 = vmatpush3.bf16.msra.mxu0 %v736_v37  ;;  %1050 = vmatpush3.bf16.msra.mxu1 %v736_v37 }
 0x19b   : > { %1046 = vmatmul.mubr.msk.bf16.vlgmr.msra.gmra.mrb[4].mxu0 %vm415_vm2, %v725_v38  ;;  %1052 = vmatmul.mubr.msk.bf16.vlgmr.msra.gmra.mrb[4].mxu1 %vm415_vm2, %v778_v39 }
 0x26e   : > { %v772_v41 = vpop.f32.mrb[4].mxu0  ;;  %v822_v42 = vpop.f32.mrb[4].mxu1 }
 0x26f   : > { %v773_v43 = vadd.f32 %v772_v41, %v730_v40  ;;  %v1047_v44 = vpop.f32.mrb[5].mxu0  ;;  %v1053_v45 = vpop.f32.mrb[5].mxu1 }
 0x270   : > { %v775_v46 = vpop.f32.mrb[6].mxu0  ;;  %v825_v47 = vpop.f32.mrb[6].mxu1 }
 0x271   : > { %830 = vrot.lane.b32.xlu1 %v773_v43, %s1196_s14  ;;  %v1048_v48 = vpop.f32.mrb[7].mxu0  ;;  %v1054_v49 = vpop.f32.mrb[7].mxu1 }
 0x275   : > { %782 = vperm.xlu1 %1118, %v779_v50  }
 0x2e3   : > { %v831_v52 = vpop.permute.xlu1 %830 }
 0x2e4   : > { %v833_v53 = vadd.f32 %v831_v52, %v828_v51 }
 0x2e6   : > { %v990_v54 = vpack.c.bf16 %v833_v53, %v833_v53 }
 0x2e8   : > { %838 = vrot.lane.b32.xlu0 %v990_v54, %s1193_s25  ;;  %s391_s25 = scalar_lea.vmem [#allocation2], %s967_s0  ;;  %s1197_s0 = smov [#allocation2]  }
 0x2e9   : > { %s865_s29 = sshll.u32 %s391_s25, 4  ;;  %s1131_s21 = sshll.u32 %s1197_s0, 4  ;;  %s1392_s29 = int_to_ptr.vmem [resolvable:$true] %s865_s29  ;;  %s1132_s21 = int_to_ptr.vmem [resolvable:$false] %s1131_s21 }
 0x2ea   : > { %s1127_s12 = scalar_lea.vmem %s1392_s29, 64  ;;  %s1133_s13 = scalar_lea.vmem %s1132_s21, 128 }
 0x2eb   : > { %p1128_p11 = scmp.ne.s32.totalorder %s1392_s29, %s1127_s12  ;;  %p1134_p0 = scmp.lt.s32.totalorder %s1392_s29, %s1132_s21 }
 0x2ec   : > { %p1135_p1 = scmp.lt.s32.totalorder %s1133_s13, %s1127_s12 }
 0x2ed   : > { %p1129_p12 = pnand %p1128_p11, %p1296_p5 }
 0x2ee   : > { %p1136_p2 = por %p1135_p1, %p1134_p0 }
 0x2ef   : > { %p1130_p13 = pneg %p1129_p12 }
 0x2f1   : > { %p1137_p3 = pnand %p1136_p2, %p1130_p13 }
 0x2f4   : > { %v783_v56 = vpop.permute.xlu1 %782 }
 0x2f5   : > { %v823_v57 = vadd.f32 %v822_v42, %v783_v56 }
 0x2f7   : > { %v844_v58 = vadd.f32 %v843_v55, %v823_v57 }
 0x2f9   : > { %846 = vst.msk [vmem:[%s409_s15] sm:$0xff] %vm845_vm3, %v844_v58 }
 0x35a   : > { %v839_v59 = vpop.permute.xlu0 %838 }
 0x35b   : > { %842 = vst.msk [vmem:[%s391_s25] sm:$0xf] %vm841_vm4, %v839_v59 }
 0x35c   : > { %1140 = shalt.err (!%p1137_p3)
}
 0x35d   : > { %s1141_s2 = scalar_lea.hbm %s1390_s30, 64  ;;  %s1145_s15 = scalar_lea.hbm %s1442_s10, 128 }
 0x35e   : > { %p1142_p4 = scmp.ne.s32.totalorder %s1390_s30, %s1141_s2  ;;  %p1146_p9 = scmp.lt.u32.totalorder %s1390_s30, %s1442_s10 }
 0x35f   : > { %p1147_p10 = scmp.lt.u32.totalorder %s1145_s15, %s1141_s2  ;;  %p1149_p12 = scmp.lt.u32.totalorder %s1141_s2, %s1390_s30 }
 0x360   : > { %p1143_p7 = pnand %p1142_p4, %p1296_p5 }
 0x361   : > { %p1148_p11 = por %p1147_p10, %p1146_p9 }
 0x362   : > { %p1144_p8 = pneg %p1143_p7 }
 0x363   : > { %p1150_p13 = por %p1149_p12, %p1148_p11 }
 0x365   : > { %p1151_p0 = pnand %p1150_p13, %p1144_p8 }
 0x367   : > { %1154 = shalt.err (!%p1151_p0)
}
 0x368   : > { %1073 = dma.vmem_to_hbm [thread:$0]  (%p1296_p5), %s1392_s29, 64, %s1390_s30, %s848_s22  }
 0x369 PF: > { %p1079_p1 = scmp.ge.s32.totalorder %s1189_s20, 2  ;;  %s880_s24 = sand.u32 1, %s1177_s17  }
 0x36a   : > { %s881_s12 = scalar_lea.sflag [#allocation3], %s880_s24 }
 0x36b   : > { %p1076_p2 = pnand %p1079_p1, %p1300_p6 }
 0x36d   : > { %1172 = dma.done.wait (!%p1076_p2), %s881_s12, 64  }
 0x36e   : > { %1174 = vsyncadd (!%p1076_p2), %s881_s12, 4294967232  ;;  %p22_p3 = scmp.ge.s32.totalorder %s1283_s23, 4   ;;  %s1452_s17 = smov %s1181_s18 }
 0x36f   : > { %s1453_s18 = smov %s1185_s19  ;;  %s1454_s19 = smov %s1294_s26 }
 0x370   : > { %s1455_s20 = smov %s1283_s23  ;;  %24 = sbr.rel (!%p22_p3) target bundleno = 7 (0x7), region = 114 }
 0x377   :  { %893 = vsyncpa [#allocation3], 1 }
 0x378   :  { %895 = vsyncpa [#allocation3 + $0x1], 1 }

// kernel: _lambda_.47
= control target key start
LH: loop header
LB: loop body
LE: loop exit
PB: predicated region body
PF: predicated region fallthrough
CT: control target
= control target key end

     0   :  { %s1282_s12 = smov 0   ;;  %s1426_s0 = inlined_call_operand.vmem [shape: bf16[2,8,30], index: 0, kind: input, shape index: {}]   ;;  %s1427_s1 = inlined_call_operand.vmem [shape: bf16[15,4,8], index: 1, kind: input, shape index: {}]   ;;  %s1428_s2 = inlined_call_operand.vmem [shape: f32[4,1], index: 2, kind: input, shape index: {}]   ;;  %s1429_s3 = inlined_call_operand.vmem [shape: bf16[2,4,16], index: 3, kind: output, shape index: {}]  }
   0x1 LB: > { %s997_s13 = sadd.s32 4294967295, %s1243_s12   ;;  %p1001_p0 = scmp.ge.s32.totalorder %s1243_s12, 1  ;;  %s1243_s12 = sphi %s1282_s12, %s13_s12  }
   0x2   : > { %p136_p1 = scmp.lt.s32.totalorder %s1243_s12, 3 }
   0x4   : > { %p137_p2 = pnand %p1001_p0, %p136_p1 }
   0x5   : > { %p158_p3 = scmp.lt.s32.totalorder (!%p137_p2), %s997_s13, 1  ;;  %v1245_v0 = vmov (!%p137_p2), 0.0   ;;  %vm1246_vm0 = vmmov (!%p137_p2), 0   ;;  %vm174_vm1 = vcmask (!%p137_p2), 1043456   ;;  %v169_v4 = vld [vmem:[%s1427_s1] sm:$0x3] (!%p137_p2) }
   0x6   : > { %140 = sbr.rel (%p137_p2) target bundleno = 439 (0x1b7), region = 32  ;;  %1066 = vmatprep.subr.bf16.mxu1 (!%p137_p2), %v1245_v0  ;;  %1068 = vmatprep.mubr.msk.bf16.mxu1 (!%p137_p2), %vm1246_vm0, %v1245_v0  ;;  %vm170_vm2 = vcmask (!%p137_p2), 64512   ;;  %s1247_s20 = smov (!%p137_p2), 127   ;;  %v167_v5 = vld [vmem:[%s1428_s2] sm:$0xf] (!%p137_p2)  ;;  %v1261_v6 = vmov (!%p137_p2), 0  }
   0x7   : > { %1108 = vmatprep.subr.bf16.mxu0 (!%p137_p2), %v1245_v0  ;;  %1110 = vmatprep.mubr.msk.bf16.mxu0 (!%p137_p2), %vm1246_vm0, %v1245_v0  ;;  %s1248_s21 = smov (!%p137_p2), 121   ;;  %s1249_s22 = smov (!%p137_p2), 120   ;;  %v1005_v11 = vld [vmem:[%s1427_s1 + $0x2] sm:$0x3] (!%p137_p2)  ;;  %v1018_v12 = vld [vmem:[%s1427_s1 + $0xe] sm:$0x3] (!%p137_p2) }
   0x8   : > { %s1250_s23 = smov (!%p137_p2), 119   ;;  %s1251_s24 = smov (!%p137_p2), 126   ;;  %1235 = vset.pattern.permute.xlu0 (!%p137_p2), %v1261_v6  ;;  %v1008_v19 = vld [vmem:[%s1427_s1 + $0x4] sm:$0x3] (!%p137_p2)  ;;  %v1020_v20 = vld [vmem:[%s1427_s1 + $0x10] sm:$0x3] (!%p137_p2) }
   0x9   : > { %s1252_s25 = smov (!%p137_p2), 118   ;;  %s1253_s26 = smov (!%p137_p2), 125   ;;  %v1010_v25 = vld [vmem:[%s1427_s1 + $0x6] sm:$0x3] (!%p137_p2)  ;;  %v1022_v26 = vld [vmem:[%s1427_s1 + $0x12] sm:$0x3] (!%p137_p2) }
   0xa   : > { %s1254_s27 = smov (!%p137_p2), 117   ;;  %s1255_s28 = smov (!%p137_p2), 124   ;;  %v1012_v31 = vld [vmem:[%s1427_s1 + $0x8] sm:$0x3] (!%p137_p2)  ;;  %v1024_v32 = vld [vmem:[%s1427_s1 + $0x14] sm:$0x3] (!%p137_p2) }
   0xb   : > { %s1256_s29 = smov (!%p137_p2), 116   ;;  %s1257_s30 = smov (!%p137_p2), 123   ;;  %v1014_v37 = vld [vmem:[%s1427_s1 + $0xa] sm:$0x3] (!%p137_p2)  ;;  %v1026_v38 = vld [vmem:[%s1427_s1 + $0x16] sm:$0x3] (!%p137_p2) }
   0xc   : > { %s1258_s4 = smov (!%p137_p2), 115   ;;  %s1259_s5 = smov (!%p137_p2), 122   ;;  %v1016_v42 = vld [vmem:[%s1427_s1 + $0xc] sm:$0x3] (!%p137_p2)  ;;  %v1028_v43 = vld [vmem:[%s1427_s1 + $0x18] sm:$0x3] (!%p137_p2) }
   0xd   : > { %s1431_s13 = smov (!%p158_p3, %s997_s13), 1  ;;  %s1260_s6 = smov 114   ;;  %v1030_v46 = vld [vmem:[%s1427_s1 + $0x1a] sm:$0x3]  ;;  %v1032_v48 = vld [vmem:[%s1427_s1 + $0x1c] sm:$0x3] }
   0xe   : > { %s1002_s14 = sshll.u32 %s1431_s13, 2  ;;  %vm942_vm3 = vcmask 123904  }
   0xf   : > { %s161_s17 = scalar_lea.vmem %s1426_s0, %s1002_s14  ;;  %s1003_s14 = sshll.u32 %s1431_s13, 1 }
  0x10   : > { %v168_v1 = vld [vmem:[%s161_s17] sm:$0xf]  ;;  %s165_s17 = scalar_lea.vmem %s1429_s3, %s1003_s14 }
  0x11   : > { %v1006_v2 = vcombine.low %v168_v1, %v168_v1  ;;  %v176_v3 = vsel %vm174_vm1, %v168_v1, 0 }
  0x12   : > { %1067 = vmatpush3.bf16.msra.mxu1 %v176_v3 }
  0x13   : > { %229 = vrot.lane.b32.xlu1 %v1006_v2, %s1247_s20  ;;  %535 = vrot.lane.b32.xlu0 %v1006_v2, %s1248_s21 }
  0x14   : > { %1072 = vmatprep.subr.bf16.mxu1 %v1245_v0 }
  0x15   : > { %1069 = vmatmul.mubr.msk.bf16.vlgmr.msra.gmra.mrb[0].mxu1 %vm170_vm2, %v169_v4 }
  0x16   : > { %1074 = vmatprep.mubr.msk.bf16.mxu1 %vm1246_vm0, %v1245_v0 }
  0x17   : > { %586 = vrot.lane.b32.xlu0 %v1006_v2, %s1249_s22  ;;  %637 = vrot.lane.b32.xlu1 %v1006_v2, %s1250_s23 }
  0x1b   : > { %280 = vrot.lane.b32.xlu0 %v1006_v2, %s1251_s24  ;;  %688 = vrot.lane.b32.xlu1 %v1006_v2, %s1252_s25 }
  0x1f   : > { %331 = vrot.lane.b32.xlu0 %v1006_v2, %s1253_s26  ;;  %739 = vrot.lane.b32.xlu1 %v1006_v2, %s1254_s27 }
  0x23   : > { %382 = vrot.lane.b32.xlu0 %v1006_v2, %s1255_s28  ;;  %790 = vrot.lane.b32.xlu1 %v1006_v2, %s1256_s29 }
  0x27   : > { %433 = vrot.lane.b32.xlu0 %v1006_v2, %s1257_s30  ;;  %841 = vrot.lane.b32.xlu1 %v1006_v2, %s1258_s4 }
  0x2b   : > { %484 = vrot.lane.b32.xlu0 %v1006_v2, %s1259_s5  ;;  %892 = vrot.lane.b32.xlu1 %v1006_v2, %s1260_s6 }
  0x2f   : > { %220 = vperm.xlu0 %1235, %v167_v5  }
  0x85   : > { %v230_v7 = vpop.permute.xlu1 %229  ;;  %v536_v8 = vpop.permute.xlu0 %535 }
  0x86   : > { %v235_v9 = vsel %vm174_vm1, %v230_v7, 0  ;;  %v541_v10 = vsel %vm174_vm1, %v536_v8, 0 }
  0x87   : > { %1073 = vmatpush3.bf16.msra.mxu1 %v235_v9  ;;  %1109 = vmatpush3.bf16.msra.mxu0 %v541_v10 }
  0x88   : > { %1114 = vmatprep.subr.bf16.mxu0 %v1245_v0  ;;  %1078 = vmatprep.subr.bf16.mxu1 %v1245_v0 }
  0x89   : > { %v587_v13 = vpop.permute.xlu0 %586  ;;  %v638_v17 = vpop.permute.xlu1 %637 }
  0x8a   : > { %v592_v14 = vsel %vm174_vm1, %v587_v13, 0  ;;  %1075 = vmatmul.mubr.msk.bf16.vlgmr.msra.gmra.mrb[0].mxu1 %vm170_vm2, %v1005_v11  ;;  %1111 = vmatmul.mubr.msk.bf16.vlgmr.msra.gmra.mrb[0].mxu0 %vm170_vm2, %v1018_v12  ;;  %v643_v21 = vsel %vm174_vm1, %v638_v17, 0 }
  0x8b   : > { %1115 = vmatpush3.bf16.msra.mxu0 %v592_v14  ;;  %1080 = vmatprep.mubr.msk.bf16.mxu1 %vm1246_vm0, %v1245_v0 }
  0x8c   : > { %1116 = vmatprep.mubr.msk.bf16.mxu0 %vm1246_vm0, %v1245_v0  ;;  %1120 = vmatprep.subr.bf16.mxu0 %v1245_v0 }
  0x8d   : > { %v281_v15 = vpop.permute.xlu0 %280  ;;  %v689_v23 = vpop.permute.xlu1 %688 }
  0x8e   : > { %v286_v16 = vsel %vm174_vm1, %v281_v15, 0  ;;  %v694_v27 = vsel %vm174_vm1, %v689_v23, 0 }
  0x8f   : > { %1079 = vmatpush3.bf16.msra.mxu1 %v286_v16 }
  0x90   : > { %1084 = vmatprep.subr.bf16.mxu1 %v1245_v0 }
  0x91   : > { %v332_v18 = vpop.permute.xlu0 %331  ;;  %v740_v29 = vpop.permute.xlu1 %739 }
  0x92   : > { %v337_v22 = vsel %vm174_vm1, %v332_v18, 0  ;;  %v745_v33 = vsel %vm174_vm1, %v740_v29, 0 }
  0x95   : > { %v383_v24 = vpop.permute.xlu0 %382  ;;  %v791_v35 = vpop.permute.xlu1 %790 }
  0x96   : > { %1081 = vmatmul.mubr.msk.bf16.vlgmr.msra.gmra.mrb[0].mxu1 %vm170_vm2, %v1008_v19  ;;  %1117 = vmatmul.mubr.msk.bf16.vlgmr.msra.gmra.mrb[0].mxu0 %vm170_vm2, %v1020_v20  ;;  %v388_v28 = vsel %vm174_vm1, %v383_v24, 0  ;;  %v796_v39 = vsel %vm174_vm1, %v791_v35, 0 }
  0x97   : > { %1121 = vmatpush3.bf16.msra.mxu0 %v643_v21  ;;  %1085 = vmatpush3.bf16.msra.mxu1 %v337_v22 }
  0x98   : > { %1086 = vmatprep.mubr.msk.bf16.mxu1 %vm1246_vm0, %v1245_v0  ;;  %1122 = vmatprep.mubr.msk.bf16.mxu0 %vm1246_vm0, %v1245_v0 }
  0x99   : > { %1126 = vmatprep.subr.bf16.mxu0 %v1245_v0  ;;  %1090 = vmatprep.subr.bf16.mxu1 %v1245_v0  ;;  %v434_v30 = vpop.permute.xlu0 %433  ;;  %v842_v41 = vpop.permute.xlu1 %841 }
  0x9a   : > { %v439_v34 = vsel %vm174_vm1, %v434_v30, 0  ;;  %v847_v44 = vsel %vm174_vm1, %v842_v41, 0 }
  0x9d   : > { %v485_v36 = vpop.permute.xlu0 %484  ;;  %v893_v45 = vpop.permute.xlu1 %892 }
  0x9e   : > { %v490_v40 = vsel %vm174_vm1, %v485_v36, 0  ;;  %v898_v47 = vsel %vm174_vm1, %v893_v45, 0 }
  0xa2   : > { %1087 = vmatmul.mubr.msk.bf16.vlgmr.msra.gmra.mrb[0].mxu1 %vm170_vm2, %v1010_v25  ;;  %1123 = vmatmul.mubr.msk.bf16.vlgmr.msra.gmra.mrb[0].mxu0 %vm170_vm2, %v1022_v26 }
  0xa3   : > { %1127 = vmatpush3.bf16.msra.mxu0 %v694_v27  ;;  %1091 = vmatpush3.bf16.msra.mxu1 %v388_v28 }
  0xa4   : > { %1092 = vmatprep.mubr.msk.bf16.mxu1 %vm1246_vm0, %v1245_v0  ;;  %1128 = vmatprep.mubr.msk.bf16.mxu0 %vm1246_vm0, %v1245_v0 }
  0xa5   : > { %1132 = vmatprep.subr.bf16.mxu0 %v1245_v0  ;;  %1096 = vmatprep.subr.bf16.mxu1 %v1245_v0 }
  0xae   : > { %1093 = vmatmul.mubr.msk.bf16.vlgmr.msra.gmra.mrb[0].mxu1 %vm170_vm2, %v1012_v31  ;;  %1129 = vmatmul.mubr.msk.bf16.vlgmr.msra.gmra.mrb[0].mxu0 %vm170_vm2, %v1024_v32  ;;  %v221_v53 = vpop.permute.xlu0 %220 }
  0xaf   : > { %1133 = vmatpush3.bf16.msra.mxu0 %v745_v33  ;;  %1097 = vmatpush3.bf16.msra.mxu1 %v439_v34 }
  0xb0   : > { %1098 = vmatprep.mubr.msk.bf16.mxu1 %vm1246_vm0, %v1245_v0  ;;  %1134 = vmatprep.mubr.msk.bf16.mxu0 %vm1246_vm0, %v1245_v0 }
  0xb1   : > { %1138 = vmatprep.subr.bf16.mxu0 %v1245_v0  ;;  %1102 = vmatprep.subr.bf16.mxu1 %v1245_v0 }
  0xba   : > { %1099 = vmatmul.mubr.msk.bf16.vlgmr.msra.gmra.mrb[0].mxu1 %vm170_vm2, %v1014_v37  ;;  %1135 = vmatmul.mubr.msk.bf16.vlgmr.msra.gmra.mrb[0].mxu0 %vm170_vm2, %v1026_v38 }
  0xbb   : > { %1139 = vmatpush3.bf16.msra.mxu0 %v796_v39  ;;  %1103 = vmatpush3.bf16.msra.mxu1 %v490_v40 }
  0xbc   : > { %1104 = vmatprep.mubr.msk.bf16.mxu1 %vm1246_vm0, %v1245_v0  ;;  %1140 = vmatprep.mubr.msk.bf16.mxu0 %vm1246_vm0, %v1245_v0 }
  0xbd   : > { %1144 = vmatprep.subr.bf16.mxu0 %v1245_v0 }
  0xc6   : > { %1105 = vmatmul.mubr.msk.bf16.vlgmr.msra.gmra.mrb[0].mxu1 %vm170_vm2, %v1016_v42  ;;  %1141 = vmatmul.mubr.msk.bf16.vlgmr.msra.gmra.mrb[0].mxu0 %vm170_vm2, %v1028_v43 }
  0xc7   : > { %1145 = vmatpush3.bf16.msra.mxu0 %v847_v44  ;;  %1146 = vmatprep.mubr.msk.bf16.mxu0 %vm1246_vm0, %v1245_v0 }
  0xc8   : > { %1150 = vmatprep.subr.bf16.mxu0 %v1245_v0 }
  0xd2   : > { %1147 = vmatmul.mubr.msk.bf16.vlgmr.msra.gmra.mrb[0].mxu0 %vm170_vm2, %v1030_v46 }
  0xd3   : > { %1151 = vmatpush3.bf16.msra.mxu0 %v898_v47  ;;  %1152 = vmatprep.mubr.msk.bf16.mxu0 %vm1246_vm0, %v1245_v0 }
  0xde   : > { %1153 = vmatmul.mubr.msk.bf16.vlgmr.msra.gmra.mrb[0].mxu0 %vm170_vm2, %v1032_v48 }
 0x199   : > { %v526_v49 = vpop.f32.mrb[0].mxu1 }
 0x19a   : > { %v1106_v50 = vpop.f32.mrb[1].mxu1  ;;  %v1156_v54 = vadd.f32 %v526_v49, %v221_v53 }
 0x19b   : > { %v529_v51 = vpop.f32.mrb[2].mxu1 }
 0x19c   : > { %v1107_v52 = vpop.f32.mrb[3].mxu1 }
 0x1b1   : > { %v934_v55 = vpop.f32.mrb[0].mxu0 }
 0x1b2   : > { %v1157_v56 = vadd.f32 %v1156_v54, %v934_v55  ;;  %v1154_v57 = vpop.f32.mrb[1].mxu0 }
 0x1b3   : > { %v937_v58 = vpop.f32.mrb[2].mxu0 }
 0x1b4   : > { %v941_v59 = vpack.c.bf16 %v1157_v56, %v1157_v56  ;;  %v1155_v60 = vpop.f32.mrb[3].mxu0 }
 0x1b6   : > { %943 = vst.msk [vmem:[%s165_s17] sm:$0x3] %vm942_vm3, %v941_v59 }
 0x1b7 PF: > { %s13_s12 = sadd.s32 1, %s1243_s12  }
 0x1b8   : > { %p10_p4 = scmp.ge.s32.totalorder %s13_s12, 4  }
 0x1ba   :  { %12 = sbr.rel (!%p10_p4) target bundleno = 1 (0x1), region = 76 }

</bundles_post_ra>
